<compile_context>
chip_gen: v7x
topology: tpu7x:2x2x1
jax: 0.10.0
libtpu: 0.0.40
codegen_flags: <defaults>
</compile_context>

<pallas_src>
import jax
import jax.numpy as jnp
from jax.experimental import pallas as pl
from jax.experimental.pallas import tpu as pltpu


# ---------------------------------------------------------------------------
# Pallas kernels
# ---------------------------------------------------------------------------
def _conv_relu_maxpool_kernel(cols_ref, w_ref, b_ref, o_ref):
    # cols_ref: (4*M, 9*Cin) im2col rows, block d = dh*2+dw holds the rows for
    #           conv-output pixels (2*ho+dh, 2*wo+dw); rows within a block are
    #           ordered (n, ho, wo).
    # w_ref   : (9*Cin, Cout)    b_ref: (1, Cout)    o_ref: (M, Cout)
    m = o_ref.shape[0]
    y = jnp.dot(cols_ref[...], w_ref[...], preferred_element_type=jnp.float32)
    y = jnp.maximum(y + b_ref[...], 0.0)                 # conv + bias + ReLU
    # fused 2x2 / stride-2 maxpool: elementwise max of the 4 window slots.
    p = jnp.maximum(jnp.maximum(y[0 * m:1 * m], y[1 * m:2 * m]),
                    jnp.maximum(y[2 * m:3 * m], y[3 * m:4 * m]))
    o_ref[...] = p.astype(o_ref.dtype)


def _conv_relu_avgpool_kernel(cols_ref, w_ref, b_ref, o_ref):
    # cols_ref: (4*MP, 9*Cin); block d = di*2+dj (MP rows, first M valid) holds
    #           im2col rows for conv-output pixels (i+di, j+dj), i,j in 0..6,
    #           rows ordered (n, i, j). MP is M rounded up to a multiple of 8.
    # o_ref   : (M, Cout) — AdaptiveAvgPool2d((7,7)) of relu(conv) on 8x8 maps.
    m = o_ref.shape[0]
    mp = cols_ref.shape[0] // 4
    y = jnp.dot(cols_ref[...], w_ref[...], preferred_element_type=jnp.float32)
    y = jnp.maximum(y + b_ref[...], 0.0)                 # conv + bias + ReLU
    s = (y[0 * mp:0 * mp + m] + y[1 * mp:1 * mp + m] +
         y[2 * mp:2 * mp + m] + y[3 * mp:3 * mp + m])
    o_ref[...] = (s * 0.25).astype(o_ref.dtype)


def _head_kernel(x_ref, fc1u1_w_ref, fc1u1_b_ref,
                 fc2_w_ref, fc2_b_ref, fc3_w_ref, fc3_b_ref,
                 u2_w_ref, u2_b_ref, u3_w_ref, u3_b_ref,
                 u4_w_ref, u4_b_ref, pred_ref, unc_ref):
    # Entire classifier + uncertainty head in one kernel; all weights are
    # VMEM-resident, intermediates stay in values (never touch HBM).
    x = x_ref[...]                                       # (N, FEAT) HWC order
    hu = jnp.dot(x, fc1u1_w_ref[...], preferred_element_type=jnp.float32)
    hu = jnp.maximum(hu + fc1u1_b_ref[...], 0.0)         # fused fc1 | u1
    h_dim = fc2_w_ref.shape[0]
    h = hu[:, :h_dim]
    u = hu[:, h_dim:]
    # classifier: Linear->ReLU->Dropout(=id)->Linear->ReLU->Dropout(=id)->Linear
    h = jnp.maximum(jnp.dot(h, fc2_w_ref[...],
                            preferred_element_type=jnp.float32) + fc2_b_ref[...], 0.0)
    pred = jnp.dot(h, fc3_w_ref[...],
                   preferred_element_type=jnp.float32) + fc3_b_ref[...]
    # uncertainty head
    u = jnp.maximum(jnp.dot(u, u2_w_ref[...],
                            preferred_element_type=jnp.float32) + u2_b_ref[...], 0.0)
    u = jnp.maximum(jnp.dot(u, u3_w_ref[...],
                            preferred_element_type=jnp.float32) + u3_b_ref[...], 0.0)
    unc = jnp.dot(u, u4_w_ref[...],
                  preferred_element_type=jnp.float32) + u4_b_ref[...]
    pred_ref[...] = pred.astype(pred_ref.dtype)
    unc_ref[...] = unc.astype(unc_ref.dtype)


# ---------------------------------------------------------------------------
# Glue wrappers (layout only; tiny tensors, fused by XLA under jit)
# ---------------------------------------------------------------------------
def _im2col_3x3(x_nhwc):
    """(N,H,W,Cin) -> (N,H,W,9*Cin) for a 3x3 conv with padding=1."""
    n, h, w, _ = x_nhwc.shape
    xp = jnp.pad(x_nhwc, ((0, 0), (1, 1), (1, 1), (0, 0)))
    return jnp.concatenate(
        [xp[:, kh:kh + h, kw:kw + w, :] for kh in range(3) for kw in range(3)],
        axis=-1)


def conv3x3_relu_maxpool(x, w9c, b2):
    """conv3x3(pad=1) + ReLU + maxpool2x2/2, batch-fused, one matmul."""
    n, h, w, cin = x.shape
    cout = w9c.shape[1]
    ho, wo = h // 2, w // 2
    cols = _im2col_3x3(x)                                       # (N,H,W,9Cin)
    m = n * ho * wo
    blocks = [cols[:, dh::2, dw::2, :].reshape(m, 9 * cin)
              for dh in range(2) for dw in range(2)]
    cols_m = jnp.concatenate(blocks, axis=0)                    # (4M, 9Cin)
    out = pl.pallas_call(
        _conv_relu_maxpool_kernel,
        out_shape=jax.ShapeDtypeStruct((m, cout), x.dtype),
    )(cols_m, w9c, b2)
    return out.reshape(n, ho, wo, cout)


def conv3x3_relu_avgpool7(x, w9c, b2):
    """conv3x3(pad=1) + ReLU + AdaptiveAvgPool2d((7,7)) on 8x8 maps.
    Returns (N*49, Cout) with rows ordered (n, i, j) — i.e. HWC flatten-ready."""
    n, h, w, cin = x.shape
    assert h == 8 and w == 8, "synthetic config: adaptive pool specialized to 8->7"
    cout = w9c.shape[1]
    ph = pw = 7
    cols = _im2col_3x3(x)                                       # (N,8,8,9Cin)
    m = n * ph * pw                                             # 98
    mp = ((m + 7) // 8) * 8                                     # 104 (8-aligned)
    blocks = []
    for di in range(2):
        for dj in range(2):
            blk = cols[:, di:di + ph, dj:dj + pw, :].reshape(m, 9 * cin)
            blocks.append(jnp.pad(blk, ((0, mp - m), (0, 0))))
    cols_m = jnp.concatenate(blocks, axis=0)                    # (4*MP, 9Cin)
    return pl.pallas_call(
        _conv_relu_avgpool_kernel,
        out_shape=jax.ShapeDtypeStruct((m, cout), x.dtype),
    )(cols_m, w9c, b2)


def fused_head(feat, kp):
    """classifier + uncertainty head in a single pallas_call."""
    n = feat.shape[0]
    num_classes = kp["fc3_b"].shape[-1]
    return pl.pallas_call(
        _head_kernel,
        out_shape=(jax.ShapeDtypeStruct((n, num_classes), feat.dtype),
                   jax.ShapeDtypeStruct((n, 1), feat.dtype)),
        compiler_params=pltpu.CompilerParams(
            vmem_limit_bytes=48 * 1024 * 1024),
    )(feat, kp["fc1u1_w"], kp["fc1u1_b"],
      kp["fc2_w"], kp["fc2_b"], kp["fc3_w"], kp["fc3_b"],
      kp["u2_w"], kp["u2_b"], kp["u3_w"], kp["u3_b"],
      kp["u4_w"], kp["u4_b"])


# ---------------------------------------------------------------------------
# Parameter repacking (one-time, outside the forward)
# ---------------------------------------------------------------------------
def prepare_params(p):
    """Repack PyTorch-convention params into kernel layouts:
    - 3x3 taps folded into the contraction dim of conv weights,
    - fc1/u1 rows permuted CHW->HWC (so no transpose before flatten) and fused,
    - biases as (1, F)."""
    c_in = p["conv1_w"].shape[2]
    c1 = p["conv1_w"].shape[3]
    c2_in = p["conv2_w"].shape[2]
    c_feat = p["conv2_w"].shape[3]
    kp = {
        "conv1_w": p["conv1_w"].reshape(9 * c_in, c1),
        "conv1_b": p["conv1_b"].reshape(1, c1),
        "conv2_w": p["conv2_w"].reshape(9 * c2_in, c_feat),
        "conv2_b": p["conv2_b"].reshape(1, c_feat),
    }
    # torch.flatten on NCHW is channel-major (c*49 + i*7 + j); our feature slab
    # is HWC (i*7*C + j*C + c). Permute the weight rows once to compensate.
    hh = ww = 7
    f = jnp.arange(hh * ww * c_feat)
    i, j, c = f // (ww * c_feat), (f // c_feat) % ww, f % c_feat
    perm = c * (hh * ww) + i * ww + j
    kp["fc1u1_w"] = jnp.concatenate([p["fc1_w"][perm], p["u1_w"][perm]], axis=1)
    kp["fc1u1_b"] = jnp.concatenate([p["fc1_b"], p["u1_b"]]).reshape(1, -1)
    for name in ("fc2", "fc3", "u2", "u3", "u4"):
        kp[name + "_w"] = p[name + "_w"]
        kp[name + "_b"] = p[name + "_b"].reshape(1, -1)
    return kp


# ---------------------------------------------------------------------------
# VGG forward (3 pallas_call launches total)
# ---------------------------------------------------------------------------
@jax.jit
def vgg_forward(x_nchw, kp):
    x = jnp.transpose(x_nchw, (0, 2, 3, 1))                       # NCHW->NHWC
    x = conv3x3_relu_maxpool(x, kp["conv1_w"], kp["conv1_b"])     # (N,8,8,32)
    feat = conv3x3_relu_avgpool7(x, kp["conv2_w"], kp["conv2_b"])  # (N*49,64)
    n = x.shape[0]
    feat = feat.reshape(n, -1)                                    # (N,3136) HWC
    pred, uncertainty = fused_head(feat, kp)
    return pred, uncertainty


# ---------------------------------------------------------------------------
# Pure-JAX reference (original PyTorch layout) for a sanity check
# ---------------------------------------------------------------------------
def ref_forward(x_nchw, p):
    def conv(x, w_hwio, b):
        w_oihw = jnp.transpose(w_hwio, (3, 2, 0, 1))
        y = jax.lax.conv_general_dilated(
            x, w_oihw, window_strides=(1, 1), padding=((1, 1), (1, 1)),
            dimension_numbers=("NCHW", "OIHW", "NCHW"))
        return jax.nn.relu(y + b[None, :, None, None])

    x = conv(x_nchw, p["conv1_w"], p["conv1_b"])
    n, c, h, w = x.shape
    x = x.reshape(n, c, h // 2, 2, w // 2, 2).max(axis=(3, 5))
    x = conv(x, p["conv2_w"], p["conv2_b"])
    x = 0.25 * (x[:, :, 0:7, 0:7] + x[:, :, 1:8, 0:7] +
                x[:, :, 0:7, 1:8] + x[:, :, 1:8, 1:8])
    f = x.reshape(n, -1)                                          # CHW flatten
    lin = lambda a, wq, bq: a @ wq + bq
    hcl = jax.nn.relu(lin(f, p["fc1_w"], p["fc1_b"]))
    hcl = jax.nn.relu(lin(hcl, p["fc2_w"], p["fc2_b"]))
    pred = lin(hcl, p["fc3_w"], p["fc3_b"])
    u = jax.nn.relu(lin(f, p["u1_w"], p["u1_b"]))
    u = jax.nn.relu(lin(u, p["u2_w"], p["u2_b"]))
    u = jax.nn.relu(lin(u, p["u3_w"], p["u3_b"]))
    unc = lin(u, p["u4_w"], p["u4_b"])
    return pred, unc


# ---------------------------------------------------------------------------
# Deterministic synthetic parameters (scaled-down VGG dims)
# ---------------------------------------------------------------------------
def init_params(key):
    C_IN, C1, C_FEAT = 4, 32, 64          # 512 feature channels in real VGG
    FEAT = C_FEAT * 7 * 7                 # 3136 (512*7*7 in real VGG)
    HIDDEN = 256                          # 4096 in real VGG
    NUM_CLASSES = 16                      # 1000 in real VGG
    UNC = 128                             # 1000 in real VGG

    ks = jax.random.split(key, 18)

    def w(k, shape, fan_in):
        return jax.random.normal(k, shape, jnp.float32) / jnp.sqrt(jnp.float32(fan_in))

    return {
        "conv1_w": w(ks[0], (3, 3, C_IN, C1), 9 * C_IN),
        "conv1_b": jnp.zeros((C1,), jnp.float32),
        "conv2_w": w(ks[1], (3, 3, C1, C_FEAT), 9 * C1),
        "conv2_b": jnp.zeros((C_FEAT,), jnp.float32),
        "fc1_w": w(ks[2], (FEAT, HIDDEN), FEAT),
        "fc1_b": w(ks[3], (HIDDEN,), FEAT),
        "fc2_w": w(ks[4], (HIDDEN, HIDDEN), HIDDEN),
        "fc2_b": w(ks[5], (HIDDEN,), HIDDEN),
        "fc3_w": w(ks[6], (HIDDEN, NUM_CLASSES), HIDDEN),
        "fc3_b": w(ks[7], (NUM_CLASSES,), HIDDEN),
        "u1_w": w(ks[8], (FEAT, HIDDEN), FEAT),
        "u1_b": w(ks[9], (HIDDEN,), FEAT),
        "u2_w": w(ks[10], (HIDDEN, UNC), HIDDEN),
        "u2_b": w(ks[11], (UNC,), HIDDEN),
        "u3_w": w(ks[12], (UNC, UNC), UNC),
        "u3_b": w(ks[13], (UNC,), UNC),
        "u4_w": w(ks[14], (UNC, 1), UNC),
        "u4_b": w(ks[15], (1,), UNC),
    }


if __name__ == "__main__":
    key = jax.random.PRNGKey(0)
    k_x, k_p = jax.random.split(key)

    x = jax.random.normal(k_x, (2, 4, 16, 16), jnp.float32)   # NCHW input
    params = init_params(k_p)
    kparams = prepare_params(params)                          # one-time repack

    pred, uncertainty = vgg_forward(x, kparams)
    jax.block_until_ready((pred, uncertainty))

    assert pred.shape == (2, 16)
    assert uncertainty.shape == (2, 1)

    # loose-tolerance sanity check vs. a pure-JAX reference in torch layout
    pred_ref, unc_ref = ref_forward(x, params)
    assert jnp.allclose(pred, pred_ref, rtol=1e-2, atol=1e-2)
    assert jnp.allclose(uncertainty, unc_ref, rtol=1e-2, atol=1e-2)

    print("KERNEL_OK")
</pallas_src>

<mosaic_0001>
module attributes {stable_mosaic.version = 11 : i64} {
  func.func @_conv_relu_maxpool_kernel(%arg0: memref<512x36xf32, #tpu.memory_space<vmem>>, %arg1: memref<36x32xf32, #tpu.memory_space<vmem>>, %arg2: memref<1x32xf32, #tpu.memory_space<vmem>>, %arg3: memref<128x32xf32, #tpu.memory_space<vmem>>) attributes {dimension_semantics = [], scalar_prefetch = 0 : i64, scratch_operands = 0 : i64, tpu.core_type = #tpu.core_type<tc>} {
    %c0 = arith.constant 0 : index
    %c0_0 = arith.constant 0 : index
    %0 = vector.load %arg0[%c0, %c0_0] : memref<512x36xf32, #tpu.memory_space<vmem>>, vector<512x36xf32>
    %c0_1 = arith.constant 0 : index
    %c0_2 = arith.constant 0 : index
    %1 = vector.load %arg1[%c0_1, %c0_2] : memref<36x32xf32, #tpu.memory_space<vmem>>, vector<36x32xf32>
    %cst = arith.constant dense<0.000000e+00> : vector<512x32xf32>
    %2 = tpu.matmul %0, %1, %cst {dimension_numbers = #tpu.dot_dimension_numbers<[1], [0], [0], [1], [0, 0, 1, 1], [], []>} : vector<512x36xf32>, vector<36x32xf32>, vector<512x32xf32> -> vector<512x32xf32>
    %c0_3 = arith.constant 0 : index
    %c0_4 = arith.constant 0 : index
    %3 = vector.load %arg2[%c0_3, %c0_4] : memref<1x32xf32, #tpu.memory_space<vmem>>, vector<1x32xf32>
    %4 = vector.broadcast %3 : vector<1x32xf32> to vector<512x32xf32>
    %5 = arith.addf %2, %4 : vector<512x32xf32>
    %cst_5 = arith.constant 0.000000e+00 : f32
    %6 = vector.broadcast %cst_5 : f32 to vector<512x32xf32>
    %7 = arith.maximumf %5, %6 : vector<512x32xf32>
    %8 = vector.extract_strided_slice %7 {offsets = [0, 0], sizes = [128, 32], strides = [1, 1]} : vector<512x32xf32> to vector<128x32xf32>
    %9 = vector.extract_strided_slice %7 {offsets = [128, 0], sizes = [128, 32], strides = [1, 1]} : vector<512x32xf32> to vector<128x32xf32>
    %10 = arith.maximumf %8, %9 : vector<128x32xf32>
    %11 = vector.extract_strided_slice %7 {offsets = [256, 0], sizes = [128, 32], strides = [1, 1]} : vector<512x32xf32> to vector<128x32xf32>
    %12 = vector.extract_strided_slice %7 {offsets = [384, 0], sizes = [128, 32], strides = [1, 1]} : vector<512x32xf32> to vector<128x32xf32>
    %13 = arith.maximumf %11, %12 : vector<128x32xf32>
    %14 = arith.maximumf %10, %13 : vector<128x32xf32>
    %c0_6 = arith.constant 0 : index
    %c0_7 = arith.constant 0 : index
    %15 = vector.load %arg3[%c0_6, %c0_7] : memref<128x32xf32, #tpu.memory_space<vmem>>, vector<128x32xf32>
    tpu.vector_store %arg3[%c0_6, %c0_7], %14 {strides = array<i32>} : memref<128x32xf32, #tpu.memory_space<vmem>>, vector<128x32xf32>,
    return
  }
}

module attributes {stable_mosaic.version = 11 : i64} {
  func.func @_conv_relu_avgpool_kernel(%arg0: memref<416x288xf32, #tpu.memory_space<vmem>>, %arg1: memref<288x64xf32, #tpu.memory_space<vmem>>, %arg2: memref<1x64xf32, #tpu.memory_space<vmem>>, %arg3: memref<98x64xf32, #tpu.memory_space<vmem>>) attributes {dimension_semantics = [], scalar_prefetch = 0 : i64, scratch_operands = 0 : i64, tpu.core_type = #tpu.core_type<tc>} {
    %c0 = arith.constant 0 : index
    %c0_0 = arith.constant 0 : index
    %0 = vector.load %arg0[%c0, %c0_0] : memref<416x288xf32, #tpu.memory_space<vmem>>, vector<416x288xf32>
    %c0_1 = arith.constant 0 : index
    %c0_2 = arith.constant 0 : index
    %1 = vector.load %arg1[%c0_1, %c0_2] : memref<288x64xf32, #tpu.memory_space<vmem>>, vector<288x64xf32>
    %cst = arith.constant dense<0.000000e+00> : vector<416x64xf32>
    %2 = tpu.matmul %0, %1, %cst {dimension_numbers = #tpu.dot_dimension_numbers<[1], [0], [0], [1], [0, 0, 1, 1], [], []>} : vector<416x288xf32>, vector<288x64xf32>, vector<416x64xf32> -> vector<416x64xf32>
    %c0_3 = arith.constant 0 : index
    %c0_4 = arith.constant 0 : index
    %3 = vector.load %arg2[%c0_3, %c0_4] : memref<1x64xf32, #tpu.memory_space<vmem>>, vector<1x64xf32>
    %4 = vector.broadcast %3 : vector<1x64xf32> to vector<416x64xf32>
    %5 = arith.addf %2, %4 : vector<416x64xf32>
    %cst_5 = arith.constant 0.000000e+00 : f32
    %6 = vector.broadcast %cst_5 : f32 to vector<416x64xf32>
    %7 = arith.maximumf %5, %6 : vector<416x64xf32>
    %8 = vector.extract_strided_slice %7 {offsets = [0, 0], sizes = [98, 64], strides = [1, 1]} : vector<416x64xf32> to vector<98x64xf32>
    %9 = vector.extract_strided_slice %7 {offsets = [104, 0], sizes = [98, 64], strides = [1, 1]} : vector<416x64xf32> to vector<98x64xf32>
    %10 = arith.addf %8, %9 : vector<98x64xf32>
    %11 = vector.extract_strided_slice %7 {offsets = [208, 0], sizes = [98, 64], strides = [1, 1]} : vector<416x64xf32> to vector<98x64xf32>
    %12 = arith.addf %10, %11 : vector<98x64xf32>
    %13 = vector.extract_strided_slice %7 {offsets = [312, 0], sizes = [98, 64], strides = [1, 1]} : vector<416x64xf32> to vector<98x64xf32>
    %14 = arith.addf %12, %13 : vector<98x64xf32>
    %cst_6 = arith.constant 2.500000e-01 : f32
    %15 = vector.broadcast %cst_6 : f32 to vector<98x64xf32>
    %16 = arith.mulf %14, %15 : vector<98x64xf32>
    %c0_7 = arith.constant 0 : index
    %c0_8 = arith.constant 0 : index
    %17 = vector.load %arg3[%c0_7, %c0_8] : memref<98x64xf32, #tpu.memory_space<vmem>>, vector<98x64xf32>
    tpu.vector_store %arg3[%c0_7, %c0_8], %16 {strides = array<i32>} : memref<98x64xf32, #tpu.memory_space<vmem>>, vector<98x64xf32>,
    return
  }
}

module attributes {stable_mosaic.version = 11 : i64} {
  func.func @_head_kernel(%arg0: memref<2x3136xf32, #tpu.memory_space<vmem>>, %arg1: memref<3136x512xf32, #tpu.memory_space<vmem>>, %arg2: memref<1x512xf32, #tpu.memory_space<vmem>>, %arg3: memref<256x256xf32, #tpu.memory_space<vmem>>, %arg4: memref<1x256xf32, #tpu.memory_space<vmem>>, %arg5: memref<256x16xf32, #tpu.memory_space<vmem>>, %arg6: memref<1x16xf32, #tpu.memory_space<vmem>>, %arg7: memref<256x128xf32, #tpu.memory_space<vmem>>, %arg8: memref<1x128xf32, #tpu.memory_space<vmem>>, %arg9: memref<128x128xf32, #tpu.memory_space<vmem>>, %arg10: memref<1x128xf32, #tpu.memory_space<vmem>>, %arg11: memref<128x1xf32, #tpu.memory_space<vmem>>, %arg12: memref<1x1xf32, #tpu.memory_space<vmem>>, %arg13: memref<2x16xf32, #tpu.memory_space<vmem>>, %arg14: memref<2x1xf32, #tpu.memory_space<vmem>>) attributes {dimension_semantics = [], scalar_prefetch = 0 : i64, scratch_operands = 0 : i64, tpu.core_type = #tpu.core_type<tc>} {
    %c0 = arith.constant 0 : index
    %c0_0 = arith.constant 0 : index
    %0 = vector.load %arg0[%c0, %c0_0] : memref<2x3136xf32, #tpu.memory_space<vmem>>, vector<2x3136xf32>
    %c0_1 = arith.constant 0 : index
    %c0_2 = arith.constant 0 : index
    %1 = vector.load %arg1[%c0_1, %c0_2] : memref<3136x512xf32, #tpu.memory_space<vmem>>, vector<3136x512xf32>
    %cst = arith.constant dense<0.000000e+00> : vector<2x512xf32>
    %2 = tpu.matmul %0, %1, %cst {dimension_numbers = #tpu.dot_dimension_numbers<[1], [0], [0], [1], [0, 0, 1, 1], [], []>} : vector<2x3136xf32>, vector<3136x512xf32>, vector<2x512xf32> -> vector<2x512xf32>
    %c0_3 = arith.constant 0 : index
    %c0_4 = arith.constant 0 : index
    %3 = vector.load %arg2[%c0_3, %c0_4] : memref<1x512xf32, #tpu.memory_space<vmem>>, vector<1x512xf32>
    %4 = vector.broadcast %3 : vector<1x512xf32> to vector<2x512xf32>
    %5 = arith.addf %2, %4 : vector<2x512xf32>
    %cst_5 = arith.constant 0.000000e+00 : f32
    %6 = vector.broadcast %cst_5 : f32 to vector<2x512xf32>
    %7 = arith.maximumf %5, %6 : vector<2x512xf32>
    %8 = vector.extract_strided_slice %7 {offsets = [0, 0], sizes = [2, 256], strides = [1, 1]} : vector<2x512xf32> to vector<2x256xf32>
    %9 = vector.extract_strided_slice %7 {offsets = [0, 256], sizes = [2, 256], strides = [1, 1]} : vector<2x512xf32> to vector<2x256xf32>
    %c0_6 = arith.constant 0 : index
    %c0_7 = arith.constant 0 : index
    %10 = vector.load %arg3[%c0_6, %c0_7] : memref<256x256xf32, #tpu.memory_space<vmem>>, vector<256x256xf32>
    %cst_8 = arith.constant dense<0.000000e+00> : vector<2x256xf32>
    %11 = tpu.matmul %8, %10, %cst_8 {dimension_numbers = #tpu.dot_dimension_numbers<[1], [0], [0], [1], [0, 0, 1, 1], [], []>} : vector<2x256xf32>, vector<256x256xf32>, vector<2x256xf32> -> vector<2x256xf32>
    %c0_9 = arith.constant 0 : index
    %c0_10 = arith.constant 0 : index
    %12 = vector.load %arg4[%c0_9, %c0_10] : memref<1x256xf32, #tpu.memory_space<vmem>>, vector<1x256xf32>
    %13 = vector.broadcast %12 : vector<1x256xf32> to vector<2x256xf32>
    %14 = arith.addf %11, %13 : vector<2x256xf32>
    %cst_11 = arith.constant 0.000000e+00 : f32
    %15 = vector.broadcast %cst_11 : f32 to vector<2x256xf32>
    %16 = arith.maximumf %14, %15 : vector<2x256xf32>
    %c0_12 = arith.constant 0 : index
    %c0_13 = arith.constant 0 : index
    %17 = vector.load %arg5[%c0_12, %c0_13] : memref<256x16xf32, #tpu.memory_space<vmem>>, vector<256x16xf32>
    %cst_14 = arith.constant dense<0.000000e+00> : vector<2x16xf32>
    %18 = tpu.matmul %16, %17, %cst_14 {dimension_numbers = #tpu.dot_dimension_numbers<[1], [0], [0], [1], [0, 0, 1, 1], [], []>} : vector<2x256xf32>, vector<256x16xf32>, vector<2x16xf32> -> vector<2x16xf32>
    %c0_15 = arith.constant 0 : index
    %c0_16 = arith.constant 0 : index
    %19 = vector.load %arg6[%c0_15, %c0_16] : memref<1x16xf32, #tpu.memory_space<vmem>>, vector<1x16xf32>
    %20 = vector.broadcast %19 : vector<1x16xf32> to vector<2x16xf32>
    %21 = arith.addf %18, %20 : vector<2x16xf32>
    %c0_17 = arith.constant 0 : index
    %c0_18 = arith.constant 0 : index
    %22 = vector.load %arg7[%c0_17, %c0_18] : memref<256x128xf32, #tpu.memory_space<vmem>>, vector<256x128xf32>
    %cst_19 = arith.constant dense<0.000000e+00> : vector<2x128xf32>
    %23 = tpu.matmul %9, %22, %cst_19 {dimension_numbers = #tpu.dot_dimension_numbers<[1], [0], [0], [1], [0, 0, 1, 1], [], []>} : vector<2x256xf32>, vector<256x128xf32>, vector<2x128xf32> -> vector<2x128xf32>
    %c0_20 = arith.constant 0 : index
    %c0_21 = arith.constant 0 : index
    %24 = vector.load %arg8[%c0_20, %c0_21] : memref<1x128xf32, #tpu.memory_space<vmem>>, vector<1x128xf32>
    %25 = vector.broadcast %24 : vector<1x128xf32> to vector<2x128xf32>
    %26 = arith.addf %23, %25 : vector<2x128xf32>
    %cst_22 = arith.constant 0.000000e+00 : f32
    %27 = vector.broadcast %cst_22 : f32 to vector<2x128xf32>
    %28 = arith.maximumf %26, %27 : vector<2x128xf32>
    %c0_23 = arith.constant 0 : index
    %c0_24 = arith.constant 0 : index
    %29 = vector.load %arg9[%c0_23, %c0_24] : memref<128x128xf32, #tpu.memory_space<vmem>>, vector<128x128xf32>
    %cst_25 = arith.constant dense<0.000000e+00> : vector<2x128xf32>
    %30 = tpu.matmul %28, %29, %cst_25 {dimension_numbers = #tpu.dot_dimension_numbers<[1], [0], [0], [1], [0, 0, 1, 1], [], []>} : vector<2x128xf32>, vector<128x128xf32>, vector<2x128xf32> -> vector<2x128xf32>
    %c0_26 = arith.constant 0 : index
    %c0_27 = arith.constant 0 : index
    %31 = vector.load %arg10[%c0_26, %c0_27] : memref<1x128xf32, #tpu.memory_space<vmem>>, vector<1x128xf32>
    %32 = vector.broadcast %31 : vector<1x128xf32> to vector<2x128xf32>
    %33 = arith.addf %30, %32 : vector<2x128xf32>
    %cst_28 = arith.constant 0.000000e+00 : f32
    %34 = vector.broadcast %cst_28 : f32 to vector<2x128xf32>
    %35 = arith.maximumf %33, %34 : vector<2x128xf32>
    %c0_29 = arith.constant 0 : index
    %c0_30 = arith.constant 0 : index
    %36 = vector.load %arg11[%c0_29, %c0_30] : memref<128x1xf32, #tpu.memory_space<vmem>>, vector<128x1xf32>
    %cst_31 = arith.constant dense<0.000000e+00> : vector<2x1xf32>
    %37 = tpu.matmul %35, %36, %cst_31 {dimension_numbers = #tpu.dot_dimension_numbers<[1], [0], [0], [1], [0, 0, 1, 1], [], []>} : vector<2x128xf32>, vector<128x1xf32>, vector<2x1xf32> -> vector<2x1xf32>
    %c0_32 = arith.constant 0 : index
    %c0_33 = arith.constant 0 : index
    %38 = vector.load %arg12[%c0_32, %c0_33] : memref<1x1xf32, #tpu.memory_space<vmem>>, vector<1x1xf32>
    %39 = vector.broadcast %38 : vector<1x1xf32> to vector<2x1xf32>
    %40 = arith.addf %37, %39 : vector<2x1xf32>
    %c0_34 = arith.constant 0 : index
    %c0_35 = arith.constant 0 : index
    %41 = vector.load %arg13[%c0_34, %c0_35] : memref<2x16xf32, #tpu.memory_space<vmem>>, vector<2x16xf32>
    tpu.vector_store %arg13[%c0_34, %c0_35], %21 {strides = array<i32>} : memref<2x16xf32, #tpu.memory_space<vmem>>, vector<2x16xf32>,
    %c0_36 = arith.constant 0 : index
    %c0_37 = arith.constant 0 : index
    %42 = vector.load %arg14[%c0_36, %c0_37] : memref<2x1xf32, #tpu.memory_space<vmem>>, vector<2x1xf32>
    tpu.vector_store %arg14[%c0_36, %c0_37], %40 {strides = array<i32>} : memref<2x1xf32, #tpu.memory_space<vmem>>, vector<2x1xf32>,
    return
  }
}

</mosaic_0001>

<bundles_post_ra>
// kernel: vgg_forward.3
= control target key start
LH: loop header
LB: loop body
LE: loop exit
PB: predicated region body
PF: predicated region fallthrough
CT: control target
= control target key end

     0   :  { %vm90_vm0 = vcmask 293888   ;;  %vm283_vm1 = vcmask 1043456   ;;  %vm784_vm2 = vcmask 261120   ;;  %s1648_s1 = inlined_call_operand.vmem [shape: f32[36,32], index: 1, kind: input, shape index: {}]   ;;  %s1649_s0 = inlined_call_operand.vmem [shape: f32[512,36], index: 0, kind: input, shape index: {}]   ;;  %s1650_s2 = inlined_call_operand.vmem [shape: f32[1,32], index: 2, kind: input, shape index: {}]   ;;  %s1651_s3 = inlined_call_operand.vmem [shape: f32[128,32], index: 3, kind: output, shape index: {}]  }
   0x1   :  { %v78_v0 = vld [vmem:[%s1648_s1] sm:$0xff]  ;;  %v79_v1 = vld [vmem:[%s1648_s1 + $0x8] sm:$0xff]  ;;  %v80_v2 = vld [vmem:[%s1648_s1 + $0x10] sm:$0xff] }
   0x2   :  { %v1046_v3 = vpack.c.bf16 %v79_v1, %v78_v0  ;;  %v81_v4 = vld [vmem:[%s1648_s1 + $0x18] sm:$0xff]  ;;  %v14_v5 = vld [vmem:[%s1649_s0] sm:$0xff]  ;;  %v15_v9 = vld [vmem:[%s1649_s0 + $0x8] sm:$0xff] }
   0x3   :  { %v1050_v6 = vpack.c.bf16 %v81_v4, %v80_v2  ;;  %950 = vmatprep.mubr.msk.f32.mxu0 %vm90_vm0, %v14_v5  ;;  %v46_v7 = vld [vmem:[%s1649_s0 + $0x100] sm:$0xff]  ;;  %v47_v10 = vld [vmem:[%s1649_s0 + $0x108] sm:$0xff]  ;;  %v16_v11 = vld [vmem:[%s1649_s0 + $0x10] sm:$0xff] }
   0x4   :  { %1047 = vmatprep.subr.bf16.mxu0 %v1046_v3  ;;  %1054 = vmatprep.subr.bf16.mxu1 %v1046_v3  ;;  %v82_v8 = vld [vmem:[%s1648_s1 + $0x20] sm:$0xf]  ;;  %v48_v12 = vld [vmem:[%s1649_s0 + $0x110] sm:$0xff]  ;;  %v17_v13 = vld [vmem:[%s1649_s0 + $0x18] sm:$0xff] }
   0x5   :  { %1049 = vmatpush3.bf16.msra.mxu0 %v1046_v3  ;;  %1057 = vmatpush3.bf16.msra.mxu1 %v1046_v3  ;;  %v49_v14 = vld [vmem:[%s1649_s0 + $0x118] sm:$0xff]  ;;  %v18_v15 = vld [vmem:[%s1649_s0 + $0x20] sm:$0xff]  ;;  %v19_v17 = vld [vmem:[%s1649_s0 + $0x28] sm:$0xff] }
   0x6   :  { %1051 = vmatprep.subr.bf16.mxu0 %v1050_v6  ;;  %1055 = vmatprep.subr.bf16.mxu1 %v1050_v6  ;;  %v50_v16 = vld [vmem:[%s1649_s0 + $0x120] sm:$0xff]  ;;  %v51_v18 = vld [vmem:[%s1649_s0 + $0x128] sm:$0xff]  ;;  %v20_v19 = vld [vmem:[%s1649_s0 + $0x30] sm:$0xff] }
   0x7   :  { %998 = vmatprep.mubr.msk.f32.mxu1 %vm90_vm0, %v46_v7  ;;  %v52_v20 = vld [vmem:[%s1649_s0 + $0x130] sm:$0xff]  ;;  %v21_v21 = vld [vmem:[%s1649_s0 + $0x38] sm:$0xff]  ;;  %v22_v23 = vld [vmem:[%s1649_s0 + $0x40] sm:$0xff] }
   0x8   :  { %v53_v22 = vld [vmem:[%s1649_s0 + $0x138] sm:$0xff]  ;;  %v54_v24 = vld [vmem:[%s1649_s0 + $0x140] sm:$0xff]  ;;  %v23_v25 = vld [vmem:[%s1649_s0 + $0x48] sm:$0xff] }
   0x9   :  { %1053 = vmatpush3.bf16.msra.mxu0 %v1050_v6  ;;  %1058 = vmatpush3.bf16.msra.mxu1 %v1050_v6  ;;  %v55_v26 = vld [vmem:[%s1649_s0 + $0x148] sm:$0xff]  ;;  %v24_v27 = vld [vmem:[%s1649_s0 + $0x50] sm:$0xff]  ;;  %v25_v29 = vld [vmem:[%s1649_s0 + $0x58] sm:$0xff] }
   0xa   :  { %948 = vmatprep.subr.msk.mxu0 %vm283_vm1, %v82_v8  ;;  %1056 = vmatprep.subr.msk.mxu1 %vm283_vm1, %v82_v8  ;;  %v56_v28 = vld [vmem:[%s1649_s0 + $0x150] sm:$0xff]  ;;  %v57_v30 = vld [vmem:[%s1649_s0 + $0x158] sm:$0xff]  ;;  %v26_v31 = vld [vmem:[%s1649_s0 + $0x60] sm:$0xff] }
   0xb   :  { %v58_v32 = vld [vmem:[%s1649_s0 + $0x160] sm:$0xff]  ;;  %v27_v33 = vld [vmem:[%s1649_s0 + $0x68] sm:$0xff]  ;;  %v28_v35 = vld [vmem:[%s1649_s0 + $0x70] sm:$0xff] }
   0xc   :  { %v59_v34 = vld [vmem:[%s1649_s0 + $0x168] sm:$0xff]  ;;  %v60_v36 = vld [vmem:[%s1649_s0 + $0x170] sm:$0xff]  ;;  %v29_v37 = vld [vmem:[%s1649_s0 + $0x78] sm:$0xff] }
   0xd   :  { %949 = vmatpush3.msk.msra.mxu0 %vm283_vm1, %v82_v8  ;;  %1059 = vmatpush3.msk.msra.mxu1 %vm283_vm1, %v82_v8  ;;  %v61_v38 = vld [vmem:[%s1649_s0 + $0x178] sm:$0xff]  ;;  %v30_v39 = vld [vmem:[%s1649_s0 + $0x80] sm:$0xff]  ;;  %v31_v41 = vld [vmem:[%s1649_s0 + $0x88] sm:$0xff] }
   0xe   :  { %951 = vmatmul.mubr.msk.f32.vlgmr.msra.gmra.mrb[0].mxu0 %vm90_vm0, %v15_v9  ;;  %999 = vmatmul.mubr.msk.f32.vlgmr.msra.gmra.mrb[0].mxu1 %vm90_vm0, %v47_v10  ;;  %v62_v40 = vld [vmem:[%s1649_s0 + $0x180] sm:$0xff]  ;;  %v63_v42 = vld [vmem:[%s1649_s0 + $0x188] sm:$0xff]  ;;  %v32_v43 = vld [vmem:[%s1649_s0 + $0x90] sm:$0xff] }
   0xf   :  { %953 = vmatprep.mubr.msk.f32.mxu0 %vm90_vm0, %v16_v11  ;;  %1001 = vmatprep.mubr.msk.f32.mxu1 %vm90_vm0, %v48_v12  ;;  %v64_v44 = vld [vmem:[%s1649_s0 + $0x190] sm:$0xff]  ;;  %v33_v45 = vld [vmem:[%s1649_s0 + $0x98] sm:$0xff]  ;;  %v34_v47 = vld [vmem:[%s1649_s0 + $0xa0] sm:$0xff] }
  0x10   :  { %v65_v46 = vld [vmem:[%s1649_s0 + $0x198] sm:$0xff]  ;;  %v66_v48 = vld [vmem:[%s1649_s0 + $0x1a0] sm:$0xff]  ;;  %v35_v49 = vld [vmem:[%s1649_s0 + $0xa8] sm:$0xff] }
  0x11   :  { %v67_v50 = vld [vmem:[%s1649_s0 + $0x1a8] sm:$0xff]  ;;  %v36_v51 = vld [vmem:[%s1649_s0 + $0xb0] sm:$0xff]  ;;  %v37_v53 = vld [vmem:[%s1649_s0 + $0xb8] sm:$0xff] }
  0x12   :  { %954 = vmatmul.mubr.msk.f32.gmra.mrb[2].mxu0 %vm90_vm0, %v17_v13  ;;  %1002 = vmatmul.mubr.msk.f32.gmra.mrb[2].mxu1 %vm90_vm0, %v49_v14  ;;  %v68_v52 = vld [vmem:[%s1649_s0 + $0x1b0] sm:$0xff]  ;;  %v69_v54 = vld [vmem:[%s1649_s0 + $0x1b8] sm:$0xff]  ;;  %v38_v55 = vld [vmem:[%s1649_s0 + $0xc0] sm:$0xff] }
  0x13   :  { %956 = vmatprep.mubr.msk.f32.mxu0 %vm90_vm0, %v18_v15  ;;  %1004 = vmatprep.mubr.msk.f32.mxu1 %vm90_vm0, %v50_v16  ;;  %v70_v56 = vld [vmem:[%s1649_s0 + $0x1c0] sm:$0xff]  ;;  %v39_v57 = vld [vmem:[%s1649_s0 + $0xc8] sm:$0xff]  ;;  %v40_v59 = vld [vmem:[%s1649_s0 + $0xd0] sm:$0xff] }
  0x14   :  { %v71_v58 = vld [vmem:[%s1649_s0 + $0x1c8] sm:$0xff]  ;;  %v72_v60 = vld [vmem:[%s1649_s0 + $0x1d0] sm:$0xff]  ;;  %v41_v61 = vld [vmem:[%s1649_s0 + $0xd8] sm:$0xff] }
  0x15   :  { %v73_v62 = vld [vmem:[%s1649_s0 + $0x1d8] sm:$0xff]  ;;  %v42_v63 = vld [vmem:[%s1649_s0 + $0xe0] sm:$0xff]  ;;  %v43_v1 = vld [vmem:[%s1649_s0 + $0xe8] sm:$0xff] }
  0x16   :  { %957 = vmatmul.mubr.msk.f32.gmra.mrb[4].mxu0 %vm90_vm0, %v19_v17  ;;  %1005 = vmatmul.mubr.msk.f32.gmra.mrb[4].mxu1 %vm90_vm0, %v51_v18  ;;  %v74_v0 = vld [vmem:[%s1649_s0 + $0x1e0] sm:$0xff]  ;;  %v75_v2 = vld [vmem:[%s1649_s0 + $0x1e8] sm:$0xff]  ;;  %v44_v3 = vld [vmem:[%s1649_s0 + $0xf0] sm:$0xff] }
  0x17   :  { %959 = vmatprep.mubr.msk.f32.mxu0 %vm90_vm0, %v20_v19  ;;  %1007 = vmatprep.mubr.msk.f32.mxu1 %vm90_vm0, %v52_v20  ;;  %v76_v4 = vld [vmem:[%s1649_s0 + $0x1f0] sm:$0xff]  ;;  %v45_v5 = vld [vmem:[%s1649_s0 + $0xf8] sm:$0xff] }
  0x18   :  { %v77_v6 = vld [vmem:[%s1649_s0 + $0x1f8] sm:$0xff] }
  0x1a   :  { %960 = vmatmul.mubr.msk.f32.gmra.mrb[6].mxu0 %vm90_vm0, %v21_v21  ;;  %1008 = vmatmul.mubr.msk.f32.gmra.mrb[6].mxu1 %vm90_vm0, %v53_v22 }
  0x1b   :  { %962 = vmatprep.mubr.msk.f32.mxu0 %vm90_vm0, %v22_v23  ;;  %1010 = vmatprep.mubr.msk.f32.mxu1 %vm90_vm0, %v54_v24 }
  0x1e   :  { %963 = vmatmul.mubr.msk.f32.gmra.mrb[8].mxu0 %vm90_vm0, %v23_v25  ;;  %1011 = vmatmul.mubr.msk.f32.gmra.mrb[8].mxu1 %vm90_vm0, %v55_v26  ;;  %v1354_v25 = vld [vmem:[%s1650_s2] ss:$0 sm:$0xff] }
  0x1f   :  { %965 = vmatprep.mubr.msk.f32.mxu0 %vm90_vm0, %v24_v27  ;;  %1013 = vmatprep.mubr.msk.f32.mxu1 %vm90_vm0, %v56_v28 }
  0x22   :  { %966 = vmatmul.mubr.msk.f32.gmra.mrb[10].mxu0 %vm90_vm0, %v25_v29  ;;  %1014 = vmatmul.mubr.msk.f32.gmra.mrb[10].mxu1 %vm90_vm0, %v57_v30 }
  0x23   :  { %968 = vmatprep.mubr.msk.f32.mxu0 %vm90_vm0, %v26_v31  ;;  %1016 = vmatprep.mubr.msk.f32.mxu1 %vm90_vm0, %v58_v32 }
  0x26   :  { %969 = vmatmul.mubr.msk.f32.gmra.mrb[12].mxu0 %vm90_vm0, %v27_v33  ;;  %1017 = vmatmul.mubr.msk.f32.gmra.mrb[12].mxu1 %vm90_vm0, %v59_v34 }
  0x27   :  { %971 = vmatprep.mubr.msk.f32.mxu0 %vm90_vm0, %v28_v35  ;;  %1019 = vmatprep.mubr.msk.f32.mxu1 %vm90_vm0, %v60_v36 }
  0x2a   :  { %972 = vmatmul.mubr.msk.f32.gmra.mrb[14].mxu0 %vm90_vm0, %v29_v37  ;;  %1020 = vmatmul.mubr.msk.f32.gmra.mrb[14].mxu1 %vm90_vm0, %v61_v38 }
  0x2b   :  { %974 = vmatprep.mubr.msk.f32.mxu0 %vm90_vm0, %v30_v39  ;;  %1022 = vmatprep.mubr.msk.f32.mxu1 %vm90_vm0, %v62_v40 }
  0x2e   :  { %975 = vmatmul.mubr.msk.f32.gmra.mrb[16].mxu0 %vm90_vm0, %v31_v41  ;;  %1023 = vmatmul.mubr.msk.f32.gmra.mrb[16].mxu1 %vm90_vm0, %v63_v42 }
  0x2f   :  { %977 = vmatprep.mubr.msk.f32.mxu0 %vm90_vm0, %v32_v43  ;;  %1025 = vmatprep.mubr.msk.f32.mxu1 %vm90_vm0, %v64_v44 }
  0x32   :  { %978 = vmatmul.mubr.msk.f32.gmra.mrb[18].mxu0 %vm90_vm0, %v33_v45  ;;  %1026 = vmatmul.mubr.msk.f32.gmra.mrb[18].mxu1 %vm90_vm0, %v65_v46 }
  0x33   :  { %980 = vmatprep.mubr.msk.f32.mxu0 %vm90_vm0, %v34_v47  ;;  %1028 = vmatprep.mubr.msk.f32.mxu1 %vm90_vm0, %v66_v48 }
  0x36   :  { %981 = vmatmul.mubr.msk.f32.gmra.mrb[20].mxu0 %vm90_vm0, %v35_v49  ;;  %1029 = vmatmul.mubr.msk.f32.gmra.mrb[20].mxu1 %vm90_vm0, %v67_v50 }
  0x37   :  { %983 = vmatprep.mubr.msk.f32.mxu0 %vm90_vm0, %v36_v51  ;;  %1031 = vmatprep.mubr.msk.f32.mxu1 %vm90_vm0, %v68_v52 }
  0x3a   :  { %984 = vmatmul.mubr.msk.f32.gmra.mrb[22].mxu0 %vm90_vm0, %v37_v53  ;;  %1032 = vmatmul.mubr.msk.f32.gmra.mrb[22].mxu1 %vm90_vm0, %v69_v54 }
  0x3b   :  { %986 = vmatprep.mubr.msk.f32.mxu0 %vm90_vm0, %v38_v55  ;;  %1034 = vmatprep.mubr.msk.f32.mxu1 %vm90_vm0, %v70_v56 }
  0x3e   :  { %987 = vmatmul.mubr.msk.f32.gmra.mrb[24].mxu0 %vm90_vm0, %v39_v57  ;;  %1035 = vmatmul.mubr.msk.f32.gmra.mrb[24].mxu1 %vm90_vm0, %v71_v58 }
  0x3f   :  { %989 = vmatprep.mubr.msk.f32.mxu0 %vm90_vm0, %v40_v59  ;;  %1037 = vmatprep.mubr.msk.f32.mxu1 %vm90_vm0, %v72_v60 }
  0x42   :  { %990 = vmatmul.mubr.msk.f32.gmra.mrb[26].mxu0 %vm90_vm0, %v41_v61  ;;  %1038 = vmatmul.mubr.msk.f32.gmra.mrb[26].mxu1 %vm90_vm0, %v73_v62 }
  0x43   :  { %992 = vmatprep.mubr.msk.f32.mxu0 %vm90_vm0, %v42_v63  ;;  %1040 = vmatprep.mubr.msk.f32.mxu1 %vm90_vm0, %v74_v0 }
  0x46   :  { %993 = vmatmul.mubr.msk.f32.gmra.mrb[28].mxu0 %vm90_vm0, %v43_v1  ;;  %1041 = vmatmul.mubr.msk.f32.gmra.mrb[28].mxu1 %vm90_vm0, %v75_v2 }
  0x47   :  { %995 = vmatprep.mubr.msk.f32.mxu0 %vm90_vm0, %v44_v3  ;;  %1043 = vmatprep.mubr.msk.f32.mxu1 %vm90_vm0, %v76_v4 }
  0x4a   :  { %996 = vmatmul.mubr.msk.f32.gmra.mrb[30].mxu0 %vm90_vm0, %v45_v5  ;;  %1044 = vmatmul.mubr.msk.f32.gmra.mrb[30].mxu1 %vm90_vm0, %v77_v6 }
  0xe1   :  { %v952_v7 = vpop.f32.mrb[0].mxu0  ;;  %v1000_v8 = vpop.f32.mrb[0].mxu1 }
  0xe2   :  { %v353_v9 = vpop.f32.mrb[1].mxu0  ;;  %v513_v10 = vpop.f32.mrb[1].mxu1  ;;  %v1357_v28 = vadd.f32 %v952_v7, %v1354_v25  ;;  %v1360_v29 = vadd.f32 %v1000_v8, %v1354_v25 }
  0xe3   :  { %v1363_v32 = vadd.f32 %v1354_v25, %v353_v9  ;;  %v1366_v33 = vadd.f32 %v1354_v25, %v513_v10 }
  0xe4   :  { %v673_v40 = vmax.f32 %v1357_v28, 0.0  ;;  %v705_v41 = vmax.f32 %v1360_v29, 0.0 }
  0xe5   :  { %v955_v11 = vpop.f32.mrb[2].mxu0  ;;  %v1003_v12 = vpop.f32.mrb[2].mxu1  ;;  %v672_v44 = vmax.f32 %v1363_v32, 0.0  ;;  %v704_v45 = vmax.f32 %v1366_v33, 0.0 }
  0xe6   :  { %v363_v13 = vpop.f32.mrb[3].mxu0  ;;  %v523_v14 = vpop.f32.mrb[3].mxu1  ;;  %v1369_v36 = vadd.f32 %v955_v11, %v1354_v25  ;;  %v1372_v37 = vadd.f32 %v1003_v12, %v1354_v25 }
  0xe7   :  { %v1375_v38 = vadd.f32 %v1354_v25, %v363_v13  ;;  %v1378_v39 = vadd.f32 %v1354_v25, %v523_v14 }
  0xe8   :  { %v675_v50 = vmax.f32 %v1369_v36, 0.0  ;;  %v707_v51 = vmax.f32 %v1372_v37, 0.0 }
  0xe9   :  { %v958_v15 = vpop.f32.mrb[4].mxu0  ;;  %v1006_v16 = vpop.f32.mrb[4].mxu1  ;;  %v674_v54 = vmax.f32 %v1375_v38, 0.0  ;;  %v706_v55 = vmax.f32 %v1378_v39, 0.0 }
  0xea   :  { %v373_v17 = vpop.f32.mrb[5].mxu0  ;;  %v533_v18 = vpop.f32.mrb[5].mxu1  ;;  %v1385_v46 = vadd.f32 %v958_v15, %v1354_v25  ;;  %v1388_v47 = vadd.f32 %v1006_v16, %v1354_v25 }
  0xeb   :  { %v1397_v52 = vadd.f32 %v1354_v25, %v373_v17  ;;  %v1400_v53 = vadd.f32 %v1354_v25, %v533_v18 }
  0xec   :  { %v677_v0 = vmax.f32 %v1385_v46, 0.0  ;;  %v709_v1 = vmax.f32 %v1388_v47, 0.0 }
  0xed   :  { %v961_v19 = vpop.f32.mrb[6].mxu0  ;;  %v1009_v20 = vpop.f32.mrb[6].mxu1  ;;  %v676_v6 = vmax.f32 %v1397_v52, 0.0  ;;  %v708_v7 = vmax.f32 %v1400_v53, 0.0 }
  0xee   :  { %v383_v21 = vpop.f32.mrb[7].mxu0  ;;  %v543_v22 = vpop.f32.mrb[7].mxu1  ;;  %v1405_v56 = vadd.f32 %v961_v19, %v1354_v25  ;;  %v1408_v57 = vadd.f32 %v1009_v20, %v1354_v25 }
  0xef   :  { %v1411_v58 = vadd.f32 %v1354_v25, %v383_v21  ;;  %v1414_v59 = vadd.f32 %v1354_v25, %v543_v22 }
  0xf0   :  { %v679_v10 = vmax.f32 %v1405_v56, 0.0  ;;  %v711_v11 = vmax.f32 %v1408_v57, 0.0 }
  0xf1   :  { %v964_v23 = vpop.f32.mrb[8].mxu0  ;;  %v1012_v24 = vpop.f32.mrb[8].mxu1  ;;  %v678_v14 = vmax.f32 %v1411_v58, 0.0  ;;  %v1652_v56 = vmax.f32 %v1414_v59, 0.0 }
  0xf2   :  { %v393_v26 = vpop.f32.mrb[9].mxu0  ;;  %v553_v27 = vpop.f32.mrb[9].mxu1  ;;  %v1417_v60 = vadd.f32 %v964_v23, %v1354_v25  ;;  %v1420_v61 = vadd.f32 %v1012_v24, %v1354_v25 }
  0xf3   :  { %v1429_v2 = vadd.f32 %v1354_v25, %v393_v26  ;;  %v1432_v3 = vadd.f32 %v1354_v25, %v553_v27 }
  0xf5   :  { %v967_v30 = vpop.f32.mrb[10].mxu0  ;;  %v1015_v31 = vpop.f32.mrb[10].mxu1 }
  0xf6   :  { %v403_v34 = vpop.f32.mrb[11].mxu0  ;;  %v563_v35 = vpop.f32.mrb[11].mxu1  ;;  %v1441_v8 = vadd.f32 %v967_v30, %v1354_v25  ;;  %v1444_v9 = vadd.f32 %v1015_v31, %v1354_v25 }
  0xf7   :  { %v1449_v12 = vadd.f32 %v1354_v25, %v403_v34  ;;  %v1452_v13 = vadd.f32 %v1354_v25, %v563_v35 }
  0xf9   :  { %v970_v42 = vpop.f32.mrb[12].mxu0  ;;  %v1018_v43 = vpop.f32.mrb[12].mxu1  ;;  %v682_v35 = vmax.f32 %v1449_v12, 0.0 }
  0xfa   :  { %v1390_v48 = vpop.f32.mrb[13].mxu0  ;;  %v1392_v49 = vpop.f32.mrb[13].mxu1 }
  0xfb   :  { %v1488_v29 = vadd.f32 %v1354_v25, %v1390_v48 }
  0xfd   :  { %v1422_v62 = vpop.f32.mrb[14].mxu0  ;;  %v1424_v63 = vpop.f32.mrb[14].mxu1 }
  0xfe   :  { %v1434_v4 = vpop.f32.mrb[15].mxu0  ;;  %v1436_v5 = vpop.f32.mrb[15].mxu1 }
 0x101   :  { %v976_v18 = vpop.f32.mrb[16].mxu0  ;;  %v1024_v19 = vpop.f32.mrb[16].mxu1 }
 0x102   :  { %v439_v22 = vadd.f32 %v976_v18, %v1354_v25  ;;  %v599_v23 = vadd.f32 %v1024_v19, %v1354_v25  ;;  %v433_v24 = vpop.f32.mrb[17].mxu0  ;;  %v593_v26 = vpop.f32.mrb[17].mxu1  ;;  %v1469_v18 = vadd.f32 %v970_v42, %v1354_v25  ;;  %v1472_v19 = vadd.f32 %v1018_v43, %v1354_v25 }
 0x103   :  { %v434_v31 = vadd.f32 %v1354_v25, %v433_v24  ;;  %v594_v34 = vadd.f32 %v1354_v25, %v593_v26 }
 0x104   :  { %v689_v17 = vmax.f32 %v439_v22, 0.0  ;;  %v721_v21 = vmax.f32 %v599_v23, 0.0 }
 0x105   :  { %v688_v16 = vmax.f32 %v434_v31, 0.0  ;;  %v720_v27 = vmax.f32 %v594_v34, 0.0  ;;  %v979_v15 = vpop.f32.mrb[18].mxu0  ;;  %v1027_v30 = vpop.f32.mrb[18].mxu1 }
 0x106   :  { %v737_v24 = vmax.f32 %v673_v40, %v689_v17  ;;  %v753_v26 = vmax.f32 %v705_v41, %v721_v21  ;;  %v449_v20 = vadd.f32 %v979_v15, %v1354_v25  ;;  %v609_v22 = vadd.f32 %v1027_v30, %v1354_v25  ;;  %v443_v23 = vpop.f32.mrb[19].mxu0  ;;  %v603_v42 = vpop.f32.mrb[19].mxu1 }
 0x107   :  { %v736_v43 = vmax.f32 %v672_v44, %v688_v16  ;;  %v752_v31 = vmax.f32 %v704_v45, %v720_v27  ;;  %v444_v34 = vadd.f32 %v1354_v25, %v443_v23  ;;  %v604_v28 = vadd.f32 %v1354_v25, %v603_v42 }
 0x108   :  { %v769_v40 = vmax.f32 %v737_v24, %v753_v26  ;;  %v691_v41 = vmax.f32 %v449_v20, 0.0  ;;  %v723_v15 = vmax.f32 %v609_v22, 0.0  ;;  %v1492_v17 = vadd.f32 %v1354_v25, %v1392_v49 }
 0x109   :  { %v768_v32 = vmax.f32 %v736_v43, %v752_v31  ;;  %v690_v44 = vmax.f32 %v444_v34, 0.0  ;;  %v722_v16 = vmax.f32 %v604_v28, 0.0  ;;  %v982_v33 = vpop.f32.mrb[20].mxu0  ;;  %v1030_v45 = vpop.f32.mrb[20].mxu1  ;;  %v717_v42 = vmax.f32 %v1472_v19, 0.0 }
 0x10a   :  { %786 = vst.msk [vmem:[%s1651_s3 + $0x8] sm:$0xff] %vm784_vm2, %v769_v40  ;;  %v739_v48 = vmax.f32 %v675_v50, %v691_v41  ;;  %v755_v20 = vmax.f32 %v707_v51, %v723_v15  ;;  %v459_v21 = vadd.f32 %v982_v33, %v1354_v25  ;;  %v619_v49 = vadd.f32 %v1030_v45, %v1354_v25  ;;  %v453_v27 = vpop.f32.mrb[21].mxu0  ;;  %v613_v30 = vpop.f32.mrb[21].mxu1 }
 0x10b   :  { %785 = vst.msk [vmem:[%s1651_s3] sm:$0xff] %vm784_vm2, %v768_v32  ;;  %v738_v24 = vmax.f32 %v674_v54, %v690_v44  ;;  %v754_v36 = vmax.f32 %v706_v55, %v722_v16  ;;  %v454_v37 = vadd.f32 %v1354_v25, %v453_v27  ;;  %v614_v50 = vadd.f32 %v1354_v25, %v613_v30 }
 0x10c   :  { %v685_v51 = vmax.f32 %v1469_v18, 0.0  ;;  %v771_v26 = vmax.f32 %v739_v48, %v755_v20  ;;  %v693_v22 = vmax.f32 %v459_v21, 0.0  ;;  %v725_v23 = vmax.f32 %v619_v49, 0.0 }
 0x10d   :  { %v770_v43 = vmax.f32 %v738_v24, %v754_v36  ;;  %v692_v31 = vmax.f32 %v454_v37, 0.0  ;;  %v724_v34 = vmax.f32 %v614_v50, 0.0  ;;  %v985_v28 = vpop.f32.mrb[22].mxu0  ;;  %v1033_v38 = vpop.f32.mrb[22].mxu1  ;;  %v716_v45 = vmax.f32 %v1492_v17, 0.0 }
 0x10e   :  { %788 = vst.msk [vmem:[%s1651_s3 + $0x18] sm:$0xff] %vm784_vm2, %v771_v26  ;;  %v741_v39 = vmax.f32 %v677_v0, %v693_v22  ;;  %v757_v54 = vmax.f32 %v709_v1, %v725_v23  ;;  %v469_v55 = vadd.f32 %v985_v28, %v1354_v25  ;;  %v629_v40 = vadd.f32 %v1033_v38, %v1354_v25  ;;  %v463_v41 = vpop.f32.mrb[23].mxu0  ;;  %v623_v15 = vpop.f32.mrb[23].mxu1 }
 0x10f   :  { %787 = vst.msk [vmem:[%s1651_s3 + $0x10] sm:$0xff] %vm784_vm2, %v770_v43  ;;  %v740_v32 = vmax.f32 %v676_v6, %v692_v31  ;;  %v756_v46 = vmax.f32 %v708_v7, %v724_v34  ;;  %v464_v47 = vadd.f32 %v1354_v25, %v463_v41  ;;  %v624_v0 = vadd.f32 %v1354_v25, %v623_v15 }
 0x110   :  { %v684_v1 = vmax.f32 %v1488_v29, 0.0  ;;  %v773_v44 = vmax.f32 %v741_v39, %v757_v54  ;;  %v695_v16 = vmax.f32 %v469_v55, 0.0  ;;  %v727_v33 = vmax.f32 %v629_v40, 0.0 }
 0x111   :  { %v772_v48 = vmax.f32 %v740_v32, %v756_v46  ;;  %v694_v20 = vmax.f32 %v464_v47, 0.0  ;;  %v726_v21 = vmax.f32 %v624_v0, 0.0  ;;  %v988_v49 = vpop.f32.mrb[24].mxu0  ;;  %v1036_v52 = vpop.f32.mrb[24].mxu1  ;;  %v1560_v37 = vadd.f32 %v1422_v62, %v1354_v25 }
 0x112   :  { %790 = vst.msk [vmem:[%s1651_s3 + $0x28] sm:$0xff] %vm784_vm2, %v773_v44  ;;  %v743_v53 = vmax.f32 %v679_v10, %v695_v16  ;;  %v759_v6 = vmax.f32 %v711_v11, %v727_v33  ;;  %v479_v7 = vadd.f32 %v988_v49, %v1354_v25  ;;  %v639_v27 = vadd.f32 %v1036_v52, %v1354_v25  ;;  %v473_v30 = vpop.f32.mrb[25].mxu0  ;;  %v633_v24 = vpop.f32.mrb[25].mxu1 }
 0x113   :  { %789 = vst.msk [vmem:[%s1651_s3 + $0x20] sm:$0xff] %vm784_vm2, %v772_v48  ;;  %v742_v36 = vmax.f32 %v678_v14, %v694_v20  ;;  %v758_v10 = vmax.f32 %v1652_v56, %v726_v21  ;;  %v474_v57 = vadd.f32 %v1354_v25, %v473_v30  ;;  %v634_v11 = vadd.f32 %v1354_v25, %v633_v24 }
 0x114   :  { %v775_v50 = vmax.f32 %v743_v53, %v759_v6  ;;  %v697_v26 = vmax.f32 %v479_v7, 0.0  ;;  %v729_v22 = vmax.f32 %v639_v27, 0.0  ;;  %v1564_v23 = vadd.f32 %v1424_v63, %v1354_v25 }
 0x115   :  { %v774_v58 = vmax.f32 %v742_v36, %v758_v10  ;;  %v696_v14 = vmax.f32 %v474_v57, 0.0  ;;  %v728_v43 = vmax.f32 %v634_v11, 0.0  ;;  %v991_v59 = vpop.f32.mrb[26].mxu0  ;;  %v1039_v31 = vpop.f32.mrb[26].mxu1  ;;  %v1653_v62 = vmax.f32 %v1417_v60, 0.0 }
 0x116   :  { %792 = vst.msk [vmem:[%s1651_s3 + $0x38] sm:$0xff] %vm784_vm2, %v775_v50  ;;  %v1654_v28 = vmax.f32 %v1420_v61, 0.0  ;;  %v489_v39 = vadd.f32 %v991_v59, %v1354_v25  ;;  %v649_v63 = vadd.f32 %v1039_v31, %v1354_v25  ;;  %v483_v54 = vpop.f32.mrb[27].mxu0  ;;  %v643_v55 = vpop.f32.mrb[27].mxu1  ;;  %v1655_v40 = vmax.f32 %v1429_v2, 0.0 }
 0x117   :  { %v745_v34 = vmax.f32 %v1653_v62, %v697_v26  ;;  %791 = vst.msk [vmem:[%s1651_s3 + $0x30] sm:$0xff] %vm784_vm2, %v774_v58  ;;  %v1656_v60 = vmax.f32 %v1432_v3, 0.0  ;;  %v484_v61 = vadd.f32 %v1354_v25, %v483_v54  ;;  %v644_v32 = vadd.f32 %v1354_v25, %v643_v55 }
 0x118   :  { %v761_v38 = vmax.f32 %v1654_v28, %v729_v22  ;;  %v744_v41 = vmax.f32 %v1655_v40, %v696_v14  ;;  %v424_v46 = vadd.f32 %v1354_v25, %v1434_v4  ;;  %v699_v0 = vmax.f32 %v489_v39, 0.0 }
 0x119   :  { %v760_v15 = vmax.f32 %v1656_v60, %v728_v43  ;;  %v731_v44 = vmax.f32 %v649_v63, 0.0  ;;  %v584_v16 = vadd.f32 %v1354_v25, %v1436_v5  ;;  %v698_v48 = vmax.f32 %v484_v61, 0.0  ;;  %v994_v20 = vpop.f32.mrb[28].mxu0  ;;  %v1042_v21 = vpop.f32.mrb[28].mxu1 }
 0x11a   :  { %v777_v47 = vmax.f32 %v745_v34, %v761_v38  ;;  %v730_v2 = vmax.f32 %v644_v32, 0.0  ;;  %v1657_v3 = vmax.f32 %v1441_v8, 0.0  ;;  %v1658_v4 = vmax.f32 %v1444_v9, 0.0  ;;  %v493_v6 = vpop.f32.mrb[29].mxu0  ;;  %v653_v7 = vpop.f32.mrb[29].mxu1 }
 0x11b   :  { %v776_v33 = vmax.f32 %v744_v41, %v760_v15  ;;  %v499_v53 = vadd.f32 %v994_v20, %v1354_v25  ;;  %v659_v5 = vadd.f32 %v1042_v21, %v1354_v25  ;;  %v746_v27 = vmax.f32 %v682_v35, %v698_v48 }
 0x11c   :  { %794 = vst.msk [vmem:[%s1651_s3 + $0x48] sm:$0xff] %vm784_vm2, %v777_v47  ;;  %v747_v49 = vmax.f32 %v1657_v3, %v699_v0  ;;  %v763_v52 = vmax.f32 %v1658_v4, %v731_v44  ;;  %v1659_v8 = vmax.f32 %v1452_v13, 0.0  ;;  %v494_v9 = vadd.f32 %v1354_v25, %v493_v6 }
 0x11d   :  { %793 = vst.msk [vmem:[%s1651_s3 + $0x40] sm:$0xff] %vm784_vm2, %v776_v33  ;;  %v654_v24 = vadd.f32 %v1354_v25, %v653_v7  ;;  %v687_v36 = vmax.f32 %v1560_v37, 0.0  ;;  %v701_v10 = vmax.f32 %v499_v53, 0.0  ;;  %v733_v57 = vmax.f32 %v659_v5, 0.0  ;;  %v997_v58 = vpop.f32.mrb[30].mxu0  ;;  %v1045_v12 = vpop.f32.mrb[30].mxu1 }
 0x11e   :  { %v762_v30 = vmax.f32 %v1659_v8, %v730_v2  ;;  %v779_v56 = vmax.f32 %v747_v49, %v763_v52  ;;  %v719_v11 = vmax.f32 %v1564_v23, 0.0  ;;  %v700_v26 = vmax.f32 %v494_v9, 0.0  ;;  %v503_v14 = vpop.f32.mrb[31].mxu0  ;;  %v663_v43 = vpop.f32.mrb[31].mxu1 }
 0x11f   :  { %v732_v22 = vmax.f32 %v654_v24, 0.0  ;;  %v749_v13 = vmax.f32 %v685_v51, %v701_v10  ;;  %v765_v35 = vmax.f32 %v717_v42, %v733_v57  ;;  %v509_v37 = vadd.f32 %v997_v58, %v1354_v25 }
 0x120   :  { %v778_v50 = vmax.f32 %v746_v27, %v762_v30  ;;  %796 = vst.msk [vmem:[%s1651_s3 + $0x58] sm:$0xff] %vm784_vm2, %v779_v56  ;;  %v669_v23 = vadd.f32 %v1045_v12, %v1354_v25  ;;  %v748_v59 = vmax.f32 %v684_v1, %v700_v26  ;;  %v504_v19 = vadd.f32 %v1354_v25, %v503_v14 }
 0x121   :  { %v764_v18 = vmax.f32 %v716_v45, %v732_v22  ;;  %v664_v51 = vadd.f32 %v1354_v25, %v663_v43  ;;  %v686_v42 = vmax.f32 %v424_v46, 0.0  ;;  %v781_v31 = vmax.f32 %v749_v13, %v765_v35 }
 0x122   :  { %795 = vst.msk [vmem:[%s1651_s3 + $0x50] sm:$0xff] %vm784_vm2, %v778_v50  ;;  %v703_v62 = vmax.f32 %v509_v37, 0.0  ;;  %v735_v34 = vmax.f32 %v669_v23, 0.0  ;;  %v718_v28 = vmax.f32 %v584_v16, 0.0  ;;  %v702_v39 = vmax.f32 %v504_v19, 0.0 }
 0x123   :  { %v780_v38 = vmax.f32 %v748_v59, %v764_v18  ;;  %v734_v63 = vmax.f32 %v664_v51, 0.0  ;;  %798 = vst.msk [vmem:[%s1651_s3 + $0x68] sm:$0xff] %vm784_vm2, %v781_v31 }
 0x124   :  { %v751_v29 = vmax.f32 %v687_v36, %v703_v62  ;;  %v767_v17 = vmax.f32 %v719_v11, %v735_v34  ;;  %v750_v25 = vmax.f32 %v686_v42, %v702_v39 }
 0x125   :  { %797 = vst.msk [vmem:[%s1651_s3 + $0x60] sm:$0xff] %vm784_vm2, %v780_v38  ;;  %v766_v1 = vmax.f32 %v718_v28, %v734_v63 }
 0x126   :  { %v783_v45 = vmax.f32 %v751_v29, %v767_v17 }
 0x127   :  { %v782_v54 = vmax.f32 %v750_v25, %v766_v1 }
 0x128   :  { %800 = vst.msk [vmem:[%s1651_s3 + $0x78] sm:$0xff] %vm784_vm2, %v783_v45 }
 0x129   :  { %799 = vst.msk [vmem:[%s1651_s3 + $0x70] sm:$0xff] %vm784_vm2, %v782_v54 }

// kernel: vgg_forward.4
= control target key start
LH: loop header
LB: loop body
LE: loop exit
PB: predicated region body
PF: predicated region fallthrough
CT: control target
= control target key end

     0   :  { %v1427_v0 = vmov 0.0|0.0   ;;  %vm213_vm0 = vcmask 261120   ;;  %vm1124_vm1 = vcmask 523264   ;;  %vm1137_vm2 = vcmask 517120   ;;  %s2348_s1 = inlined_call_operand.vmem [shape: f32[288,64], index: 1, kind: input, shape index: {}]   ;;  %s2349_s0 = inlined_call_operand.vmem [shape: f32[416,288], index: 0, kind: input, shape index: {}]   ;;  %s2350_s2 = inlined_call_operand.vmem [shape: f32[1,64], index: 2, kind: input, shape index: {}]   ;;  %s2351_s3 = inlined_call_operand.vmem [shape: f32[98,64], index: 3, kind: output, shape index: {}]  }
   0x1   :  { %1338 = vmatprep.subr.bf16.mxu0 %v1427_v0  ;;  %1394 = vmatprep.subr.bf16.mxu1 %v1427_v0  ;;  %v170_v1 = vld [vmem:[%s2348_s1] sm:$0xff]  ;;  %v171_v2 = vld [vmem:[%s2348_s1 + $0x8] sm:$0xff]  ;;  %v172_v3 = vld [vmem:[%s2348_s1 + $0x10] sm:$0xff] }
   0x2   :  { %v1339_v4 = vpack.c.bf16 %v171_v2, %v170_v1  ;;  %v173_v5 = vld [vmem:[%s2348_s1 + $0x18] sm:$0xff]  ;;  %v174_v7 = vld [vmem:[%s2348_s1 + $0x20] sm:$0xff]  ;;  %v175_v8 = vld [vmem:[%s2348_s1 + $0x28] sm:$0xff] }
   0x3   :  { %v1342_v6 = vpack.c.bf16 %v173_v5, %v172_v3  ;;  %v1345_v9 = vpack.c.bf16 %v175_v8, %v174_v7  ;;  %v176_v10 = vld [vmem:[%s2348_s1 + $0x30] sm:$0xff]  ;;  %v177_v11 = vld [vmem:[%s2348_s1 + $0x38] sm:$0xff]  ;;  %v15_v12 = vld [vmem:[%s2349_s0 + $0x8] sm:$0xff] }
   0x4   :  { %1340 = vmatpush1.bf16.msra.mxu0 %v1339_v4  ;;  %1410 = vmatpush1.bf16.msra.mxu1 %v1339_v4  ;;  %v1348_v13 = vpack.c.bf16 %v177_v11, %v176_v10  ;;  %v132_v14 = vld [vmem:[%s2349_s0 + $0x3b0] sm:$0xff]  ;;  %v178_v15 = vld [vmem:[%s2348_s1 + $0x40] sm:$0xff]  ;;  %v179_v16 = vld [vmem:[%s2348_s1 + $0x48] sm:$0xff] }
   0x5   :  { %1341 = vmatprep.subr.bf16.mxu0 %v1427_v0  ;;  %1395 = vmatprep.subr.bf16.mxu1 %v1427_v0  ;;  %v1351_v17 = vpack.c.bf16 %v179_v16, %v178_v15  ;;  %v180_v18 = vld [vmem:[%s2348_s1 + $0x50] sm:$0xff]  ;;  %v181_v19 = vld [vmem:[%s2348_s1 + $0x58] sm:$0xff]  ;;  %v182_v21 = vld [vmem:[%s2348_s1 + $0x60] sm:$0xff] }
   0x6   :  { %434 = vmatprep.mubr.f32.mxu0 %v15_v12  ;;  %629 = vmatprep.mubr.f32.mxu1 %v132_v14  ;;  %v1354_v20 = vpack.c.bf16 %v181_v19, %v180_v18  ;;  %v183_v22 = vld [vmem:[%s2348_s1 + $0x68] sm:$0xff]  ;;  %v184_v24 = vld [vmem:[%s2348_s1 + $0x70] sm:$0xff]  ;;  %v185_v25 = vld [vmem:[%s2348_s1 + $0x78] sm:$0xff] }
   0x7   :  { %v1357_v23 = vpack.c.bf16 %v183_v22, %v182_v21  ;;  %v1360_v26 = vpack.c.bf16 %v185_v25, %v184_v24  ;;  %v186_v27 = vld [vmem:[%s2348_s1 + $0x80] sm:$0xff]  ;;  %v187_v28 = vld [vmem:[%s2348_s1 + $0x88] sm:$0xff]  ;;  %v188_v30 = vld [vmem:[%s2348_s1 + $0x90] sm:$0xff] }
   0x8   :  { %1343 = vmatpush1.bf16.msra.mxu0 %v1342_v6  ;;  %1411 = vmatpush1.bf16.msra.mxu1 %v1342_v6  ;;  %v1363_v29 = vpack.c.bf16 %v187_v28, %v186_v27  ;;  %v189_v31 = vld [vmem:[%s2348_s1 + $0x98] sm:$0xff]  ;;  %v190_v33 = vld [vmem:[%s2348_s1 + $0xa0] sm:$0xff]  ;;  %v191_v34 = vld [vmem:[%s2348_s1 + $0xa8] sm:$0xff] }
   0x9   :  { %1344 = vmatprep.subr.bf16.mxu0 %v1427_v0  ;;  %1396 = vmatprep.subr.bf16.mxu1 %v1427_v0  ;;  %v1366_v32 = vpack.c.bf16 %v189_v31, %v188_v30  ;;  %v1369_v35 = vpack.c.bf16 %v191_v34, %v190_v33  ;;  %v192_v36 = vld [vmem:[%s2348_s1 + $0xb0] sm:$0xff]  ;;  %v193_v37 = vld [vmem:[%s2348_s1 + $0xb8] sm:$0xff]  ;;  %v194_v39 = vld [vmem:[%s2348_s1 + $0xc0] sm:$0xff] }
   0xa   :  { %v1372_v38 = vpack.c.bf16 %v193_v37, %v192_v36  ;;  %v195_v40 = vld [vmem:[%s2348_s1 + $0xc8] sm:$0xff]  ;;  %v196_v42 = vld [vmem:[%s2348_s1 + $0xd0] sm:$0xff]  ;;  %v197_v43 = vld [vmem:[%s2348_s1 + $0xd8] sm:$0xff] }
   0xb   :  { %v1375_v41 = vpack.c.bf16 %v195_v40, %v194_v39  ;;  %v1378_v44 = vpack.c.bf16 %v197_v43, %v196_v42  ;;  %v198_v45 = vld [vmem:[%s2348_s1 + $0xe0] sm:$0xff]  ;;  %v199_v46 = vld [vmem:[%s2348_s1 + $0xe8] sm:$0xff]  ;;  %v200_v48 = vld [vmem:[%s2348_s1 + $0xf0] sm:$0xff] }
   0xc   :  { %1346 = vmatpush1.bf16.msra.mxu0 %v1345_v9  ;;  %1412 = vmatpush1.bf16.msra.mxu1 %v1345_v9  ;;  %v1381_v47 = vpack.c.bf16 %v199_v46, %v198_v45  ;;  %v201_v49 = vld [vmem:[%s2348_s1 + $0xf8] sm:$0xff]  ;;  %v202_v50 = vld [vmem:[%s2348_s1 + $0x100] sm:$0xff]  ;;  %v203_v51 = vld [vmem:[%s2348_s1 + $0x108] sm:$0xff] }
   0xd   :  { %1347 = vmatprep.subr.bf16.mxu0 %v1427_v0  ;;  %1397 = vmatprep.subr.bf16.mxu1 %v1427_v0  ;;  %v1384_v52 = vpack.c.bf16 %v201_v49, %v200_v48  ;;  %v1386_v53 = vpack.c.bf16 %v203_v51, %v202_v50  ;;  %v204_v54 = vld [vmem:[%s2348_s1 + $0x110] sm:$0xff]  ;;  %v205_v55 = vld [vmem:[%s2348_s1 + $0x118] sm:$0xff]  ;;  %v14_v56 = vld [vmem:[%s2349_s0] sm:$0xff] }
   0xe   :  { %v131_v57 = vld [vmem:[%s2349_s0 + $0x3a8] sm:$0xff]  ;;  %v18_v58 = vld [vmem:[%s2349_s0 + $0x20] sm:$0xff]  ;;  %v1390_v60 = vpack.c.bf16 %v205_v55, %v204_v54  ;;  %v17_v61 = vld [vmem:[%s2349_s0 + $0x18] sm:$0xff] }
   0xf   :  { %v135_v59 = vld [vmem:[%s2349_s0 + $0x3c8] sm:$0xff]  ;;  %v134_v62 = vld [vmem:[%s2349_s0 + $0x3c0] sm:$0xff]  ;;  %v21_v63 = vld [vmem:[%s2349_s0 + $0x38] sm:$0xff] }
  0x10   :  { %1349 = vmatpush1.bf16.msra.mxu0 %v1348_v13  ;;  %1413 = vmatpush1.bf16.msra.mxu1 %v1348_v13  ;;  %v20_v1 = vld [vmem:[%s2349_s0 + $0x30] sm:$0xff]  ;;  %v137_v2 = vld [vmem:[%s2349_s0 + $0x3d8] sm:$0xff]  ;;  %v23_v5 = vld [vmem:[%s2349_s0 + $0x48] sm:$0xff] }
  0x11   :  { %1350 = vmatprep.subr.bf16.mxu0 %v1427_v0  ;;  %1398 = vmatprep.subr.bf16.mxu1 %v1427_v0  ;;  %v24_v3 = vld [vmem:[%s2349_s0 + $0x50] sm:$0xff]  ;;  %v141_v4 = vld [vmem:[%s2349_s0 + $0x3f8] sm:$0xff]  ;;  %v27_v7 = vld [vmem:[%s2349_s0 + $0x68] sm:$0xff] }
  0x12   :  { %v140_v6 = vld [vmem:[%s2349_s0 + $0x3f0] sm:$0xff]  ;;  %v26_v9 = vld [vmem:[%s2349_s0 + $0x60] sm:$0xff]  ;;  %v143_v10 = vld [vmem:[%s2349_s0 + $0x408] sm:$0xff] }
  0x13   :  { %v144_v8 = vld [vmem:[%s2349_s0 + $0x410] sm:$0xff]  ;;  %v30_v11 = vld [vmem:[%s2349_s0 + $0x80] sm:$0xff]  ;;  %v147_v12 = vld [vmem:[%s2349_s0 + $0x428] sm:$0xff] }
  0x14   :  { %1352 = vmatpush1.bf16.msra.mxu0 %v1351_v17  ;;  %1414 = vmatpush1.bf16.msra.mxu1 %v1351_v17  ;;  %v29_v13 = vld [vmem:[%s2349_s0 + $0x78] sm:$0xff]  ;;  %v146_v14 = vld [vmem:[%s2349_s0 + $0x420] sm:$0xff]  ;;  %v32_v17 = vld [vmem:[%s2349_s0 + $0x90] sm:$0xff] }
  0x15   :  { %1353 = vmatprep.subr.bf16.mxu0 %v1427_v0  ;;  %1399 = vmatprep.subr.bf16.mxu1 %v1427_v0  ;;  %v33_v15 = vld [vmem:[%s2349_s0 + $0x98] sm:$0xff]  ;;  %v150_v16 = vld [vmem:[%s2349_s0 + $0x440] sm:$0xff]  ;;  %v36_v19 = vld [vmem:[%s2349_s0 + $0xb0] sm:$0xff] }
  0x16   :  { %v149_v18 = vld [vmem:[%s2349_s0 + $0x438] sm:$0xff]  ;;  %v35_v21 = vld [vmem:[%s2349_s0 + $0xa8] sm:$0xff]  ;;  %v152_v22 = vld [vmem:[%s2349_s0 + $0x450] sm:$0xff] }
  0x17   :  { %v156_v24 = vld [vmem:[%s2349_s0 + $0x470] sm:$0xff]  ;;  %v38_v25 = vld [vmem:[%s2349_s0 + $0xc0] sm:$0xff]  ;;  %v159_v28 = vld [vmem:[%s2349_s0 + $0x488] sm:$0xff] }
  0x18   :  { %1355 = vmatpush1.bf16.msra.mxu0 %v1354_v20  ;;  %1415 = vmatpush1.bf16.msra.mxu1 %v1354_v20  ;;  %v153_v20 = vld [vmem:[%s2349_s0 + $0x458] sm:$0xff]  ;;  %v42_v27 = vld [vmem:[%s2349_s0 + $0xe0] sm:$0xff]  ;;  %v44_v33 = vld [vmem:[%s2349_s0 + $0xf0] sm:$0xff] }
  0x19   :  { %1356 = vmatprep.subr.bf16.mxu0 %v1427_v0  ;;  %1400 = vmatprep.subr.bf16.mxu1 %v1427_v0  ;;  %v158_v30 = vld [vmem:[%s2349_s0 + $0x480] sm:$0xff]  ;;  %v45_v31 = vld [vmem:[%s2349_s0 + $0xf8] sm:$0xff]  ;;  %v47_v37 = vld [vmem:[%s2349_s0 + $0x108] sm:$0xff] }
  0x1a   :  { %v161_v34 = vld [vmem:[%s2349_s0 + $0x498] sm:$0xff]  ;;  %v51_v39 = vld [vmem:[%s2349_s0 + $0x128] sm:$0xff]  ;;  %v168_v40 = vld [vmem:[%s2349_s0 + $0x4d0] sm:$0xff] }
  0x1b   :  { %v165_v36 = vld [vmem:[%s2349_s0 + $0x4b8] sm:$0xff]  ;;  %v167_v42 = vld [vmem:[%s2349_s0 + $0x4c8] sm:$0xff]  ;;  %v54_v43 = vld [vmem:[%s2349_s0 + $0x140] sm:$0xff] }
  0x1c   :  { %1358 = vmatpush1.bf16.msra.mxu0 %v1357_v23  ;;  %1416 = vmatpush1.bf16.msra.mxu1 %v1357_v23  ;;  %v39_v23 = vld [vmem:[%s2349_s0 + $0xc8] sm:$0xff]  ;;  %v53_v45 = vld [vmem:[%s2349_s0 + $0x138] sm:$0xff]  ;;  %v22_v48 = vld [vmem:[%s2349_s0 + $0x40] sm:$0xff] }
  0x1d   :  { %1359 = vmatprep.subr.bf16.mxu0 %v1427_v0  ;;  %1401 = vmatprep.subr.bf16.mxu1 %v1427_v0  ;;  %v19_v46 = vld [vmem:[%s2349_s0 + $0x28] sm:$0xff]  ;;  %v56_v49 = vld [vmem:[%s2349_s0 + $0x150] sm:$0xff]  ;;  %v25_v50 = vld [vmem:[%s2349_s0 + $0x58] sm:$0xff] }
  0x1e   :  { %v60_v51 = vld [vmem:[%s2349_s0 + $0x170] sm:$0xff]  ;;  %v31_v54 = vld [vmem:[%s2349_s0 + $0x88] sm:$0xff] }
  0x1f   :  { %v63_v55 = vld [vmem:[%s2349_s0 + $0x188] sm:$0xff] }
  0x20   :  { %1361 = vmatpush1.bf16.msra.mxu0 %v1360_v26  ;;  %1417 = vmatpush1.bf16.msra.mxu1 %v1360_v26  ;;  %v155_v26 = vld [vmem:[%s2349_s0 + $0x468] sm:$0xff] }
  0x21   :  { %1362 = vmatprep.subr.bf16.mxu0 %v1427_v0  ;;  %1402 = vmatprep.subr.bf16.mxu1 %v1427_v0 }
  0x24   :  { %1364 = vmatpush1.bf16.msra.mxu0 %v1363_v29  ;;  %1418 = vmatpush1.bf16.msra.mxu1 %v1363_v29  ;;  %v41_v29 = vld [vmem:[%s2349_s0 + $0xd8] sm:$0xff] }
  0x25   :  { %1365 = vmatprep.subr.bf16.mxu0 %v1427_v0  ;;  %1403 = vmatprep.subr.bf16.mxu1 %v1427_v0 }
  0x28   :  { %1367 = vmatpush1.bf16.msra.mxu0 %v1366_v32  ;;  %1419 = vmatpush1.bf16.msra.mxu1 %v1366_v32  ;;  %v162_v32 = vld [vmem:[%s2349_s0 + $0x4a0] sm:$0xff] }
  0x29   :  { %1368 = vmatprep.subr.bf16.mxu0 %v1427_v0  ;;  %1404 = vmatprep.subr.bf16.mxu1 %v1427_v0 }
  0x2c   :  { %1370 = vmatpush1.bf16.msra.mxu0 %v1369_v35  ;;  %1420 = vmatpush1.bf16.msra.mxu1 %v1369_v35  ;;  %v48_v35 = vld [vmem:[%s2349_s0 + $0x110] sm:$0xff] }
  0x2d   :  { %1371 = vmatprep.subr.bf16.mxu0 %v1427_v0  ;;  %1405 = vmatprep.subr.bf16.mxu1 %v1427_v0 }
  0x30   :  { %1373 = vmatpush1.bf16.msra.mxu0 %v1372_v38  ;;  %1421 = vmatpush1.bf16.msra.mxu1 %v1372_v38  ;;  %v164_v38 = vld [vmem:[%s2349_s0 + $0x4b0] sm:$0xff] }
  0x31   :  { %1374 = vmatprep.subr.bf16.mxu0 %v1427_v0  ;;  %1406 = vmatprep.subr.bf16.mxu1 %v1427_v0 }
  0x34   :  { %1376 = vmatpush1.bf16.msra.mxu0 %v1375_v41  ;;  %1422 = vmatpush1.bf16.msra.mxu1 %v1375_v41  ;;  %v50_v41 = vld [vmem:[%s2349_s0 + $0x120] sm:$0xff] }
  0x35   :  { %1377 = vmatprep.subr.bf16.mxu0 %v1427_v0  ;;  %1407 = vmatprep.subr.bf16.mxu1 %v1427_v0 }
  0x38   :  { %1379 = vmatpush1.bf16.msra.mxu0 %v1378_v44  ;;  %1423 = vmatpush1.bf16.msra.mxu1 %v1378_v44  ;;  %v16_v44 = vld [vmem:[%s2349_s0 + $0x10] sm:$0xff] }
  0x39   :  { %1380 = vmatprep.subr.bf16.mxu0 %v1427_v0  ;;  %1408 = vmatprep.subr.bf16.mxu1 %v1427_v0 }
  0x3c   :  { %1382 = vmatpush1.bf16.msra.mxu0 %v1381_v47  ;;  %1424 = vmatpush1.bf16.msra.mxu1 %v1381_v47  ;;  %v57_v47 = vld [vmem:[%s2349_s0 + $0x158] sm:$0xff] }
  0x3d   :  { %1383 = vmatprep.subr.bf16.mxu0 %v1427_v0  ;;  %1409 = vmatprep.subr.bf16.mxu1 %v1427_v0  ;;  %v138_v0 = vld [vmem:[%s2349_s0 + $0x3e0] sm:$0xff] }
  0x40   :  { %1385 = vmatpush1.bf16.msra.mxu0 %v1384_v52  ;;  %1425 = vmatpush1.bf16.msra.mxu1 %v1384_v52  ;;  %v28_v52 = vld [vmem:[%s2349_s0 + $0x70] sm:$0xff] }
  0x41   :  { %1387 = vmatprep.subr.bf16.mxu1 %v1386_v53 }
  0x43   :  { %435 = vmatmul.mubr.f32.vlgmr.msra.gmra.mrb[0].mxu0 %v14_v56  ;;  %630 = vmatmul.mubr.f32.vlgmr.msra.gmra.mrb[0].mxu1 %v131_v57  ;;  %v34_v56 = vld [vmem:[%s2349_s0 + $0xa0] sm:$0xff] }
  0x44   :  { %439 = vmatprep.mubr.f32.mxu0 %v18_v58  ;;  %634 = vmatprep.mubr.f32.mxu1 %v135_v59  ;;  %v62_v57 = vld [vmem:[%s2349_s0 + $0x180] sm:$0xff]  ;;  %v37_v58 = vld [vmem:[%s2349_s0 + $0xb8] sm:$0xff] }
  0x45   :  { %1389 = vmatpush3.bf16.msra.mxu1 %v1386_v53  ;;  %v59_v53 = vld [vmem:[%s2349_s0 + $0x168] sm:$0xff]  ;;  %v66_v59 = vld [vmem:[%s2349_s0 + $0x1a0] sm:$0xff] }
  0x46   :  { %1391 = vmatprep.subr.bf16.mxu1 %v1390_v60 }
  0x47   :  { %440 = vmatmul.mubr.f32.gmra.mrb[2].mxu0 %v17_v61  ;;  %635 = vmatmul.mubr.f32.gmra.mrb[2].mxu1 %v134_v62  ;;  %v65_v61 = vld [vmem:[%s2349_s0 + $0x198] sm:$0xff]  ;;  %v43_v62 = vld [vmem:[%s2349_s0 + $0xe8] sm:$0xff] }
  0x48   :  { %444 = vmatprep.mubr.f32.mxu0 %v21_v63  ;;  %639 = vmatprep.mubr.f32.mxu1 %v138_v0  ;;  %v69_v63 = vld [vmem:[%s2349_s0 + $0x1b8] sm:$0xff]  ;;  %v46_v0 = vld [vmem:[%s2349_s0 + $0x100] sm:$0xff] }
  0x49   :  { %1393 = vmatpush3.bf16.msra.mxu1 %v1390_v60  ;;  %v40_v60 = vld [vmem:[%s2349_s0 + $0xd0] sm:$0xff] }
  0x4b   :  { %445 = vmatmul.mubr.f32.gmra.mrb[4].mxu0 %v20_v1  ;;  %640 = vmatmul.mubr.f32.gmra.mrb[4].mxu1 %v137_v2  ;;  %v68_v1 = vld [vmem:[%s2349_s0 + $0x1b0] sm:$0xff]  ;;  %v49_v2 = vld [vmem:[%s2349_s0 + $0x118] sm:$0xff] }
  0x4c   :  { %449 = vmatprep.mubr.f32.mxu0 %v24_v3  ;;  %644 = vmatprep.mubr.f32.mxu1 %v141_v4  ;;  %v72_v3 = vld [vmem:[%s2349_s0 + $0x1d0] sm:$0xff] }
  0x4d   :  { %v52_v4 = vld [vmem:[%s2349_s0 + $0x130] sm:$0xff] }
  0x4f   :  { %450 = vmatmul.mubr.f32.gmra.mrb[6].mxu0 %v23_v5  ;;  %645 = vmatmul.mubr.f32.gmra.mrb[6].mxu1 %v140_v6  ;;  %v71_v5 = vld [vmem:[%s2349_s0 + $0x1c8] sm:$0xff] }
  0x50   :  { %454 = vmatprep.mubr.f32.mxu0 %v27_v7  ;;  %649 = vmatprep.mubr.f32.mxu1 %v144_v8  ;;  %v55_v6 = vld [vmem:[%s2349_s0 + $0x148] sm:$0xff]  ;;  %v58_v8 = vld [vmem:[%s2349_s0 + $0x160] sm:$0xff] }
  0x51   :  { %v75_v7 = vld [vmem:[%s2349_s0 + $0x1e8] sm:$0xff] }
  0x53   :  { %455 = vmatmul.mubr.f32.gmra.mrb[8].mxu0 %v26_v9  ;;  %650 = vmatmul.mubr.f32.gmra.mrb[8].mxu1 %v143_v10  ;;  %v74_v9 = vld [vmem:[%s2349_s0 + $0x1e0] sm:$0xff]  ;;  %v61_v10 = vld [vmem:[%s2349_s0 + $0x178] sm:$0xff] }
  0x54   :  { %459 = vmatprep.mubr.f32.mxu0 %v30_v11  ;;  %654 = vmatprep.mubr.f32.mxu1 %v147_v12  ;;  %v78_v11 = vld [vmem:[%s2349_s0 + $0x200] sm:$0xff]  ;;  %v64_v12 = vld [vmem:[%s2349_s0 + $0x190] sm:$0xff] }
  0x57   :  { %460 = vmatmul.mubr.f32.gmra.mrb[10].mxu0 %v29_v13  ;;  %655 = vmatmul.mubr.f32.gmra.mrb[10].mxu1 %v146_v14  ;;  %v77_v13 = vld [vmem:[%s2349_s0 + $0x1f8] sm:$0xff]  ;;  %v67_v14 = vld [vmem:[%s2349_s0 + $0x1a8] sm:$0xff] }
  0x58   :  { %464 = vmatprep.mubr.f32.mxu0 %v33_v15  ;;  %659 = vmatprep.mubr.f32.mxu1 %v150_v16  ;;  %v81_v15 = vld [vmem:[%s2349_s0 + $0x218] sm:$0xff]  ;;  %v70_v16 = vld [vmem:[%s2349_s0 + $0x1c0] sm:$0xff] }
  0x5b   :  { %465 = vmatmul.mubr.f32.gmra.mrb[12].mxu0 %v32_v17  ;;  %660 = vmatmul.mubr.f32.gmra.mrb[12].mxu1 %v149_v18  ;;  %v80_v17 = vld [vmem:[%s2349_s0 + $0x210] sm:$0xff]  ;;  %v73_v18 = vld [vmem:[%s2349_s0 + $0x1d8] sm:$0xff] }
  0x5c   :  { %469 = vmatprep.mubr.f32.mxu0 %v36_v19  ;;  %664 = vmatprep.mubr.f32.mxu1 %v153_v20  ;;  %v84_v19 = vld [vmem:[%s2349_s0 + $0x230] sm:$0xff] }
  0x5d   :  { %v76_v20 = vld [vmem:[%s2349_s0 + $0x1f0] sm:$0xff] }
  0x5f   :  { %470 = vmatmul.mubr.f32.gmra.mrb[14].mxu0 %v35_v21  ;;  %665 = vmatmul.mubr.f32.gmra.mrb[14].mxu1 %v152_v22  ;;  %v83_v21 = vld [vmem:[%s2349_s0 + $0x228] sm:$0xff] }
  0x60   :  { %474 = vmatprep.mubr.f32.mxu0 %v39_v23  ;;  %669 = vmatprep.mubr.f32.mxu1 %v156_v24  ;;  %v79_v22 = vld [vmem:[%s2349_s0 + $0x208] sm:$0xff]  ;;  %v82_v24 = vld [vmem:[%s2349_s0 + $0x220] sm:$0xff] }
  0x61   :  { %v87_v23 = vld [vmem:[%s2349_s0 + $0x248] sm:$0xff] }
  0x63   :  { %475 = vmatmul.mubr.f32.gmra.mrb[16].mxu0 %v38_v25  ;;  %670 = vmatmul.mubr.f32.gmra.mrb[16].mxu1 %v155_v26  ;;  %v86_v25 = vld [vmem:[%s2349_s0 + $0x240] sm:$0xff]  ;;  %v85_v26 = vld [vmem:[%s2349_s0 + $0x238] sm:$0xff] }
  0x64   :  { %479 = vmatprep.mubr.f32.mxu0 %v42_v27  ;;  %674 = vmatprep.mubr.f32.mxu1 %v159_v28  ;;  %v90_v27 = vld [vmem:[%s2349_s0 + $0x260] sm:$0xff]  ;;  %v88_v28 = vld [vmem:[%s2349_s0 + $0x250] sm:$0xff] }
  0x67   :  { %480 = vmatmul.mubr.f32.gmra.mrb[18].mxu0 %v41_v29  ;;  %675 = vmatmul.mubr.f32.gmra.mrb[18].mxu1 %v158_v30  ;;  %v89_v29 = vld [vmem:[%s2349_s0 + $0x258] sm:$0xff]  ;;  %v91_v30 = vld [vmem:[%s2349_s0 + $0x268] sm:$0xff] }
  0x68   :  { %484 = vmatprep.mubr.f32.mxu0 %v45_v31  ;;  %679 = vmatprep.mubr.f32.mxu1 %v162_v32  ;;  %v93_v31 = vld [vmem:[%s2349_s0 + $0x278] sm:$0xff]  ;;  %v94_v32 = vld [vmem:[%s2349_s0 + $0x280] sm:$0xff] }
  0x6b   :  { %485 = vmatmul.mubr.f32.gmra.mrb[20].mxu0 %v44_v33  ;;  %680 = vmatmul.mubr.f32.gmra.mrb[20].mxu1 %v161_v34  ;;  %v92_v33 = vld [vmem:[%s2349_s0 + $0x270] sm:$0xff]  ;;  %v97_v34 = vld [vmem:[%s2349_s0 + $0x298] sm:$0xff] }
  0x6c   :  { %489 = vmatprep.mubr.f32.mxu0 %v48_v35  ;;  %684 = vmatprep.mubr.f32.mxu1 %v165_v36  ;;  %v96_v35 = vld [vmem:[%s2349_s0 + $0x290] sm:$0xff] }
  0x6d   :  { %v100_v36 = vld [vmem:[%s2349_s0 + $0x2b0] sm:$0xff] }
  0x6f   :  { %490 = vmatmul.mubr.f32.gmra.mrb[22].mxu0 %v47_v37  ;;  %685 = vmatmul.mubr.f32.gmra.mrb[22].mxu1 %v164_v38  ;;  %v95_v37 = vld [vmem:[%s2349_s0 + $0x288] sm:$0xff] }
  0x70   :  { %494 = vmatprep.mubr.f32.mxu0 %v51_v39  ;;  %689 = vmatprep.mubr.f32.mxu1 %v168_v40  ;;  %v103_v38 = vld [vmem:[%s2349_s0 + $0x2c8] sm:$0xff]  ;;  %v106_v40 = vld [vmem:[%s2349_s0 + $0x2e0] sm:$0xff] }
  0x71   :  { %v99_v39 = vld [vmem:[%s2349_s0 + $0x2a8] sm:$0xff] }
  0x73   :  { %495 = vmatmul.mubr.f32.gmra.mrb[24].mxu0 %v50_v41  ;;  %690 = vmatmul.mubr.f32.gmra.mrb[24].mxu1 %v167_v42  ;;  %v98_v41 = vld [vmem:[%s2349_s0 + $0x2a0] sm:$0xff]  ;;  %v109_v42 = vld [vmem:[%s2349_s0 + $0x2f8] sm:$0xff] }
  0x74   :  { %499 = vmatprep.mubr.f32.mxu0 %v54_v43  ;;  %1260 = vmatprep.mubr.msk.f32.mxu1 %vm213_vm0, %v16_v44  ;;  %v102_v43 = vld [vmem:[%s2349_s0 + $0x2c0] sm:$0xff]  ;;  %v112_v44 = vld [vmem:[%s2349_s0 + $0x310] sm:$0xff] }
  0x77   :  { %500 = vmatmul.mubr.f32.gmra.mrb[26].mxu0 %v53_v45  ;;  %1261 = vmatmul.mubr.msk.f32.vlgmr.msra.gmra.mrb[26].mxu1 %vm213_vm0, %v19_v46  ;;  %v101_v45 = vld [vmem:[%s2349_s0 + $0x2b8] sm:$0xff]  ;;  %v115_v46 = vld [vmem:[%s2349_s0 + $0x328] sm:$0xff] }
  0x78   :  { %504 = vmatprep.mubr.f32.mxu0 %v57_v47  ;;  %1263 = vmatprep.mubr.msk.f32.mxu1 %vm213_vm0, %v22_v48  ;;  %v105_v47 = vld [vmem:[%s2349_s0 + $0x2d8] sm:$0xff]  ;;  %v118_v48 = vld [vmem:[%s2349_s0 + $0x340] sm:$0xff] }
  0x7b   :  { %505 = vmatmul.mubr.f32.gmra.mrb[28].mxu0 %v56_v49  ;;  %1264 = vmatmul.mubr.msk.f32.gmra.mrb[28].mxu1 %vm213_vm0, %v25_v50  ;;  %v104_v49 = vld [vmem:[%s2349_s0 + $0x2d0] sm:$0xff]  ;;  %v121_v50 = vld [vmem:[%s2349_s0 + $0x358] sm:$0xff] }
  0x7c   :  { %509 = vmatprep.mubr.f32.mxu0 %v60_v51  ;;  %1266 = vmatprep.mubr.msk.f32.mxu1 %vm213_vm0, %v28_v52  ;;  %v108_v51 = vld [vmem:[%s2349_s0 + $0x2f0] sm:$0xff] }
  0x7d   :  { %v124_v52 = vld [vmem:[%s2349_s0 + $0x370] sm:$0xff] }
  0x7f   :  { %510 = vmatmul.mubr.f32.gmra.mrb[30].mxu0 %v59_v53  ;;  %1267 = vmatmul.mubr.msk.f32.gmra.mrb[30].mxu1 %vm213_vm0, %v31_v54  ;;  %v107_v53 = vld [vmem:[%s2349_s0 + $0x2e8] sm:$0xff] }
  0x80   :  { %514 = vmatprep.mubr.f32.mxu0 %v63_v55  ;;  %1269 = vmatprep.mubr.msk.f32.mxu1 %vm213_vm0, %v34_v56  ;;  %v127_v54 = vld [vmem:[%s2349_s0 + $0x388] sm:$0xff]  ;;  %v130_v56 = vld [vmem:[%s2349_s0 + $0x3a0] sm:$0xff] }
  0x81   :  { %v111_v55 = vld [vmem:[%s2349_s0 + $0x308] sm:$0xff] }
  0x83   :  { %515 = vmatmul.mubr.f32.gmra.mrb[32].mxu0 %v62_v57  ;;  %1270 = vmatmul.mubr.msk.f32.gmra.mrb[32].mxu1 %vm213_vm0, %v37_v58  ;;  %v110_v57 = vld [vmem:[%s2349_s0 + $0x300] sm:$0xff]  ;;  %v133_v58 = vld [vmem:[%s2349_s0 + $0x3b8] sm:$0xff] }
  0x84   :  { %519 = vmatprep.mubr.f32.mxu0 %v66_v59  ;;  %1272 = vmatprep.mubr.msk.f32.mxu1 %vm213_vm0, %v40_v60  ;;  %v114_v59 = vld [vmem:[%s2349_s0 + $0x320] sm:$0xff]  ;;  %v136_v60 = vld [vmem:[%s2349_s0 + $0x3d0] sm:$0xff] }
  0x87   :  { %520 = vmatmul.mubr.f32.gmra.mrb[34].mxu0 %v65_v61  ;;  %1273 = vmatmul.mubr.msk.f32.gmra.mrb[34].mxu1 %vm213_vm0, %v43_v62  ;;  %v113_v61 = vld [vmem:[%s2349_s0 + $0x318] sm:$0xff]  ;;  %v139_v62 = vld [vmem:[%s2349_s0 + $0x3e8] sm:$0xff] }
  0x88   :  { %524 = vmatprep.mubr.f32.mxu0 %v69_v63  ;;  %1275 = vmatprep.mubr.msk.f32.mxu1 %vm213_vm0, %v46_v0  ;;  %v117_v63 = vld [vmem:[%s2349_s0 + $0x338] sm:$0xff]  ;;  %v142_v0 = vld [vmem:[%s2349_s0 + $0x400] sm:$0xff] }
  0x8b   :  { %525 = vmatmul.mubr.f32.gmra.mrb[36].mxu0 %v68_v1  ;;  %1276 = vmatmul.mubr.msk.f32.gmra.mrb[36].mxu1 %vm213_vm0, %v49_v2  ;;  %v116_v1 = vld [vmem:[%s2349_s0 + $0x330] sm:$0xff]  ;;  %v145_v2 = vld [vmem:[%s2349_s0 + $0x418] sm:$0xff] }
  0x8c   :  { %529 = vmatprep.mubr.f32.mxu0 %v72_v3  ;;  %1278 = vmatprep.mubr.msk.f32.mxu1 %vm213_vm0, %v52_v4  ;;  %v120_v3 = vld [vmem:[%s2349_s0 + $0x350] sm:$0xff] }
  0x8d   :  { %v148_v4 = vld [vmem:[%s2349_s0 + $0x430] sm:$0xff] }
  0x8f   :  { %530 = vmatmul.mubr.f32.gmra.mrb[38].mxu0 %v71_v5  ;;  %1279 = vmatmul.mubr.msk.f32.gmra.mrb[38].mxu1 %vm213_vm0, %v55_v6  ;;  %v119_v5 = vld [vmem:[%s2349_s0 + $0x348] sm:$0xff] }
  0x90   :  { %534 = vmatprep.mubr.f32.mxu0 %v75_v7  ;;  %1281 = vmatprep.mubr.msk.f32.mxu1 %vm213_vm0, %v58_v8  ;;  %v151_v6 = vld [vmem:[%s2349_s0 + $0x448] sm:$0xff]  ;;  %v154_v8 = vld [vmem:[%s2349_s0 + $0x460] sm:$0xff] }
  0x91   :  { %v123_v7 = vld [vmem:[%s2349_s0 + $0x368] sm:$0xff] }
  0x93   :  { %535 = vmatmul.mubr.f32.gmra.mrb[40].mxu0 %v74_v9  ;;  %1282 = vmatmul.mubr.msk.f32.gmra.mrb[40].mxu1 %vm213_vm0, %v61_v10  ;;  %v122_v9 = vld [vmem:[%s2349_s0 + $0x360] sm:$0xff]  ;;  %v157_v10 = vld [vmem:[%s2349_s0 + $0x478] sm:$0xff] }
  0x94   :  { %539 = vmatprep.mubr.f32.mxu0 %v78_v11  ;;  %1284 = vmatprep.mubr.msk.f32.mxu1 %vm213_vm0, %v64_v12  ;;  %v126_v11 = vld [vmem:[%s2349_s0 + $0x380] sm:$0xff]  ;;  %v160_v12 = vld [vmem:[%s2349_s0 + $0x490] sm:$0xff] }
  0x97   :  { %540 = vmatmul.mubr.f32.gmra.mrb[42].mxu0 %v77_v13  ;;  %1285 = vmatmul.mubr.msk.f32.gmra.mrb[42].mxu1 %vm213_vm0, %v67_v14  ;;  %v125_v13 = vld [vmem:[%s2349_s0 + $0x378] sm:$0xff]  ;;  %v163_v14 = vld [vmem:[%s2349_s0 + $0x4a8] sm:$0xff] }
  0x98   :  { %544 = vmatprep.mubr.f32.mxu0 %v81_v15  ;;  %1287 = vmatprep.mubr.msk.f32.mxu1 %vm213_vm0, %v70_v16  ;;  %v129_v15 = vld [vmem:[%s2349_s0 + $0x398] sm:$0xff]  ;;  %v166_v16 = vld [vmem:[%s2349_s0 + $0x4c0] sm:$0xff] }
  0x9b   :  { %545 = vmatmul.mubr.f32.gmra.mrb[44].mxu0 %v80_v17  ;;  %1288 = vmatmul.mubr.msk.f32.gmra.mrb[44].mxu1 %vm213_vm0, %v73_v18  ;;  %v128_v17 = vld [vmem:[%s2349_s0 + $0x390] sm:$0xff]  ;;  %v169_v18 = vld [vmem:[%s2349_s0 + $0x4d8] sm:$0xff] }
  0x9c   :  { %549 = vmatprep.mubr.f32.mxu0 %v84_v19  ;;  %1290 = vmatprep.mubr.msk.f32.mxu1 %vm213_vm0, %v76_v20 }
  0x9f   :  { %550 = vmatmul.mubr.f32.gmra.mrb[46].mxu0 %v83_v21  ;;  %1291 = vmatmul.mubr.msk.f32.gmra.mrb[46].mxu1 %vm213_vm0, %v79_v22 }
  0xa0   :  { %554 = vmatprep.mubr.f32.mxu0 %v87_v23  ;;  %1293 = vmatprep.mubr.msk.f32.mxu1 %vm213_vm0, %v82_v24 }
  0xa3   :  { %555 = vmatmul.mubr.f32.gmra.mrb[48].mxu0 %v86_v25  ;;  %1294 = vmatmul.mubr.msk.f32.gmra.mrb[48].mxu1 %vm213_vm0, %v85_v26 }
  0xa4   :  { %559 = vmatprep.mubr.f32.mxu0 %v90_v27  ;;  %1296 = vmatprep.mubr.msk.f32.mxu1 %vm213_vm0, %v88_v28 }
  0xa7   :  { %560 = vmatmul.mubr.f32.gmra.mrb[50].mxu0 %v89_v29  ;;  %1297 = vmatmul.mubr.msk.f32.gmra.mrb[50].mxu1 %vm213_vm0, %v91_v30 }
  0xa8   :  { %564 = vmatprep.mubr.f32.mxu0 %v93_v31  ;;  %1299 = vmatprep.mubr.msk.f32.mxu1 %vm213_vm0, %v94_v32 }
  0xab   :  { %565 = vmatmul.mubr.f32.gmra.mrb[52].mxu0 %v92_v33  ;;  %1300 = vmatmul.mubr.msk.f32.gmra.mrb[52].mxu1 %vm213_vm0, %v97_v34 }
  0xac   :  { %569 = vmatprep.mubr.f32.mxu0 %v96_v35  ;;  %1302 = vmatprep.mubr.msk.f32.mxu1 %vm213_vm0, %v100_v36 }
  0xaf   :  { %570 = vmatmul.mubr.f32.gmra.mrb[54].mxu0 %v95_v37  ;;  %1303 = vmatmul.mubr.msk.f32.gmra.mrb[54].mxu1 %vm213_vm0, %v103_v38 }
  0xb0   :  { %574 = vmatprep.mubr.f32.mxu0 %v99_v39  ;;  %1305 = vmatprep.mubr.msk.f32.mxu1 %vm213_vm0, %v106_v40 }
  0xb3   :  { %575 = vmatmul.mubr.f32.gmra.mrb[56].mxu0 %v98_v41  ;;  %1306 = vmatmul.mubr.msk.f32.gmra.mrb[56].mxu1 %vm213_vm0, %v109_v42 }
  0xb4   :  { %579 = vmatprep.mubr.f32.mxu0 %v102_v43  ;;  %1308 = vmatprep.mubr.msk.f32.mxu1 %vm213_vm0, %v112_v44 }
  0xb7   :  { %580 = vmatmul.mubr.f32.gmra.mrb[58].mxu0 %v101_v45  ;;  %1309 = vmatmul.mubr.msk.f32.gmra.mrb[58].mxu1 %vm213_vm0, %v115_v46 }
  0xb8   :  { %584 = vmatprep.mubr.f32.mxu0 %v105_v47  ;;  %1311 = vmatprep.mubr.msk.f32.mxu1 %vm213_vm0, %v118_v48 }
  0xbb   :  { %585 = vmatmul.mubr.f32.gmra.mrb[60].mxu0 %v104_v49  ;;  %1312 = vmatmul.mubr.msk.f32.gmra.mrb[60].mxu1 %vm213_vm0, %v121_v50 }
  0xbc   :  { %589 = vmatprep.mubr.f32.mxu0 %v108_v51  ;;  %1314 = vmatprep.mubr.msk.f32.mxu1 %vm213_vm0, %v124_v52 }
  0xbf   :  { %590 = vmatmul.mubr.f32.gmra.mrb[62].mxu0 %v107_v53  ;;  %1315 = vmatmul.mubr.msk.f32.gmra.mrb[62].mxu1 %vm213_vm0, %v127_v54 }
  0xc0   :  { %594 = vmatprep.mubr.f32.mxu0 %v111_v55  ;;  %1317 = vmatprep.mubr.msk.f32.mxu1 %vm213_vm0, %v130_v56 }
  0xc3   :  { %595 = vmatmul.mubr.f32.gmra.mrb[64].mxu0 %v110_v57  ;;  %1318 = vmatmul.mubr.msk.f32.gmra.mrb[64].mxu1 %vm213_vm0, %v133_v58 }
  0xc4   :  { %599 = vmatprep.mubr.f32.mxu0 %v114_v59  ;;  %1320 = vmatprep.mubr.msk.f32.mxu1 %vm213_vm0, %v136_v60 }
  0xc7   :  { %600 = vmatmul.mubr.f32.gmra.mrb[66].mxu0 %v113_v61  ;;  %1321 = vmatmul.mubr.msk.f32.gmra.mrb[66].mxu1 %vm213_vm0, %v139_v62 }
  0xc8   :  { %604 = vmatprep.mubr.f32.mxu0 %v117_v63  ;;  %1323 = vmatprep.mubr.msk.f32.mxu1 %vm213_vm0, %v142_v0 }
  0xcb   :  { %605 = vmatmul.mubr.f32.gmra.mrb[68].mxu0 %v116_v1  ;;  %1324 = vmatmul.mubr.msk.f32.gmra.mrb[68].mxu1 %vm213_vm0, %v145_v2 }
  0xcc   :  { %609 = vmatprep.mubr.f32.mxu0 %v120_v3  ;;  %1326 = vmatprep.mubr.msk.f32.mxu1 %vm213_vm0, %v148_v4 }
  0xcf   :  { %610 = vmatmul.mubr.f32.gmra.mrb[70].mxu0 %v119_v5  ;;  %1327 = vmatmul.mubr.msk.f32.gmra.mrb[70].mxu1 %vm213_vm0, %v151_v6  ;;  %v2137_v5 = vld [vmem:[%s2350_s2] ss:$0 sm:$0xff] }
  0xd0   :  { %614 = vmatprep.mubr.f32.mxu0 %v123_v7  ;;  %1329 = vmatprep.mubr.msk.f32.mxu1 %vm213_vm0, %v154_v8 }
  0xd3   :  { %615 = vmatmul.mubr.f32.gmra.mrb[72].mxu0 %v122_v9  ;;  %1330 = vmatmul.mubr.msk.f32.gmra.mrb[72].mxu1 %vm213_vm0, %v157_v10 }
  0xd4   :  { %619 = vmatprep.mubr.f32.mxu0 %v126_v11  ;;  %1332 = vmatprep.mubr.msk.f32.mxu1 %vm213_vm0, %v160_v12 }
  0xd7   :  { %620 = vmatmul.mubr.f32.gmra.mrb[74].mxu0 %v125_v13  ;;  %1333 = vmatmul.mubr.msk.f32.gmra.mrb[74].mxu1 %vm213_vm0, %v163_v14 }
  0xd8   :  { %624 = vmatprep.mubr.f32.mxu0 %v129_v15  ;;  %1335 = vmatprep.mubr.msk.f32.mxu1 %vm213_vm0, %v166_v16 }
  0xdb   :  { %625 = vmatmul.mubr.f32.gmra.mrb[76].mxu0 %v128_v17  ;;  %1336 = vmatmul.mubr.msk.f32.gmra.mrb[76].mxu1 %vm213_vm0, %v169_v18 }
 0x116   :  { %v436_v19 = vpop.f32.mrb[0].mxu0  ;;  %v2108_v20 = vpop.f32.mrb[0].mxu1 }
 0x117   :  { %v438_v21 = vpop.f32.mrb[1].mxu0  ;;  %v633_v22 = vpop.f32.mrb[1].mxu1  ;;  %v437_v9 = vadd.f32 %v2137_v5, %v436_v19 }
 0x11a   :  { %v441_v23 = vpop.f32.mrb[2].mxu0  ;;  %v2110_v24 = vpop.f32.mrb[2].mxu1 }
 0x11b   :  { %v443_v25 = vpop.f32.mrb[3].mxu0  ;;  %v638_v26 = vpop.f32.mrb[3].mxu1  ;;  %v442_v8 = vadd.f32 %v2137_v5, %v441_v23 }
 0x11e   :  { %v446_v27 = vpop.f32.mrb[4].mxu0  ;;  %v2112_v28 = vpop.f32.mrb[4].mxu1 }
 0x11f   :  { %v448_v29 = vpop.f32.mrb[5].mxu0  ;;  %v643_v30 = vpop.f32.mrb[5].mxu1  ;;  %v447_v17 = vadd.f32 %v2137_v5, %v446_v27 }
 0x122   :  { %v451_v31 = vpop.f32.mrb[6].mxu0  ;;  %v2114_v32 = vpop.f32.mrb[6].mxu1 }
 0x123   :  { %v453_v33 = vpop.f32.mrb[7].mxu0  ;;  %v648_v34 = vpop.f32.mrb[7].mxu1  ;;  %v452_v16 = vadd.f32 %v2137_v5, %v451_v31 }
 0x126   :  { %v456_v35 = vpop.f32.mrb[8].mxu0  ;;  %v2116_v36 = vpop.f32.mrb[8].mxu1 }
 0x127   :  { %v458_v37 = vpop.f32.mrb[9].mxu0  ;;  %v653_v38 = vpop.f32.mrb[9].mxu1  ;;  %v457_v29 = vadd.f32 %v2137_v5, %v456_v35 }
 0x12a   :  { %v461_v39 = vpop.f32.mrb[10].mxu0  ;;  %v2118_v40 = vpop.f32.mrb[10].mxu1 }
 0x12b   :  { %v463_v41 = vpop.f32.mrb[11].mxu0  ;;  %v658_v42 = vpop.f32.mrb[11].mxu1  ;;  %v462_v19 = vadd.f32 %v2137_v5, %v461_v39 }
 0x12e   :  { %v466_v43 = vpop.f32.mrb[12].mxu0  ;;  %v2120_v44 = vpop.f32.mrb[12].mxu1 }
 0x12f   :  { %v468_v45 = vpop.f32.mrb[13].mxu0  ;;  %v663_v46 = vpop.f32.mrb[13].mxu1  ;;  %v467_v41 = vadd.f32 %v2137_v5, %v466_v43 }
 0x132   :  { %v471_v47 = vpop.f32.mrb[14].mxu0  ;;  %v2122_v48 = vpop.f32.mrb[14].mxu1 }
 0x133   :  { %v473_v49 = vpop.f32.mrb[15].mxu0  ;;  %v668_v50 = vpop.f32.mrb[15].mxu1  ;;  %v472_v27 = vadd.f32 %v2137_v5, %v471_v47 }
 0x136   :  { %v476_v51 = vpop.f32.mrb[16].mxu0  ;;  %v2124_v52 = vpop.f32.mrb[16].mxu1 }
 0x137   :  { %v478_v53 = vpop.f32.mrb[17].mxu0  ;;  %v673_v54 = vpop.f32.mrb[17].mxu1 }
 0x138   :  { %v477_v53 = vadd.f32 %v2137_v5, %v476_v51 }
 0x13a   :  { %v481_v55 = vpop.f32.mrb[18].mxu0  ;;  %v2126_v56 = vpop.f32.mrb[18].mxu1 }
 0x13b   :  { %v483_v57 = vpop.f32.mrb[19].mxu0  ;;  %v678_v58 = vpop.f32.mrb[19].mxu1  ;;  %v482_v35 = vadd.f32 %v2137_v5, %v481_v55 }
 0x13e   :  { %v486_v59 = vpop.f32.mrb[20].mxu0  ;;  %v2128_v60 = vpop.f32.mrb[20].mxu1 }
 0x13f   :  { %v488_v61 = vpop.f32.mrb[21].mxu0  ;;  %v683_v62 = vpop.f32.mrb[21].mxu1 }
 0x142   :  { %v491_v63 = vpop.f32.mrb[22].mxu0  ;;  %v2130_v0 = vpop.f32.mrb[22].mxu1 }
 0x143   :  { %v493_v1 = vpop.f32.mrb[23].mxu0  ;;  %v688_v2 = vpop.f32.mrb[23].mxu1  ;;  %v492_v43 = vadd.f32 %v2137_v5, %v491_v63 }
 0x144   :  { %v487_v1 = vadd.f32 %v2137_v5, %v486_v59 }
 0x146   :  { %v496_v3 = vpop.f32.mrb[24].mxu0  ;;  %v2132_v4 = vpop.f32.mrb[24].mxu1 }
 0x147   :  { %v498_v6 = vpop.f32.mrb[25].mxu0  ;;  %v693_v7 = vpop.f32.mrb[25].mxu1 }
 0x14a   :  { %v501_v10 = vpop.f32.mrb[26].mxu0  ;;  %v1262_v11 = vpop.f32.mrb[26].mxu1 }
 0x14b   :  { %v2141_v12 = vadd.f32 %v1262_v11, %v442_v8  ;;  %v503_v13 = vpop.f32.mrb[27].mxu0  ;;  %v761_v14 = vpop.f32.mrb[27].mxu1  ;;  %v502_v51 = vadd.f32 %v2137_v5, %v501_v10  ;;  %v497_v11 = vadd.f32 %v2137_v5, %v496_v3 }
 0x14c   :  { %v762_v15 = vadd.f32 %v761_v14, %v437_v9 }
 0x14e   :  { %v506_v18 = vpop.f32.mrb[28].mxu0  ;;  %v1265_v21 = vpop.f32.mrb[28].mxu1  ;;  %v1020_v59 = vmax.f32 %v762_v15, 0.0 }
 0x14f   :  { %v2145_v22 = vadd.f32 %v1265_v21, %v452_v16  ;;  %v508_v25 = vpop.f32.mrb[29].mxu0  ;;  %v771_v26 = vpop.f32.mrb[29].mxu1 }
 0x150   :  { %v772_v23 = vadd.f32 %v771_v26, %v447_v17 }
 0x152   :  { %v511_v30 = vpop.f32.mrb[30].mxu0  ;;  %v1268_v33 = vpop.f32.mrb[30].mxu1 }
 0x153   :  { %v2149_v34 = vadd.f32 %v1268_v33, %v462_v19  ;;  %v513_v37 = vpop.f32.mrb[31].mxu0  ;;  %v781_v38 = vpop.f32.mrb[31].mxu1  ;;  %v512_v25 = vadd.f32 %v2137_v5, %v511_v30  ;;  %v507_v19 = vadd.f32 %v2137_v5, %v506_v18 }
 0x154   :  { %v2151_v31 = vadd.f32 %v781_v38, %v457_v29 }
 0x156   :  { %v516_v42 = vpop.f32.mrb[32].mxu0  ;;  %v1271_v45 = vpop.f32.mrb[32].mxu1 }
 0x157   :  { %v2155_v46 = vadd.f32 %v1271_v45, %v472_v27  ;;  %v518_v49 = vpop.f32.mrb[33].mxu0  ;;  %v791_v39 = vpop.f32.mrb[33].mxu1  ;;  %v517_v15 = vadd.f32 %v2137_v5, %v516_v42 }
 0x158   :  { %v2157_v50 = vadd.f32 %v791_v39, %v467_v41  ;;  %v1022_v41 = vmax.f32 %v772_v23, 0.0  ;;  %v1021_v39 = vmax.f32 %v2141_v12, 0.0  ;;  %v1024_v23 = vmax.f32 %v2151_v31, 0.0 }
 0x159   :  { %v1023_v12 = vmax.f32 %v2145_v22, 0.0  ;;  %v1025_v22 = vmax.f32 %v2149_v34, 0.0  ;;  %v1027_v34 = vmax.f32 %v2155_v46, 0.0 }
 0x15a   :  { %v521_v54 = vpop.f32.mrb[34].mxu0  ;;  %v1274_v57 = vpop.f32.mrb[34].mxu1  ;;  %v1026_v31 = vmax.f32 %v2157_v50, 0.0 }
 0x15b   :  { %v2161_v58 = vadd.f32 %v1274_v57, %v482_v35  ;;  %v523_v61 = vpop.f32.mrb[35].mxu0  ;;  %v801_v47 = vpop.f32.mrb[35].mxu1  ;;  %v522_v45 = vadd.f32 %v2137_v5, %v521_v54 }
 0x15c   :  { %v2163_v62 = vadd.f32 %v801_v47, %v477_v53 }
 0x15e   :  { %v526_v2 = vpop.f32.mrb[36].mxu0  ;;  %v1277_v6 = vpop.f32.mrb[36].mxu1  ;;  %v1028_v50 = vmax.f32 %v2163_v62, 0.0 }
 0x15f   :  { %v2167_v7 = vadd.f32 %v1277_v6, %v492_v43  ;;  %v528_v8 = vpop.f32.mrb[37].mxu0  ;;  %v811_v55 = vpop.f32.mrb[37].mxu1  ;;  %v527_v42 = vadd.f32 %v2137_v5, %v526_v2 }
 0x160   :  { %v2169_v9 = vadd.f32 %v811_v55, %v487_v1 }
 0x162   :  { %v531_v13 = vpop.f32.mrb[38].mxu0  ;;  %v1280_v14 = vpop.f32.mrb[38].mxu1  ;;  %v1030_v62 = vmax.f32 %v2169_v9, 0.0  ;;  %v1031_v9 = vmax.f32 %v2167_v7, 0.0 }
 0x163   :  { %v827_v16 = vadd.f32 %v1280_v14, %v502_v51  ;;  %v533_v17 = vpop.f32.mrb[39].mxu0  ;;  %v821_v21 = vpop.f32.mrb[39].mxu1  ;;  %v532_v54 = vadd.f32 %v2137_v5, %v531_v13 }
 0x164   :  { %v2173_v63 = vadd.f32 %v821_v21, %v497_v11 }
 0x165   :  { %v1033_v26 = vmax.f32 %v827_v16, 0.0 }
 0x166   :  { %v536_v29 = vpop.f32.mrb[40].mxu0  ;;  %v1283_v33 = vpop.f32.mrb[40].mxu1 }
 0x167   :  { %v2177_v37 = vadd.f32 %v1033_v26, %v1020_v59  ;;  %v837_v10 = vadd.f32 %v1283_v33, %v512_v25  ;;  %v538_v38 = vpop.f32.mrb[41].mxu0  ;;  %v831_v3 = vpop.f32.mrb[41].mxu1  ;;  %v537_v2 = vadd.f32 %v2137_v5, %v536_v29 }
 0x168   :  { %v832_v27 = vadd.f32 %v831_v3, %v507_v19 }
 0x169   :  { %v1035_v49 = vmax.f32 %v837_v10, 0.0 }
 0x16a   :  { %v1034_v30 = vmax.f32 %v832_v27, 0.0  ;;  %v541_v35 = vpop.f32.mrb[42].mxu0  ;;  %v1286_v53 = vpop.f32.mrb[42].mxu1 }
 0x16b   :  { %v2182_v18 = vadd.f32 %v1035_v49, %v1022_v41  ;;  %v847_v57 = vadd.f32 %v1286_v53, %v522_v45  ;;  %v543_v61 = vpop.f32.mrb[43].mxu0  ;;  %v841_v47 = vpop.f32.mrb[43].mxu1  ;;  %v542_v13 = vadd.f32 %v2137_v5, %v541_v35 }
 0x16c   :  { %v2184_v43 = vadd.f32 %v1034_v30, %v1021_v39  ;;  %v842_v1 = vadd.f32 %v841_v47, %v517_v15 }
 0x16d   :  { %v1037_v6 = vmax.f32 %v847_v57, 0.0 }
 0x16e   :  { %v1036_v8 = vmax.f32 %v842_v1, 0.0  ;;  %v546_v55 = vpop.f32.mrb[44].mxu0  ;;  %v1289_v51 = vpop.f32.mrb[44].mxu1 }
 0x16f   :  { %v2190_v11 = vadd.f32 %v1037_v6, %v1024_v23  ;;  %v857_v14 = vadd.f32 %v1289_v51, %v532_v54  ;;  %v548_v16 = vpop.f32.mrb[45].mxu0  ;;  %v851_v17 = vpop.f32.mrb[45].mxu1  ;;  %v547_v29 = vadd.f32 %v2137_v5, %v546_v55  ;;  %v1029_v6 = vmax.f32 %v2161_v58, 0.0 }
 0x170   :  { %v2192_v21 = vadd.f32 %v1036_v8, %v1023_v12  ;;  %v852_v59 = vadd.f32 %v851_v17, %v527_v42 }
 0x171   :  { %v1039_v25 = vmax.f32 %v857_v14, 0.0 }
 0x172   :  { %v1038_v26 = vmax.f32 %v852_v59, 0.0  ;;  %v551_v19 = vpop.f32.mrb[46].mxu0  ;;  %v1292_v33 = vpop.f32.mrb[46].mxu1 }
 0x173   :  { %v2198_v10 = vadd.f32 %v1039_v25, %v1026_v31  ;;  %v867_v38 = vadd.f32 %v1292_v33, %v542_v13  ;;  %v553_v3 = vpop.f32.mrb[47].mxu0  ;;  %v861_v27 = vpop.f32.mrb[47].mxu1  ;;  %v552_v49 = vadd.f32 %v2137_v5, %v551_v19 }
 0x174   :  { %v2200_v41 = vadd.f32 %v1038_v26, %v1025_v22  ;;  %v862_v45 = vadd.f32 %v861_v27, %v537_v2  ;;  %v1032_v22 = vmax.f32 %v2173_v63, 0.0 }
 0x175   :  { %v1041_v39 = vmax.f32 %v867_v38, 0.0 }
 0x176   :  { %v1040_v15 = vmax.f32 %v862_v45, 0.0  ;;  %v556_v30 = vpop.f32.mrb[48].mxu0  ;;  %v1295_v35 = vpop.f32.mrb[48].mxu1 }
 0x177   :  { %v2206_v53 = vadd.f32 %v1041_v39, %v1028_v50  ;;  %v877_v57 = vadd.f32 %v1295_v35, %v552_v49  ;;  %v558_v61 = vpop.f32.mrb[49].mxu0  ;;  %v871_v47 = vpop.f32.mrb[49].mxu1  ;;  %v557_v46 = vadd.f32 %v2137_v5, %v556_v30 }
 0x178   :  { %v2208_v1 = vadd.f32 %v1040_v15, %v1027_v34  ;;  %v872_v23 = vadd.f32 %v871_v47, %v547_v29 }
 0x179   :  { %v1043_v54 = vmax.f32 %v877_v57, 0.0 }
 0x17a   :  { %v1042_v12 = vmax.f32 %v872_v23, 0.0  ;;  %v561_v42 = vpop.f32.mrb[50].mxu0  ;;  %v1298_v8 = vpop.f32.mrb[50].mxu1 }
 0x17b   :  { %v2213_v55 = vadd.f32 %v1043_v54, %v1030_v62  ;;  %v562_v51 = vadd.f32 %v2137_v5, %v561_v42  ;;  %v563_v14 = vpop.f32.mrb[51].mxu0  ;;  %v881_v16 = vpop.f32.mrb[51].mxu1 }
 0x17c   :  { %v2216_v17 = vadd.f32 %v1042_v12, %v1029_v6  ;;  %v882_v59 = vadd.f32 %v881_v16, %v557_v46 }
 0x17d   :  { %v887_v31 = vadd.f32 %v1298_v8, %v562_v51 }
 0x17e   :  { %v1044_v13 = vmax.f32 %v882_v59, 0.0  ;;  %v566_v25 = vpop.f32.mrb[52].mxu0  ;;  %v1301_v58 = vpop.f32.mrb[52].mxu1 }
 0x17f   :  { %v1045_v2 = vmax.f32 %v887_v31, 0.0  ;;  %v567_v26 = vadd.f32 %v2137_v5, %v566_v25  ;;  %v568_v19 = vpop.f32.mrb[53].mxu0  ;;  %v891_v33 = vpop.f32.mrb[53].mxu1 }
 0x180   :  { %v2221_v38 = vadd.f32 %v1044_v13, %v1031_v9 }
 0x181   :  { %v2223_v3 = vadd.f32 %v1045_v2, %v1032_v22  ;;  %v892_v27 = vadd.f32 %v891_v33, %v567_v26  ;;  %v632_v33 = vadd.f32 %v2137_v5, %v2108_v20  ;;  %v637_v20 = vadd.f32 %v2137_v5, %v2110_v24 }
 0x182   :  { %v571_v45 = vpop.f32.mrb[54].mxu0  ;;  %v1304_v50 = vpop.f32.mrb[54].mxu1  ;;  %v647_v24 = vadd.f32 %v2137_v5, %v2114_v32 }
 0x183   :  { %v1046_v49 = vmax.f32 %v892_v27, 0.0  ;;  %v572_v7 = vadd.f32 %v2137_v5, %v571_v45  ;;  %v573_v39 = vpop.f32.mrb[55].mxu0  ;;  %v901_v34 = vpop.f32.mrb[55].mxu1 }
 0x185   :  { %v1085_v29 = vadd.f32 %v2177_v37, %v1046_v49  ;;  %v897_v63 = vadd.f32 %v1301_v58, %v572_v7 }
 0x186   :  { %v576_v15 = vpop.f32.mrb[56].mxu0  ;;  %v1307_v30 = vpop.f32.mrb[56].mxu1 }
 0x187   :  { %v1047_v35 = vmax.f32 %v897_v63, 0.0  ;;  %v577_v57 = vadd.f32 %v2137_v5, %v576_v15  ;;  %v578_v61 = vpop.f32.mrb[57].mxu0  ;;  %v911_v47 = vpop.f32.mrb[57].mxu1  ;;  %v642_v15 = vadd.f32 %v2137_v5, %v2112_v28  ;;  %v652_v28 = vadd.f32 %v2137_v5, %v2116_v36 }
 0x189   :  { %v902_v23 = vadd.f32 %v901_v34, %v577_v57  ;;  %v2229_v62 = vadd.f32 %v2184_v43, %v1047_v35 }
 0x18a   :  { %v581_v54 = vpop.f32.mrb[58].mxu0  ;;  %v1310_v6 = vpop.f32.mrb[58].mxu1 }
 0x18b   :  { %v1048_v46 = vmax.f32 %v902_v23, 0.0  ;;  %v582_v12 = vadd.f32 %v2137_v5, %v581_v54  ;;  %v583_v42 = vpop.f32.mrb[59].mxu0  ;;  %v921_v8 = vpop.f32.mrb[59].mxu1 }
 0x18d   :  { %v907_v37 = vadd.f32 %v1304_v50, %v582_v12  ;;  %v1087_v51 = vadd.f32 %v2182_v18, %v1048_v46 }
 0x18e   :  { %v586_v14 = vpop.f32.mrb[60].mxu0  ;;  %v2233_v16 = vpop.f32.mrb[60].mxu1 }
 0x18f   :  { %v1049_v59 = vmax.f32 %v907_v37, 0.0  ;;  %v587_v31 = vadd.f32 %v2137_v5, %v586_v14  ;;  %v588_v9 = vpop.f32.mrb[61].mxu0  ;;  %v931_v13 = vpop.f32.mrb[61].mxu1 }
 0x191   :  { %v912_v43 = vadd.f32 %v911_v47, %v587_v31  ;;  %v2237_v25 = vadd.f32 %v2192_v21, %v1049_v59 }
 0x192   :  { %v591_v58 = vpop.f32.mrb[62].mxu0  ;;  %v2239_v22 = vpop.f32.mrb[62].mxu1 }
 0x193   :  { %v1050_v2 = vmax.f32 %v912_v43, 0.0  ;;  %v592_v26 = vadd.f32 %v2137_v5, %v591_v58  ;;  %v593_v19 = vpop.f32.mrb[63].mxu0  ;;  %v2242_v18 = vpop.f32.mrb[63].mxu1 }
 0x195   :  { %v917_v27 = vadd.f32 %v1307_v30, %v592_v26  ;;  %v1089_v45 = vadd.f32 %v2190_v11, %v1050_v2 }
 0x196   :  { %v596_v50 = vpop.f32.mrb[64].mxu0  ;;  %v1319_v49 = vpop.f32.mrb[64].mxu1 }
 0x197   :  { %v1051_v7 = vmax.f32 %v917_v27, 0.0  ;;  %v597_v21 = vadd.f32 %v2137_v5, %v596_v50  ;;  %v957_v39 = vadd.f32 %v1319_v49, %v632_v33  ;;  %v598_v34 = vpop.f32.mrb[65].mxu0  ;;  %v2248_v63 = vpop.f32.mrb[65].mxu1 }
 0x199   :  { %v922_v35 = vadd.f32 %v921_v8, %v597_v21  ;;  %v1059_v57 = vmax.f32 %v957_v39, 0.0  ;;  %v2253_v61 = vadd.f32 %v2200_v41, %v1051_v7  ;;  %v657_v7 = vadd.f32 %v2137_v5, %v2118_v40 }
 0x19a   :  { %v601_v11 = vpop.f32.mrb[66].mxu0  ;;  %v1322_v30 = vpop.f32.mrb[66].mxu1 }
 0x19b   :  { %v1052_v47 = vmax.f32 %v922_v35, 0.0  ;;  %v1098_v23 = vadd.f32 %v1085_v29, %v1059_v57  ;;  %v602_v54 = vadd.f32 %v2137_v5, %v601_v11  ;;  %v967_v46 = vadd.f32 %v1322_v30, %v642_v15  ;;  %v603_v12 = vpop.f32.mrb[67].mxu0  ;;  %v961_v42 = vpop.f32.mrb[67].mxu1 }
 0x19c   :  { %v962_v8 = vadd.f32 %v961_v42, %v637_v20 }
 0x19d   :  { %v1111_v37 = vmul.f32 0.25, %v1098_v23  ;;  %v927_v41 = vadd.f32 %v1310_v6, %v602_v54  ;;  %v1061_v14 = vmax.f32 %v967_v46, 0.0  ;;  %v1091_v59 = vadd.f32 %v2198_v10, %v1052_v47 }
 0x19e   :  { %v1060_v31 = vmax.f32 %v962_v8, 0.0  ;;  %v606_v29 = vpop.f32.mrb[68].mxu0  ;;  %v1325_v9 = vpop.f32.mrb[68].mxu1  ;;  %v662_v10 = vadd.f32 %v2137_v5, %v2120_v44  ;;  %v667_v23 = vadd.f32 %v2137_v5, %v2122_v48 }
 0x19f   :  { %1125 = vst.msk [vmem:[%s2351_s3] sm:$0xff] %vm1124_vm1, %v1111_v37  ;;  %v1053_v43 = vmax.f32 %v927_v41, 0.0  ;;  %v1100_v36 = vadd.f32 %v1087_v51, %v1061_v14  ;;  %v607_v58 = vadd.f32 %v2137_v5, %v606_v29  ;;  %v977_v2 = vadd.f32 %v1325_v9, %v652_v28  ;;  %v608_v6 = vpop.f32.mrb[69].mxu0  ;;  %v971_v26 = vpop.f32.mrb[69].mxu1 }
 0x1a0   :  { %v1099_v32 = vadd.f32 %v2229_v62, %v1060_v31  ;;  %v972_v19 = vadd.f32 %v971_v26, %v647_v24  ;;  %v677_v29 = vadd.f32 %v2137_v5, %v2126_v56 }
 0x1a1   :  { %v1113_v33 = vmul.f32 0.25, %v1100_v36  ;;  %v932_v27 = vadd.f32 %v931_v13, %v607_v58  ;;  %v1063_v50 = vmax.f32 %v977_v2, 0.0  ;;  %v1092_v49 = vadd.f32 %v2208_v1, %v1053_v43 }
 0x1a2   :  { %v1112_v51 = vmul.f32 0.25, %v1099_v32  ;;  %v1062_v21 = vmax.f32 %v972_v19, 0.0  ;;  %v611_v39 = vpop.f32.mrb[70].mxu0  ;;  %v1328_v34 = vpop.f32.mrb[70].mxu1  ;;  %v672_v1 = vadd.f32 %v2137_v5, %v2124_v52 }
 0x1a3   :  { %1127 = vst.msk [vmem:[%s2351_s3 + $0x10] sm:$0xff] %vm1124_vm1, %v1113_v33  ;;  %v1054_v44 = vmax.f32 %v932_v27, 0.0  ;;  %v1102_v62 = vadd.f32 %v1089_v45, %v1063_v50  ;;  %v612_v15 = vadd.f32 %v2137_v5, %v611_v39  ;;  %v987_v13 = vadd.f32 %v1328_v34, %v662_v10  ;;  %v613_v35 = vpop.f32.mrb[71].mxu0  ;;  %v981_v57 = vpop.f32.mrb[71].mxu1 }
 0x1a4   :  { %1126 = vst.msk [vmem:[%s2351_s3 + $0x8] sm:$0xff] %vm1124_vm1, %v1112_v51  ;;  %v1101_v40 = vadd.f32 %v2237_v25, %v1062_v21  ;;  %v982_v20 = vadd.f32 %v981_v57, %v657_v7  ;;  %v687_v50 = vadd.f32 %v2137_v5, %v2130_v0 }
 0x1a5   :  { %v1115_v11 = vmul.f32 0.25, %v1102_v62  ;;  %v937_v30 = vadd.f32 %v2233_v16, %v612_v15  ;;  %v1065_v45 = vmax.f32 %v987_v13, 0.0  ;;  %v1093_v47 = vadd.f32 %v2206_v53, %v1054_v44 }
 0x1a6   :  { %v1114_v54 = vmul.f32 0.25, %v1101_v40  ;;  %v1064_v46 = vmax.f32 %v982_v20, 0.0  ;;  %v616_v52 = vpop.f32.mrb[72].mxu0  ;;  %v1331_v12 = vpop.f32.mrb[72].mxu1  ;;  %v682_v53 = vadd.f32 %v2137_v5, %v2128_v60 }
 0x1a7   :  { %1129 = vst.msk [vmem:[%s2351_s3 + $0x20] sm:$0xff] %vm1124_vm1, %v1115_v11  ;;  %v1055_v25 = vmax.f32 %v937_v30, 0.0  ;;  %v1104_v42 = vadd.f32 %v1091_v59, %v1065_v45  ;;  %v617_v28 = vadd.f32 %v2137_v5, %v616_v52  ;;  %v997_v16 = vadd.f32 %v1331_v12, %v672_v1  ;;  %v618_v8 = vpop.f32.mrb[73].mxu0  ;;  %v991_v37 = vpop.f32.mrb[73].mxu1 }
 0x1a8   :  { %1128 = vst.msk [vmem:[%s2351_s3 + $0x18] sm:$0xff] %vm1124_vm1, %v1114_v54  ;;  %v1103_v48 = vadd.f32 %v2253_v61, %v1064_v46  ;;  %v992_v41 = vadd.f32 %v991_v37, %v667_v23 }
 0x1a9   :  { %v1117_v14 = vmul.f32 0.25, %v1104_v42  ;;  %v942_v24 = vadd.f32 %v2242_v18, %v617_v28  ;;  %v1067_v59 = vmax.f32 %v997_v16, 0.0  ;;  %v1094_v31 = vadd.f32 %v2216_v17, %v1055_v25 }
 0x1aa   :  { %v1116_v9 = vmul.f32 0.25, %v1103_v48  ;;  %v1066_v43 = vmax.f32 %v992_v41, 0.0  ;;  %v621_v60 = vpop.f32.mrb[74].mxu0  ;;  %v1334_v36 = vpop.f32.mrb[74].mxu1  ;;  %v692_v17 = vadd.f32 %v2137_v5, %v2132_v4 }
 0x1ab   :  { %1131 = vst.msk [vmem:[%s2351_s3 + $0x30] sm:$0xff] %vm1124_vm1, %v1117_v14  ;;  %v1056_v61 = vmax.f32 %v942_v24, 0.0  ;;  %v1106_v58 = vadd.f32 %v1093_v47, %v1067_v59  ;;  %v622_v2 = vadd.f32 %v2137_v5, %v621_v60  ;;  %v1007_v18 = vadd.f32 %v1334_v36, %v682_v53  ;;  %v623_v6 = vpop.f32.mrb[75].mxu0  ;;  %v1001_v26 = vpop.f32.mrb[75].mxu1 }
 0x1ac   :  { %1130 = vst.msk [vmem:[%s2351_s3 + $0x28] sm:$0xff] %vm1124_vm1, %v1116_v9  ;;  %v1105_v56 = vadd.f32 %v1092_v49, %v1066_v43  ;;  %v1002_v10 = vadd.f32 %v1001_v26, %v677_v29 }
 0x1ad   :  { %v1119_v32 = vmul.f32 0.25, %v1106_v58  ;;  %v947_v19 = vadd.f32 %v2239_v22, %v622_v2  ;;  %v1069_v33 = vmax.f32 %v1007_v18, 0.0  ;;  %v1095_v27 = vadd.f32 %v2213_v55, %v1056_v61 }
 0x1ae   :  { %v1118_v7 = vmul.f32 0.25, %v1105_v56  ;;  %v1068_v51 = vmax.f32 %v1002_v10, 0.0  ;;  %v626_v21 = vpop.f32.mrb[76].mxu0  ;;  %v1337_v4 = vpop.f32.mrb[76].mxu1 }
 0x1af   :  { %1133 = vst.msk [vmem:[%s2351_s3 + $0x40] sm:$0xff] %vm1124_vm1, %v1119_v32  ;;  %v1057_v49 = vmax.f32 %v947_v19, 0.0  ;;  %v1108_v39 = vadd.f32 %v1095_v27, %v1069_v33  ;;  %v627_v34 = vadd.f32 %v2137_v5, %v626_v21  ;;  %v1017_v22 = vadd.f32 %v1337_v4, %v692_v17  ;;  %v628_v44 = vpop.f32.mrb[77].mxu0  ;;  %v1011_v62 = vpop.f32.mrb[77].mxu1 }
 0x1b0   :  { %1132 = vst.msk [vmem:[%s2351_s3 + $0x38] sm:$0xff] %vm1124_vm1, %v1118_v7  ;;  %v1107_v0 = vadd.f32 %v1094_v31, %v1068_v51  ;;  %v1012_v55 = vadd.f32 %v1011_v62, %v687_v50 }
 0x1b1   :  { %v1121_v15 = vmul.f32 0.25, %v1108_v39  ;;  %v952_v13 = vadd.f32 %v2248_v63, %v627_v34  ;;  %v1096_v35 = vadd.f32 %v2221_v38, %v1057_v49  ;;  %v1071_v20 = vmax.f32 %v1017_v22, 0.0 }
 0x1b2   :  { %v1120_v57 = vmul.f32 0.25, %v1107_v0  ;;  %v1070_v1 = vmax.f32 %v1012_v55, 0.0 }
 0x1b3   :  { %1135 = vst.msk [vmem:[%s2351_s3 + $0x50] sm:$0xff] %vm1124_vm1, %v1121_v15  ;;  %v1058_v5 = vmax.f32 %v952_v13, 0.0 }
 0x1b4   :  { %1134 = vst.msk [vmem:[%s2351_s3 + $0x48] sm:$0xff] %vm1124_vm1, %v1120_v57  ;;  %v1109_v40 = vadd.f32 %v1096_v35, %v1070_v1 }
 0x1b5   :  { %v1097_v11 = vadd.f32 %v2223_v3, %v1058_v5 }
 0x1b6   :  { %v1122_v63 = vmul.f32 0.25, %v1109_v40 }
 0x1b7   :  { %v1110_v30 = vadd.f32 %v1097_v11, %v1071_v20 }
 0x1b8   :  { %1136 = vst.msk [vmem:[%s2351_s3 + $0x58] sm:$0xff] %vm1124_vm1, %v1122_v63 }
 0x1b9   :  { %v1123_v38 = vmul.f32 0.25, %v1110_v30 }
 0x1bb   :  { %1138 = vst.msk [vmem:[%s2351_s3 + $0x60] sm:$0x3] %vm1137_vm2, %v1123_v38 }

// kernel: vgg_forward.5
= control target key start
LH: loop header
LB: loop body
LE: loop exit
PB: predicated region body
PF: predicated region fallthrough
CT: control target
= control target key end

     0   :  { %s11698_s0 = inlined_call_operand.vmem [shape: f32[2,3136], index: 0, kind: input, shape index: {}]   ;;  %s11699_s1 = inlined_call_operand.vmem [shape: f32[3136,512], index: 1, kind: input, shape index: {}]   ;;  %s11700_s2 = inlined_call_operand.vmem [shape: f32[1,512], index: 2, kind: input, shape index: {}]   ;;  %s11701_s3 = inlined_call_operand.vmem [shape: f32[256,256], index: 3, kind: input, shape index: {}]   ;;  %s11702_s4 = inlined_call_operand.vmem [shape: f32[1,256], index: 4, kind: input, shape index: {}]   ;;  %s11703_s5 = inlined_call_operand.vmem [shape: f32[256,16], index: 5, kind: input, shape index: {}]   ;;  %s11704_s6 = inlined_call_operand.vmem [shape: f32[1,16], index: 6, kind: input, shape index: {}]   ;;  %s11705_s7 = inlined_call_operand.vmem [shape: f32[256,128], index: 7, kind: input, shape index: {}]   ;;  %s11706_s8 = inlined_call_operand.vmem [shape: f32[1,128], index: 8, kind: input, shape index: {}]   ;;  %s11707_s9 = inlined_call_operand.vmem [shape: f32[128,128], index: 9, kind: input, shape index: {}]   ;;  %s11708_s10 = inlined_call_operand.vmem [shape: f32[1,128], index: 10, kind: input, shape index: {}]   ;;  %s11709_s11 = inlined_call_operand.vmem [shape: f32[128,1], index: 11, kind: input, shape index: {}]   ;;  %s11710_s12 = inlined_call_operand.<no memory space> [shape: f32[1,1], index: 12, kind: input, shape index: {}]   ;;  %s11711_s13 = inlined_call_operand.hbm [shape: f32[2,16], index: 13, kind: output, shape index: {0}]   ;;  %s11712_s14 = inlined_call_operand.vmem [shape: f32[2,1], index: 14, kind: output, shape index: {1}]  }
   0x1   :  { %v20_v0 = vstv %s11710_s12 }
   0x2   :  { %21 = vst [vmem:[#allocation2] sm:$0x1] %v20_v0 }
   0x3   :  { %v57_v1 = vld [vmem:[%s11699_s1 + $0x8] sm:$0xff]  ;;  %v59_v3 = vld [vmem:[%s11699_s1 + $0x18] sm:$0xff]  ;;  %v56_v6 = vld [vmem:[%s11699_s1] sm:$0xff] }
   0x4   :  { %v61_v2 = vld [vmem:[%s11699_s1 + $0x28] sm:$0xff]  ;;  %v63_v5 = vld [vmem:[%s11699_s1 + $0x38] sm:$0xff]  ;;  %v60_v7 = vld [vmem:[%s11699_s1 + $0x20] sm:$0xff] }
   0x5   :  { %v4397_v4 = vpack.c.bf16 %v61_v2, %v57_v1  ;;  %v5181_v8 = vpack.c.bf16 %v63_v5, %v59_v3  ;;  %v4399_v9 = vpack.c.bf16 %v60_v7, %v56_v6  ;;  %v58_v10 = vld [vmem:[%s11699_s1 + $0x10] sm:$0xff]  ;;  %v65_v12 = vld [vmem:[%s11699_s1 + $0x48] sm:$0xff]  ;;  %v67_v15 = vld [vmem:[%s11699_s1 + $0x58] sm:$0xff] }
   0x6   :  { %v62_v11 = vld [vmem:[%s11699_s1 + $0x30] sm:$0xff]  ;;  %v69_v14 = vld [vmem:[%s11699_s1 + $0x68] sm:$0xff]  ;;  %v71_v16 = vld [vmem:[%s11699_s1 + $0x78] sm:$0xff] }
   0x7   :  { %4398 = vmatprep.subr.bf16.mxu0 %v4397_v4  ;;  %v5183_v13 = vpack.c.bf16 %v62_v11, %v58_v10  ;;  %5182 = vmatprep.subr.bf16.mxu1 %v5181_v8  ;;  %v4401_v17 = vpack.c.bf16 %v69_v14, %v65_v12  ;;  %v5185_v18 = vpack.c.bf16 %v71_v16, %v67_v15  ;;  %v64_v19 = vld [vmem:[%s11699_s1 + $0x40] sm:$0xff]  ;;  %v66_v21 = vld [vmem:[%s11699_s1 + $0x50] sm:$0xff]  ;;  %v73_v24 = vld [vmem:[%s11699_s1 + $0x88] sm:$0xff] }
   0x8   :  { %4400 = vmatpush1.bf16.msra.mxu0 %v4399_v9  ;;  %v68_v20 = vld [vmem:[%s11699_s1 + $0x60] sm:$0xff]  ;;  %v70_v23 = vld [vmem:[%s11699_s1 + $0x70] sm:$0xff]  ;;  %v77_v25 = vld [vmem:[%s11699_s1 + $0xa8] sm:$0xff] }
   0x9   :  { %5184 = vmatpush1.bf16.msra.mxu1 %v5183_v13  ;;  %v4403_v22 = vpack.c.bf16 %v68_v20, %v64_v19  ;;  %4402 = vmatprep.subr.bf16.mxu0 %v4401_v17  ;;  %v5187_v26 = vpack.c.bf16 %v70_v23, %v66_v21  ;;  %v4405_v27 = vpack.c.bf16 %v77_v25, %v73_v24  ;;  %v75_v28 = vld [vmem:[%s11699_s1 + $0x98] sm:$0xff]  ;;  %v72_v30 = vld [vmem:[%s11699_s1 + $0x80] sm:$0xff]  ;;  %v74_v33 = vld [vmem:[%s11699_s1 + $0x90] sm:$0xff] }
   0xa   :  { %5186 = vmatprep.subr.bf16.mxu1 %v5185_v18  ;;  %v79_v29 = vld [vmem:[%s11699_s1 + $0xb8] sm:$0xff]  ;;  %v76_v32 = vld [vmem:[%s11699_s1 + $0xa0] sm:$0xff]  ;;  %v78_v34 = vld [vmem:[%s11699_s1 + $0xb0] sm:$0xff] }
   0xb   :  { %v5189_v31 = vpack.c.bf16 %v79_v29, %v75_v28  ;;  %v4407_v35 = vpack.c.bf16 %v76_v32, %v72_v30  ;;  %v81_v36 = vld [vmem:[%s11699_s1 + $0xc8] sm:$0xff]  ;;  %v83_v38 = vld [vmem:[%s11699_s1 + $0xd8] sm:$0xff]  ;;  %v5191_v39 = vpack.c.bf16 %v78_v34, %v74_v33  ;;  %v80_v42 = vld [vmem:[%s11699_s1 + $0xc0] sm:$0xff] }
   0xc   :  { %4404 = vmatpush1.bf16.msra.mxu0 %v4403_v22  ;;  %v85_v37 = vld [vmem:[%s11699_s1 + $0xe8] sm:$0xff]  ;;  %v87_v41 = vld [vmem:[%s11699_s1 + $0xf8] sm:$0xff]  ;;  %v84_v43 = vld [vmem:[%s11699_s1 + $0xe0] sm:$0xff] }
   0xd   :  { %5188 = vmatpush1.bf16.msra.mxu1 %v5187_v26  ;;  %4406 = vmatprep.subr.bf16.mxu0 %v4405_v27  ;;  %v4409_v40 = vpack.c.bf16 %v85_v37, %v81_v36  ;;  %v5193_v44 = vpack.c.bf16 %v87_v41, %v83_v38  ;;  %v82_v45 = vld [vmem:[%s11699_s1 + $0xd0] sm:$0xff]  ;;  %v89_v47 = vld [vmem:[%s11699_s1 + $0x108] sm:$0xff]  ;;  %v91_v49 = vld [vmem:[%s11699_s1 + $0x118] sm:$0xff]  ;;  %v4411_v51 = vpack.c.bf16 %v84_v43, %v80_v42 }
   0xe   :  { %5190 = vmatprep.subr.bf16.mxu1 %v5189_v31  ;;  %v86_v46 = vld [vmem:[%s11699_s1 + $0xf0] sm:$0xff]  ;;  %v93_v48 = vld [vmem:[%s11699_s1 + $0x128] sm:$0xff]  ;;  %v95_v50 = vld [vmem:[%s11699_s1 + $0x138] sm:$0xff] }
   0xf   :  { %v5195_v52 = vpack.c.bf16 %v86_v46, %v82_v45  ;;  %v4413_v53 = vpack.c.bf16 %v93_v48, %v89_v47  ;;  %v88_v54 = vld [vmem:[%s11699_s1 + $0x100] sm:$0xff]  ;;  %v90_v56 = vld [vmem:[%s11699_s1 + $0x110] sm:$0xff]  ;;  %v5197_v57 = vpack.c.bf16 %v95_v50, %v91_v49  ;;  %v97_v59 = vld [vmem:[%s11699_s1 + $0x148] sm:$0xff]  ;;  %v1626_v47 = vlaneseq }
  0x10   :  { %4408 = vmatpush1.bf16.msra.mxu0 %v4407_v35  ;;  %v92_v55 = vld [vmem:[%s11699_s1 + $0x120] sm:$0xff]  ;;  %v94_v58 = vld [vmem:[%s11699_s1 + $0x130] sm:$0xff]  ;;  %v101_v60 = vld [vmem:[%s11699_s1 + $0x168] sm:$0xff]  ;;  %v6228_v48 = vmov 1983009808  }
  0x11   :  { %5192 = vmatpush1.bf16.msra.mxu1 %v5191_v39  ;;  %4410 = vmatprep.subr.bf16.mxu0 %v4409_v40  ;;  %v99_v61 = vld [vmem:[%s11699_s1 + $0x158] sm:$0xff]  ;;  %v4415_v63 = vpack.c.bf16 %v92_v55, %v88_v54  ;;  %v5199_v0 = vpack.c.bf16 %v94_v58, %v90_v56  ;;  %v4417_v1 = vpack.c.bf16 %v101_v60, %v97_v59  ;;  %v96_v2 = vld [vmem:[%s11699_s1 + $0x140] sm:$0xff]  ;;  %v98_v4 = vld [vmem:[%s11699_s1 + $0x150] sm:$0xff]  ;;  %v1655_v49 = vunpack.c.l.s4 %v6228_v48 }
  0x12   :  { %5194 = vmatprep.subr.bf16.mxu1 %v5193_v44  ;;  %v103_v62 = vld [vmem:[%s11699_s1 + $0x178] sm:$0xff]  ;;  %v100_v3 = vld [vmem:[%s11699_s1 + $0x160] sm:$0xff]  ;;  %v102_v6 = vld [vmem:[%s11699_s1 + $0x170] sm:$0xff] }
  0x13   :  { %v5201_v5 = vpack.c.bf16 %v103_v62, %v99_v61  ;;  %v105_v7 = vld [vmem:[%s11699_s1 + $0x188] sm:$0xff]  ;;  %v107_v9 = vld [vmem:[%s11699_s1 + $0x198] sm:$0xff]  ;;  %v4419_v11 = vpack.c.bf16 %v100_v3, %v96_v2  ;;  %v5203_v12 = vpack.c.bf16 %v102_v6, %v98_v4  ;;  %v104_v14 = vld [vmem:[%s11699_s1 + $0x180] sm:$0xff]  ;;  %v6563_v62 = vshrl.u32 %v1626_v47, 7 }
  0x14   :  { %4412 = vmatpush1.bf16.msra.mxu0 %v4411_v51  ;;  %v109_v8 = vld [vmem:[%s11699_s1 + $0x1a8] sm:$0xff]  ;;  %v111_v10 = vld [vmem:[%s11699_s1 + $0x1b8] sm:$0xff]  ;;  %v108_v15 = vld [vmem:[%s11699_s1 + $0x1a0] sm:$0xff] }
  0x15   :  { %5196 = vmatpush1.bf16.msra.mxu1 %v5195_v52  ;;  %4414 = vmatprep.subr.bf16.mxu0 %v4413_v53  ;;  %v4421_v13 = vpack.c.bf16 %v109_v8, %v105_v7  ;;  %v106_v16 = vld [vmem:[%s11699_s1 + $0x190] sm:$0xff]  ;;  %v5205_v17 = vpack.c.bf16 %v111_v10, %v107_v9  ;;  %v113_v19 = vld [vmem:[%s11699_s1 + $0x1c8] sm:$0xff]  ;;  %v115_v21 = vld [vmem:[%s11699_s1 + $0x1d8] sm:$0xff]  ;;  %v4423_v23 = vpack.c.bf16 %v108_v15, %v104_v14 }
  0x16   :  { %5198 = vmatprep.subr.bf16.mxu1 %v5197_v57  ;;  %v110_v18 = vld [vmem:[%s11699_s1 + $0x1b0] sm:$0xff]  ;;  %v117_v20 = vld [vmem:[%s11699_s1 + $0x1e8] sm:$0xff]  ;;  %v119_v22 = vld [vmem:[%s11699_s1 + $0x1f8] sm:$0xff] }
  0x17   :  { %v5207_v24 = vpack.c.bf16 %v110_v18, %v106_v16  ;;  %v4425_v25 = vpack.c.bf16 %v117_v20, %v113_v19  ;;  %v112_v26 = vld [vmem:[%s11699_s1 + $0x1c0] sm:$0xff]  ;;  %v114_v28 = vld [vmem:[%s11699_s1 + $0x1d0] sm:$0xff]  ;;  %v5209_v29 = vpack.c.bf16 %v119_v22, %v115_v21  ;;  %v121_v31 = vld [vmem:[%s11699_s1 + $0x208] sm:$0xff] }
  0x18   :  { %4416 = vmatpush1.bf16.msra.mxu0 %v4415_v63  ;;  %v116_v27 = vld [vmem:[%s11699_s1 + $0x1e0] sm:$0xff]  ;;  %v118_v30 = vld [vmem:[%s11699_s1 + $0x1f0] sm:$0xff]  ;;  %v125_v32 = vld [vmem:[%s11699_s1 + $0x228] sm:$0xff]  ;;  %v1656_v63 = vunpack.c.0.s8 %v1655_v49 }
  0x19   :  { %5200 = vmatpush1.bf16.msra.mxu1 %v5199_v0  ;;  %4418 = vmatprep.subr.bf16.mxu0 %v4417_v1  ;;  %v123_v33 = vld [vmem:[%s11699_s1 + $0x218] sm:$0xff]  ;;  %v4427_v35 = vpack.c.bf16 %v116_v27, %v112_v26  ;;  %v5211_v36 = vpack.c.bf16 %v118_v30, %v114_v28  ;;  %v4429_v37 = vpack.c.bf16 %v125_v32, %v121_v31  ;;  %v120_v38 = vld [vmem:[%s11699_s1 + $0x200] sm:$0xff]  ;;  %v122_v40 = vld [vmem:[%s11699_s1 + $0x210] sm:$0xff] }
  0x1a   :  { %5202 = vmatprep.subr.bf16.mxu1 %v5201_v5  ;;  %v127_v34 = vld [vmem:[%s11699_s1 + $0x238] sm:$0xff]  ;;  %v124_v39 = vld [vmem:[%s11699_s1 + $0x220] sm:$0xff]  ;;  %v126_v42 = vld [vmem:[%s11699_s1 + $0x230] sm:$0xff] }
  0x1b   :  { %v5213_v41 = vpack.c.bf16 %v127_v34, %v123_v33  ;;  %v129_v43 = vld [vmem:[%s11699_s1 + $0x248] sm:$0xff]  ;;  %v131_v45 = vld [vmem:[%s11699_s1 + $0x258] sm:$0xff]  ;;  %v4431_v50 = vpack.c.bf16 %v124_v39, %v120_v38  ;;  %v5215_v51 = vpack.c.bf16 %v126_v42, %v122_v40  ;;  %v128_v53 = vld [vmem:[%s11699_s1 + $0x240] sm:$0xff] }
  0x1c   :  { %4420 = vmatpush1.bf16.msra.mxu0 %v4419_v11  ;;  %v133_v44 = vld [vmem:[%s11699_s1 + $0x268] sm:$0xff]  ;;  %v135_v46 = vld [vmem:[%s11699_s1 + $0x278] sm:$0xff]  ;;  %v132_v54 = vld [vmem:[%s11699_s1 + $0x260] sm:$0xff] }
  0x1d   :  { %5204 = vmatpush1.bf16.msra.mxu1 %v5203_v12  ;;  %4422 = vmatprep.subr.bf16.mxu0 %v4421_v13  ;;  %v4433_v52 = vpack.c.bf16 %v133_v44, %v129_v43  ;;  %v130_v55 = vld [vmem:[%s11699_s1 + $0x250] sm:$0xff]  ;;  %v5217_v56 = vpack.c.bf16 %v135_v46, %v131_v45  ;;  %v137_v58 = vld [vmem:[%s11699_s1 + $0x288] sm:$0xff]  ;;  %v139_v60 = vld [vmem:[%s11699_s1 + $0x298] sm:$0xff]  ;;  %v4435_v0 = vpack.c.bf16 %v132_v54, %v128_v53 }
  0x1e   :  { %5206 = vmatprep.subr.bf16.mxu1 %v5205_v17  ;;  %v134_v57 = vld [vmem:[%s11699_s1 + $0x270] sm:$0xff]  ;;  %v141_v59 = vld [vmem:[%s11699_s1 + $0x2a8] sm:$0xff]  ;;  %v143_v61 = vld [vmem:[%s11699_s1 + $0x2b8] sm:$0xff]  ;;  %v6590_v12 = vsub.s32 %v1656_v63, %v6563_v62 }
  0x1f   :  { %v5219_v1 = vpack.c.bf16 %v134_v57, %v130_v55  ;;  %v4437_v2 = vpack.c.bf16 %v141_v59, %v137_v58  ;;  %v136_v3 = vld [vmem:[%s11699_s1 + $0x280] sm:$0xff]  ;;  %v138_v5 = vld [vmem:[%s11699_s1 + $0x290] sm:$0xff]  ;;  %v5221_v6 = vpack.c.bf16 %v143_v61, %v139_v60  ;;  %v145_v8 = vld [vmem:[%s11699_s1 + $0x2c8] sm:$0xff] }
  0x20   :  { %4424 = vmatpush1.bf16.msra.mxu0 %v4423_v23  ;;  %v140_v4 = vld [vmem:[%s11699_s1 + $0x2a0] sm:$0xff]  ;;  %v142_v7 = vld [vmem:[%s11699_s1 + $0x2b0] sm:$0xff]  ;;  %v149_v9 = vld [vmem:[%s11699_s1 + $0x2e8] sm:$0xff] }
  0x21   :  { %5208 = vmatpush1.bf16.msra.mxu1 %v5207_v24  ;;  %4426 = vmatprep.subr.bf16.mxu0 %v4425_v25  ;;  %v147_v10 = vld [vmem:[%s11699_s1 + $0x2d8] sm:$0xff]  ;;  %v4439_v13 = vpack.c.bf16 %v140_v4, %v136_v3  ;;  %v144_v14 = vld [vmem:[%s11699_s1 + $0x2c0] sm:$0xff]  ;;  %v5223_v15 = vpack.c.bf16 %v142_v7, %v138_v5  ;;  %v4441_v16 = vpack.c.bf16 %v149_v9, %v145_v8  ;;  %v146_v18 = vld [vmem:[%s11699_s1 + $0x2d0] sm:$0xff] }
  0x22   :  { %5210 = vmatprep.subr.bf16.mxu1 %v5209_v29  ;;  %v151_v11 = vld [vmem:[%s11699_s1 + $0x2f8] sm:$0xff]  ;;  %v148_v17 = vld [vmem:[%s11699_s1 + $0x2e0] sm:$0xff]  ;;  %v150_v19 = vld [vmem:[%s11699_s1 + $0x2f0] sm:$0xff] }
  0x23   :  { %v5225_v20 = vpack.c.bf16 %v151_v11, %v147_v10  ;;  %v153_v21 = vld [vmem:[%s11699_s1 + $0x308] sm:$0xff]  ;;  %v6613_v23 = vld [vmem:[%s11698_s0] sm:$0xff]  ;;  %v155_v24 = vld [vmem:[%s11699_s1 + $0x318] sm:$0xff]  ;;  %v4443_v27 = vpack.c.bf16 %v148_v17, %v144_v14  ;;  %v5227_v28 = vpack.c.bf16 %v150_v19, %v146_v18 }
  0x24   :  { %4428 = vmatpush1.bf16.msra.mxu0 %v4427_v35  ;;  %v157_v22 = vld [vmem:[%s11699_s1 + $0x328] sm:$0xff]  ;;  %v159_v25 = vld [vmem:[%s11699_s1 + $0x338] sm:$0xff]  ;;  %v6623_v26 = vrot.slane %v6613_v23, %v6590_v12  ;;  %v152_v30 = vld [vmem:[%s11699_s1 + $0x300] sm:$0xff]  ;;  %v1653_v9 = vcombine.high %v6613_v23, %v6613_v23 }
  0x25   :  { %5212 = vmatpush1.bf16.msra.mxu1 %v5211_v36  ;;  %4430 = vmatprep.subr.bf16.mxu0 %v4429_v37  ;;  %v4445_v29 = vpack.c.bf16 %v157_v22, %v153_v21  ;;  %v156_v31 = vld [vmem:[%s11699_s1 + $0x320] sm:$0xff]  ;;  %v154_v32 = vld [vmem:[%s11699_s1 + $0x310] sm:$0xff]  ;;  %v5229_v34 = vpack.c.bf16 %v159_v25, %v155_v24  ;;  %v161_v36 = vld [vmem:[%s11699_s1 + $0x348] sm:$0xff] }
  0x26   :  { %5214 = vmatprep.subr.bf16.mxu1 %v5213_v41  ;;  %v1668_v33 = vcombine.high %v6623_v26, %v6623_v26  ;;  %v158_v35 = vld [vmem:[%s11699_s1 + $0x330] sm:$0xff]  ;;  %v165_v37 = vld [vmem:[%s11699_s1 + $0x368] sm:$0xff]  ;;  %v163_v38 = vld [vmem:[%s11699_s1 + $0x358] sm:$0xff]  ;;  %v4447_v40 = vpack.c.bf16 %v156_v31, %v152_v30  ;;  %v6744_v25 = vrot.slane %v1653_v9, %v6590_v12 }
  0x27   :  { %v167_v39 = vld [vmem:[%s11699_s1 + $0x378] sm:$0xff]  ;;  %v5231_v41 = vpack.c.bf16 %v158_v35, %v154_v32  ;;  %v4449_v42 = vpack.c.bf16 %v165_v37, %v161_v36  ;;  %v160_v43 = vld [vmem:[%s11699_s1 + $0x340] sm:$0xff]  ;;  %v162_v45 = vld [vmem:[%s11699_s1 + $0x350] sm:$0xff] }
  0x28   :  { %4432 = vmatpush1.bf16.msra.mxu0 %v4431_v50  ;;  %1853 = vmatprep.mubr.f32.mxu0 %v1668_v33  ;;  %v164_v44 = vld [vmem:[%s11699_s1 + $0x360] sm:$0xff]  ;;  %v5233_v46 = vpack.c.bf16 %v167_v39, %v163_v38  ;;  %v166_v47 = vld [vmem:[%s11699_s1 + $0x370] sm:$0xff]  ;;  %v169_v48 = vld [vmem:[%s11699_s1 + $0x388] sm:$0xff]  ;;  %v1669_v39 = vcombine.high %v6744_v25, %v6744_v25 }
  0x29   :  { %5216 = vmatpush1.bf16.msra.mxu1 %v5215_v51  ;;  %4434 = vmatprep.subr.bf16.mxu0 %v4433_v52  ;;  %v173_v49 = vld [vmem:[%s11699_s1 + $0x3a8] sm:$0xff]  ;;  %v171_v50 = vld [vmem:[%s11699_s1 + $0x398] sm:$0xff]  ;;  %v4451_v52 = vpack.c.bf16 %v164_v44, %v160_v43  ;;  %v5235_v53 = vpack.c.bf16 %v166_v47, %v162_v45  ;;  %v168_v55 = vld [vmem:[%s11699_s1 + $0x380] sm:$0xff] }
  0x2a   :  { %5218 = vmatprep.subr.bf16.mxu1 %v5217_v56  ;;  %2776 = vmatprep.mubr.f32.mxu1 %v1668_v33  ;;  %v175_v51 = vld [vmem:[%s11699_s1 + $0x3b8] sm:$0xff]  ;;  %v4453_v54 = vpack.c.bf16 %v173_v49, %v169_v48  ;;  %v172_v56 = vld [vmem:[%s11699_s1 + $0x3a0] sm:$0xff]  ;;  %v170_v57 = vld [vmem:[%s11699_s1 + $0x390] sm:$0xff] }
  0x2b   :  { %v5237_v58 = vpack.c.bf16 %v175_v51, %v171_v50  ;;  %v174_v59 = vld [vmem:[%s11699_s1 + $0x3b0] sm:$0xff]  ;;  %v177_v60 = vld [vmem:[%s11699_s1 + $0x3c8] sm:$0xff]  ;;  %v179_v63 = vld [vmem:[%s11699_s1 + $0x3d8] sm:$0xff] }
  0x2c   :  { %4436 = vmatpush1.bf16.msra.mxu0 %v4435_v0  ;;  %v181_v61 = vld [vmem:[%s11699_s1 + $0x3e8] sm:$0xff]  ;;  %v183_v0 = vld [vmem:[%s11699_s1 + $0x3f8] sm:$0xff]  ;;  %v176_v4 = vld [vmem:[%s11699_s1 + $0x3c0] sm:$0xff] }
  0x2d   :  { %5220 = vmatpush1.bf16.msra.mxu1 %v5219_v1  ;;  %4438 = vmatprep.subr.bf16.mxu0 %v4437_v2  ;;  %v4455_v1 = vpack.c.bf16 %v172_v56, %v168_v55  ;;  %v5239_v2 = vpack.c.bf16 %v174_v59, %v170_v57  ;;  %v4457_v3 = vpack.c.bf16 %v181_v61, %v177_v60  ;;  %v180_v5 = vld [vmem:[%s11699_s1 + $0x3e0] sm:$0xff]  ;;  %v182_v8 = vld [vmem:[%s11699_s1 + $0x3f0] sm:$0xff]  ;;  %v185_v10 = vld [vmem:[%s11699_s1 + $0x408] sm:$0xff] }
  0x2e   :  { %5222 = vmatprep.subr.bf16.mxu1 %v5221_v6  ;;  %v178_v6 = vld [vmem:[%s11699_s1 + $0x3d0] sm:$0xff]  ;;  %v5241_v7 = vpack.c.bf16 %v183_v0, %v179_v63  ;;  %v189_v11 = vld [vmem:[%s11699_s1 + $0x428] sm:$0xff]  ;;  %v191_v14 = vld [vmem:[%s11699_s1 + $0x438] sm:$0xff] }
  0x2f   :  { %v4461_v17 = vpack.c.bf16 %v189_v11, %v185_v10  ;;  %v184_v18 = vld [vmem:[%s11699_s1 + $0x400] sm:$0xff]  ;;  %v190_v22 = vld [vmem:[%s11699_s1 + $0x430] sm:$0xff]  ;;  %v193_v23 = vld [vmem:[%s11699_s1 + $0x448] sm:$0xff] }
  0x30   :  { %4440 = vmatpush1.bf16.msra.mxu0 %v4439_v13  ;;  %v187_v13 = vld [vmem:[%s11699_s1 + $0x418] sm:$0xff]  ;;  %v188_v19 = vld [vmem:[%s11699_s1 + $0x420] sm:$0xff]  ;;  %v197_v24 = vld [vmem:[%s11699_s1 + $0x468] sm:$0xff] }
  0x31   :  { %5224 = vmatpush1.bf16.msra.mxu1 %v5223_v15  ;;  %4442 = vmatprep.subr.bf16.mxu0 %v4441_v16  ;;  %v4459_v15 = vpack.c.bf16 %v180_v5, %v176_v4  ;;  %v5243_v16 = vpack.c.bf16 %v182_v8, %v178_v6  ;;  %v5245_v21 = vpack.c.bf16 %v191_v14, %v187_v13  ;;  %v192_v32 = vld [vmem:[%s11699_s1 + $0x440] sm:$0xff]  ;;  %v198_v36 = vld [vmem:[%s11699_s1 + $0x470] sm:$0xff]  ;;  %v201_v37 = vld [vmem:[%s11699_s1 + $0x488] sm:$0xff] }
  0x32   :  { %5226 = vmatprep.subr.bf16.mxu1 %v5225_v20  ;;  %v186_v20 = vld [vmem:[%s11699_s1 + $0x410] sm:$0xff]  ;;  %v4465_v31 = vpack.c.bf16 %v197_v24, %v193_v23  ;;  %v196_v33 = vld [vmem:[%s11699_s1 + $0x460] sm:$0xff]  ;;  %v205_v38 = vld [vmem:[%s11699_s1 + $0x4a8] sm:$0xff] }
  0x33   :  { %v5247_v30 = vpack.c.bf16 %v190_v22, %v186_v20  ;;  %v4469_v44 = vpack.c.bf16 %v205_v38, %v201_v37  ;;  %v200_v45 = vld [vmem:[%s11699_s1 + $0x480] sm:$0xff]  ;;  %v202_v47 = vld [vmem:[%s11699_s1 + $0x490] sm:$0xff]  ;;  %v209_v49 = vld [vmem:[%s11699_s1 + $0x4c8] sm:$0xff] }
  0x34   :  { %4444 = vmatpush1.bf16.msra.mxu0 %v4443_v27  ;;  %v195_v27 = vld [vmem:[%s11699_s1 + $0x458] sm:$0xff]  ;;  %v213_v50 = vld [vmem:[%s11699_s1 + $0x4e8] sm:$0xff]  ;;  %v208_v56 = vld [vmem:[%s11699_s1 + $0x4c0] sm:$0xff] }
  0x35   :  { %5228 = vmatpush1.bf16.msra.mxu1 %v5227_v28  ;;  %4446 = vmatprep.subr.bf16.mxu0 %v4445_v29  ;;  %v199_v28 = vld [vmem:[%s11699_s1 + $0x478] sm:$0xff]  ;;  %v4463_v29 = vpack.c.bf16 %v188_v19, %v184_v18  ;;  %v4473_v55 = vpack.c.bf16 %v213_v50, %v209_v49  ;;  %v212_v57 = vld [vmem:[%s11699_s1 + $0x4e0] sm:$0xff]  ;;  %v214_v60 = vld [vmem:[%s11699_s1 + $0x4f0] sm:$0xff] }
  0x36   :  { %5230 = vmatprep.subr.bf16.mxu1 %v5229_v34  ;;  %v194_v34 = vld [vmem:[%s11699_s1 + $0x450] sm:$0xff]  ;;  %v5249_v35 = vpack.c.bf16 %v199_v28, %v195_v27  ;;  %v211_v51 = vld [vmem:[%s11699_s1 + $0x4d8] sm:$0xff]  ;;  %v217_v61 = vld [vmem:[%s11699_s1 + $0x508] sm:$0xff] }
  0x37   :  { %v5251_v43 = vpack.c.bf16 %v198_v36, %v194_v34  ;;  %v221_v63 = vld [vmem:[%s11699_s1 + $0x528] sm:$0xff]  ;;  %v219_v0 = vld [vmem:[%s11699_s1 + $0x518] sm:$0xff]  ;;  %v216_v5 = vld [vmem:[%s11699_s1 + $0x500] sm:$0xff] }
  0x38   :  { %4448 = vmatpush1.bf16.msra.mxu0 %v4447_v40  ;;  %v203_v40 = vld [vmem:[%s11699_s1 + $0x498] sm:$0xff]  ;;  %v4477_v4 = vpack.c.bf16 %v221_v63, %v217_v61  ;;  %v220_v6 = vld [vmem:[%s11699_s1 + $0x520] sm:$0xff]  ;;  %v222_v9 = vld [vmem:[%s11699_s1 + $0x530] sm:$0xff] }
  0x39   :  { %5232 = vmatpush1.bf16.msra.mxu1 %v5231_v41  ;;  %4450 = vmatprep.subr.bf16.mxu0 %v4449_v42  ;;  %v207_v41 = vld [vmem:[%s11699_s1 + $0x4b8] sm:$0xff]  ;;  %v4467_v42 = vpack.c.bf16 %v196_v33, %v192_v32  ;;  %v225_v10 = vld [vmem:[%s11699_s1 + $0x548] sm:$0xff]  ;;  %v224_v18 = vld [vmem:[%s11699_s1 + $0x540] sm:$0xff] }
  0x3a   :  { %5234 = vmatprep.subr.bf16.mxu1 %v5233_v46  ;;  %v204_v46 = vld [vmem:[%s11699_s1 + $0x4a0] sm:$0xff]  ;;  %v5253_v48 = vpack.c.bf16 %v207_v41, %v203_v40  ;;  %v229_v11 = vld [vmem:[%s11699_s1 + $0x568] sm:$0xff]  ;;  %v227_v13 = vld [vmem:[%s11699_s1 + $0x558] sm:$0xff] }
  0x3b   :  { %v231_v14 = vld [vmem:[%s11699_s1 + $0x578] sm:$0xff]  ;;  %v228_v19 = vld [vmem:[%s11699_s1 + $0x560] sm:$0xff]  ;;  %v226_v20 = vld [vmem:[%s11699_s1 + $0x550] sm:$0xff] }
  0x3c   :  { %4452 = vmatpush1.bf16.msra.mxu0 %v4451_v52  ;;  %v215_v52 = vld [vmem:[%s11699_s1 + $0x4f8] sm:$0xff]  ;;  %v230_v22 = vld [vmem:[%s11699_s1 + $0x570] sm:$0xff]  ;;  %v233_v23 = vld [vmem:[%s11699_s1 + $0x588] sm:$0xff] }
  0x3d   :  { %5236 = vmatpush1.bf16.msra.mxu1 %v5235_v53  ;;  %4454 = vmatprep.subr.bf16.mxu0 %v4453_v54  ;;  %v4471_v53 = vpack.c.bf16 %v204_v46, %v200_v45  ;;  %v5257_v59 = vpack.c.bf16 %v215_v52, %v211_v51  ;;  %v237_v24 = vld [vmem:[%s11699_s1 + $0x5a8] sm:$0xff]  ;;  %v235_v27 = vld [vmem:[%s11699_s1 + $0x598] sm:$0xff]  ;;  %v232_v32 = vld [vmem:[%s11699_s1 + $0x580] sm:$0xff] }
  0x3e   :  { %5238 = vmatprep.subr.bf16.mxu1 %v5237_v58  ;;  %v210_v58 = vld [vmem:[%s11699_s1 + $0x4d0] sm:$0xff]  ;;  %v239_v28 = vld [vmem:[%s11699_s1 + $0x5b8] sm:$0xff]  ;;  %v236_v33 = vld [vmem:[%s11699_s1 + $0x5a0] sm:$0xff] }
  0x3f   :  { %v234_v34 = vld [vmem:[%s11699_s1 + $0x590] sm:$0xff]  ;;  %v241_v37 = vld [vmem:[%s11699_s1 + $0x5c8] sm:$0xff]  ;;  %v247_v40 = vld [vmem:[%s11699_s1 + $0x5f8] sm:$0xff]  ;;  %v4487_v41 = vpack.c.bf16 %v236_v33, %v232_v32 }
  0x40   :  { %4456 = vmatpush1.bf16.msra.mxu0 %v4455_v1  ;;  %v223_v1 = vld [vmem:[%s11699_s1 + $0x538] sm:$0xff]  ;;  %v238_v36 = vld [vmem:[%s11699_s1 + $0x5b0] sm:$0xff]  ;;  %v245_v38 = vld [vmem:[%s11699_s1 + $0x5e8] sm:$0xff] }
  0x41   :  { %5240 = vmatpush1.bf16.msra.mxu1 %v5239_v2  ;;  %4458 = vmatprep.subr.bf16.mxu0 %v4457_v3  ;;  %v4475_v2 = vpack.c.bf16 %v212_v57, %v208_v56  ;;  %v5259_v3 = vpack.c.bf16 %v214_v60, %v210_v58  ;;  %v5261_v8 = vpack.c.bf16 %v223_v1, %v219_v0  ;;  %v244_v45 = vld [vmem:[%s11699_s1 + $0x5e0] sm:$0xff]  ;;  %v242_v46 = vld [vmem:[%s11699_s1 + $0x5d0] sm:$0xff]  ;;  %v253_v49 = vld [vmem:[%s11699_s1 + $0x628] sm:$0xff] }
  0x42   :  { %5242 = vmatprep.subr.bf16.mxu1 %v5241_v7  ;;  %v218_v7 = vld [vmem:[%s11699_s1 + $0x510] sm:$0xff]  ;;  %v251_v50 = vld [vmem:[%s11699_s1 + $0x618] sm:$0xff]  ;;  %v252_v56 = vld [vmem:[%s11699_s1 + $0x620] sm:$0xff] }
  0x43   :  { %v255_v51 = vld [vmem:[%s11699_s1 + $0x638] sm:$0xff]  ;;  %v250_v57 = vld [vmem:[%s11699_s1 + $0x610] sm:$0xff]  ;;  %v257_v60 = vld [vmem:[%s11699_s1 + $0x648] sm:$0xff] }
  0x44   :  { %4460 = vmatpush1.bf16.msra.mxu0 %v4459_v15  ;;  %v4479_v15 = vpack.c.bf16 %v220_v6, %v216_v5  ;;  %v5277_v58 = vpack.c.bf16 %v255_v51, %v251_v50  ;;  %v261_v61 = vld [vmem:[%s11699_s1 + $0x668] sm:$0xff]  ;;  %v259_v63 = vld [vmem:[%s11699_s1 + $0x658] sm:$0xff]  ;;  %v260_v5 = vld [vmem:[%s11699_s1 + $0x660] sm:$0xff] }
  0x45   :  { %5244 = vmatpush1.bf16.msra.mxu1 %v5243_v16  ;;  %4462 = vmatprep.subr.bf16.mxu0 %v4461_v17  ;;  %v5263_v16 = vpack.c.bf16 %v222_v9, %v218_v7  ;;  %v4481_v17 = vpack.c.bf16 %v229_v11, %v225_v10  ;;  %v263_v0 = vld [vmem:[%s11699_s1 + $0x678] sm:$0xff]  ;;  %v258_v6 = vld [vmem:[%s11699_s1 + $0x650] sm:$0xff]  ;;  %v265_v9 = vld [vmem:[%s11699_s1 + $0x688] sm:$0xff] }
  0x46   :  { %5246 = vmatprep.subr.bf16.mxu1 %v5245_v21  ;;  %v5265_v21 = vpack.c.bf16 %v231_v14, %v227_v13  ;;  %v5281_v7 = vpack.c.bf16 %v263_v0, %v259_v63  ;;  %v269_v10 = vld [vmem:[%s11699_s1 + $0x6a8] sm:$0xff]  ;;  %v267_v11 = vld [vmem:[%s11699_s1 + $0x698] sm:$0xff]  ;;  %v276_v32 = vld [vmem:[%s11699_s1 + $0x6e0] sm:$0xff] }
  0x47   :  { %1854 = vmatmul.mubr.f32.vlgmr.msra.gmra.mrb[0].mxu0 %v6623_v26  ;;  %v271_v13 = vld [vmem:[%s11699_s1 + $0x6b8] sm:$0xff]  ;;  %v274_v33 = vld [vmem:[%s11699_s1 + $0x6d0] sm:$0xff] }
  0x48   :  { %4464 = vmatpush1.bf16.msra.mxu0 %v4463_v29  ;;  %2777 = vmatmul.mubr.f32.vlgmr.msra.gmra.mrb[0].mxu1 %v6623_v26  ;;  %v206_v26 = vld [vmem:[%s11699_s1 + $0x4b0] sm:$0xff]  ;;  %v4483_v29 = vpack.c.bf16 %v228_v19, %v224_v18  ;;  %v268_v18 = vld [vmem:[%s11699_s1 + $0x6a0] sm:$0xff]  ;;  %v295_v50 = vld [vmem:[%s11699_s1 + $0x778] sm:$0xff] }
  0x49   :  { %5248 = vmatpush1.bf16.msra.mxu1 %v5247_v30  ;;  %4466 = vmatprep.subr.bf16.mxu0 %v4465_v31  ;;  %v5255_v54 = vpack.c.bf16 %v206_v26, %v202_v47  ;;  %v5267_v30 = vpack.c.bf16 %v230_v22, %v226_v20  ;;  %v4485_v31 = vpack.c.bf16 %v237_v24, %v233_v23  ;;  %v249_v26 = vld [vmem:[%s11699_s1 + $0x608] sm:$0xff]  ;;  %v266_v19 = vld [vmem:[%s11699_s1 + $0x690] sm:$0xff]  ;;  %v275_v24 = vld [vmem:[%s11699_s1 + $0x6d8] sm:$0xff] }
  0x4a   :  { %5250 = vmatprep.subr.bf16.mxu1 %v5249_v35  ;;  %1924 = vmatprep.mubr.f32.mxu0 %v1669_v39  ;;  %v5269_v35 = vpack.c.bf16 %v239_v28, %v235_v27  ;;  %v5285_v20 = vpack.c.bf16 %v271_v13, %v267_v11  ;;  %v273_v22 = vld [vmem:[%s11699_s1 + $0x6c8] sm:$0xff]  ;;  %v279_v27 = vld [vmem:[%s11699_s1 + $0x6f8] sm:$0xff] }
  0x4b   :  { %2847 = vmatprep.mubr.f32.mxu1 %v1669_v39  ;;  %v243_v39 = vld [vmem:[%s11699_s1 + $0x5d8] sm:$0xff]  ;;  %v277_v23 = vld [vmem:[%s11699_s1 + $0x6e8] sm:$0xff] }
  0x4c   :  { %4468 = vmatpush1.bf16.msra.mxu0 %v4467_v42  ;;  %v5271_v42 = vpack.c.bf16 %v238_v36, %v234_v34  ;;  %v5273_v47 = vpack.c.bf16 %v247_v40, %v243_v39  ;;  %v5289_v34 = vpack.c.bf16 %v279_v27, %v275_v24  ;;  %v281_v36 = vld [vmem:[%s11699_s1 + $0x708] sm:$0xff]  ;;  %v287_v39 = vld [vmem:[%s11699_s1 + $0x738] sm:$0xff] }
  0x4d   :  { %5252 = vmatpush1.bf16.msra.mxu1 %v5251_v43  ;;  %4470 = vmatprep.subr.bf16.mxu0 %v4469_v44  ;;  %v4489_v43 = vpack.c.bf16 %v245_v38, %v241_v37  ;;  %v240_v44 = vld [vmem:[%s11699_s1 + $0x5c0] sm:$0xff]  ;;  %v285_v37 = vld [vmem:[%s11699_s1 + $0x728] sm:$0xff]  ;;  %v283_v38 = vld [vmem:[%s11699_s1 + $0x718] sm:$0xff] }
  0x4e   :  { %5254 = vmatprep.subr.bf16.mxu1 %v5253_v48  ;;  %v246_v48 = vld [vmem:[%s11699_s1 + $0x5f0] sm:$0xff]  ;;  %v4491_v52 = vpack.c.bf16 %v244_v45, %v240_v44  ;;  %v284_v44 = vld [vmem:[%s11699_s1 + $0x720] sm:$0xff]  ;;  %v303_v63 = vld [vmem:[%s11699_s1 + $0x7b8] sm:$0xff] }
  0x4f   :  { %v282_v45 = vld [vmem:[%s11699_s1 + $0x710] sm:$0xff]  ;;  %v311_v11 = vld [vmem:[%s11699_s1 + $0x7f8] sm:$0xff] }
  0x50   :  { %4472 = vmatpush1.bf16.msra.mxu0 %v4471_v53  ;;  %v5275_v53 = vpack.c.bf16 %v246_v48, %v242_v46  ;;  %v5293_v46 = vpack.c.bf16 %v287_v39, %v283_v38  ;;  %v289_v48 = vld [vmem:[%s11699_s1 + $0x748] sm:$0xff]  ;;  %v319_v24 = vld [vmem:[%s11699_s1 + $0x838] sm:$0xff] }
  0x51   :  { %5256 = vmatpush1.bf16.msra.mxu1 %v5255_v54  ;;  %4474 = vmatprep.subr.bf16.mxu0 %v4473_v55  ;;  %v4493_v54 = vpack.c.bf16 %v253_v49, %v249_v26  ;;  %v248_v55 = vld [vmem:[%s11699_s1 + $0x600] sm:$0xff]  ;;  %v293_v26 = vld [vmem:[%s11699_s1 + $0x768] sm:$0xff]  ;;  %v291_v49 = vld [vmem:[%s11699_s1 + $0x758] sm:$0xff] }
  0x52   :  { %5258 = vmatprep.subr.bf16.mxu1 %v5257_v59  ;;  %v254_v59 = vld [vmem:[%s11699_s1 + $0x630] sm:$0xff]  ;;  %v4495_v1 = vpack.c.bf16 %v252_v56, %v248_v55  ;;  %v292_v55 = vld [vmem:[%s11699_s1 + $0x760] sm:$0xff]  ;;  %v327_v38 = vld [vmem:[%s11699_s1 + $0x878] sm:$0xff] }
  0x53   :  { %v290_v56 = vld [vmem:[%s11699_s1 + $0x750] sm:$0xff] }
  0x54   :  { %4476 = vmatpush1.bf16.msra.mxu0 %v4475_v2  ;;  %v5279_v2 = vpack.c.bf16 %v254_v59, %v250_v57  ;;  %v5297_v57 = vpack.c.bf16 %v295_v50, %v291_v49  ;;  %v297_v59 = vld [vmem:[%s11699_s1 + $0x788] sm:$0xff]  ;;  %v331_v50 = vld [vmem:[%s11699_s1 + $0x898] sm:$0xff] }
  0x55   :  { %5260 = vmatpush1.bf16.msra.mxu1 %v5259_v3  ;;  %4478 = vmatprep.subr.bf16.mxu0 %v4477_v4  ;;  %v4497_v3 = vpack.c.bf16 %v261_v61, %v257_v60  ;;  %v256_v4 = vld [vmem:[%s11699_s1 + $0x640] sm:$0xff]  ;;  %v301_v60 = vld [vmem:[%s11699_s1 + $0x7a8] sm:$0xff]  ;;  %v299_v61 = vld [vmem:[%s11699_s1 + $0x798] sm:$0xff] }
  0x56   :  { %5262 = vmatprep.subr.bf16.mxu1 %v5261_v8  ;;  %v262_v8 = vld [vmem:[%s11699_s1 + $0x670] sm:$0xff]  ;;  %v4499_v14 = vpack.c.bf16 %v260_v5, %v256_v4  ;;  %v300_v4 = vld [vmem:[%s11699_s1 + $0x7a0] sm:$0xff]  ;;  %v333_v49 = vld [vmem:[%s11699_s1 + $0x8a8] sm:$0xff] }
  0x57   :  { %v298_v5 = vld [vmem:[%s11699_s1 + $0x790] sm:$0xff] }
  0x58   :  { %4480 = vmatpush1.bf16.msra.mxu0 %v4479_v15  ;;  %v5283_v15 = vpack.c.bf16 %v262_v8, %v258_v6  ;;  %v5301_v6 = vpack.c.bf16 %v303_v63, %v299_v61  ;;  %v305_v8 = vld [vmem:[%s11699_s1 + $0x7c8] sm:$0xff]  ;;  %v339_v63 = vld [vmem:[%s11699_s1 + $0x8d8] sm:$0xff] }
  0x59   :  { %5264 = vmatpush1.bf16.msra.mxu1 %v5263_v16  ;;  %4482 = vmatprep.subr.bf16.mxu0 %v4481_v17  ;;  %v4501_v16 = vpack.c.bf16 %v269_v10, %v265_v9  ;;  %v264_v17 = vld [vmem:[%s11699_s1 + $0x680] sm:$0xff]  ;;  %v309_v9 = vld [vmem:[%s11699_s1 + $0x7e8] sm:$0xff]  ;;  %v307_v10 = vld [vmem:[%s11699_s1 + $0x7d8] sm:$0xff] }
  0x5a   :  { %5266 = vmatprep.subr.bf16.mxu1 %v5265_v21  ;;  %v270_v21 = vld [vmem:[%s11699_s1 + $0x6b0] sm:$0xff]  ;;  %v4503_v28 = vpack.c.bf16 %v268_v18, %v264_v17  ;;  %v308_v17 = vld [vmem:[%s11699_s1 + $0x7e0] sm:$0xff]  ;;  %v341_v61 = vld [vmem:[%s11699_s1 + $0x8e8] sm:$0xff] }
  0x5b   :  { %v306_v18 = vld [vmem:[%s11699_s1 + $0x7d0] sm:$0xff] }
  0x5c   :  { %4484 = vmatpush1.bf16.msra.mxu0 %v4483_v29  ;;  %v5287_v29 = vpack.c.bf16 %v270_v21, %v266_v19  ;;  %v5305_v19 = vpack.c.bf16 %v311_v11, %v307_v10  ;;  %v313_v21 = vld [vmem:[%s11699_s1 + $0x808] sm:$0xff]  ;;  %v347_v11 = vld [vmem:[%s11699_s1 + $0x918] sm:$0xff] }
  0x5d   :  { %5268 = vmatpush1.bf16.msra.mxu1 %v5267_v30  ;;  %4486 = vmatprep.subr.bf16.mxu0 %v4485_v31  ;;  %v4505_v30 = vpack.c.bf16 %v277_v23, %v273_v22  ;;  %v272_v31 = vld [vmem:[%s11699_s1 + $0x6c0] sm:$0xff]  ;;  %v317_v22 = vld [vmem:[%s11699_s1 + $0x828] sm:$0xff]  ;;  %v315_v23 = vld [vmem:[%s11699_s1 + $0x818] sm:$0xff] }
  0x5e   :  { %5270 = vmatprep.subr.bf16.mxu1 %v5269_v35  ;;  %v278_v35 = vld [vmem:[%s11699_s1 + $0x6f0] sm:$0xff]  ;;  %v4507_v40 = vpack.c.bf16 %v276_v32, %v272_v31  ;;  %v316_v31 = vld [vmem:[%s11699_s1 + $0x820] sm:$0xff]  ;;  %v349_v10 = vld [vmem:[%s11699_s1 + $0x928] sm:$0xff] }
  0x5f   :  { %v314_v32 = vld [vmem:[%s11699_s1 + $0x810] sm:$0xff] }
  0x60   :  { %4488 = vmatpush1.bf16.msra.mxu0 %v4487_v41  ;;  %v5291_v41 = vpack.c.bf16 %v278_v35, %v274_v33  ;;  %v5309_v33 = vpack.c.bf16 %v319_v24, %v315_v23  ;;  %v321_v35 = vld [vmem:[%s11699_s1 + $0x848] sm:$0xff]  ;;  %v355_v24 = vld [vmem:[%s11699_s1 + $0x958] sm:$0xff] }
  0x61   :  { %5272 = vmatpush1.bf16.msra.mxu1 %v5271_v42  ;;  %4490 = vmatprep.subr.bf16.mxu0 %v4489_v43  ;;  %v4509_v42 = vpack.c.bf16 %v285_v37, %v281_v36  ;;  %v280_v43 = vld [vmem:[%s11699_s1 + $0x700] sm:$0xff]  ;;  %v325_v36 = vld [vmem:[%s11699_s1 + $0x868] sm:$0xff]  ;;  %v323_v37 = vld [vmem:[%s11699_s1 + $0x858] sm:$0xff] }
  0x62   :  { %5274 = vmatprep.subr.bf16.mxu1 %v5273_v47  ;;  %v286_v47 = vld [vmem:[%s11699_s1 + $0x730] sm:$0xff]  ;;  %v4511_v51 = vpack.c.bf16 %v284_v44, %v280_v43  ;;  %v320_v43 = vld [vmem:[%s11699_s1 + $0x840] sm:$0xff]  ;;  %v357_v23 = vld [vmem:[%s11699_s1 + $0x968] sm:$0xff] }
  0x63   :  { %v324_v44 = vld [vmem:[%s11699_s1 + $0x860] sm:$0xff] }
  0x64   :  { %4492 = vmatpush1.bf16.msra.mxu0 %v4491_v52  ;;  %v5295_v52 = vpack.c.bf16 %v286_v47, %v282_v45  ;;  %v322_v45 = vld [vmem:[%s11699_s1 + $0x850] sm:$0xff]  ;;  %v5313_v47 = vpack.c.bf16 %v327_v38, %v323_v37  ;;  %v365_v37 = vld [vmem:[%s11699_s1 + $0x9a8] sm:$0xff]  ;;  %v363_v38 = vld [vmem:[%s11699_s1 + $0x998] sm:$0xff] }
  0x65   :  { %5276 = vmatpush1.bf16.msra.mxu1 %v5275_v53  ;;  %4494 = vmatprep.subr.bf16.mxu0 %v4493_v54  ;;  %v4513_v53 = vpack.c.bf16 %v293_v26, %v289_v48  ;;  %v288_v54 = vld [vmem:[%s11699_s1 + $0x740] sm:$0xff]  ;;  %v326_v48 = vld [vmem:[%s11699_s1 + $0x870] sm:$0xff]  ;;  %v329_v26 = vld [vmem:[%s11699_s1 + $0x888] sm:$0xff] }
  0x66   :  { %5278 = vmatprep.subr.bf16.mxu1 %v5277_v58  ;;  %v294_v58 = vld [vmem:[%s11699_s1 + $0x770] sm:$0xff]  ;;  %v4515_v0 = vpack.c.bf16 %v292_v55, %v288_v54  ;;  %v5315_v54 = vpack.c.bf16 %v326_v48, %v322_v45  ;;  %v4533_v55 = vpack.c.bf16 %v333_v49, %v329_v26  ;;  %v364_v45 = vld [vmem:[%s11699_s1 + $0x9a0] sm:$0xff]  ;;  %v369_v49 = vld [vmem:[%s11699_s1 + $0x9c8] sm:$0xff] }
  0x67   :  { %v366_v26 = vld [vmem:[%s11699_s1 + $0x9b0] sm:$0xff] }
  0x68   :  { %4496 = vmatpush1.bf16.msra.mxu0 %v4495_v1  ;;  %v5299_v1 = vpack.c.bf16 %v294_v58, %v290_v56  ;;  %v328_v56 = vld [vmem:[%s11699_s1 + $0x880] sm:$0xff]  ;;  %v330_v58 = vld [vmem:[%s11699_s1 + $0x890] sm:$0xff] }
  0x69   :  { %5280 = vmatpush1.bf16.msra.mxu1 %v5279_v2  ;;  %4498 = vmatprep.subr.bf16.mxu0 %v4497_v3  ;;  %v4517_v2 = vpack.c.bf16 %v301_v60, %v297_v59  ;;  %v296_v3 = vld [vmem:[%s11699_s1 + $0x780] sm:$0xff]  ;;  %v337_v60 = vld [vmem:[%s11699_s1 + $0x8c8] sm:$0xff] }
  0x6a   :  { %5282 = vmatprep.subr.bf16.mxu1 %v5281_v7  ;;  %v302_v7 = vld [vmem:[%s11699_s1 + $0x7b0] sm:$0xff]  ;;  %v4519_v13 = vpack.c.bf16 %v300_v4, %v296_v3  ;;  %v4537_v3 = vpack.c.bf16 %v341_v61, %v337_v60  ;;  %v336_v4 = vld [vmem:[%s11699_s1 + $0x8c0] sm:$0xff]  ;;  %v377_v60 = vld [vmem:[%s11699_s1 + $0xa08] sm:$0xff] }
  0x6b   :  { %v381_v61 = vld [vmem:[%s11699_s1 + $0xa28] sm:$0xff] }
  0x6c   :  { %4500 = vmatpush1.bf16.msra.mxu0 %v4499_v14  ;;  %v5303_v14 = vpack.c.bf16 %v302_v7, %v298_v5  ;;  %v340_v5 = vld [vmem:[%s11699_s1 + $0x8e0] sm:$0xff] }
  0x6d   :  { %5284 = vmatpush1.bf16.msra.mxu1 %v5283_v15  ;;  %4502 = vmatprep.subr.bf16.mxu0 %v4501_v16  ;;  %v4521_v15 = vpack.c.bf16 %v309_v9, %v305_v8  ;;  %v304_v16 = vld [vmem:[%s11699_s1 + $0x7c0] sm:$0xff]  ;;  %v342_v8 = vld [vmem:[%s11699_s1 + $0x8f0] sm:$0xff]  ;;  %v345_v9 = vld [vmem:[%s11699_s1 + $0x908] sm:$0xff] }
  0x6e   :  { %5286 = vmatprep.subr.bf16.mxu1 %v5285_v20  ;;  %v310_v20 = vld [vmem:[%s11699_s1 + $0x7f0] sm:$0xff]  ;;  %v4523_v27 = vpack.c.bf16 %v308_v17, %v304_v16  ;;  %v4541_v16 = vpack.c.bf16 %v349_v10, %v345_v9  ;;  %v344_v17 = vld [vmem:[%s11699_s1 + $0x900] sm:$0xff]  ;;  %v385_v9 = vld [vmem:[%s11699_s1 + $0xa48] sm:$0xff] }
  0x6f   :  { %v389_v10 = vld [vmem:[%s11699_s1 + $0xa68] sm:$0xff] }
  0x70   :  { %4504 = vmatpush1.bf16.msra.mxu0 %v4503_v28  ;;  %v5307_v28 = vpack.c.bf16 %v310_v20, %v306_v18  ;;  %v348_v18 = vld [vmem:[%s11699_s1 + $0x920] sm:$0xff] }
  0x71   :  { %5288 = vmatpush1.bf16.msra.mxu1 %v5287_v29  ;;  %4506 = vmatprep.subr.bf16.mxu0 %v4505_v30  ;;  %v4525_v29 = vpack.c.bf16 %v317_v22, %v313_v21  ;;  %v312_v30 = vld [vmem:[%s11699_s1 + $0x800] sm:$0xff]  ;;  %v350_v21 = vld [vmem:[%s11699_s1 + $0x930] sm:$0xff]  ;;  %v353_v22 = vld [vmem:[%s11699_s1 + $0x948] sm:$0xff] }
  0x72   :  { %5290 = vmatprep.subr.bf16.mxu1 %v5289_v34  ;;  %v318_v34 = vld [vmem:[%s11699_s1 + $0x830] sm:$0xff]  ;;  %v4527_v39 = vpack.c.bf16 %v316_v31, %v312_v30  ;;  %v4545_v30 = vpack.c.bf16 %v357_v23, %v353_v22  ;;  %v352_v31 = vld [vmem:[%s11699_s1 + $0x940] sm:$0xff]  ;;  %v393_v22 = vld [vmem:[%s11699_s1 + $0xa88] sm:$0xff] }
  0x73   :  { %v397_v23 = vld [vmem:[%s11699_s1 + $0xaa8] sm:$0xff] }
  0x74   :  { %4508 = vmatpush1.bf16.msra.mxu0 %v4507_v40  ;;  %v7143_v40 = vld [vmem:[%s11698_s0 + $0x8] sm:$0xff] }
  0x75   :  { %5292 = vmatpush1.bf16.msra.mxu1 %v5291_v41  ;;  %4510 = vmatprep.subr.bf16.mxu0 %v4509_v42  ;;  %v5311_v41 = vpack.c.bf16 %v318_v34, %v314_v32  ;;  %v4529_v42 = vpack.c.bf16 %v325_v36, %v321_v35  ;;  %v356_v32 = vld [vmem:[%s11699_s1 + $0x960] sm:$0xff]  ;;  %v358_v35 = vld [vmem:[%s11699_s1 + $0x970] sm:$0xff]  ;;  %v361_v36 = vld [vmem:[%s11699_s1 + $0x988] sm:$0xff] }
  0x76   :  { %5294 = vmatprep.subr.bf16.mxu1 %v5293_v46  ;;  %v7156_v46 = vrot.slane %v7143_v40, %v6590_v12 }
  0x78   :  { %4512 = vmatpush1.bf16.msra.mxu0 %v4511_v51  ;;  %v335_v51 = vld [vmem:[%s11699_s1 + $0x8b8] sm:$0xff] }
  0x79   :  { %5296 = vmatpush1.bf16.msra.mxu1 %v5295_v52  ;;  %4514 = vmatprep.subr.bf16.mxu0 %v4513_v53  ;;  %v1685_v52 = vcombine.high %v7156_v46, %v7156_v46  ;;  %v4531_v53 = vpack.c.bf16 %v324_v44, %v320_v43  ;;  %v5317_v59 = vpack.c.bf16 %v335_v51, %v331_v50  ;;  %v360_v44 = vld [vmem:[%s11699_s1 + $0x980] sm:$0xff]  ;;  %v373_v50 = vld [vmem:[%s11699_s1 + $0x9e8] sm:$0xff]  ;;  %v371_v51 = vld [vmem:[%s11699_s1 + $0x9d8] sm:$0xff] }
  0x7a   :  { %5298 = vmatprep.subr.bf16.mxu1 %v5297_v57  ;;  %v332_v57 = vld [vmem:[%s11699_s1 + $0x8a0] sm:$0xff]  ;;  %v4549_v43 = vpack.c.bf16 %v365_v37, %v361_v36  ;;  %v401_v36 = vld [vmem:[%s11699_s1 + $0xac8] sm:$0xff] }
  0x7b   :  { %v405_v37 = vld [vmem:[%s11699_s1 + $0xae8] sm:$0xff] }
  0x7c   :  { %4516 = vmatpush1.bf16.msra.mxu0 %v4515_v0  ;;  %v343_v0 = vld [vmem:[%s11699_s1 + $0x8f8] sm:$0xff] }
  0x7d   :  { %5300 = vmatpush1.bf16.msra.mxu1 %v5299_v1  ;;  %4518 = vmatprep.subr.bf16.mxu0 %v4517_v2  ;;  %v4535_v1 = vpack.c.bf16 %v332_v57, %v328_v56  ;;  %v5321_v7 = vpack.c.bf16 %v343_v0, %v339_v63  ;;  %v368_v56 = vld [vmem:[%s11699_s1 + $0x9c0] sm:$0xff]  ;;  %v379_v63 = vld [vmem:[%s11699_s1 + $0xa18] sm:$0xff] }
  0x7e   :  { %5302 = vmatprep.subr.bf16.mxu1 %v5301_v6  ;;  %v338_v6 = vld [vmem:[%s11699_s1 + $0x8d0] sm:$0xff]  ;;  %v372_v57 = vld [vmem:[%s11699_s1 + $0x9e0] sm:$0xff]  ;;  %v383_v0 = vld [vmem:[%s11699_s1 + $0xa38] sm:$0xff] }
  0x80   :  { %4520 = vmatpush1.bf16.msra.mxu0 %v4519_v13  ;;  %v351_v13 = vld [vmem:[%s11699_s1 + $0x938] sm:$0xff] }
  0x81   :  { %5304 = vmatpush1.bf16.msra.mxu1 %v5303_v14  ;;  %4522 = vmatprep.subr.bf16.mxu0 %v4521_v15  ;;  %v4539_v14 = vpack.c.bf16 %v340_v5, %v336_v4  ;;  %v5323_v15 = vpack.c.bf16 %v342_v8, %v338_v6  ;;  %v5325_v20 = vpack.c.bf16 %v351_v13, %v347_v11  ;;  %v376_v4 = vld [vmem:[%s11699_s1 + $0xa00] sm:$0xff]  ;;  %v378_v6 = vld [vmem:[%s11699_s1 + $0xa10] sm:$0xff]  ;;  %v387_v11 = vld [vmem:[%s11699_s1 + $0xa58] sm:$0xff] }
  0x82   :  { %5306 = vmatprep.subr.bf16.mxu1 %v5305_v19  ;;  %v346_v19 = vld [vmem:[%s11699_s1 + $0x910] sm:$0xff]  ;;  %v380_v5 = vld [vmem:[%s11699_s1 + $0xa20] sm:$0xff]  ;;  %v391_v13 = vld [vmem:[%s11699_s1 + $0xa78] sm:$0xff] }
  0x83   :  { %v382_v8 = vld [vmem:[%s11699_s1 + $0xa30] sm:$0xff] }
  0x84   :  { %4524 = vmatpush1.bf16.msra.mxu0 %v4523_v27  ;;  %v359_v27 = vld [vmem:[%s11699_s1 + $0x978] sm:$0xff] }
  0x85   :  { %5308 = vmatpush1.bf16.msra.mxu1 %v5307_v28  ;;  %4526 = vmatprep.subr.bf16.mxu0 %v4525_v29  ;;  %v4543_v28 = vpack.c.bf16 %v348_v18, %v344_v17  ;;  %v5327_v29 = vpack.c.bf16 %v350_v21, %v346_v19  ;;  %v5329_v34 = vpack.c.bf16 %v359_v27, %v355_v24  ;;  %v384_v17 = vld [vmem:[%s11699_s1 + $0xa40] sm:$0xff]  ;;  %v386_v19 = vld [vmem:[%s11699_s1 + $0xa50] sm:$0xff]  ;;  %v395_v24 = vld [vmem:[%s11699_s1 + $0xa98] sm:$0xff] }
  0x86   :  { %5310 = vmatprep.subr.bf16.mxu1 %v5309_v33  ;;  %v354_v33 = vld [vmem:[%s11699_s1 + $0x950] sm:$0xff]  ;;  %v388_v18 = vld [vmem:[%s11699_s1 + $0xa60] sm:$0xff]  ;;  %v399_v27 = vld [vmem:[%s11699_s1 + $0xab8] sm:$0xff] }
  0x87   :  { %1925 = vmatmul.mubr.f32.vlgmr.msra.gmra.mrb[0].mxu0 %v6744_v25  ;;  %v390_v21 = vld [vmem:[%s11699_s1 + $0xa70] sm:$0xff] }
  0x88   :  { %4528 = vmatpush1.bf16.msra.mxu0 %v4527_v39  ;;  %2848 = vmatmul.mubr.f32.vlgmr.msra.gmra.mrb[0].mxu1 %v6744_v25  ;;  %v334_v25 = vld [vmem:[%s11699_s1 + $0x8b0] sm:$0xff]  ;;  %v367_v39 = vld [vmem:[%s11699_s1 + $0x9b8] sm:$0xff] }
  0x89   :  { %5312 = vmatpush1.bf16.msra.mxu1 %v5311_v41  ;;  %4530 = vmatprep.subr.bf16.mxu0 %v4529_v42  ;;  %v5319_v2 = vpack.c.bf16 %v334_v25, %v330_v58  ;;  %v4547_v41 = vpack.c.bf16 %v356_v32, %v352_v31  ;;  %v5331_v42 = vpack.c.bf16 %v358_v35, %v354_v33  ;;  %v370_v58 = vld [vmem:[%s11699_s1 + $0x9d0] sm:$0xff]  ;;  %v392_v31 = vld [vmem:[%s11699_s1 + $0xa80] sm:$0xff] }
  0x8a   :  { %5314 = vmatprep.subr.bf16.mxu1 %v5313_v47  ;;  %1995 = vmatprep.mubr.f32.mxu0 %v1685_v52  ;;  %v362_v47 = vld [vmem:[%s11699_s1 + $0x990] sm:$0xff]  ;;  %v5333_v48 = vpack.c.bf16 %v367_v39, %v363_v38  ;;  %v396_v32 = vld [vmem:[%s11699_s1 + $0xaa0] sm:$0xff]  ;;  %v403_v38 = vld [vmem:[%s11699_s1 + $0xad8] sm:$0xff] }
  0x8b   :  { %2918 = vmatprep.mubr.f32.mxu1 %v1685_v52  ;;  %v375_v52 = vld [vmem:[%s11699_s1 + $0x9f8] sm:$0xff]  ;;  %v374_v25 = vld [vmem:[%s11699_s1 + $0x9f0] sm:$0xff] }
  0x8c   :  { %4532 = vmatpush1.bf16.msra.mxu0 %v4531_v53  ;;  %v4551_v53 = vpack.c.bf16 %v364_v45, %v360_v44  ;;  %v394_v33 = vld [vmem:[%s11699_s1 + $0xa90] sm:$0xff]  ;;  %v407_v39 = vld [vmem:[%s11699_s1 + $0xaf8] sm:$0xff]  ;;  %v400_v44 = vld [vmem:[%s11699_s1 + $0xac0] sm:$0xff] }
  0x8d   :  { %5316 = vmatpush1.bf16.msra.mxu1 %v5315_v54  ;;  %4534 = vmatprep.subr.bf16.mxu0 %v4533_v55  ;;  %v5335_v54 = vpack.c.bf16 %v366_v26, %v362_v47  ;;  %v4553_v55 = vpack.c.bf16 %v373_v50, %v369_v49  ;;  %v398_v35 = vld [vmem:[%s11699_s1 + $0xab0] sm:$0xff]  ;;  %v404_v45 = vld [vmem:[%s11699_s1 + $0xae0] sm:$0xff]  ;;  %v409_v49 = vld [vmem:[%s11699_s1 + $0xb08] sm:$0xff] }
  0x8e   :  { %5318 = vmatprep.subr.bf16.mxu1 %v5317_v59  ;;  %v5337_v59 = vpack.c.bf16 %v375_v52, %v371_v51  ;;  %v402_v47 = vld [vmem:[%s11699_s1 + $0xad0] sm:$0xff]  ;;  %v413_v50 = vld [vmem:[%s11699_s1 + $0xb28] sm:$0xff]  ;;  %v411_v51 = vld [vmem:[%s11699_s1 + $0xb18] sm:$0xff] }
  0x8f   :  { %v406_v26 = vld [vmem:[%s11699_s1 + $0xaf0] sm:$0xff]  ;;  %v415_v52 = vld [vmem:[%s11699_s1 + $0xb38] sm:$0xff] }
  0x90   :  { %4536 = vmatpush1.bf16.msra.mxu0 %v4535_v1  ;;  %v4555_v1 = vpack.c.bf16 %v372_v57, %v368_v56  ;;  %v408_v56 = vld [vmem:[%s11699_s1 + $0xb00] sm:$0xff] }
  0x91   :  { %5320 = vmatpush1.bf16.msra.mxu1 %v5319_v2  ;;  %4538 = vmatprep.subr.bf16.mxu0 %v4537_v3  ;;  %v5339_v2 = vpack.c.bf16 %v374_v25, %v370_v58  ;;  %v4557_v3 = vpack.c.bf16 %v381_v61, %v377_v60  ;;  %v412_v57 = vld [vmem:[%s11699_s1 + $0xb20] sm:$0xff]  ;;  %v410_v58 = vld [vmem:[%s11699_s1 + $0xb10] sm:$0xff]  ;;  %v417_v60 = vld [vmem:[%s11699_s1 + $0xb48] sm:$0xff] }
  0x92   :  { %5322 = vmatprep.subr.bf16.mxu1 %v5321_v7  ;;  %v5341_v7 = vpack.c.bf16 %v383_v0, %v379_v63  ;;  %v414_v25 = vld [vmem:[%s11699_s1 + $0xb30] sm:$0xff]  ;;  %v421_v61 = vld [vmem:[%s11699_s1 + $0xb68] sm:$0xff]  ;;  %v419_v63 = vld [vmem:[%s11699_s1 + $0xb58] sm:$0xff] }
  0x93   :  { %v423_v0 = vld [vmem:[%s11699_s1 + $0xb78] sm:$0xff] }
  0x94   :  { %4540 = vmatpush1.bf16.msra.mxu0 %v4539_v14  ;;  %v4559_v14 = vpack.c.bf16 %v380_v5, %v376_v4  ;;  %v416_v4 = vld [vmem:[%s11699_s1 + $0xb40] sm:$0xff] }
  0x95   :  { %5324 = vmatpush1.bf16.msra.mxu1 %v5323_v15  ;;  %4542 = vmatprep.subr.bf16.mxu0 %v4541_v16  ;;  %v5343_v15 = vpack.c.bf16 %v382_v8, %v378_v6  ;;  %v4561_v16 = vpack.c.bf16 %v389_v10, %v385_v9  ;;  %v420_v5 = vld [vmem:[%s11699_s1 + $0xb60] sm:$0xff]  ;;  %v418_v6 = vld [vmem:[%s11699_s1 + $0xb50] sm:$0xff]  ;;  %v425_v9 = vld [vmem:[%s11699_s1 + $0xb88] sm:$0xff] }
  0x96   :  { %5326 = vmatprep.subr.bf16.mxu1 %v5325_v20  ;;  %v5345_v20 = vpack.c.bf16 %v391_v13, %v387_v11  ;;  %v422_v8 = vld [vmem:[%s11699_s1 + $0xb70] sm:$0xff]  ;;  %v429_v10 = vld [vmem:[%s11699_s1 + $0xba8] sm:$0xff]  ;;  %v427_v11 = vld [vmem:[%s11699_s1 + $0xb98] sm:$0xff] }
  0x97   :  { %v431_v13 = vld [vmem:[%s11699_s1 + $0xbb8] sm:$0xff] }
  0x98   :  { %4544 = vmatpush1.bf16.msra.mxu0 %v4543_v28  ;;  %v4563_v28 = vpack.c.bf16 %v388_v18, %v384_v17  ;;  %v424_v17 = vld [vmem:[%s11699_s1 + $0xb80] sm:$0xff] }
  0x99   :  { %5328 = vmatpush1.bf16.msra.mxu1 %v5327_v29  ;;  %4546 = vmatprep.subr.bf16.mxu0 %v4545_v30  ;;  %v5347_v29 = vpack.c.bf16 %v390_v21, %v386_v19  ;;  %v4565_v30 = vpack.c.bf16 %v397_v23, %v393_v22  ;;  %v428_v18 = vld [vmem:[%s11699_s1 + $0xba0] sm:$0xff]  ;;  %v426_v19 = vld [vmem:[%s11699_s1 + $0xb90] sm:$0xff]  ;;  %v433_v22 = vld [vmem:[%s11699_s1 + $0xbc8] sm:$0xff] }
  0x9a   :  { %5330 = vmatprep.subr.bf16.mxu1 %v5329_v34  ;;  %v5349_v34 = vpack.c.bf16 %v399_v27, %v395_v24  ;;  %v430_v21 = vld [vmem:[%s11699_s1 + $0xbb0] sm:$0xff]  ;;  %v437_v23 = vld [vmem:[%s11699_s1 + $0xbe8] sm:$0xff]  ;;  %v435_v24 = vld [vmem:[%s11699_s1 + $0xbd8] sm:$0xff] }
  0x9b   :  { %v439_v27 = vld [vmem:[%s11699_s1 + $0xbf8] sm:$0xff] }
  0x9c   :  { %4548 = vmatpush1.bf16.msra.mxu0 %v4547_v41  ;;  %v4567_v41 = vpack.c.bf16 %v396_v32, %v392_v31  ;;  %v432_v31 = vld [vmem:[%s11699_s1 + $0xbc0] sm:$0xff] }
  0x9d   :  { %5332 = vmatpush1.bf16.msra.mxu1 %v5331_v42  ;;  %4550 = vmatprep.subr.bf16.mxu0 %v4549_v43  ;;  %v5351_v42 = vpack.c.bf16 %v398_v35, %v394_v33  ;;  %v4569_v43 = vpack.c.bf16 %v405_v37, %v401_v36  ;;  %v436_v32 = vld [vmem:[%s11699_s1 + $0xbe0] sm:$0xff]  ;;  %v434_v33 = vld [vmem:[%s11699_s1 + $0xbd0] sm:$0xff]  ;;  %v441_v36 = vld [vmem:[%s11699_s1 + $0xc08] sm:$0xff] }
  0x9e   :  { %5334 = vmatprep.subr.bf16.mxu1 %v5333_v48  ;;  %v5353_v48 = vpack.c.bf16 %v407_v39, %v403_v38  ;;  %v438_v35 = vld [vmem:[%s11699_s1 + $0xbf0] sm:$0xff]  ;;  %v445_v37 = vld [vmem:[%s11699_s1 + $0xc28] sm:$0xff]  ;;  %v1670_v38 = vcombine.high %v7143_v40, %v7143_v40  ;;  %v443_v39 = vld [vmem:[%s11699_s1 + $0xc18] sm:$0xff] }
  0x9f   :  { %v444_v40 = vld [vmem:[%s11699_s1 + $0xc20] sm:$0xff] }
  0xa0   :  { %4552 = vmatpush1.bf16.msra.mxu0 %v4551_v53  ;;  %v4571_v53 = vpack.c.bf16 %v404_v45, %v400_v44  ;;  %v4589_v44 = vpack.c.bf16 %v445_v37, %v441_v36  ;;  %v440_v45 = vld [vmem:[%s11699_s1 + $0xc00] sm:$0xff]  ;;  %v478_v36 = vld [vmem:[%s11699_s1 + $0xd30] sm:$0xff]  ;;  %v481_v37 = vld [vmem:[%s11699_s1 + $0xd48] sm:$0xff] }
  0xa1   :  { %5336 = vmatpush1.bf16.msra.mxu1 %v5335_v54  ;;  %4554 = vmatprep.subr.bf16.mxu0 %v4553_v55  ;;  %v5355_v54 = vpack.c.bf16 %v406_v26, %v402_v47  ;;  %v4573_v55 = vpack.c.bf16 %v413_v50, %v409_v49  ;;  %v442_v47 = vld [vmem:[%s11699_s1 + $0xc10] sm:$0xff]  ;;  %v449_v49 = vld [vmem:[%s11699_s1 + $0xc48] sm:$0xff] }
  0xa2   :  { %5338 = vmatprep.subr.bf16.mxu1 %v5337_v59  ;;  %v5357_v59 = vpack.c.bf16 %v415_v52, %v411_v51  ;;  %v446_v26 = vld [vmem:[%s11699_s1 + $0xc30] sm:$0xff]  ;;  %v453_v50 = vld [vmem:[%s11699_s1 + $0xc68] sm:$0xff]  ;;  %v7534_v51 = vrot.slane %v1670_v38, %v6590_v12  ;;  %v451_v52 = vld [vmem:[%s11699_s1 + $0xc58] sm:$0xff] }
  0xa3   :  { %v485_v38 = vld [vmem:[%s11699_s1 + $0xd68] sm:$0xff] }
  0xa4   :  { %4556 = vmatpush1.bf16.msra.mxu0 %v4555_v1  ;;  %v4575_v1 = vpack.c.bf16 %v412_v57, %v408_v56  ;;  %v4593_v56 = vpack.c.bf16 %v453_v50, %v449_v49  ;;  %v448_v57 = vld [vmem:[%s11699_s1 + $0xc40] sm:$0xff]  ;;  %v489_v49 = vld [vmem:[%s11699_s1 + $0xd88] sm:$0xff] }
  0xa5   :  { %5340 = vmatpush1.bf16.msra.mxu1 %v5339_v2  ;;  %4558 = vmatprep.subr.bf16.mxu0 %v4557_v3  ;;  %v5359_v2 = vpack.c.bf16 %v414_v25, %v410_v58  ;;  %v4577_v3 = vpack.c.bf16 %v421_v61, %v417_v60  ;;  %v452_v58 = vld [vmem:[%s11699_s1 + $0xc60] sm:$0xff]  ;;  %v454_v60 = vld [vmem:[%s11699_s1 + $0xc70] sm:$0xff]  ;;  %v457_v61 = vld [vmem:[%s11699_s1 + $0xc88] sm:$0xff] }
  0xa6   :  { %5342 = vmatprep.subr.bf16.mxu1 %v5341_v7  ;;  %v5361_v7 = vpack.c.bf16 %v423_v0, %v419_v63  ;;  %v461_v63 = vld [vmem:[%s11699_s1 + $0xca8] sm:$0xff]  ;;  %v1686_v0 = vcombine.high %v7534_v51, %v7534_v51 }
  0xa7   :  { %v493_v50 = vld [vmem:[%s11699_s1 + $0xda8] sm:$0xff] }
  0xa8   :  { %4560 = vmatpush1.bf16.msra.mxu0 %v4559_v14  ;;  %v4579_v14 = vpack.c.bf16 %v420_v5, %v416_v4  ;;  %v4597_v5 = vpack.c.bf16 %v461_v63, %v457_v61  ;;  %v497_v61 = vld [vmem:[%s11699_s1 + $0xdc8] sm:$0xff] }
  0xa9   :  { %5344 = vmatpush1.bf16.msra.mxu1 %v5343_v15  ;;  %4562 = vmatprep.subr.bf16.mxu0 %v4561_v16  ;;  %v5363_v15 = vpack.c.bf16 %v422_v8, %v418_v6  ;;  %v4581_v16 = vpack.c.bf16 %v429_v10, %v425_v9  ;;  %v456_v6 = vld [vmem:[%s11699_s1 + $0xc80] sm:$0xff]  ;;  %v458_v8 = vld [vmem:[%s11699_s1 + $0xc90] sm:$0xff]  ;;  %v465_v10 = vld [vmem:[%s11699_s1 + $0xcc8] sm:$0xff] }
  0xaa   :  { %5346 = vmatprep.subr.bf16.mxu1 %v5345_v20  ;;  %v5365_v20 = vpack.c.bf16 %v431_v13, %v427_v11  ;;  %v469_v11 = vld [vmem:[%s11699_s1 + $0xce8] sm:$0xff]  ;;  %v467_v13 = vld [vmem:[%s11699_s1 + $0xcd8] sm:$0xff] }
  0xab   :  { %v501_v63 = vld [vmem:[%s11699_s1 + $0xde8] sm:$0xff] }
  0xac   :  { %4564 = vmatpush1.bf16.msra.mxu0 %v4563_v28  ;;  %v4583_v28 = vpack.c.bf16 %v428_v18, %v424_v17  ;;  %v4601_v17 = vpack.c.bf16 %v469_v11, %v465_v10  ;;  %v464_v18 = vld [vmem:[%s11699_s1 + $0xcc0] sm:$0xff]  ;;  %v509_v10 = vld [vmem:[%s11699_s1 + $0xe28] sm:$0xff]  ;;  %v507_v11 = vld [vmem:[%s11699_s1 + $0xe18] sm:$0xff] }
  0xad   :  { %5348 = vmatpush1.bf16.msra.mxu1 %v5347_v29  ;;  %4566 = vmatprep.subr.bf16.mxu0 %v4565_v30  ;;  %v5367_v29 = vpack.c.bf16 %v430_v21, %v426_v19  ;;  %v4585_v30 = vpack.c.bf16 %v437_v23, %v433_v22  ;;  %v468_v19 = vld [vmem:[%s11699_s1 + $0xce0] sm:$0xff]  ;;  %v470_v22 = vld [vmem:[%s11699_s1 + $0xcf0] sm:$0xff]  ;;  %v473_v23 = vld [vmem:[%s11699_s1 + $0xd08] sm:$0xff] }
  0xae   :  { %5350 = vmatprep.subr.bf16.mxu1 %v5349_v34  ;;  %v5369_v34 = vpack.c.bf16 %v439_v27, %v435_v24  ;;  %v477_v24 = vld [vmem:[%s11699_s1 + $0xd28] sm:$0xff]  ;;  %v475_v27 = vld [vmem:[%s11699_s1 + $0xd18] sm:$0xff] }
  0xb0   :  { %4568 = vmatpush1.bf16.msra.mxu0 %v4567_v41  ;;  %v447_v41 = vld [vmem:[%s11699_s1 + $0xc38] sm:$0xff] }
  0xb1   :  { %5352 = vmatpush1.bf16.msra.mxu1 %v5351_v42  ;;  %4570 = vmatprep.subr.bf16.mxu0 %v4569_v43  ;;  %v4587_v42 = vpack.c.bf16 %v436_v32, %v432_v31  ;;  %v5371_v43 = vpack.c.bf16 %v438_v35, %v434_v33  ;;  %v4605_v31 = vpack.c.bf16 %v477_v24, %v473_v23  ;;  %v472_v32 = vld [vmem:[%s11699_s1 + $0xd00] sm:$0xff]  ;;  %v517_v23 = vld [vmem:[%s11699_s1 + $0xe68] sm:$0xff]  ;;  %v515_v24 = vld [vmem:[%s11699_s1 + $0xe58] sm:$0xff] }
  0xb2   :  { %5354 = vmatprep.subr.bf16.mxu1 %v5353_v48  ;;  %v5373_v48 = vpack.c.bf16 %v447_v41, %v443_v39  ;;  %v476_v33 = vld [vmem:[%s11699_s1 + $0xd20] sm:$0xff]  ;;  %v483_v39 = vld [vmem:[%s11699_s1 + $0xd58] sm:$0xff] }
  0xb3   :  { %v487_v41 = vld [vmem:[%s11699_s1 + $0xd78] sm:$0xff] }
  0xb4   :  { %4572 = vmatpush1.bf16.msra.mxu0 %v4571_v53  ;;  %v455_v53 = vld [vmem:[%s11699_s1 + $0xc78] sm:$0xff] }
  0xb5   :  { %5356 = vmatpush1.bf16.msra.mxu1 %v5355_v54  ;;  %4574 = vmatprep.subr.bf16.mxu0 %v4573_v55  ;;  %v4591_v54 = vpack.c.bf16 %v444_v40, %v440_v45  ;;  %v5375_v55 = vpack.c.bf16 %v446_v26, %v442_v47  ;;  %v5377_v25 = vpack.c.bf16 %v455_v53, %v451_v52  ;;  %v480_v45 = vld [vmem:[%s11699_s1 + $0xd40] sm:$0xff]  ;;  %v482_v47 = vld [vmem:[%s11699_s1 + $0xd50] sm:$0xff]  ;;  %v491_v52 = vld [vmem:[%s11699_s1 + $0xd98] sm:$0xff] }
  0xb6   :  { %5358 = vmatprep.subr.bf16.mxu1 %v5357_v59  ;;  %v450_v59 = vld [vmem:[%s11699_s1 + $0xc50] sm:$0xff]  ;;  %v484_v40 = vld [vmem:[%s11699_s1 + $0xd60] sm:$0xff]  ;;  %v495_v53 = vld [vmem:[%s11699_s1 + $0xdb8] sm:$0xff] }
  0xb7   :  { %v5379_v4 = vpack.c.bf16 %v454_v60, %v450_v59  ;;  %v486_v26 = vld [vmem:[%s11699_s1 + $0xd70] sm:$0xff] }
  0xb8   :  { %4576 = vmatpush1.bf16.msra.mxu0 %v4575_v1  ;;  %v459_v1 = vld [vmem:[%s11699_s1 + $0xc98] sm:$0xff]  ;;  %v490_v59 = vld [vmem:[%s11699_s1 + $0xd90] sm:$0xff] }
  0xb9   :  { %5360 = vmatpush1.bf16.msra.mxu1 %v5359_v2  ;;  %4578 = vmatprep.subr.bf16.mxu0 %v4577_v3  ;;  %v463_v2 = vld [vmem:[%s11699_s1 + $0xcb8] sm:$0xff]  ;;  %v4595_v3 = vpack.c.bf16 %v452_v58, %v448_v57  ;;  %v488_v57 = vld [vmem:[%s11699_s1 + $0xd80] sm:$0xff]  ;;  %v494_v60 = vld [vmem:[%s11699_s1 + $0xdb0] sm:$0xff] }
  0xba   :  { %5362 = vmatprep.subr.bf16.mxu1 %v5361_v7  ;;  %v460_v7 = vld [vmem:[%s11699_s1 + $0xca0] sm:$0xff]  ;;  %v5381_v9 = vpack.c.bf16 %v463_v2, %v459_v1  ;;  %v503_v1 = vld [vmem:[%s11699_s1 + $0xdf8] sm:$0xff] }
  0xbb   :  { %v492_v58 = vld [vmem:[%s11699_s1 + $0xda0] sm:$0xff] }
  0xbc   :  { %4580 = vmatpush1.bf16.msra.mxu0 %v4579_v14  ;;  %v471_v14 = vld [vmem:[%s11699_s1 + $0xcf8] sm:$0xff]  ;;  %v4615_v2 = vpack.c.bf16 %v492_v58, %v488_v57  ;;  %v532_v57 = vld [vmem:[%s11699_s1 + $0xee0] sm:$0xff]  ;;  %v530_v58 = vld [vmem:[%s11699_s1 + $0xed0] sm:$0xff] }
  0xbd   :  { %5364 = vmatpush1.bf16.msra.mxu1 %v5363_v15  ;;  %4582 = vmatprep.subr.bf16.mxu0 %v4581_v16  ;;  %v4599_v15 = vpack.c.bf16 %v460_v7, %v456_v6  ;;  %v5385_v21 = vpack.c.bf16 %v471_v14, %v467_v13  ;;  %v500_v6 = vld [vmem:[%s11699_s1 + $0xde0] sm:$0xff]  ;;  %v498_v7 = vld [vmem:[%s11699_s1 + $0xdd0] sm:$0xff]  ;;  %v511_v13 = vld [vmem:[%s11699_s1 + $0xe38] sm:$0xff] }
  0xbe   :  { %5366 = vmatprep.subr.bf16.mxu1 %v5365_v20  ;;  %v466_v20 = vld [vmem:[%s11699_s1 + $0xcd0] sm:$0xff] }
  0xc0   :  { %4584 = vmatpush1.bf16.msra.mxu0 %v4583_v28  ;;  %v479_v28 = vld [vmem:[%s11699_s1 + $0xd38] sm:$0xff] }
  0xc1   :  { %5368 = vmatpush1.bf16.msra.mxu1 %v5367_v29  ;;  %4586 = vmatprep.subr.bf16.mxu0 %v4585_v30  ;;  %v4603_v29 = vpack.c.bf16 %v468_v19, %v464_v18  ;;  %v5387_v30 = vpack.c.bf16 %v470_v22, %v466_v20  ;;  %v5389_v35 = vpack.c.bf16 %v479_v28, %v475_v27  ;;  %v508_v18 = vld [vmem:[%s11699_s1 + $0xe20] sm:$0xff]  ;;  %v506_v19 = vld [vmem:[%s11699_s1 + $0xe10] sm:$0xff]  ;;  %v513_v22 = vld [vmem:[%s11699_s1 + $0xe48] sm:$0xff] }
  0xc2   :  { %5370 = vmatprep.subr.bf16.mxu1 %v5369_v34  ;;  %v474_v34 = vld [vmem:[%s11699_s1 + $0xd10] sm:$0xff]  ;;  %v5405_v20 = vpack.c.bf16 %v511_v13, %v507_v11  ;;  %v519_v27 = vld [vmem:[%s11699_s1 + $0xe78] sm:$0xff] }
  0xc3   :  { %v551_v11 = vld [vmem:[%s11699_s1 + $0xf78] sm:$0xff] }
  0xc4   :  { %4588 = vmatpush1.bf16.msra.mxu0 %v4587_v42  ;;  %v4607_v42 = vpack.c.bf16 %v476_v33, %v472_v32  ;;  %v516_v32 = vld [vmem:[%s11699_s1 + $0xe60] sm:$0xff]  ;;  %v514_v33 = vld [vmem:[%s11699_s1 + $0xe50] sm:$0xff] }
  0xc5   :  { %5372 = vmatpush1.bf16.msra.mxu1 %v5371_v43  ;;  %4590 = vmatprep.subr.bf16.mxu0 %v4589_v44  ;;  %v5391_v43 = vpack.c.bf16 %v478_v36, %v474_v34  ;;  %v4609_v44 = vpack.c.bf16 %v485_v38, %v481_v37  ;;  %v5409_v34 = vpack.c.bf16 %v519_v27, %v515_v24  ;;  %v521_v36 = vld [vmem:[%s11699_s1 + $0xe88] sm:$0xff]  ;;  %v523_v38 = vld [vmem:[%s11699_s1 + $0xe98] sm:$0xff] }
  0xc6   :  { %5374 = vmatprep.subr.bf16.mxu1 %v5373_v48  ;;  %v5393_v48 = vpack.c.bf16 %v487_v41, %v483_v39  ;;  %v525_v37 = vld [vmem:[%s11699_s1 + $0xea8] sm:$0xff]  ;;  %v527_v39 = vld [vmem:[%s11699_s1 + $0xeb8] sm:$0xff] }
  0xc7   :  { %1996 = vmatmul.mubr.f32.vlgmr.msra.gmra.mrb[0].mxu0 %v7156_v46  ;;  %v559_v24 = vld [vmem:[%s11699_s1 + $0xfb8] sm:$0xff] }
  0xc8   :  { %4592 = vmatpush1.bf16.msra.mxu0 %v4591_v54  ;;  %2919 = vmatmul.mubr.f32.vlgmr.msra.gmra.mrb[0].mxu1 %v7156_v46  ;;  %v462_v46 = vld [vmem:[%s11699_s1 + $0xcb0] sm:$0xff]  ;;  %v4611_v54 = vpack.c.bf16 %v484_v40, %v480_v45  ;;  %v524_v45 = vld [vmem:[%s11699_s1 + $0xea0] sm:$0xff] }
  0xc9   :  { %5376 = vmatpush1.bf16.msra.mxu1 %v5375_v55  ;;  %4594 = vmatprep.subr.bf16.mxu0 %v4593_v56  ;;  %v5383_v16 = vpack.c.bf16 %v462_v46, %v458_v8  ;;  %v5395_v55 = vpack.c.bf16 %v486_v26, %v482_v47  ;;  %v4613_v56 = vpack.c.bf16 %v493_v50, %v489_v49  ;;  %v505_v46 = vld [vmem:[%s11699_s1 + $0xe08] sm:$0xff]  ;;  %v522_v40 = vld [vmem:[%s11699_s1 + $0xe90] sm:$0xff]  ;;  %v531_v50 = vld [vmem:[%s11699_s1 + $0xed8] sm:$0xff] }
  0xca   :  { %5378 = vmatprep.subr.bf16.mxu1 %v5377_v25  ;;  %2066 = vmatprep.mubr.f32.mxu0 %v1686_v0  ;;  %v5397_v25 = vpack.c.bf16 %v495_v53, %v491_v52  ;;  %v5413_v47 = vpack.c.bf16 %v527_v39, %v523_v38  ;;  %v529_v26 = vld [vmem:[%s11699_s1 + $0xec8] sm:$0xff]  ;;  %v535_v52 = vld [vmem:[%s11699_s1 + $0xef8] sm:$0xff] }
  0xcb   :  { %2989 = vmatprep.mubr.f32.mxu1 %v1686_v0  ;;  %v499_v0 = vld [vmem:[%s11699_s1 + $0xdd8] sm:$0xff]  ;;  %v533_v49 = vld [vmem:[%s11699_s1 + $0xee8] sm:$0xff] }
  0xcc   :  { %4596 = vmatpush1.bf16.msra.mxu0 %v4595_v3  ;;  %v5399_v3 = vpack.c.bf16 %v494_v60, %v490_v59  ;;  %v5401_v8 = vpack.c.bf16 %v503_v1, %v499_v0  ;;  %v5417_v59 = vpack.c.bf16 %v535_v52, %v531_v50  ;;  %v537_v60 = vld [vmem:[%s11699_s1 + $0xf08] sm:$0xff]  ;;  %v543_v0 = vld [vmem:[%s11699_s1 + $0xf38] sm:$0xff]  ;;  %v7909_v52 = vld [vmem:[%s11698_s0 + $0x10] sm:$0xff] }
  0xcd   :  { %5380 = vmatpush1.bf16.msra.mxu1 %v5379_v4  ;;  %4598 = vmatprep.subr.bf16.mxu0 %v4597_v5  ;;  %v4617_v4 = vpack.c.bf16 %v501_v63, %v497_v61  ;;  %v496_v5 = vld [vmem:[%s11699_s1 + $0xdc0] sm:$0xff]  ;;  %v541_v61 = vld [vmem:[%s11699_s1 + $0xf28] sm:$0xff]  ;;  %v539_v63 = vld [vmem:[%s11699_s1 + $0xf18] sm:$0xff] }
  0xce   :  { %5382 = vmatprep.subr.bf16.mxu1 %v5381_v9  ;;  %v502_v9 = vld [vmem:[%s11699_s1 + $0xdf0] sm:$0xff]  ;;  %v4619_v14 = vpack.c.bf16 %v500_v6, %v496_v5  ;;  %v540_v5 = vld [vmem:[%s11699_s1 + $0xf20] sm:$0xff]  ;;  %v567_v38 = vld [vmem:[%s11699_s1 + $0xff8] sm:$0xff] }
  0xcf   :  { %v538_v6 = vld [vmem:[%s11699_s1 + $0xf10] sm:$0xff]  ;;  %v575_v50 = vld [vmem:[%s11699_s1 + $0x1038] sm:$0xff] }
  0xd0   :  { %4600 = vmatpush1.bf16.msra.mxu0 %v4599_v15  ;;  %v5403_v15 = vpack.c.bf16 %v502_v9, %v498_v7  ;;  %v5421_v7 = vpack.c.bf16 %v543_v0, %v539_v63  ;;  %v545_v9 = vld [vmem:[%s11699_s1 + $0xf48] sm:$0xff]  ;;  %v7931_v63 = vrot.slane %v7909_v52, %v6590_v12  ;;  %v579_v0 = vld [vmem:[%s11699_s1 + $0x1058] sm:$0xff] }
  0xd1   :  { %5384 = vmatpush1.bf16.msra.mxu1 %v5383_v16  ;;  %4602 = vmatprep.subr.bf16.mxu0 %v4601_v17  ;;  %v4621_v16 = vpack.c.bf16 %v509_v10, %v505_v46  ;;  %v504_v17 = vld [vmem:[%s11699_s1 + $0xe00] sm:$0xff]  ;;  %v549_v46 = vld [vmem:[%s11699_s1 + $0xf68] sm:$0xff]  ;;  %v547_v10 = vld [vmem:[%s11699_s1 + $0xf58] sm:$0xff] }
  0xd2   :  { %5386 = vmatprep.subr.bf16.mxu1 %v5385_v21  ;;  %v510_v21 = vld [vmem:[%s11699_s1 + $0xe30] sm:$0xff]  ;;  %v4623_v28 = vpack.c.bf16 %v508_v18, %v504_v17  ;;  %v548_v17 = vld [vmem:[%s11699_s1 + $0xf60] sm:$0xff] }
  0xd3   :  { %v546_v18 = vld [vmem:[%s11699_s1 + $0xf50] sm:$0xff] }
  0xd4   :  { %4604 = vmatpush1.bf16.msra.mxu0 %v4603_v29  ;;  %v5407_v29 = vpack.c.bf16 %v510_v21, %v506_v19  ;;  %v5425_v19 = vpack.c.bf16 %v551_v11, %v547_v10  ;;  %v553_v21 = vld [vmem:[%s11699_s1 + $0xf88] sm:$0xff]  ;;  %v1702_v11 = vcombine.high %v7931_v63, %v7931_v63 }
  0xd5   :  { %5388 = vmatpush1.bf16.msra.mxu1 %v5387_v30  ;;  %4606 = vmatprep.subr.bf16.mxu0 %v4605_v31  ;;  %v4625_v30 = vpack.c.bf16 %v517_v23, %v513_v22  ;;  %v512_v31 = vld [vmem:[%s11699_s1 + $0xe40] sm:$0xff]  ;;  %v557_v22 = vld [vmem:[%s11699_s1 + $0xfa8] sm:$0xff]  ;;  %v555_v23 = vld [vmem:[%s11699_s1 + $0xf98] sm:$0xff] }
  0xd6   :  { %5390 = vmatprep.subr.bf16.mxu1 %v5389_v35  ;;  %v518_v35 = vld [vmem:[%s11699_s1 + $0xe70] sm:$0xff]  ;;  %v4627_v41 = vpack.c.bf16 %v516_v32, %v512_v31  ;;  %v556_v31 = vld [vmem:[%s11699_s1 + $0xfa0] sm:$0xff]  ;;  %v589_v10 = vld [vmem:[%s11699_s1 + $0x10a8] sm:$0xff] }
  0xd7   :  { %v554_v32 = vld [vmem:[%s11699_s1 + $0xf90] sm:$0xff] }
  0xd8   :  { %4608 = vmatpush1.bf16.msra.mxu0 %v4607_v42  ;;  %v5411_v42 = vpack.c.bf16 %v518_v35, %v514_v33  ;;  %v5429_v33 = vpack.c.bf16 %v559_v24, %v555_v23  ;;  %v561_v35 = vld [vmem:[%s11699_s1 + $0xfc8] sm:$0xff] }
  0xd9   :  { %5392 = vmatpush1.bf16.msra.mxu1 %v5391_v43  ;;  %4610 = vmatprep.subr.bf16.mxu0 %v4609_v44  ;;  %v4629_v43 = vpack.c.bf16 %v525_v37, %v521_v36  ;;  %v520_v44 = vld [vmem:[%s11699_s1 + $0xe80] sm:$0xff]  ;;  %v565_v36 = vld [vmem:[%s11699_s1 + $0xfe8] sm:$0xff]  ;;  %v563_v37 = vld [vmem:[%s11699_s1 + $0xfd8] sm:$0xff] }
  0xda   :  { %5394 = vmatprep.subr.bf16.mxu1 %v5393_v48  ;;  %v526_v48 = vld [vmem:[%s11699_s1 + $0xeb0] sm:$0xff]  ;;  %v4631_v53 = vpack.c.bf16 %v524_v45, %v520_v44  ;;  %v564_v44 = vld [vmem:[%s11699_s1 + $0xfe0] sm:$0xff] }
  0xdb   :  { %v562_v45 = vld [vmem:[%s11699_s1 + $0xfd0] sm:$0xff] }
  0xdc   :  { %4612 = vmatpush1.bf16.msra.mxu0 %v4611_v54  ;;  %v5415_v54 = vpack.c.bf16 %v526_v48, %v522_v40  ;;  %v5433_v40 = vpack.c.bf16 %v567_v38, %v563_v37  ;;  %v569_v48 = vld [vmem:[%s11699_s1 + $0x1008] sm:$0xff] }
  0xdd   :  { %5396 = vmatpush1.bf16.msra.mxu1 %v5395_v55  ;;  %4614 = vmatprep.subr.bf16.mxu0 %v4613_v56  ;;  %v4633_v55 = vpack.c.bf16 %v533_v49, %v529_v26  ;;  %v528_v56 = vld [vmem:[%s11699_s1 + $0xec0] sm:$0xff]  ;;  %v573_v26 = vld [vmem:[%s11699_s1 + $0x1028] sm:$0xff]  ;;  %v571_v49 = vld [vmem:[%s11699_s1 + $0x1018] sm:$0xff] }
  0xde   :  { %5398 = vmatprep.subr.bf16.mxu1 %v5397_v25  ;;  %v534_v25 = vld [vmem:[%s11699_s1 + $0xef0] sm:$0xff]  ;;  %v4635_v1 = vpack.c.bf16 %v532_v57, %v528_v56  ;;  %v568_v56 = vld [vmem:[%s11699_s1 + $0x1000] sm:$0xff] }
  0xdf   :  { %v572_v57 = vld [vmem:[%s11699_s1 + $0x1020] sm:$0xff] }
  0xe0   :  { %4616 = vmatpush1.bf16.msra.mxu0 %v4615_v2  ;;  %v5419_v2 = vpack.c.bf16 %v534_v25, %v530_v58  ;;  %v570_v58 = vld [vmem:[%s11699_s1 + $0x1010] sm:$0xff] }
  0xe1   :  { %5400 = vmatpush1.bf16.msra.mxu1 %v5399_v3  ;;  %4618 = vmatprep.subr.bf16.mxu0 %v4617_v4  ;;  %v4637_v3 = vpack.c.bf16 %v541_v61, %v537_v60  ;;  %v536_v4 = vld [vmem:[%s11699_s1 + $0xf00] sm:$0xff]  ;;  %v574_v25 = vld [vmem:[%s11699_s1 + $0x1030] sm:$0xff]  ;;  %v577_v60 = vld [vmem:[%s11699_s1 + $0x1048] sm:$0xff] }
  0xe2   :  { %5402 = vmatprep.subr.bf16.mxu1 %v5401_v8  ;;  %v542_v8 = vld [vmem:[%s11699_s1 + $0xf30] sm:$0xff]  ;;  %v4639_v13 = vpack.c.bf16 %v540_v5, %v536_v4  ;;  %v581_v61 = vld [vmem:[%s11699_s1 + $0x1068] sm:$0xff]  ;;  %v576_v5 = vld [vmem:[%s11699_s1 + $0x1040] sm:$0xff] }
  0xe3   :  { %v4657_v4 = vpack.c.bf16 %v581_v61, %v577_v60 }
  0xe4   :  { %4620 = vmatpush1.bf16.msra.mxu0 %v4619_v14  ;;  %v5423_v14 = vpack.c.bf16 %v542_v8, %v538_v6  ;;  %v580_v6 = vld [vmem:[%s11699_s1 + $0x1060] sm:$0xff] }
  0xe5   :  { %5404 = vmatpush1.bf16.msra.mxu1 %v5403_v15  ;;  %4622 = vmatprep.subr.bf16.mxu0 %v4621_v16  ;;  %v4641_v15 = vpack.c.bf16 %v549_v46, %v545_v9  ;;  %v544_v16 = vld [vmem:[%s11699_s1 + $0xf40] sm:$0xff]  ;;  %v582_v9 = vld [vmem:[%s11699_s1 + $0x1070] sm:$0xff]  ;;  %v585_v46 = vld [vmem:[%s11699_s1 + $0x1088] sm:$0xff] }
  0xe6   :  { %5406 = vmatprep.subr.bf16.mxu1 %v5405_v20  ;;  %v550_v20 = vld [vmem:[%s11699_s1 + $0xf70] sm:$0xff]  ;;  %v4643_v27 = vpack.c.bf16 %v548_v17, %v544_v16 }
  0xe8   :  { %4624 = vmatpush1.bf16.msra.mxu0 %v4623_v28  ;;  %v5427_v28 = vpack.c.bf16 %v550_v20, %v546_v18 }
  0xe9   :  { %5408 = vmatpush1.bf16.msra.mxu1 %v5407_v29  ;;  %4626 = vmatprep.subr.bf16.mxu0 %v4625_v30  ;;  %v4645_v29 = vpack.c.bf16 %v557_v22, %v553_v21  ;;  %v552_v30 = vld [vmem:[%s11699_s1 + $0xf80] sm:$0xff] }
  0xea   :  { %5410 = vmatprep.subr.bf16.mxu1 %v5409_v34  ;;  %v558_v34 = vld [vmem:[%s11699_s1 + $0xfb0] sm:$0xff]  ;;  %v4647_v39 = vpack.c.bf16 %v556_v31, %v552_v30 }
  0xec   :  { %4628 = vmatpush1.bf16.msra.mxu0 %v4627_v41  ;;  %v5431_v41 = vpack.c.bf16 %v558_v34, %v554_v32 }
  0xed   :  { %5412 = vmatpush1.bf16.msra.mxu1 %v5411_v42  ;;  %4630 = vmatprep.subr.bf16.mxu0 %v4629_v43  ;;  %v4649_v42 = vpack.c.bf16 %v565_v36, %v561_v35  ;;  %v560_v43 = vld [vmem:[%s11699_s1 + $0xfc0] sm:$0xff] }
  0xee   :  { %5414 = vmatprep.subr.bf16.mxu1 %v5413_v47  ;;  %v566_v47 = vld [vmem:[%s11699_s1 + $0xff0] sm:$0xff] }
  0xf0   :  { %4632 = vmatpush1.bf16.msra.mxu0 %v4631_v53  ;;  %v4651_v53 = vpack.c.bf16 %v564_v44, %v560_v43 }
  0xf1   :  { %5416 = vmatpush1.bf16.msra.mxu1 %v5415_v54  ;;  %4634 = vmatprep.subr.bf16.mxu0 %v4633_v55  ;;  %v5435_v54 = vpack.c.bf16 %v566_v47, %v562_v45  ;;  %v4653_v55 = vpack.c.bf16 %v573_v26, %v569_v48 }
  0xf2   :  { %5418 = vmatprep.subr.bf16.mxu1 %v5417_v59  ;;  %v5437_v59 = vpack.c.bf16 %v575_v50, %v571_v49 }
  0xf4   :  { %4636 = vmatpush1.bf16.msra.mxu0 %v4635_v1  ;;  %v583_v1 = vld [vmem:[%s11699_s1 + $0x1078] sm:$0xff] }
  0xf5   :  { %5420 = vmatpush1.bf16.msra.mxu1 %v5419_v2  ;;  %4638 = vmatprep.subr.bf16.mxu0 %v4637_v3  ;;  %v4655_v2 = vpack.c.bf16 %v572_v57, %v568_v56  ;;  %v5439_v3 = vpack.c.bf16 %v574_v25, %v570_v58  ;;  %v5441_v8 = vpack.c.bf16 %v583_v1, %v579_v0 }
  0xf6   :  { %5422 = vmatprep.subr.bf16.mxu1 %v5421_v7  ;;  %v578_v7 = vld [vmem:[%s11699_s1 + $0x1050] sm:$0xff] }
  0xf8   :  { %4640 = vmatpush1.bf16.msra.mxu0 %v4639_v13  ;;  %v587_v13 = vld [vmem:[%s11699_s1 + $0x1098] sm:$0xff] }
  0xf9   :  { %5424 = vmatpush1.bf16.msra.mxu1 %v5423_v14  ;;  %4642 = vmatprep.subr.bf16.mxu0 %v4641_v15  ;;  %v591_v14 = vld [vmem:[%s11699_s1 + $0x10b8] sm:$0xff] }
  0xfa   :  { %5426 = vmatprep.subr.bf16.mxu1 %v5425_v19 }
  0xfc   :  { %4644 = vmatpush1.bf16.msra.mxu0 %v4643_v27 }
  0xfd   :  { %5428 = vmatpush1.bf16.msra.mxu1 %v5427_v28  ;;  %4646 = vmatprep.subr.bf16.mxu0 %v4645_v29 }
  0xfe   :  { %5430 = vmatprep.subr.bf16.mxu1 %v5429_v33 }
 0x100   :  { %4648 = vmatpush1.bf16.msra.mxu0 %v4647_v39 }
 0x101   :  { %5432 = vmatpush1.bf16.msra.mxu1 %v5431_v41  ;;  %4650 = vmatprep.subr.bf16.mxu0 %v4649_v42 }
 0x102   :  { %5434 = vmatprep.subr.bf16.mxu1 %v5433_v40 }
 0x104   :  { %4652 = vmatpush1.bf16.msra.mxu0 %v4651_v53 }
 0x105   :  { %5436 = vmatpush1.bf16.msra.mxu1 %v5435_v54  ;;  %4654 = vmatprep.subr.bf16.mxu0 %v4653_v55 }
 0x106   :  { %5438 = vmatprep.subr.bf16.mxu1 %v5437_v59 }
 0x107   :  { %2067 = vmatmul.mubr.f32.vlgmr.msra.gmra.mrb[0].mxu0 %v7534_v51 }
 0x108   :  { %22 = vsyncpa [#allocation4], 0  ;;  %4656 = vmatpush1.bf16.msra.mxu0 %v4655_v2  ;;  %2990 = vmatmul.mubr.f32.vlgmr.msra.gmra.mrb[0].mxu1 %v7534_v51  ;;  %v4659_v15 = vpack.c.bf16 %v580_v6, %v576_v5  ;;  %v5443_v16 = vpack.c.bf16 %v582_v9, %v578_v7  ;;  %v4661_v17 = vpack.c.bf16 %v589_v10, %v585_v46  ;;  %v584_v18 = vld [vmem:[%s11699_s1 + $0x1080] sm:$0xff]  ;;  %v586_v20 = vld [vmem:[%s11699_s1 + $0x1090] sm:$0xff]  ;;  %vm1786_vm0 = vcmask 523264  }
 0x109   :  { %5440 = vmatpush1.bf16.msra.mxu1 %v5439_v3  ;;  %4658 = vmatprep.subr.bf16.mxu0 %v4657_v4  ;;  %v588_v19 = vld [vmem:[%s11699_s1 + $0x10a0] sm:$0xff]  ;;  %v5445_v21 = vpack.c.bf16 %v591_v14, %v587_v13  ;;  %v590_v51 = vld [vmem:[%s11699_s1 + $0x10b0] sm:$0xff]  ;;  %v593_v22 = vld [vmem:[%s11699_s1 + $0x10c8] sm:$0xff]  ;;  %vm6231_vm1 = vmmov 0   ;;  %vm4194_vm2 = vcmask 123904  }
 0x10a   :  { %5442 = vmatprep.subr.bf16.mxu1 %v5441_v8  ;;  %v597_v23 = vld [vmem:[%s11699_s1 + $0x10e8] sm:$0xff]  ;;  %2137 = vmatprep.mubr.f32.mxu0 %v1702_v11  ;;  %v595_v24 = vld [vmem:[%s11699_s1 + $0x10d8] sm:$0xff]  ;;  %v4663_v28 = vpack.c.bf16 %v588_v19, %v584_v18  ;;  %v5447_v29 = vpack.c.bf16 %v590_v51, %v586_v20  ;;  %v592_v31 = vld [vmem:[%s11699_s1 + $0x10c0] sm:$0xff] }
 0x10b   :  { %v599_v27 = vld [vmem:[%s11699_s1 + $0x10f8] sm:$0xff]  ;;  %3060 = vmatprep.mubr.f32.mxu1 %v1702_v11  ;;  %v4665_v30 = vpack.c.bf16 %v597_v23, %v593_v22  ;;  %v596_v32 = vld [vmem:[%s11699_s1 + $0x10e0] sm:$0xff]  ;;  %v594_v33 = vld [vmem:[%s11699_s1 + $0x10d0] sm:$0xff] }
 0x10c   :  { %4660 = vmatpush1.bf16.msra.mxu0 %v4659_v15  ;;  %v5449_v34 = vpack.c.bf16 %v599_v27, %v595_v24  ;;  %v598_v35 = vld [vmem:[%s11699_s1 + $0x10f0] sm:$0xff]  ;;  %v601_v36 = vld [vmem:[%s11699_s1 + $0x1108] sm:$0xff]  ;;  %v603_v38 = vld [vmem:[%s11699_s1 + $0x1118] sm:$0xff]  ;;  %v4667_v41 = vpack.c.bf16 %v596_v32, %v592_v31 }
 0x10d   :  { %5444 = vmatpush1.bf16.msra.mxu1 %v5443_v16  ;;  %4662 = vmatprep.subr.bf16.mxu0 %v4661_v17  ;;  %v605_v37 = vld [vmem:[%s11699_s1 + $0x1128] sm:$0xff]  ;;  %v607_v39 = vld [vmem:[%s11699_s1 + $0x1138] sm:$0xff]  ;;  %v5451_v42 = vpack.c.bf16 %v598_v35, %v594_v33  ;;  %v600_v44 = vld [vmem:[%s11699_s1 + $0x1100] sm:$0xff] }
 0x10e   :  { %5446 = vmatprep.subr.bf16.mxu1 %v5445_v21  ;;  %v4669_v43 = vpack.c.bf16 %v605_v37, %v601_v36  ;;  %v604_v45 = vld [vmem:[%s11699_s1 + $0x1120] sm:$0xff]  ;;  %v602_v40 = vld [vmem:[%s11699_s1 + $0x1110] sm:$0xff]  ;;  %v5453_v47 = vpack.c.bf16 %v607_v39, %v603_v38  ;;  %v609_v26 = vld [vmem:[%s11699_s1 + $0x1148] sm:$0xff] }
 0x10f   :  { %v606_v48 = vld [vmem:[%s11699_s1 + $0x1130] sm:$0xff]  ;;  %v613_v49 = vld [vmem:[%s11699_s1 + $0x1168] sm:$0xff]  ;;  %v611_v50 = vld [vmem:[%s11699_s1 + $0x1158] sm:$0xff]  ;;  %v4671_v54 = vpack.c.bf16 %v604_v45, %v600_v44 }
 0x110   :  { %4664 = vmatpush1.bf16.msra.mxu0 %v4663_v28  ;;  %v615_v53 = vld [vmem:[%s11699_s1 + $0x1178] sm:$0xff]  ;;  %v5455_v55 = vpack.c.bf16 %v606_v48, %v602_v40  ;;  %v4673_v56 = vpack.c.bf16 %v613_v49, %v609_v26  ;;  %v608_v57 = vld [vmem:[%s11699_s1 + $0x1140] sm:$0xff]  ;;  %v610_v59 = vld [vmem:[%s11699_s1 + $0x1150] sm:$0xff] }
 0x111   :  { %5448 = vmatpush1.bf16.msra.mxu1 %v5447_v29  ;;  %4666 = vmatprep.subr.bf16.mxu0 %v4665_v30  ;;  %v612_v58 = vld [vmem:[%s11699_s1 + $0x1160] sm:$0xff]  ;;  %v5457_v25 = vpack.c.bf16 %v615_v53, %v611_v50  ;;  %v614_v60 = vld [vmem:[%s11699_s1 + $0x1170] sm:$0xff]  ;;  %v617_v61 = vld [vmem:[%s11699_s1 + $0x1188] sm:$0xff] }
 0x112   :  { %5450 = vmatprep.subr.bf16.mxu1 %v5449_v34  ;;  %v621_v0 = vld [vmem:[%s11699_s1 + $0x11a8] sm:$0xff]  ;;  %v619_v1 = vld [vmem:[%s11699_s1 + $0x1198] sm:$0xff]  ;;  %v4675_v3 = vpack.c.bf16 %v612_v58, %v608_v57  ;;  %v5459_v4 = vpack.c.bf16 %v614_v60, %v610_v59  ;;  %v616_v6 = vld [vmem:[%s11699_s1 + $0x1180] sm:$0xff] }
 0x113   :  { %v623_v2 = vld [vmem:[%s11699_s1 + $0x11b8] sm:$0xff]  ;;  %v4677_v5 = vpack.c.bf16 %v621_v0, %v617_v61  ;;  %v620_v7 = vld [vmem:[%s11699_s1 + $0x11a0] sm:$0xff]  ;;  %v618_v8 = vld [vmem:[%s11699_s1 + $0x1190] sm:$0xff] }
 0x114   :  { %4668 = vmatpush1.bf16.msra.mxu0 %v4667_v41  ;;  %v5461_v9 = vpack.c.bf16 %v623_v2, %v619_v1  ;;  %v622_v46 = vld [vmem:[%s11699_s1 + $0x11b0] sm:$0xff]  ;;  %v625_v10 = vld [vmem:[%s11699_s1 + $0x11c8] sm:$0xff]  ;;  %v627_v13 = vld [vmem:[%s11699_s1 + $0x11d8] sm:$0xff]  ;;  %v4679_v15 = vpack.c.bf16 %v620_v7, %v616_v6 }
 0x115   :  { %5452 = vmatpush1.bf16.msra.mxu1 %v5451_v42  ;;  %4670 = vmatprep.subr.bf16.mxu0 %v4669_v43  ;;  %v629_v11 = vld [vmem:[%s11699_s1 + $0x11e8] sm:$0xff]  ;;  %v631_v14 = vld [vmem:[%s11699_s1 + $0x11f8] sm:$0xff]  ;;  %v5463_v16 = vpack.c.bf16 %v622_v46, %v618_v8  ;;  %v624_v18 = vld [vmem:[%s11699_s1 + $0x11c0] sm:$0xff] }
 0x116   :  { %5454 = vmatprep.subr.bf16.mxu1 %v5453_v47  ;;  %v4681_v17 = vpack.c.bf16 %v629_v11, %v625_v10  ;;  %v628_v19 = vld [vmem:[%s11699_s1 + $0x11e0] sm:$0xff]  ;;  %v626_v20 = vld [vmem:[%s11699_s1 + $0x11d0] sm:$0xff]  ;;  %v5465_v21 = vpack.c.bf16 %v631_v14, %v627_v13  ;;  %v633_v22 = vld [vmem:[%s11699_s1 + $0x1208] sm:$0xff] }
 0x117   :  { %v630_v51 = vld [vmem:[%s11699_s1 + $0x11f0] sm:$0xff]  ;;  %v637_v23 = vld [vmem:[%s11699_s1 + $0x1228] sm:$0xff]  ;;  %v635_v24 = vld [vmem:[%s11699_s1 + $0x1218] sm:$0xff]  ;;  %v4683_v28 = vpack.c.bf16 %v628_v19, %v624_v18 }
 0x118   :  { %4672 = vmatpush1.bf16.msra.mxu0 %v4671_v54  ;;  %v639_v27 = vld [vmem:[%s11699_s1 + $0x1238] sm:$0xff]  ;;  %v5467_v29 = vpack.c.bf16 %v630_v51, %v626_v20  ;;  %v4685_v30 = vpack.c.bf16 %v637_v23, %v633_v22  ;;  %v632_v31 = vld [vmem:[%s11699_s1 + $0x1200] sm:$0xff]  ;;  %v634_v33 = vld [vmem:[%s11699_s1 + $0x1210] sm:$0xff] }
 0x119   :  { %5456 = vmatpush1.bf16.msra.mxu1 %v5455_v55  ;;  %4674 = vmatprep.subr.bf16.mxu0 %v4673_v56  ;;  %v636_v32 = vld [vmem:[%s11699_s1 + $0x1220] sm:$0xff]  ;;  %v5469_v34 = vpack.c.bf16 %v639_v27, %v635_v24  ;;  %v638_v35 = vld [vmem:[%s11699_s1 + $0x1230] sm:$0xff]  ;;  %v641_v36 = vld [vmem:[%s11699_s1 + $0x1248] sm:$0xff] }
 0x11a   :  { %5458 = vmatprep.subr.bf16.mxu1 %v5457_v25  ;;  %v645_v37 = vld [vmem:[%s11699_s1 + $0x1268] sm:$0xff]  ;;  %v643_v38 = vld [vmem:[%s11699_s1 + $0x1258] sm:$0xff]  ;;  %v4687_v41 = vpack.c.bf16 %v636_v32, %v632_v31  ;;  %v5471_v42 = vpack.c.bf16 %v638_v35, %v634_v33  ;;  %v640_v44 = vld [vmem:[%s11699_s1 + $0x1240] sm:$0xff] }
 0x11b   :  { %v647_v39 = vld [vmem:[%s11699_s1 + $0x1278] sm:$0xff]  ;;  %v4689_v43 = vpack.c.bf16 %v645_v37, %v641_v36  ;;  %v644_v45 = vld [vmem:[%s11699_s1 + $0x1260] sm:$0xff]  ;;  %v642_v40 = vld [vmem:[%s11699_s1 + $0x1250] sm:$0xff] }
 0x11c   :  { %4676 = vmatpush1.bf16.msra.mxu0 %v4675_v3  ;;  %v5473_v47 = vpack.c.bf16 %v647_v39, %v643_v38  ;;  %v646_v48 = vld [vmem:[%s11699_s1 + $0x1270] sm:$0xff]  ;;  %v649_v26 = vld [vmem:[%s11699_s1 + $0x1288] sm:$0xff]  ;;  %v651_v50 = vld [vmem:[%s11699_s1 + $0x1298] sm:$0xff]  ;;  %v4691_v54 = vpack.c.bf16 %v644_v45, %v640_v44 }
 0x11d   :  { %5460 = vmatpush1.bf16.msra.mxu1 %v5459_v4  ;;  %4678 = vmatprep.subr.bf16.mxu0 %v4677_v5  ;;  %v653_v49 = vld [vmem:[%s11699_s1 + $0x12a8] sm:$0xff]  ;;  %v655_v53 = vld [vmem:[%s11699_s1 + $0x12b8] sm:$0xff]  ;;  %v5475_v55 = vpack.c.bf16 %v646_v48, %v642_v40  ;;  %v648_v57 = vld [vmem:[%s11699_s1 + $0x1280] sm:$0xff] }
 0x11e   :  { %5462 = vmatprep.subr.bf16.mxu1 %v5461_v9  ;;  %v4693_v56 = vpack.c.bf16 %v653_v49, %v649_v26  ;;  %v652_v58 = vld [vmem:[%s11699_s1 + $0x12a0] sm:$0xff]  ;;  %v650_v59 = vld [vmem:[%s11699_s1 + $0x1290] sm:$0xff]  ;;  %v5477_v25 = vpack.c.bf16 %v655_v53, %v651_v50  ;;  %v657_v61 = vld [vmem:[%s11699_s1 + $0x12c8] sm:$0xff] }
 0x11f   :  { %v654_v60 = vld [vmem:[%s11699_s1 + $0x12b0] sm:$0xff]  ;;  %v661_v0 = vld [vmem:[%s11699_s1 + $0x12e8] sm:$0xff]  ;;  %v659_v1 = vld [vmem:[%s11699_s1 + $0x12d8] sm:$0xff]  ;;  %v4695_v3 = vpack.c.bf16 %v652_v58, %v648_v57 }
 0x120   :  { %4680 = vmatpush1.bf16.msra.mxu0 %v4679_v15  ;;  %v663_v2 = vld [vmem:[%s11699_s1 + $0x12f8] sm:$0xff]  ;;  %v5479_v4 = vpack.c.bf16 %v654_v60, %v650_v59  ;;  %v4697_v5 = vpack.c.bf16 %v661_v0, %v657_v61  ;;  %v656_v6 = vld [vmem:[%s11699_s1 + $0x12c0] sm:$0xff]  ;;  %v658_v8 = vld [vmem:[%s11699_s1 + $0x12d0] sm:$0xff] }
 0x121   :  { %5464 = vmatpush1.bf16.msra.mxu1 %v5463_v16  ;;  %4682 = vmatprep.subr.bf16.mxu0 %v4681_v17  ;;  %v660_v7 = vld [vmem:[%s11699_s1 + $0x12e0] sm:$0xff]  ;;  %v5481_v9 = vpack.c.bf16 %v663_v2, %v659_v1  ;;  %v662_v46 = vld [vmem:[%s11699_s1 + $0x12f0] sm:$0xff]  ;;  %v665_v10 = vld [vmem:[%s11699_s1 + $0x1308] sm:$0xff]  ;;  %v1687_v1 = vcombine.high %v7909_v52, %v7909_v52 }
 0x122   :  { %5466 = vmatprep.subr.bf16.mxu1 %v5465_v21  ;;  %v669_v11 = vld [vmem:[%s11699_s1 + $0x1328] sm:$0xff]  ;;  %v667_v13 = vld [vmem:[%s11699_s1 + $0x1318] sm:$0xff]  ;;  %v4699_v15 = vpack.c.bf16 %v660_v7, %v656_v6  ;;  %v5483_v16 = vpack.c.bf16 %v662_v46, %v658_v8  ;;  %v664_v18 = vld [vmem:[%s11699_s1 + $0x1300] sm:$0xff] }
 0x123   :  { %v671_v14 = vld [vmem:[%s11699_s1 + $0x1338] sm:$0xff]  ;;  %v4701_v17 = vpack.c.bf16 %v669_v11, %v665_v10  ;;  %v668_v19 = vld [vmem:[%s11699_s1 + $0x1320] sm:$0xff]  ;;  %v666_v20 = vld [vmem:[%s11699_s1 + $0x1310] sm:$0xff] }
 0x124   :  { %4684 = vmatpush1.bf16.msra.mxu0 %v4683_v28  ;;  %v5485_v21 = vpack.c.bf16 %v671_v14, %v667_v13  ;;  %v670_v51 = vld [vmem:[%s11699_s1 + $0x1330] sm:$0xff]  ;;  %v673_v22 = vld [vmem:[%s11699_s1 + $0x1348] sm:$0xff]  ;;  %v675_v24 = vld [vmem:[%s11699_s1 + $0x1358] sm:$0xff]  ;;  %v4703_v28 = vpack.c.bf16 %v668_v19, %v664_v18  ;;  %v8324_v13 = vrot.slane %v1687_v1, %v6590_v12 }
 0x125   :  { %5468 = vmatpush1.bf16.msra.mxu1 %v5467_v29  ;;  %4686 = vmatprep.subr.bf16.mxu0 %v4685_v30  ;;  %v677_v23 = vld [vmem:[%s11699_s1 + $0x1368] sm:$0xff]  ;;  %v679_v27 = vld [vmem:[%s11699_s1 + $0x1378] sm:$0xff]  ;;  %v5487_v29 = vpack.c.bf16 %v670_v51, %v666_v20  ;;  %v672_v31 = vld [vmem:[%s11699_s1 + $0x1340] sm:$0xff] }
 0x126   :  { %5470 = vmatprep.subr.bf16.mxu1 %v5469_v34  ;;  %v4705_v30 = vpack.c.bf16 %v677_v23, %v673_v22  ;;  %v676_v32 = vld [vmem:[%s11699_s1 + $0x1360] sm:$0xff]  ;;  %v674_v33 = vld [vmem:[%s11699_s1 + $0x1350] sm:$0xff]  ;;  %v5489_v34 = vpack.c.bf16 %v679_v27, %v675_v24  ;;  %v681_v36 = vld [vmem:[%s11699_s1 + $0x1388] sm:$0xff]  ;;  %v1703_v27 = vcombine.high %v8324_v13, %v8324_v13 }
 0x127   :  { %v678_v35 = vld [vmem:[%s11699_s1 + $0x1370] sm:$0xff]  ;;  %v685_v37 = vld [vmem:[%s11699_s1 + $0x13a8] sm:$0xff]  ;;  %v683_v38 = vld [vmem:[%s11699_s1 + $0x1398] sm:$0xff] }
 0x128   :  { %4688 = vmatpush1.bf16.msra.mxu0 %v4687_v41  ;;  %v687_v39 = vld [vmem:[%s11699_s1 + $0x13b8] sm:$0xff]  ;;  %v4707_v41 = vpack.c.bf16 %v676_v32, %v672_v31  ;;  %v680_v44 = vld [vmem:[%s11699_s1 + $0x1380] sm:$0xff]  ;;  %v682_v40 = vld [vmem:[%s11699_s1 + $0x1390] sm:$0xff] }
 0x129   :  { %5472 = vmatpush1.bf16.msra.mxu1 %v5471_v42  ;;  %4690 = vmatprep.subr.bf16.mxu0 %v4689_v43  ;;  %v5491_v42 = vpack.c.bf16 %v678_v35, %v674_v33  ;;  %v4709_v43 = vpack.c.bf16 %v685_v37, %v681_v36  ;;  %v684_v45 = vld [vmem:[%s11699_s1 + $0x13a0] sm:$0xff]  ;;  %v686_v48 = vld [vmem:[%s11699_s1 + $0x13b0] sm:$0xff]  ;;  %v689_v26 = vld [vmem:[%s11699_s1 + $0x13c8] sm:$0xff] }
 0x12a   :  { %5474 = vmatprep.subr.bf16.mxu1 %v5473_v47  ;;  %v5493_v47 = vpack.c.bf16 %v687_v39, %v683_v38  ;;  %v693_v49 = vld [vmem:[%s11699_s1 + $0x13e8] sm:$0xff]  ;;  %v691_v50 = vld [vmem:[%s11699_s1 + $0x13d8] sm:$0xff]  ;;  %v688_v57 = vld [vmem:[%s11699_s1 + $0x13c0] sm:$0xff] }
 0x12b   :  { %v695_v53 = vld [vmem:[%s11699_s1 + $0x13f8] sm:$0xff]  ;;  %v692_v58 = vld [vmem:[%s11699_s1 + $0x13e0] sm:$0xff]  ;;  %v690_v59 = vld [vmem:[%s11699_s1 + $0x13d0] sm:$0xff] }
 0x12c   :  { %4692 = vmatpush1.bf16.msra.mxu0 %v4691_v54  ;;  %v4711_v54 = vpack.c.bf16 %v684_v45, %v680_v44  ;;  %v694_v60 = vld [vmem:[%s11699_s1 + $0x13f0] sm:$0xff]  ;;  %v697_v61 = vld [vmem:[%s11699_s1 + $0x1408] sm:$0xff]  ;;  %v699_v2 = vld [vmem:[%s11699_s1 + $0x1418] sm:$0xff] }
 0x12d   :  { %5476 = vmatpush1.bf16.msra.mxu1 %v5475_v55  ;;  %4694 = vmatprep.subr.bf16.mxu0 %v4693_v56  ;;  %v5495_v55 = vpack.c.bf16 %v686_v48, %v682_v40  ;;  %v4713_v56 = vpack.c.bf16 %v693_v49, %v689_v26  ;;  %v701_v0 = vld [vmem:[%s11699_s1 + $0x1428] sm:$0xff]  ;;  %v696_v7 = vld [vmem:[%s11699_s1 + $0x1400] sm:$0xff]  ;;  %v698_v8 = vld [vmem:[%s11699_s1 + $0x1410] sm:$0xff] }
 0x12e   :  { %5478 = vmatprep.subr.bf16.mxu1 %v5477_v25  ;;  %v5497_v25 = vpack.c.bf16 %v695_v53, %v691_v50  ;;  %v4717_v6 = vpack.c.bf16 %v701_v0, %v697_v61  ;;  %v700_v52 = vld [vmem:[%s11699_s1 + $0x1420] sm:$0xff]  ;;  %v702_v46 = vld [vmem:[%s11699_s1 + $0x1430] sm:$0xff]  ;;  %v705_v10 = vld [vmem:[%s11699_s1 + $0x1448] sm:$0xff] }
 0x12f   :  { %v709_v11 = vld [vmem:[%s11699_s1 + $0x1468] sm:$0xff]  ;;  %v707_v14 = vld [vmem:[%s11699_s1 + $0x1458] sm:$0xff]  ;;  %v704_v19 = vld [vmem:[%s11699_s1 + $0x1440] sm:$0xff] }
 0x130   :  { %4696 = vmatpush1.bf16.msra.mxu0 %v4695_v3  ;;  %v703_v3 = vld [vmem:[%s11699_s1 + $0x1438] sm:$0xff]  ;;  %v4721_v18 = vpack.c.bf16 %v709_v11, %v705_v10  ;;  %v708_v20 = vld [vmem:[%s11699_s1 + $0x1460] sm:$0xff]  ;;  %v710_v22 = vld [vmem:[%s11699_s1 + $0x1470] sm:$0xff] }
 0x131   :  { %5480 = vmatpush1.bf16.msra.mxu1 %v5479_v4  ;;  %4698 = vmatprep.subr.bf16.mxu0 %v4697_v5  ;;  %v4715_v4 = vpack.c.bf16 %v692_v58, %v688_v57  ;;  %v5499_v5 = vpack.c.bf16 %v694_v60, %v690_v59  ;;  %v713_v23 = vld [vmem:[%s11699_s1 + $0x1488] sm:$0xff]  ;;  %v712_v33 = vld [vmem:[%s11699_s1 + $0x1480] sm:$0xff]  ;;  %v714_v35 = vld [vmem:[%s11699_s1 + $0x1490] sm:$0xff] }
 0x132   :  { %5482 = vmatprep.subr.bf16.mxu1 %v5481_v9  ;;  %v5501_v9 = vpack.c.bf16 %v703_v3, %v699_v2  ;;  %v717_v24 = vld [vmem:[%s11699_s1 + $0x14a8] sm:$0xff]  ;;  %v723_v39 = vld [vmem:[%s11699_s1 + $0x14d8] sm:$0xff]  ;;  %v720_v45 = vld [vmem:[%s11699_s1 + $0x14c0] sm:$0xff] }
 0x133   :  { %v4725_v32 = vpack.c.bf16 %v717_v24, %v713_v23  ;;  %v721_v37 = vld [vmem:[%s11699_s1 + $0x14c8] sm:$0xff]  ;;  %v724_v40 = vld [vmem:[%s11699_s1 + $0x14e0] sm:$0xff]  ;;  %v726_v26 = vld [vmem:[%s11699_s1 + $0x14f0] sm:$0xff] }
 0x134   :  { %4700 = vmatpush1.bf16.msra.mxu0 %v4699_v15  ;;  %v711_v15 = vld [vmem:[%s11699_s1 + $0x1478] sm:$0xff]  ;;  %v725_v38 = vld [vmem:[%s11699_s1 + $0x14e8] sm:$0xff]  ;;  %v728_v58 = vld [vmem:[%s11699_s1 + $0x1500] sm:$0xff] }
 0x135   :  { %5484 = vmatpush1.bf16.msra.mxu1 %v5483_v16  ;;  %4702 = vmatprep.subr.bf16.mxu0 %v4701_v17  ;;  %v4719_v16 = vpack.c.bf16 %v700_v52, %v696_v7  ;;  %v5503_v17 = vpack.c.bf16 %v702_v46, %v698_v8  ;;  %v5505_v51 = vpack.c.bf16 %v711_v15, %v707_v14  ;;  %v729_v49 = vld [vmem:[%s11699_s1 + $0x1508] sm:$0xff]  ;;  %v731_v53 = vld [vmem:[%s11699_s1 + $0x1518] sm:$0xff]  ;;  %v732_v59 = vld [vmem:[%s11699_s1 + $0x1520] sm:$0xff] }
 0x136   :  { %5486 = vmatprep.subr.bf16.mxu1 %v5485_v21  ;;  %v706_v21 = vld [vmem:[%s11699_s1 + $0x1450] sm:$0xff]  ;;  %v4729_v44 = vpack.c.bf16 %v725_v38, %v721_v37  ;;  %v733_v50 = vld [vmem:[%s11699_s1 + $0x1528] sm:$0xff]  ;;  %v739_v2 = vld [vmem:[%s11699_s1 + $0x1558] sm:$0xff] }
 0x137   :  { %v5507_v31 = vpack.c.bf16 %v710_v22, %v706_v21  ;;  %v4733_v57 = vpack.c.bf16 %v733_v50, %v729_v49  ;;  %v734_v61 = vld [vmem:[%s11699_s1 + $0x1530] sm:$0xff]  ;;  %v737_v0 = vld [vmem:[%s11699_s1 + $0x1548] sm:$0xff]  ;;  %v743_v3 = vld [vmem:[%s11699_s1 + $0x1578] sm:$0xff] }
 0x138   :  { %4704 = vmatpush1.bf16.msra.mxu0 %v4703_v28  ;;  %v715_v28 = vld [vmem:[%s11699_s1 + $0x1498] sm:$0xff]  ;;  %v741_v1 = vld [vmem:[%s11699_s1 + $0x1568] sm:$0xff]  ;;  %v736_v7 = vld [vmem:[%s11699_s1 + $0x1540] sm:$0xff] }
 0x139   :  { %5488 = vmatpush1.bf16.msra.mxu1 %v5487_v29  ;;  %4706 = vmatprep.subr.bf16.mxu0 %v4705_v30  ;;  %v719_v29 = vld [vmem:[%s11699_s1 + $0x14b8] sm:$0xff]  ;;  %v4723_v30 = vpack.c.bf16 %v708_v20, %v704_v19  ;;  %v740_v52 = vld [vmem:[%s11699_s1 + $0x1560] sm:$0xff]  ;;  %v738_v8 = vld [vmem:[%s11699_s1 + $0x1550] sm:$0xff] }
 0x13a   :  { %5490 = vmatprep.subr.bf16.mxu1 %v5489_v34  ;;  %v716_v34 = vld [vmem:[%s11699_s1 + $0x14a0] sm:$0xff]  ;;  %v5509_v36 = vpack.c.bf16 %v719_v29, %v715_v28  ;;  %v742_v46 = vld [vmem:[%s11699_s1 + $0x1570] sm:$0xff]  ;;  %v745_v10 = vld [vmem:[%s11699_s1 + $0x1588] sm:$0xff] }
 0x13b   :  { %v749_v11 = vld [vmem:[%s11699_s1 + $0x15a8] sm:$0xff]  ;;  %v747_v14 = vld [vmem:[%s11699_s1 + $0x1598] sm:$0xff]  ;;  %v744_v19 = vld [vmem:[%s11699_s1 + $0x1580] sm:$0xff] }
 0x13c   :  { %4708 = vmatpush1.bf16.msra.mxu0 %v4707_v41  ;;  %v727_v41 = vld [vmem:[%s11699_s1 + $0x14f8] sm:$0xff]  ;;  %v748_v20 = vld [vmem:[%s11699_s1 + $0x15a0] sm:$0xff]  ;;  %v746_v21 = vld [vmem:[%s11699_s1 + $0x1590] sm:$0xff] }
 0x13d   :  { %5492 = vmatpush1.bf16.msra.mxu1 %v5491_v42  ;;  %4710 = vmatprep.subr.bf16.mxu0 %v4709_v43  ;;  %v4727_v42 = vpack.c.bf16 %v716_v34, %v712_v33  ;;  %v5513_v48 = vpack.c.bf16 %v727_v41, %v723_v39  ;;  %v751_v15 = vld [vmem:[%s11699_s1 + $0x15b8] sm:$0xff]  ;;  %v750_v22 = vld [vmem:[%s11699_s1 + $0x15b0] sm:$0xff]  ;;  %v753_v23 = vld [vmem:[%s11699_s1 + $0x15c8] sm:$0xff]  ;;  %v4743_v29 = vpack.c.bf16 %v748_v20, %v744_v19 }
 0x13e   :  { %5494 = vmatprep.subr.bf16.mxu1 %v5493_v47  ;;  %v722_v47 = vld [vmem:[%s11699_s1 + $0x14d0] sm:$0xff]  ;;  %v757_v24 = vld [vmem:[%s11699_s1 + $0x15e8] sm:$0xff]  ;;  %v759_v28 = vld [vmem:[%s11699_s1 + $0x15f8] sm:$0xff] }
 0x13f   :  { %v756_v33 = vld [vmem:[%s11699_s1 + $0x15e0] sm:$0xff]  ;;  %v754_v34 = vld [vmem:[%s11699_s1 + $0x15d0] sm:$0xff]  ;;  %v765_v37 = vld [vmem:[%s11699_s1 + $0x1628] sm:$0xff] }
 0x140   :  { %4712 = vmatpush1.bf16.msra.mxu0 %v4711_v54  ;;  %v735_v54 = vld [vmem:[%s11699_s1 + $0x1538] sm:$0xff]  ;;  %v773_v49 = vld [vmem:[%s11699_s1 + $0x1668] sm:$0xff]  ;;  %v788_v19 = vld [vmem:[%s11699_s1 + $0x16e0] sm:$0xff] }
 0x141   :  { %5496 = vmatpush1.bf16.msra.mxu1 %v5495_v55  ;;  %4714 = vmatprep.subr.bf16.mxu0 %v4713_v56  ;;  %v4731_v55 = vpack.c.bf16 %v724_v40, %v720_v45  ;;  %v5515_v56 = vpack.c.bf16 %v726_v26, %v722_v47  ;;  %v5517_v60 = vpack.c.bf16 %v735_v54, %v731_v53  ;;  %v763_v38 = vld [vmem:[%s11699_s1 + $0x1618] sm:$0xff]  ;;  %v764_v45 = vld [vmem:[%s11699_s1 + $0x1620] sm:$0xff]  ;;  %v762_v40 = vld [vmem:[%s11699_s1 + $0x1610] sm:$0xff] }
 0x142   :  { %5498 = vmatprep.subr.bf16.mxu1 %v5497_v25  ;;  %v730_v25 = vld [vmem:[%s11699_s1 + $0x1510] sm:$0xff]  ;;  %v767_v39 = vld [vmem:[%s11699_s1 + $0x1638] sm:$0xff]  ;;  %v769_v26 = vld [vmem:[%s11699_s1 + $0x1648] sm:$0xff] }
 0x143   :  { %v5533_v47 = vpack.c.bf16 %v767_v39, %v763_v38  ;;  %v771_v50 = vld [vmem:[%s11699_s1 + $0x1658] sm:$0xff]  ;;  %v786_v20 = vld [vmem:[%s11699_s1 + $0x16d0] sm:$0xff] }
 0x144   :  { %4716 = vmatpush1.bf16.msra.mxu0 %v4715_v4  ;;  %v4735_v4 = vpack.c.bf16 %v732_v59, %v728_v58  ;;  %v775_v53 = vld [vmem:[%s11699_s1 + $0x1678] sm:$0xff]  ;;  %v772_v58 = vld [vmem:[%s11699_s1 + $0x1660] sm:$0xff]  ;;  %v770_v59 = vld [vmem:[%s11699_s1 + $0x1650] sm:$0xff] }
 0x145   :  { %5500 = vmatpush1.bf16.msra.mxu1 %v5499_v5  ;;  %4718 = vmatprep.subr.bf16.mxu0 %v4717_v6  ;;  %v5519_v5 = vpack.c.bf16 %v734_v61, %v730_v25  ;;  %v4737_v6 = vpack.c.bf16 %v741_v1, %v737_v0  ;;  %v5537_v25 = vpack.c.bf16 %v775_v53, %v771_v50  ;;  %v777_v61 = vld [vmem:[%s11699_s1 + $0x1688] sm:$0xff]  ;;  %v779_v1 = vld [vmem:[%s11699_s1 + $0x1698] sm:$0xff] }
 0x146   :  { %5502 = vmatprep.subr.bf16.mxu1 %v5501_v9  ;;  %v5521_v9 = vpack.c.bf16 %v743_v3, %v739_v2  ;;  %v781_v0 = vld [vmem:[%s11699_s1 + $0x16a8] sm:$0xff]  ;;  %v783_v2 = vld [vmem:[%s11699_s1 + $0x16b8] sm:$0xff] }
 0x147   :  { %2138 = vmatmul.mubr.f32.vlgmr.msra.gmra.mrb[0].mxu0 %v7931_v63  ;;  %v807_v38 = vld [vmem:[%s11699_s1 + $0x1778] sm:$0xff] }
 0x148   :  { %4720 = vmatpush1.bf16.msra.mxu0 %v4719_v16  ;;  %3061 = vmatmul.mubr.f32.vlgmr.msra.gmra.mrb[0].mxu1 %v7931_v63  ;;  %v718_v63 = vld [vmem:[%s11699_s1 + $0x14b0] sm:$0xff]  ;;  %v4739_v16 = vpack.c.bf16 %v740_v52, %v736_v7  ;;  %v780_v7 = vld [vmem:[%s11699_s1 + $0x16a0] sm:$0xff]  ;;  %v815_v50 = vld [vmem:[%s11699_s1 + $0x17b8] sm:$0xff] }
 0x149   :  { %5504 = vmatpush1.bf16.msra.mxu1 %v5503_v17  ;;  %4722 = vmatprep.subr.bf16.mxu0 %v4721_v18  ;;  %v5511_v43 = vpack.c.bf16 %v718_v63, %v714_v35  ;;  %v5523_v17 = vpack.c.bf16 %v742_v46, %v738_v8  ;;  %v4741_v18 = vpack.c.bf16 %v749_v11, %v745_v10  ;;  %v761_v63 = vld [vmem:[%s11699_s1 + $0x1608] sm:$0xff]  ;;  %v778_v52 = vld [vmem:[%s11699_s1 + $0x1690] sm:$0xff]  ;;  %v787_v11 = vld [vmem:[%s11699_s1 + $0x16d8] sm:$0xff] }
 0x14a   :  { %5506 = vmatprep.subr.bf16.mxu1 %v5505_v51  ;;  %2208 = vmatprep.mubr.f32.mxu0 %v1703_v27  ;;  %v5525_v51 = vpack.c.bf16 %v751_v15, %v747_v14  ;;  %v5541_v8 = vpack.c.bf16 %v783_v2, %v779_v1  ;;  %v785_v46 = vld [vmem:[%s11699_s1 + $0x16c8] sm:$0xff]  ;;  %v791_v14 = vld [vmem:[%s11699_s1 + $0x16f8] sm:$0xff] }
 0x14b   :  { %3131 = vmatprep.mubr.f32.mxu1 %v1703_v27  ;;  %v755_v27 = vld [vmem:[%s11699_s1 + $0x15d8] sm:$0xff]  ;;  %v789_v10 = vld [vmem:[%s11699_s1 + $0x16e8] sm:$0xff] }
 0x14c   :  { %4724 = vmatpush1.bf16.msra.mxu0 %v4723_v30  ;;  %v5527_v30 = vpack.c.bf16 %v750_v22, %v746_v21  ;;  %v5529_v35 = vpack.c.bf16 %v759_v28, %v755_v27  ;;  %v5545_v21 = vpack.c.bf16 %v791_v14, %v787_v11  ;;  %v793_v22 = vld [vmem:[%s11699_s1 + $0x1708] sm:$0xff]  ;;  %v799_v27 = vld [vmem:[%s11699_s1 + $0x1738] sm:$0xff] }
 0x14d   :  { %5508 = vmatpush1.bf16.msra.mxu1 %v5507_v31  ;;  %4726 = vmatprep.subr.bf16.mxu0 %v4725_v32  ;;  %v4745_v31 = vpack.c.bf16 %v757_v24, %v753_v23  ;;  %v752_v32 = vld [vmem:[%s11699_s1 + $0x15c0] sm:$0xff]  ;;  %v797_v23 = vld [vmem:[%s11699_s1 + $0x1728] sm:$0xff]  ;;  %v795_v24 = vld [vmem:[%s11699_s1 + $0x1718] sm:$0xff] }
 0x14e   :  { %5510 = vmatprep.subr.bf16.mxu1 %v5509_v36  ;;  %v758_v36 = vld [vmem:[%s11699_s1 + $0x15f0] sm:$0xff]  ;;  %v4747_v41 = vpack.c.bf16 %v756_v33, %v752_v32  ;;  %v796_v32 = vld [vmem:[%s11699_s1 + $0x1720] sm:$0xff]  ;;  %v823_v1 = vld [vmem:[%s11699_s1 + $0x17f8] sm:$0xff] }
 0x14f   :  { %v794_v33 = vld [vmem:[%s11699_s1 + $0x1710] sm:$0xff]  ;;  %v831_v11 = vld [vmem:[%s11699_s1 + $0x1838] sm:$0xff] }
 0x150   :  { %4728 = vmatpush1.bf16.msra.mxu0 %v4727_v42  ;;  %v5531_v42 = vpack.c.bf16 %v758_v36, %v754_v34  ;;  %v5549_v34 = vpack.c.bf16 %v799_v27, %v795_v24  ;;  %v801_v36 = vld [vmem:[%s11699_s1 + $0x1748] sm:$0xff]  ;;  %v8699_v14 = vld [vmem:[%s11698_s0 + $0x18] sm:$0xff] }
 0x151   :  { %5512 = vmatpush1.bf16.msra.mxu1 %v5511_v43  ;;  %4730 = vmatprep.subr.bf16.mxu0 %v4729_v44  ;;  %v4749_v43 = vpack.c.bf16 %v765_v37, %v761_v63  ;;  %v760_v44 = vld [vmem:[%s11699_s1 + $0x1600] sm:$0xff]  ;;  %v805_v63 = vld [vmem:[%s11699_s1 + $0x1768] sm:$0xff]  ;;  %v803_v37 = vld [vmem:[%s11699_s1 + $0x1758] sm:$0xff]  ;;  %v8721_v24 = vrot.slane %v8699_v14, %v6590_v12 }
 0x152   :  { %5514 = vmatprep.subr.bf16.mxu1 %v5513_v48  ;;  %v766_v48 = vld [vmem:[%s11699_s1 + $0x1630] sm:$0xff]  ;;  %v4751_v54 = vpack.c.bf16 %v764_v45, %v760_v44  ;;  %v804_v44 = vld [vmem:[%s11699_s1 + $0x1760] sm:$0xff]  ;;  %v835_v27 = vld [vmem:[%s11699_s1 + $0x1858] sm:$0xff] }
 0x153   :  { %v802_v45 = vld [vmem:[%s11699_s1 + $0x1750] sm:$0xff] }
 0x154   :  { %4732 = vmatpush1.bf16.msra.mxu0 %v4731_v55  ;;  %v5535_v55 = vpack.c.bf16 %v766_v48, %v762_v40  ;;  %v5553_v40 = vpack.c.bf16 %v807_v38, %v803_v37  ;;  %v809_v48 = vld [vmem:[%s11699_s1 + $0x1788] sm:$0xff]  ;;  %v1719_v38 = vcombine.high %v8721_v24, %v8721_v24 }
 0x155   :  { %5516 = vmatpush1.bf16.msra.mxu1 %v5515_v56  ;;  %4734 = vmatprep.subr.bf16.mxu0 %v4733_v57  ;;  %v4753_v56 = vpack.c.bf16 %v773_v49, %v769_v26  ;;  %v768_v57 = vld [vmem:[%s11699_s1 + $0x1640] sm:$0xff]  ;;  %v813_v26 = vld [vmem:[%s11699_s1 + $0x17a8] sm:$0xff]  ;;  %v811_v49 = vld [vmem:[%s11699_s1 + $0x1798] sm:$0xff] }
 0x156   :  { %5518 = vmatprep.subr.bf16.mxu1 %v5517_v60  ;;  %v774_v60 = vld [vmem:[%s11699_s1 + $0x1670] sm:$0xff]  ;;  %v4755_v3 = vpack.c.bf16 %v772_v58, %v768_v57  ;;  %v812_v57 = vld [vmem:[%s11699_s1 + $0x17a0] sm:$0xff]  ;;  %v845_v37 = vld [vmem:[%s11699_s1 + $0x18a8] sm:$0xff] }
 0x157   :  { %v810_v58 = vld [vmem:[%s11699_s1 + $0x1790] sm:$0xff] }
 0x158   :  { %4736 = vmatpush1.bf16.msra.mxu0 %v4735_v4  ;;  %v5539_v4 = vpack.c.bf16 %v774_v60, %v770_v59  ;;  %v5557_v59 = vpack.c.bf16 %v815_v50, %v811_v49  ;;  %v817_v60 = vld [vmem:[%s11699_s1 + $0x17c8] sm:$0xff]  ;;  %v851_v50 = vld [vmem:[%s11699_s1 + $0x18d8] sm:$0xff] }
 0x159   :  { %5520 = vmatpush1.bf16.msra.mxu1 %v5519_v5  ;;  %4738 = vmatprep.subr.bf16.mxu0 %v4737_v6  ;;  %v4757_v5 = vpack.c.bf16 %v781_v0, %v777_v61  ;;  %v776_v6 = vld [vmem:[%s11699_s1 + $0x1680] sm:$0xff]  ;;  %v821_v61 = vld [vmem:[%s11699_s1 + $0x17e8] sm:$0xff]  ;;  %v819_v0 = vld [vmem:[%s11699_s1 + $0x17d8] sm:$0xff] }
 0x15a   :  { %5522 = vmatprep.subr.bf16.mxu1 %v5521_v9  ;;  %v782_v9 = vld [vmem:[%s11699_s1 + $0x16b0] sm:$0xff]  ;;  %v4759_v15 = vpack.c.bf16 %v780_v7, %v776_v6  ;;  %v820_v6 = vld [vmem:[%s11699_s1 + $0x17e0] sm:$0xff]  ;;  %v853_v49 = vld [vmem:[%s11699_s1 + $0x18e8] sm:$0xff] }
 0x15b   :  { %v818_v7 = vld [vmem:[%s11699_s1 + $0x17d0] sm:$0xff] }
 0x15c   :  { %4740 = vmatpush1.bf16.msra.mxu0 %v4739_v16  ;;  %v5543_v16 = vpack.c.bf16 %v782_v9, %v778_v52  ;;  %v5561_v52 = vpack.c.bf16 %v823_v1, %v819_v0  ;;  %v825_v9 = vld [vmem:[%s11699_s1 + $0x1808] sm:$0xff]  ;;  %v859_v1 = vld [vmem:[%s11699_s1 + $0x1918] sm:$0xff] }
 0x15d   :  { %5524 = vmatpush1.bf16.msra.mxu1 %v5523_v17  ;;  %4742 = vmatprep.subr.bf16.mxu0 %v4741_v18  ;;  %v4761_v17 = vpack.c.bf16 %v789_v10, %v785_v46  ;;  %v784_v18 = vld [vmem:[%s11699_s1 + $0x16c0] sm:$0xff]  ;;  %v829_v46 = vld [vmem:[%s11699_s1 + $0x1828] sm:$0xff]  ;;  %v827_v10 = vld [vmem:[%s11699_s1 + $0x1818] sm:$0xff] }
 0x15e   :  { %5526 = vmatprep.subr.bf16.mxu1 %v5525_v51  ;;  %v790_v51 = vld [vmem:[%s11699_s1 + $0x16f0] sm:$0xff]  ;;  %v4763_v28 = vpack.c.bf16 %v788_v19, %v784_v18  ;;  %v824_v18 = vld [vmem:[%s11699_s1 + $0x1800] sm:$0xff]  ;;  %v861_v0 = vld [vmem:[%s11699_s1 + $0x1928] sm:$0xff] }
 0x15f   :  { %v828_v19 = vld [vmem:[%s11699_s1 + $0x1820] sm:$0xff] }
 0x160   :  { %4744 = vmatpush1.bf16.msra.mxu0 %v4743_v29  ;;  %v5547_v29 = vpack.c.bf16 %v790_v51, %v786_v20  ;;  %v826_v20 = vld [vmem:[%s11699_s1 + $0x1810] sm:$0xff] }
 0x161   :  { %5528 = vmatpush1.bf16.msra.mxu1 %v5527_v30  ;;  %4746 = vmatprep.subr.bf16.mxu0 %v4745_v31  ;;  %v4765_v30 = vpack.c.bf16 %v797_v23, %v793_v22  ;;  %v792_v31 = vld [vmem:[%s11699_s1 + $0x1700] sm:$0xff]  ;;  %v830_v51 = vld [vmem:[%s11699_s1 + $0x1830] sm:$0xff]  ;;  %v833_v22 = vld [vmem:[%s11699_s1 + $0x1848] sm:$0xff] }
 0x162   :  { %5530 = vmatprep.subr.bf16.mxu1 %v5529_v35  ;;  %v798_v35 = vld [vmem:[%s11699_s1 + $0x1730] sm:$0xff]  ;;  %v4767_v39 = vpack.c.bf16 %v796_v32, %v792_v31  ;;  %v837_v23 = vld [vmem:[%s11699_s1 + $0x1868] sm:$0xff]  ;;  %v832_v32 = vld [vmem:[%s11699_s1 + $0x1840] sm:$0xff] }
 0x163   :  { %v4785_v31 = vpack.c.bf16 %v837_v23, %v833_v22  ;;  %v870_v22 = vld [vmem:[%s11699_s1 + $0x1970] sm:$0xff]  ;;  %v873_v23 = vld [vmem:[%s11699_s1 + $0x1988] sm:$0xff] }
 0x164   :  { %4748 = vmatpush1.bf16.msra.mxu0 %v4747_v41  ;;  %v5551_v41 = vpack.c.bf16 %v798_v35, %v794_v33  ;;  %v836_v33 = vld [vmem:[%s11699_s1 + $0x1860] sm:$0xff] }
 0x165   :  { %5532 = vmatpush1.bf16.msra.mxu1 %v5531_v42  ;;  %4750 = vmatprep.subr.bf16.mxu0 %v4749_v43  ;;  %v4769_v42 = vpack.c.bf16 %v805_v63, %v801_v36  ;;  %v800_v43 = vld [vmem:[%s11699_s1 + $0x1740] sm:$0xff]  ;;  %v838_v36 = vld [vmem:[%s11699_s1 + $0x1870] sm:$0xff]  ;;  %v841_v63 = vld [vmem:[%s11699_s1 + $0x1888] sm:$0xff] }
 0x166   :  { %5534 = vmatprep.subr.bf16.mxu1 %v5533_v47  ;;  %v806_v47 = vld [vmem:[%s11699_s1 + $0x1770] sm:$0xff]  ;;  %v4771_v53 = vpack.c.bf16 %v804_v44, %v800_v43  ;;  %v4789_v44 = vpack.c.bf16 %v845_v37, %v841_v63  ;;  %v881_v37 = vld [vmem:[%s11699_s1 + $0x19c8] sm:$0xff] }
 0x167   :  { %v878_v63 = vld [vmem:[%s11699_s1 + $0x19b0] sm:$0xff] }
 0x168   :  { %4752 = vmatpush1.bf16.msra.mxu0 %v4751_v54  ;;  %v5555_v54 = vpack.c.bf16 %v806_v47, %v802_v45  ;;  %v840_v45 = vld [vmem:[%s11699_s1 + $0x1880] sm:$0xff]  ;;  %v842_v47 = vld [vmem:[%s11699_s1 + $0x1890] sm:$0xff] }
 0x169   :  { %5536 = vmatpush1.bf16.msra.mxu1 %v5535_v55  ;;  %4754 = vmatprep.subr.bf16.mxu0 %v4753_v56  ;;  %v4773_v55 = vpack.c.bf16 %v813_v26, %v809_v48  ;;  %v808_v56 = vld [vmem:[%s11699_s1 + $0x1780] sm:$0xff]  ;;  %v849_v26 = vld [vmem:[%s11699_s1 + $0x18c8] sm:$0xff] }
 0x16a   :  { %5538 = vmatprep.subr.bf16.mxu1 %v5537_v25  ;;  %v814_v25 = vld [vmem:[%s11699_s1 + $0x17b0] sm:$0xff]  ;;  %v4775_v2 = vpack.c.bf16 %v812_v57, %v808_v56  ;;  %v4793_v56 = vpack.c.bf16 %v853_v49, %v849_v26  ;;  %v848_v57 = vld [vmem:[%s11699_s1 + $0x18c0] sm:$0xff]  ;;  %v889_v26 = vld [vmem:[%s11699_s1 + $0x1a08] sm:$0xff] }
 0x16b   :  { %v893_v49 = vld [vmem:[%s11699_s1 + $0x1a28] sm:$0xff] }
 0x16c   :  { %4756 = vmatpush1.bf16.msra.mxu0 %v4755_v3  ;;  %v5559_v3 = vpack.c.bf16 %v814_v25, %v810_v58  ;;  %v852_v58 = vld [vmem:[%s11699_s1 + $0x18e0] sm:$0xff] }
 0x16d   :  { %5540 = vmatpush1.bf16.msra.mxu1 %v5539_v4  ;;  %4758 = vmatprep.subr.bf16.mxu0 %v4757_v5  ;;  %v4777_v4 = vpack.c.bf16 %v821_v61, %v817_v60  ;;  %v816_v5 = vld [vmem:[%s11699_s1 + $0x17c0] sm:$0xff]  ;;  %v854_v60 = vld [vmem:[%s11699_s1 + $0x18f0] sm:$0xff]  ;;  %v857_v61 = vld [vmem:[%s11699_s1 + $0x1908] sm:$0xff] }
 0x16e   :  { %5542 = vmatprep.subr.bf16.mxu1 %v5541_v8  ;;  %v822_v8 = vld [vmem:[%s11699_s1 + $0x17f0] sm:$0xff] }
 0x170   :  { %4760 = vmatpush1.bf16.msra.mxu0 %v4759_v15  ;;  %v4779_v15 = vpack.c.bf16 %v820_v6, %v816_v5  ;;  %v4797_v5 = vpack.c.bf16 %v861_v0, %v857_v61  ;;  %v856_v6 = vld [vmem:[%s11699_s1 + $0x1900] sm:$0xff]  ;;  %v897_v61 = vld [vmem:[%s11699_s1 + $0x1a48] sm:$0xff] }
 0x171   :  { %5544 = vmatpush1.bf16.msra.mxu1 %v5543_v16  ;;  %4762 = vmatprep.subr.bf16.mxu0 %v4761_v17  ;;  %v5563_v16 = vpack.c.bf16 %v822_v8, %v818_v7  ;;  %v4781_v17 = vpack.c.bf16 %v829_v46, %v825_v9  ;;  %v860_v7 = vld [vmem:[%s11699_s1 + $0x1920] sm:$0xff]  ;;  %v862_v9 = vld [vmem:[%s11699_s1 + $0x1930] sm:$0xff]  ;;  %v865_v46 = vld [vmem:[%s11699_s1 + $0x1948] sm:$0xff] }
 0x172   :  { %5546 = vmatprep.subr.bf16.mxu1 %v5545_v21  ;;  %v5565_v21 = vpack.c.bf16 %v831_v11, %v827_v10  ;;  %v869_v10 = vld [vmem:[%s11699_s1 + $0x1968] sm:$0xff]  ;;  %v867_v11 = vld [vmem:[%s11699_s1 + $0x1958] sm:$0xff] }
 0x173   :  { %v901_v0 = vld [vmem:[%s11699_s1 + $0x1a68] sm:$0xff] }
 0x174   :  { %4764 = vmatpush1.bf16.msra.mxu0 %v4763_v28  ;;  %v839_v28 = vld [vmem:[%s11699_s1 + $0x1878] sm:$0xff] }
 0x175   :  { %5548 = vmatpush1.bf16.msra.mxu1 %v5547_v29  ;;  %4766 = vmatprep.subr.bf16.mxu0 %v4765_v30  ;;  %v4783_v29 = vpack.c.bf16 %v828_v19, %v824_v18  ;;  %v5567_v30 = vpack.c.bf16 %v830_v51, %v826_v20  ;;  %v5569_v35 = vpack.c.bf16 %v839_v28, %v835_v27  ;;  %v864_v19 = vld [vmem:[%s11699_s1 + $0x1940] sm:$0xff]  ;;  %v877_v27 = vld [vmem:[%s11699_s1 + $0x19a8] sm:$0xff]  ;;  %v875_v28 = vld [vmem:[%s11699_s1 + $0x1998] sm:$0xff] }
 0x176   :  { %5550 = vmatprep.subr.bf16.mxu1 %v5549_v34  ;;  %v834_v34 = vld [vmem:[%s11699_s1 + $0x1850] sm:$0xff]  ;;  %v4801_v18 = vpack.c.bf16 %v869_v10, %v865_v46  ;;  %v868_v20 = vld [vmem:[%s11699_s1 + $0x1960] sm:$0xff]  ;;  %v905_v46 = vld [vmem:[%s11699_s1 + $0x1a88] sm:$0xff] }
 0x177   :  { %v5571_v43 = vpack.c.bf16 %v838_v36, %v834_v34  ;;  %v876_v34 = vld [vmem:[%s11699_s1 + $0x19a0] sm:$0xff]  ;;  %v909_v10 = vld [vmem:[%s11699_s1 + $0x1aa8] sm:$0xff] }
 0x178   :  { %4768 = vmatpush1.bf16.msra.mxu0 %v4767_v39  ;;  %v843_v39 = vld [vmem:[%s11699_s1 + $0x1898] sm:$0xff] }
 0x179   :  { %5552 = vmatpush1.bf16.msra.mxu1 %v5551_v41  ;;  %4770 = vmatprep.subr.bf16.mxu0 %v4769_v42  ;;  %v847_v41 = vld [vmem:[%s11699_s1 + $0x18b8] sm:$0xff]  ;;  %v4787_v42 = vpack.c.bf16 %v836_v33, %v832_v32  ;;  %v4805_v32 = vpack.c.bf16 %v877_v27, %v873_v23  ;;  %v872_v33 = vld [vmem:[%s11699_s1 + $0x1980] sm:$0xff]  ;;  %v913_v23 = vld [vmem:[%s11699_s1 + $0x1ac8] sm:$0xff] }
 0x17a   :  { %5554 = vmatprep.subr.bf16.mxu1 %v5553_v40  ;;  %v844_v40 = vld [vmem:[%s11699_s1 + $0x18a0] sm:$0xff]  ;;  %v5573_v48 = vpack.c.bf16 %v847_v41, %v843_v39  ;;  %v883_v39 = vld [vmem:[%s11699_s1 + $0x19d8] sm:$0xff]  ;;  %v917_v27 = vld [vmem:[%s11699_s1 + $0x1ae8] sm:$0xff] }
 0x17b   :  { %v887_v41 = vld [vmem:[%s11699_s1 + $0x19f8] sm:$0xff] }
 0x17c   :  { %4772 = vmatpush1.bf16.msra.mxu0 %v4771_v53  ;;  %v855_v53 = vld [vmem:[%s11699_s1 + $0x18f8] sm:$0xff] }
 0x17d   :  { %5556 = vmatpush1.bf16.msra.mxu1 %v5555_v54  ;;  %4774 = vmatprep.subr.bf16.mxu0 %v4773_v55  ;;  %v4791_v54 = vpack.c.bf16 %v844_v40, %v840_v45  ;;  %v5577_v25 = vpack.c.bf16 %v855_v53, %v851_v50  ;;  %v880_v45 = vld [vmem:[%s11699_s1 + $0x19c0] sm:$0xff]  ;;  %v891_v50 = vld [vmem:[%s11699_s1 + $0x1a18] sm:$0xff] }
 0x17e   :  { %5558 = vmatprep.subr.bf16.mxu1 %v5557_v59  ;;  %v850_v59 = vld [vmem:[%s11699_s1 + $0x18d0] sm:$0xff]  ;;  %v884_v40 = vld [vmem:[%s11699_s1 + $0x19e0] sm:$0xff]  ;;  %v895_v53 = vld [vmem:[%s11699_s1 + $0x1a38] sm:$0xff] }
 0x180   :  { %4776 = vmatpush1.bf16.msra.mxu0 %v4775_v2  ;;  %v863_v2 = vld [vmem:[%s11699_s1 + $0x1938] sm:$0xff] }
 0x181   :  { %5560 = vmatpush1.bf16.msra.mxu1 %v5559_v3  ;;  %4778 = vmatprep.subr.bf16.mxu0 %v4777_v4  ;;  %v4795_v3 = vpack.c.bf16 %v852_v58, %v848_v57  ;;  %v5579_v4 = vpack.c.bf16 %v854_v60, %v850_v59  ;;  %v5581_v8 = vpack.c.bf16 %v863_v2, %v859_v1  ;;  %v888_v57 = vld [vmem:[%s11699_s1 + $0x1a00] sm:$0xff]  ;;  %v890_v59 = vld [vmem:[%s11699_s1 + $0x1a10] sm:$0xff]  ;;  %v899_v1 = vld [vmem:[%s11699_s1 + $0x1a58] sm:$0xff] }
 0x182   :  { %5562 = vmatprep.subr.bf16.mxu1 %v5561_v52  ;;  %v858_v52 = vld [vmem:[%s11699_s1 + $0x1910] sm:$0xff]  ;;  %v892_v58 = vld [vmem:[%s11699_s1 + $0x1a20] sm:$0xff]  ;;  %v903_v2 = vld [vmem:[%s11699_s1 + $0x1a78] sm:$0xff] }
 0x183   :  { %v894_v60 = vld [vmem:[%s11699_s1 + $0x1a30] sm:$0xff] }
 0x184   :  { %4780 = vmatpush1.bf16.msra.mxu0 %v4779_v15  ;;  %v871_v15 = vld [vmem:[%s11699_s1 + $0x1978] sm:$0xff] }
 0x185   :  { %5564 = vmatpush1.bf16.msra.mxu1 %v5563_v16  ;;  %4782 = vmatprep.subr.bf16.mxu0 %v4781_v17  ;;  %v4799_v16 = vpack.c.bf16 %v860_v7, %v856_v6  ;;  %v5583_v17 = vpack.c.bf16 %v862_v9, %v858_v52  ;;  %v5585_v51 = vpack.c.bf16 %v871_v15, %v867_v11  ;;  %v896_v6 = vld [vmem:[%s11699_s1 + $0x1a40] sm:$0xff]  ;;  %v898_v52 = vld [vmem:[%s11699_s1 + $0x1a50] sm:$0xff]  ;;  %v907_v11 = vld [vmem:[%s11699_s1 + $0x1a98] sm:$0xff] }
 0x186   :  { %5566 = vmatprep.subr.bf16.mxu1 %v5565_v21  ;;  %v866_v21 = vld [vmem:[%s11699_s1 + $0x1950] sm:$0xff]  ;;  %v900_v7 = vld [vmem:[%s11699_s1 + $0x1a60] sm:$0xff]  ;;  %v911_v15 = vld [vmem:[%s11699_s1 + $0x1ab8] sm:$0xff] }
 0x187   :  { %2209 = vmatmul.mubr.f32.vlgmr.msra.gmra.mrb[0].mxu0 %v8324_v13  ;;  %v902_v9 = vld [vmem:[%s11699_s1 + $0x1a70] sm:$0xff] }
 0x188   :  { %4784 = vmatpush1.bf16.msra.mxu0 %v4783_v29  ;;  %3132 = vmatmul.mubr.f32.vlgmr.msra.gmra.mrb[0].mxu1 %v8324_v13  ;;  %v846_v13 = vld [vmem:[%s11699_s1 + $0x18b0] sm:$0xff]  ;;  %v879_v29 = vld [vmem:[%s11699_s1 + $0x19b8] sm:$0xff] }
 0x189   :  { %5568 = vmatpush1.bf16.msra.mxu1 %v5567_v30  ;;  %4786 = vmatprep.subr.bf16.mxu0 %v4785_v31  ;;  %v5575_v55 = vpack.c.bf16 %v846_v13, %v842_v47  ;;  %v4803_v30 = vpack.c.bf16 %v868_v20, %v864_v19  ;;  %v5587_v31 = vpack.c.bf16 %v870_v22, %v866_v21  ;;  %v882_v47 = vld [vmem:[%s11699_s1 + $0x19d0] sm:$0xff]  ;;  %v904_v19 = vld [vmem:[%s11699_s1 + $0x1a80] sm:$0xff] }
 0x18a   :  { %5570 = vmatprep.subr.bf16.mxu1 %v5569_v35  ;;  %2279 = vmatprep.mubr.f32.mxu0 %v1719_v38  ;;  %v874_v35 = vld [vmem:[%s11699_s1 + $0x1990] sm:$0xff]  ;;  %v5589_v36 = vpack.c.bf16 %v879_v29, %v875_v28  ;;  %v908_v20 = vld [vmem:[%s11699_s1 + $0x1aa0] sm:$0xff]  ;;  %v915_v28 = vld [vmem:[%s11699_s1 + $0x1ad8] sm:$0xff] }
 0x18b   :  { %3202 = vmatprep.mubr.f32.mxu1 %v1719_v38  ;;  %v885_v38 = vld [vmem:[%s11699_s1 + $0x19e8] sm:$0xff]  ;;  %v886_v13 = vld [vmem:[%s11699_s1 + $0x19f0] sm:$0xff]  ;;  %v919_v29 = vld [vmem:[%s11699_s1 + $0x1af8] sm:$0xff] }
 0x18c   :  { %4788 = vmatpush1.bf16.msra.mxu0 %v4787_v42  ;;  %v4807_v42 = vpack.c.bf16 %v876_v34, %v872_v33  ;;  %v906_v21 = vld [vmem:[%s11699_s1 + $0x1a90] sm:$0xff]  ;;  %v912_v33 = vld [vmem:[%s11699_s1 + $0x1ac0] sm:$0xff] }
 0x18d   :  { %5572 = vmatpush1.bf16.msra.mxu1 %v5571_v43  ;;  %4790 = vmatprep.subr.bf16.mxu0 %v4789_v44  ;;  %v5591_v43 = vpack.c.bf16 %v878_v63, %v874_v35  ;;  %v4809_v44 = vpack.c.bf16 %v885_v38, %v881_v37  ;;  %v910_v22 = vld [vmem:[%s11699_s1 + $0x1ab0] sm:$0xff]  ;;  %v916_v34 = vld [vmem:[%s11699_s1 + $0x1ae0] sm:$0xff]  ;;  %v921_v37 = vld [vmem:[%s11699_s1 + $0x1b08] sm:$0xff] }
 0x18e   :  { %5574 = vmatprep.subr.bf16.mxu1 %v5573_v48  ;;  %v5593_v48 = vpack.c.bf16 %v887_v41, %v883_v39  ;;  %v914_v35 = vld [vmem:[%s11699_s1 + $0x1ad0] sm:$0xff]  ;;  %v925_v38 = vld [vmem:[%s11699_s1 + $0x1b28] sm:$0xff]  ;;  %v923_v39 = vld [vmem:[%s11699_s1 + $0x1b18] sm:$0xff] }
 0x18f   :  { %v918_v63 = vld [vmem:[%s11699_s1 + $0x1af0] sm:$0xff]  ;;  %v927_v41 = vld [vmem:[%s11699_s1 + $0x1b38] sm:$0xff] }
 0x190   :  { %4792 = vmatpush1.bf16.msra.mxu0 %v4791_v54  ;;  %v4811_v54 = vpack.c.bf16 %v884_v40, %v880_v45  ;;  %v920_v45 = vld [vmem:[%s11699_s1 + $0x1b00] sm:$0xff] }
 0x191   :  { %5576 = vmatpush1.bf16.msra.mxu1 %v5575_v55  ;;  %4794 = vmatprep.subr.bf16.mxu0 %v4793_v56  ;;  %v5595_v55 = vpack.c.bf16 %v886_v13, %v882_v47  ;;  %v4813_v56 = vpack.c.bf16 %v893_v49, %v889_v26  ;;  %v924_v40 = vld [vmem:[%s11699_s1 + $0x1b20] sm:$0xff]  ;;  %v922_v47 = vld [vmem:[%s11699_s1 + $0x1b10] sm:$0xff]  ;;  %v929_v26 = vld [vmem:[%s11699_s1 + $0x1b48] sm:$0xff] }
 0x192   :  { %5578 = vmatprep.subr.bf16.mxu1 %v5577_v25  ;;  %v5597_v25 = vpack.c.bf16 %v895_v53, %v891_v50  ;;  %v926_v13 = vld [vmem:[%s11699_s1 + $0x1b30] sm:$0xff]  ;;  %v933_v49 = vld [vmem:[%s11699_s1 + $0x1b68] sm:$0xff]  ;;  %v931_v50 = vld [vmem:[%s11699_s1 + $0x1b58] sm:$0xff] }
 0x193   :  { %v935_v53 = vld [vmem:[%s11699_s1 + $0x1b78] sm:$0xff] }
 0x194   :  { %4796 = vmatpush1.bf16.msra.mxu0 %v4795_v3  ;;  %v4815_v3 = vpack.c.bf16 %v892_v58, %v888_v57  ;;  %v928_v57 = vld [vmem:[%s11699_s1 + $0x1b40] sm:$0xff] }
 0x195   :  { %5580 = vmatpush1.bf16.msra.mxu1 %v5579_v4  ;;  %4798 = vmatprep.subr.bf16.mxu0 %v4797_v5  ;;  %v5599_v4 = vpack.c.bf16 %v894_v60, %v890_v59  ;;  %v4817_v5 = vpack.c.bf16 %v901_v0, %v897_v61  ;;  %v932_v58 = vld [vmem:[%s11699_s1 + $0x1b60] sm:$0xff]  ;;  %v930_v59 = vld [vmem:[%s11699_s1 + $0x1b50] sm:$0xff]  ;;  %v937_v61 = vld [vmem:[%s11699_s1 + $0x1b88] sm:$0xff] }
 0x196   :  { %5582 = vmatprep.subr.bf16.mxu1 %v5581_v8  ;;  %v5601_v8 = vpack.c.bf16 %v903_v2, %v899_v1  ;;  %v934_v60 = vld [vmem:[%s11699_s1 + $0x1b70] sm:$0xff]  ;;  %v941_v0 = vld [vmem:[%s11699_s1 + $0x1ba8] sm:$0xff]  ;;  %v939_v1 = vld [vmem:[%s11699_s1 + $0x1b98] sm:$0xff] }
 0x197   :  { %v943_v2 = vld [vmem:[%s11699_s1 + $0x1bb8] sm:$0xff] }
 0x198   :  { %4800 = vmatpush1.bf16.msra.mxu0 %v4799_v16  ;;  %v4819_v16 = vpack.c.bf16 %v900_v7, %v896_v6  ;;  %v936_v6 = vld [vmem:[%s11699_s1 + $0x1b80] sm:$0xff] }
 0x199   :  { %5584 = vmatpush1.bf16.msra.mxu1 %v5583_v17  ;;  %4802 = vmatprep.subr.bf16.mxu0 %v4801_v18  ;;  %v5603_v17 = vpack.c.bf16 %v902_v9, %v898_v52  ;;  %v4821_v18 = vpack.c.bf16 %v909_v10, %v905_v46  ;;  %v940_v7 = vld [vmem:[%s11699_s1 + $0x1ba0] sm:$0xff]  ;;  %v938_v52 = vld [vmem:[%s11699_s1 + $0x1b90] sm:$0xff]  ;;  %v945_v46 = vld [vmem:[%s11699_s1 + $0x1bc8] sm:$0xff] }
 0x19a   :  { %5586 = vmatprep.subr.bf16.mxu1 %v5585_v51  ;;  %v5605_v51 = vpack.c.bf16 %v911_v15, %v907_v11  ;;  %v942_v9 = vld [vmem:[%s11699_s1 + $0x1bb0] sm:$0xff]  ;;  %v949_v10 = vld [vmem:[%s11699_s1 + $0x1be8] sm:$0xff]  ;;  %v947_v11 = vld [vmem:[%s11699_s1 + $0x1bd8] sm:$0xff] }
 0x19b   :  { %v951_v15 = vld [vmem:[%s11699_s1 + $0x1bf8] sm:$0xff] }
 0x19c   :  { %4804 = vmatpush1.bf16.msra.mxu0 %v4803_v30  ;;  %v4823_v30 = vpack.c.bf16 %v908_v20, %v904_v19  ;;  %v944_v19 = vld [vmem:[%s11699_s1 + $0x1bc0] sm:$0xff] }
 0x19d   :  { %5588 = vmatpush1.bf16.msra.mxu1 %v5587_v31  ;;  %4806 = vmatprep.subr.bf16.mxu0 %v4805_v32  ;;  %v5607_v31 = vpack.c.bf16 %v910_v22, %v906_v21  ;;  %v4825_v32 = vpack.c.bf16 %v917_v27, %v913_v23  ;;  %v948_v20 = vld [vmem:[%s11699_s1 + $0x1be0] sm:$0xff]  ;;  %v946_v21 = vld [vmem:[%s11699_s1 + $0x1bd0] sm:$0xff]  ;;  %v953_v23 = vld [vmem:[%s11699_s1 + $0x1c08] sm:$0xff] }
 0x19e   :  { %5590 = vmatprep.subr.bf16.mxu1 %v5589_v36  ;;  %v5609_v36 = vpack.c.bf16 %v919_v29, %v915_v28  ;;  %v950_v22 = vld [vmem:[%s11699_s1 + $0x1bf0] sm:$0xff]  ;;  %v957_v27 = vld [vmem:[%s11699_s1 + $0x1c28] sm:$0xff]  ;;  %v1704_v28 = vcombine.high %v8699_v14, %v8699_v14  ;;  %v955_v29 = vld [vmem:[%s11699_s1 + $0x1c18] sm:$0xff] }
 0x19f   :  { %v956_v14 = vld [vmem:[%s11699_s1 + $0x1c20] sm:$0xff] }
 0x1a0   :  { %4808 = vmatpush1.bf16.msra.mxu0 %v4807_v42  ;;  %v4827_v42 = vpack.c.bf16 %v916_v34, %v912_v33  ;;  %v4845_v33 = vpack.c.bf16 %v957_v27, %v953_v23  ;;  %v952_v34 = vld [vmem:[%s11699_s1 + $0x1c00] sm:$0xff]  ;;  %v990_v23 = vld [vmem:[%s11699_s1 + $0x1d30] sm:$0xff]  ;;  %v993_v27 = vld [vmem:[%s11699_s1 + $0x1d48] sm:$0xff] }
 0x1a1   :  { %5592 = vmatpush1.bf16.msra.mxu1 %v5591_v43  ;;  %4810 = vmatprep.subr.bf16.mxu0 %v4809_v44  ;;  %v5611_v43 = vpack.c.bf16 %v918_v63, %v914_v35  ;;  %v4829_v44 = vpack.c.bf16 %v925_v38, %v921_v37  ;;  %v954_v35 = vld [vmem:[%s11699_s1 + $0x1c10] sm:$0xff]  ;;  %v961_v37 = vld [vmem:[%s11699_s1 + $0x1c48] sm:$0xff] }
 0x1a2   :  { %5594 = vmatprep.subr.bf16.mxu1 %v5593_v48  ;;  %v5613_v48 = vpack.c.bf16 %v927_v41, %v923_v39  ;;  %v958_v63 = vld [vmem:[%s11699_s1 + $0x1c30] sm:$0xff]  ;;  %v965_v38 = vld [vmem:[%s11699_s1 + $0x1c68] sm:$0xff]  ;;  %v9114_v39 = vrot.slane %v1704_v28, %v6590_v12  ;;  %v963_v41 = vld [vmem:[%s11699_s1 + $0x1c58] sm:$0xff] }
 0x1a3   :  { %v997_v28 = vld [vmem:[%s11699_s1 + $0x1d68] sm:$0xff] }
 0x1a4   :  { %4812 = vmatpush1.bf16.msra.mxu0 %v4811_v54  ;;  %v4831_v54 = vpack.c.bf16 %v924_v40, %v920_v45  ;;  %v4849_v45 = vpack.c.bf16 %v965_v38, %v961_v37  ;;  %v960_v40 = vld [vmem:[%s11699_s1 + $0x1c40] sm:$0xff]  ;;  %v1001_v37 = vld [vmem:[%s11699_s1 + $0x1d88] sm:$0xff] }
 0x1a5   :  { %5596 = vmatpush1.bf16.msra.mxu1 %v5595_v55  ;;  %4814 = vmatprep.subr.bf16.mxu0 %v4813_v56  ;;  %v5615_v55 = vpack.c.bf16 %v926_v13, %v922_v47  ;;  %v4833_v56 = vpack.c.bf16 %v933_v49, %v929_v26  ;;  %v964_v47 = vld [vmem:[%s11699_s1 + $0x1c60] sm:$0xff]  ;;  %v966_v26 = vld [vmem:[%s11699_s1 + $0x1c70] sm:$0xff]  ;;  %v969_v49 = vld [vmem:[%s11699_s1 + $0x1c88] sm:$0xff] }
 0x1a6   :  { %5598 = vmatprep.subr.bf16.mxu1 %v5597_v25  ;;  %v5617_v25 = vpack.c.bf16 %v935_v53, %v931_v50  ;;  %v973_v50 = vld [vmem:[%s11699_s1 + $0x1ca8] sm:$0xff]  ;;  %v1720_v53 = vcombine.high %v9114_v39, %v9114_v39 }
 0x1a7   :  { %v1005_v38 = vld [vmem:[%s11699_s1 + $0x1da8] sm:$0xff] }
 0x1a8   :  { %4816 = vmatpush1.bf16.msra.mxu0 %v4815_v3  ;;  %v4835_v3 = vpack.c.bf16 %v932_v58, %v928_v57  ;;  %v4853_v58 = vpack.c.bf16 %v973_v50, %v969_v49  ;;  %v1009_v49 = vld [vmem:[%s11699_s1 + $0x1dc8] sm:$0xff] }
 0x1a9   :  { %5600 = vmatpush1.bf16.msra.mxu1 %v5599_v4  ;;  %4818 = vmatprep.subr.bf16.mxu0 %v4817_v5  ;;  %v5619_v4 = vpack.c.bf16 %v934_v60, %v930_v59  ;;  %v4837_v5 = vpack.c.bf16 %v941_v0, %v937_v61  ;;  %v968_v59 = vld [vmem:[%s11699_s1 + $0x1c80] sm:$0xff]  ;;  %v970_v60 = vld [vmem:[%s11699_s1 + $0x1c90] sm:$0xff]  ;;  %v977_v0 = vld [vmem:[%s11699_s1 + $0x1cc8] sm:$0xff] }
 0x1aa   :  { %5602 = vmatprep.subr.bf16.mxu1 %v5601_v8  ;;  %v5621_v8 = vpack.c.bf16 %v943_v2, %v939_v1  ;;  %v981_v1 = vld [vmem:[%s11699_s1 + $0x1ce8] sm:$0xff]  ;;  %v979_v2 = vld [vmem:[%s11699_s1 + $0x1cd8] sm:$0xff] }
 0x1ab   :  { %v1013_v50 = vld [vmem:[%s11699_s1 + $0x1de8] sm:$0xff] }
 0x1ac   :  { %4820 = vmatpush1.bf16.msra.mxu0 %v4819_v16  ;;  %v4839_v16 = vpack.c.bf16 %v940_v7, %v936_v6  ;;  %v4857_v6 = vpack.c.bf16 %v981_v1, %v977_v0  ;;  %v976_v7 = vld [vmem:[%s11699_s1 + $0x1cc0] sm:$0xff]  ;;  %v1021_v0 = vld [vmem:[%s11699_s1 + $0x1e28] sm:$0xff]  ;;  %v1019_v1 = vld [vmem:[%s11699_s1 + $0x1e18] sm:$0xff] }
 0x1ad   :  { %5604 = vmatpush1.bf16.msra.mxu1 %v5603_v17  ;;  %4822 = vmatprep.subr.bf16.mxu0 %v4821_v18  ;;  %v5623_v17 = vpack.c.bf16 %v942_v9, %v938_v52  ;;  %v4841_v18 = vpack.c.bf16 %v949_v10, %v945_v46  ;;  %v980_v52 = vld [vmem:[%s11699_s1 + $0x1ce0] sm:$0xff]  ;;  %v982_v46 = vld [vmem:[%s11699_s1 + $0x1cf0] sm:$0xff]  ;;  %v985_v10 = vld [vmem:[%s11699_s1 + $0x1d08] sm:$0xff] }
 0x1ae   :  { %5606 = vmatprep.subr.bf16.mxu1 %v5605_v51  ;;  %v5625_v51 = vpack.c.bf16 %v951_v15, %v947_v11  ;;  %v989_v11 = vld [vmem:[%s11699_s1 + $0x1d28] sm:$0xff]  ;;  %v987_v15 = vld [vmem:[%s11699_s1 + $0x1d18] sm:$0xff] }
 0x1b0   :  { %4824 = vmatpush1.bf16.msra.mxu0 %v4823_v30  ;;  %v959_v30 = vld [vmem:[%s11699_s1 + $0x1c38] sm:$0xff] }
 0x1b1   :  { %5608 = vmatpush1.bf16.msra.mxu1 %v5607_v31  ;;  %4826 = vmatprep.subr.bf16.mxu0 %v4825_v32  ;;  %v4843_v31 = vpack.c.bf16 %v948_v20, %v944_v19  ;;  %v5627_v32 = vpack.c.bf16 %v950_v22, %v946_v21  ;;  %v4861_v19 = vpack.c.bf16 %v989_v11, %v985_v10  ;;  %v984_v20 = vld [vmem:[%s11699_s1 + $0x1d00] sm:$0xff]  ;;  %v1029_v10 = vld [vmem:[%s11699_s1 + $0x1e68] sm:$0xff]  ;;  %v1027_v11 = vld [vmem:[%s11699_s1 + $0x1e58] sm:$0xff] }
 0x1b2   :  { %5610 = vmatprep.subr.bf16.mxu1 %v5609_v36  ;;  %v5629_v36 = vpack.c.bf16 %v959_v30, %v955_v29  ;;  %v988_v21 = vld [vmem:[%s11699_s1 + $0x1d20] sm:$0xff]  ;;  %v995_v29 = vld [vmem:[%s11699_s1 + $0x1d58] sm:$0xff] }
 0x1b3   :  { %v999_v30 = vld [vmem:[%s11699_s1 + $0x1d78] sm:$0xff] }
 0x1b4   :  { %4828 = vmatpush1.bf16.msra.mxu0 %v4827_v42  ;;  %v967_v42 = vld [vmem:[%s11699_s1 + $0x1c78] sm:$0xff] }
 0x1b5   :  { %5612 = vmatpush1.bf16.msra.mxu1 %v5611_v43  ;;  %4830 = vmatprep.subr.bf16.mxu0 %v4829_v44  ;;  %v4847_v43 = vpack.c.bf16 %v956_v14, %v952_v34  ;;  %v5631_v44 = vpack.c.bf16 %v958_v63, %v954_v35  ;;  %v5633_v13 = vpack.c.bf16 %v967_v42, %v963_v41  ;;  %v992_v34 = vld [vmem:[%s11699_s1 + $0x1d40] sm:$0xff]  ;;  %v994_v35 = vld [vmem:[%s11699_s1 + $0x1d50] sm:$0xff]  ;;  %v1003_v41 = vld [vmem:[%s11699_s1 + $0x1d98] sm:$0xff] }
 0x1b6   :  { %5614 = vmatprep.subr.bf16.mxu1 %v5613_v48  ;;  %v962_v48 = vld [vmem:[%s11699_s1 + $0x1c50] sm:$0xff]  ;;  %v996_v14 = vld [vmem:[%s11699_s1 + $0x1d60] sm:$0xff]  ;;  %v1007_v42 = vld [vmem:[%s11699_s1 + $0x1db8] sm:$0xff] }
 0x1b7   :  { %v5635_v57 = vpack.c.bf16 %v966_v26, %v962_v48  ;;  %v998_v63 = vld [vmem:[%s11699_s1 + $0x1d70] sm:$0xff] }
 0x1b8   :  { %4832 = vmatpush1.bf16.msra.mxu0 %v4831_v54  ;;  %v971_v54 = vld [vmem:[%s11699_s1 + $0x1c98] sm:$0xff]  ;;  %v1002_v48 = vld [vmem:[%s11699_s1 + $0x1d90] sm:$0xff] }
 0x1b9   :  { %5616 = vmatpush1.bf16.msra.mxu1 %v5615_v55  ;;  %4834 = vmatprep.subr.bf16.mxu0 %v4833_v56  ;;  %v975_v55 = vld [vmem:[%s11699_s1 + $0x1cb8] sm:$0xff]  ;;  %v4851_v56 = vpack.c.bf16 %v964_v47, %v960_v40  ;;  %v1000_v40 = vld [vmem:[%s11699_s1 + $0x1d80] sm:$0xff]  ;;  %v1006_v26 = vld [vmem:[%s11699_s1 + $0x1db0] sm:$0xff] }
 0x1ba   :  { %5618 = vmatprep.subr.bf16.mxu1 %v5617_v25  ;;  %v972_v25 = vld [vmem:[%s11699_s1 + $0x1ca0] sm:$0xff]  ;;  %v5637_v61 = vpack.c.bf16 %v975_v55, %v971_v54  ;;  %v1015_v54 = vld [vmem:[%s11699_s1 + $0x1df8] sm:$0xff] }
 0x1bb   :  { %v1004_v47 = vld [vmem:[%s11699_s1 + $0x1da0] sm:$0xff] }
 0x1bc   :  { %4836 = vmatpush1.bf16.msra.mxu0 %v4835_v3  ;;  %v983_v3 = vld [vmem:[%s11699_s1 + $0x1cf8] sm:$0xff]  ;;  %v4871_v55 = vpack.c.bf16 %v1004_v47, %v1000_v40  ;;  %v1044_v40 = vld [vmem:[%s11699_s1 + $0x1ee0] sm:$0xff]  ;;  %v1042_v47 = vld [vmem:[%s11699_s1 + $0x1ed0] sm:$0xff] }
 0x1bd   :  { %5620 = vmatpush1.bf16.msra.mxu1 %v5619_v4  ;;  %4838 = vmatprep.subr.bf16.mxu0 %v4837_v5  ;;  %v4855_v4 = vpack.c.bf16 %v972_v25, %v968_v59  ;;  %v5641_v9 = vpack.c.bf16 %v983_v3, %v979_v2  ;;  %v1012_v59 = vld [vmem:[%s11699_s1 + $0x1de0] sm:$0xff]  ;;  %v1010_v25 = vld [vmem:[%s11699_s1 + $0x1dd0] sm:$0xff]  ;;  %v1023_v2 = vld [vmem:[%s11699_s1 + $0x1e38] sm:$0xff] }
 0x1be   :  { %5622 = vmatprep.subr.bf16.mxu1 %v5621_v8  ;;  %v978_v8 = vld [vmem:[%s11699_s1 + $0x1cd0] sm:$0xff] }
 0x1c0   :  { %4840 = vmatpush1.bf16.msra.mxu0 %v4839_v16  ;;  %v991_v16 = vld [vmem:[%s11699_s1 + $0x1d38] sm:$0xff] }
 0x1c1   :  { %5624 = vmatpush1.bf16.msra.mxu1 %v5623_v17  ;;  %4842 = vmatprep.subr.bf16.mxu0 %v4841_v18  ;;  %v4859_v17 = vpack.c.bf16 %v980_v52, %v976_v7  ;;  %v5643_v18 = vpack.c.bf16 %v982_v46, %v978_v8  ;;  %v5645_v22 = vpack.c.bf16 %v991_v16, %v987_v15  ;;  %v1020_v7 = vld [vmem:[%s11699_s1 + $0x1e20] sm:$0xff]  ;;  %v1018_v52 = vld [vmem:[%s11699_s1 + $0x1e10] sm:$0xff]  ;;  %v1025_v46 = vld [vmem:[%s11699_s1 + $0x1e48] sm:$0xff] }
 0x1c2   :  { %5626 = vmatprep.subr.bf16.mxu1 %v5625_v51  ;;  %v986_v51 = vld [vmem:[%s11699_s1 + $0x1d10] sm:$0xff]  ;;  %v5661_v8 = vpack.c.bf16 %v1023_v2, %v1019_v1  ;;  %v1031_v15 = vld [vmem:[%s11699_s1 + $0x1e78] sm:$0xff] }
 0x1c3   :  { %v1063_v1 = vld [vmem:[%s11699_s1 + $0x1f78] sm:$0xff] }
 0x1c4   :  { %4844 = vmatpush1.bf16.msra.mxu0 %v4843_v31  ;;  %v4863_v31 = vpack.c.bf16 %v988_v21, %v984_v20  ;;  %v1028_v20 = vld [vmem:[%s11699_s1 + $0x1e60] sm:$0xff]  ;;  %v1026_v21 = vld [vmem:[%s11699_s1 + $0x1e50] sm:$0xff] }
 0x1c5   :  { %5628 = vmatpush1.bf16.msra.mxu1 %v5627_v32  ;;  %4846 = vmatprep.subr.bf16.mxu0 %v4845_v33  ;;  %v5647_v32 = vpack.c.bf16 %v990_v23, %v986_v51  ;;  %v4865_v33 = vpack.c.bf16 %v997_v28, %v993_v27  ;;  %v5665_v51 = vpack.c.bf16 %v1031_v15, %v1027_v11  ;;  %v1033_v23 = vld [vmem:[%s11699_s1 + $0x1e88] sm:$0xff]  ;;  %v1035_v28 = vld [vmem:[%s11699_s1 + $0x1e98] sm:$0xff] }
 0x1c6   :  { %5630 = vmatprep.subr.bf16.mxu1 %v5629_v36  ;;  %v5649_v36 = vpack.c.bf16 %v999_v30, %v995_v29  ;;  %v1037_v27 = vld [vmem:[%s11699_s1 + $0x1ea8] sm:$0xff]  ;;  %v1039_v29 = vld [vmem:[%s11699_s1 + $0x1eb8] sm:$0xff] }
 0x1c7   :  { %2280 = vmatmul.mubr.f32.vlgmr.msra.gmra.mrb[0].mxu0 %v8721_v24  ;;  %v1071_v11 = vld [vmem:[%s11699_s1 + $0x1fb8] sm:$0xff] }
 0x1c8   :  { %4848 = vmatpush1.bf16.msra.mxu0 %v4847_v43  ;;  %3203 = vmatmul.mubr.f32.vlgmr.msra.gmra.mrb[0].mxu1 %v8721_v24  ;;  %v974_v24 = vld [vmem:[%s11699_s1 + $0x1cb0] sm:$0xff]  ;;  %v4867_v43 = vpack.c.bf16 %v996_v14, %v992_v34  ;;  %v1036_v34 = vld [vmem:[%s11699_s1 + $0x1ea0] sm:$0xff] }
 0x1c9   :  { %5632 = vmatpush1.bf16.msra.mxu1 %v5631_v44  ;;  %4850 = vmatprep.subr.bf16.mxu0 %v4849_v45  ;;  %v5639_v5 = vpack.c.bf16 %v974_v24, %v970_v60  ;;  %v5651_v44 = vpack.c.bf16 %v998_v63, %v994_v35  ;;  %v4869_v45 = vpack.c.bf16 %v1005_v38, %v1001_v37  ;;  %v1017_v24 = vld [vmem:[%s11699_s1 + $0x1e08] sm:$0xff]  ;;  %v1034_v14 = vld [vmem:[%s11699_s1 + $0x1e90] sm:$0xff]  ;;  %v1043_v38 = vld [vmem:[%s11699_s1 + $0x1ed8] sm:$0xff] }
 0x1ca   :  { %5634 = vmatprep.subr.bf16.mxu1 %v5633_v13  ;;  %2350 = vmatprep.mubr.f32.mxu0 %v1720_v53  ;;  %v5653_v13 = vpack.c.bf16 %v1007_v42, %v1003_v41  ;;  %v5669_v35 = vpack.c.bf16 %v1039_v29, %v1035_v28  ;;  %v1041_v63 = vld [vmem:[%s11699_s1 + $0x1ec8] sm:$0xff]  ;;  %v1047_v41 = vld [vmem:[%s11699_s1 + $0x1ef8] sm:$0xff] }
 0x1cb   :  { %3273 = vmatprep.mubr.f32.mxu1 %v1720_v53  ;;  %v1011_v53 = vld [vmem:[%s11699_s1 + $0x1dd8] sm:$0xff]  ;;  %v1045_v37 = vld [vmem:[%s11699_s1 + $0x1ee8] sm:$0xff] }
 0x1cc   :  { %4852 = vmatpush1.bf16.msra.mxu0 %v4851_v56  ;;  %v5655_v56 = vpack.c.bf16 %v1006_v26, %v1002_v48  ;;  %v5657_v60 = vpack.c.bf16 %v1015_v54, %v1011_v53  ;;  %v5673_v48 = vpack.c.bf16 %v1047_v41, %v1043_v38  ;;  %v1049_v26 = vld [vmem:[%s11699_s1 + $0x1f08] sm:$0xff]  ;;  %v1055_v53 = vld [vmem:[%s11699_s1 + $0x1f38] sm:$0xff]  ;;  %v9489_v41 = vld [vmem:[%s11698_s0 + $0x20] sm:$0xff] }
 0x1cd   :  { %5636 = vmatpush1.bf16.msra.mxu1 %v5635_v57  ;;  %4854 = vmatprep.subr.bf16.mxu0 %v4853_v58  ;;  %v4873_v57 = vpack.c.bf16 %v1013_v50, %v1009_v49  ;;  %v1008_v58 = vld [vmem:[%s11699_s1 + $0x1dc0] sm:$0xff]  ;;  %v1053_v49 = vld [vmem:[%s11699_s1 + $0x1f28] sm:$0xff]  ;;  %v1051_v50 = vld [vmem:[%s11699_s1 + $0x1f18] sm:$0xff] }
 0x1ce   :  { %5638 = vmatprep.subr.bf16.mxu1 %v5637_v61  ;;  %v1014_v61 = vld [vmem:[%s11699_s1 + $0x1df0] sm:$0xff]  ;;  %v4875_v3 = vpack.c.bf16 %v1012_v59, %v1008_v58  ;;  %v1052_v58 = vld [vmem:[%s11699_s1 + $0x1f20] sm:$0xff]  ;;  %v1079_v28 = vld [vmem:[%s11699_s1 + $0x1ff8] sm:$0xff] }
 0x1cf   :  { %v1050_v59 = vld [vmem:[%s11699_s1 + $0x1f10] sm:$0xff]  ;;  %v1087_v38 = vld [vmem:[%s11699_s1 + $0x2038] sm:$0xff] }
 0x1d0   :  { %4856 = vmatpush1.bf16.msra.mxu0 %v4855_v4  ;;  %v5659_v4 = vpack.c.bf16 %v1014_v61, %v1010_v25  ;;  %v5677_v25 = vpack.c.bf16 %v1055_v53, %v1051_v50  ;;  %v1057_v61 = vld [vmem:[%s11699_s1 + $0x1f48] sm:$0xff]  ;;  %v9511_v50 = vrot.slane %v9489_v41, %v6590_v12  ;;  %v1091_v53 = vld [vmem:[%s11699_s1 + $0x2058] sm:$0xff] }
 0x1d1   :  { %5640 = vmatpush1.bf16.msra.mxu1 %v5639_v5  ;;  %4858 = vmatprep.subr.bf16.mxu0 %v4857_v6  ;;  %v4877_v5 = vpack.c.bf16 %v1021_v0, %v1017_v24  ;;  %v1016_v6 = vld [vmem:[%s11699_s1 + $0x1e00] sm:$0xff]  ;;  %v1061_v24 = vld [vmem:[%s11699_s1 + $0x1f68] sm:$0xff]  ;;  %v1059_v0 = vld [vmem:[%s11699_s1 + $0x1f58] sm:$0xff] }
 0x1d2   :  { %5642 = vmatprep.subr.bf16.mxu1 %v5641_v9  ;;  %v1022_v9 = vld [vmem:[%s11699_s1 + $0x1e30] sm:$0xff]  ;;  %v4879_v16 = vpack.c.bf16 %v1020_v7, %v1016_v6  ;;  %v1060_v6 = vld [vmem:[%s11699_s1 + $0x1f60] sm:$0xff] }
 0x1d3   :  { %v1058_v7 = vld [vmem:[%s11699_s1 + $0x1f50] sm:$0xff] }
 0x1d4   :  { %4860 = vmatpush1.bf16.msra.mxu0 %v4859_v17  ;;  %v5663_v17 = vpack.c.bf16 %v1022_v9, %v1018_v52  ;;  %v5681_v52 = vpack.c.bf16 %v1063_v1, %v1059_v0  ;;  %v1065_v9 = vld [vmem:[%s11699_s1 + $0x1f88] sm:$0xff]  ;;  %v1736_v1 = vcombine.high %v9511_v50, %v9511_v50 }
 0x1d5   :  { %5644 = vmatpush1.bf16.msra.mxu1 %v5643_v18  ;;  %4862 = vmatprep.subr.bf16.mxu0 %v4861_v19  ;;  %v4881_v18 = vpack.c.bf16 %v1029_v10, %v1025_v46  ;;  %v1024_v19 = vld [vmem:[%s11699_s1 + $0x1e40] sm:$0xff]  ;;  %v1069_v46 = vld [vmem:[%s11699_s1 + $0x1fa8] sm:$0xff]  ;;  %v1067_v10 = vld [vmem:[%s11699_s1 + $0x1f98] sm:$0xff] }
 0x1d6   :  { %5646 = vmatprep.subr.bf16.mxu1 %v5645_v22  ;;  %v1030_v22 = vld [vmem:[%s11699_s1 + $0x1e70] sm:$0xff]  ;;  %v4883_v30 = vpack.c.bf16 %v1028_v20, %v1024_v19  ;;  %v1068_v19 = vld [vmem:[%s11699_s1 + $0x1fa0] sm:$0xff]  ;;  %v1101_v0 = vld [vmem:[%s11699_s1 + $0x20a8] sm:$0xff] }
 0x1d7   :  { %v1066_v20 = vld [vmem:[%s11699_s1 + $0x1f90] sm:$0xff] }
 0x1d8   :  { %4864 = vmatpush1.bf16.msra.mxu0 %v4863_v31  ;;  %v5667_v31 = vpack.c.bf16 %v1030_v22, %v1026_v21  ;;  %v5685_v21 = vpack.c.bf16 %v1071_v11, %v1067_v10  ;;  %v1073_v22 = vld [vmem:[%s11699_s1 + $0x1fc8] sm:$0xff]  ;;  %v1107_v11 = vld [vmem:[%s11699_s1 + $0x20d8] sm:$0xff] }
 0x1d9   :  { %5648 = vmatpush1.bf16.msra.mxu1 %v5647_v32  ;;  %4866 = vmatprep.subr.bf16.mxu0 %v4865_v33  ;;  %v4885_v32 = vpack.c.bf16 %v1037_v27, %v1033_v23  ;;  %v1032_v33 = vld [vmem:[%s11699_s1 + $0x1e80] sm:$0xff]  ;;  %v1077_v23 = vld [vmem:[%s11699_s1 + $0x1fe8] sm:$0xff]  ;;  %v1075_v27 = vld [vmem:[%s11699_s1 + $0x1fd8] sm:$0xff] }
 0x1da   :  { %5650 = vmatprep.subr.bf16.mxu1 %v5649_v36  ;;  %v1038_v36 = vld [vmem:[%s11699_s1 + $0x1eb0] sm:$0xff]  ;;  %v4887_v42 = vpack.c.bf16 %v1036_v34, %v1032_v33  ;;  %v1076_v33 = vld [vmem:[%s11699_s1 + $0x1fe0] sm:$0xff]  ;;  %v1109_v10 = vld [vmem:[%s11699_s1 + $0x20e8] sm:$0xff] }
 0x1db   :  { %v1074_v34 = vld [vmem:[%s11699_s1 + $0x1fd0] sm:$0xff] }
 0x1dc   :  { %4868 = vmatpush1.bf16.msra.mxu0 %v4867_v43  ;;  %v5671_v43 = vpack.c.bf16 %v1038_v36, %v1034_v14  ;;  %v5689_v14 = vpack.c.bf16 %v1079_v28, %v1075_v27  ;;  %v1081_v36 = vld [vmem:[%s11699_s1 + $0x2008] sm:$0xff]  ;;  %v1115_v28 = vld [vmem:[%s11699_s1 + $0x2118] sm:$0xff] }
 0x1dd   :  { %5652 = vmatpush1.bf16.msra.mxu1 %v5651_v44  ;;  %4870 = vmatprep.subr.bf16.mxu0 %v4869_v45  ;;  %v4889_v44 = vpack.c.bf16 %v1045_v37, %v1041_v63  ;;  %v1040_v45 = vld [vmem:[%s11699_s1 + $0x1ec0] sm:$0xff]  ;;  %v1085_v63 = vld [vmem:[%s11699_s1 + $0x2028] sm:$0xff]  ;;  %v1083_v37 = vld [vmem:[%s11699_s1 + $0x2018] sm:$0xff] }
 0x1de   :  { %5654 = vmatprep.subr.bf16.mxu1 %v5653_v13  ;;  %v1046_v13 = vld [vmem:[%s11699_s1 + $0x1ef0] sm:$0xff]  ;;  %v4891_v54 = vpack.c.bf16 %v1044_v40, %v1040_v45  ;;  %v1080_v45 = vld [vmem:[%s11699_s1 + $0x2000] sm:$0xff]  ;;  %v1117_v27 = vld [vmem:[%s11699_s1 + $0x2128] sm:$0xff] }
 0x1df   :  { %v1084_v40 = vld [vmem:[%s11699_s1 + $0x2020] sm:$0xff] }
 0x1e0   :  { %4872 = vmatpush1.bf16.msra.mxu0 %v4871_v55  ;;  %v5675_v55 = vpack.c.bf16 %v1046_v13, %v1042_v47  ;;  %v1082_v47 = vld [vmem:[%s11699_s1 + $0x2010] sm:$0xff] }
 0x1e1   :  { %5656 = vmatpush1.bf16.msra.mxu1 %v5655_v56  ;;  %4874 = vmatprep.subr.bf16.mxu0 %v4873_v57  ;;  %v4893_v56 = vpack.c.bf16 %v1053_v49, %v1049_v26  ;;  %v1048_v57 = vld [vmem:[%s11699_s1 + $0x1f00] sm:$0xff]  ;;  %v1086_v13 = vld [vmem:[%s11699_s1 + $0x2030] sm:$0xff]  ;;  %v1089_v26 = vld [vmem:[%s11699_s1 + $0x2048] sm:$0xff] }
 0x1e2   :  { %5658 = vmatprep.subr.bf16.mxu1 %v5657_v60  ;;  %v1054_v60 = vld [vmem:[%s11699_s1 + $0x1f30] sm:$0xff]  ;;  %v4895_v2 = vpack.c.bf16 %v1052_v58, %v1048_v57  ;;  %v1093_v49 = vld [vmem:[%s11699_s1 + $0x2068] sm:$0xff]  ;;  %v1088_v58 = vld [vmem:[%s11699_s1 + $0x2040] sm:$0xff] }
 0x1e3   :  { %v4913_v57 = vpack.c.bf16 %v1093_v49, %v1089_v26  ;;  %v1126_v26 = vld [vmem:[%s11699_s1 + $0x2170] sm:$0xff]  ;;  %v1129_v49 = vld [vmem:[%s11699_s1 + $0x2188] sm:$0xff] }
 0x1e4   :  { %4876 = vmatpush1.bf16.msra.mxu0 %v4875_v3  ;;  %v5679_v3 = vpack.c.bf16 %v1054_v60, %v1050_v59  ;;  %v1092_v59 = vld [vmem:[%s11699_s1 + $0x2060] sm:$0xff] }
 0x1e5   :  { %5660 = vmatpush1.bf16.msra.mxu1 %v5659_v4  ;;  %4878 = vmatprep.subr.bf16.mxu0 %v4877_v5  ;;  %v4897_v4 = vpack.c.bf16 %v1061_v24, %v1057_v61  ;;  %v1056_v5 = vld [vmem:[%s11699_s1 + $0x1f40] sm:$0xff]  ;;  %v1094_v61 = vld [vmem:[%s11699_s1 + $0x2070] sm:$0xff]  ;;  %v1097_v24 = vld [vmem:[%s11699_s1 + $0x2088] sm:$0xff] }
 0x1e6   :  { %5662 = vmatprep.subr.bf16.mxu1 %v5661_v8  ;;  %v1062_v8 = vld [vmem:[%s11699_s1 + $0x1f70] sm:$0xff]  ;;  %v4899_v15 = vpack.c.bf16 %v1060_v6, %v1056_v5  ;;  %v4917_v6 = vpack.c.bf16 %v1101_v0, %v1097_v24  ;;  %v1137_v0 = vld [vmem:[%s11699_s1 + $0x21c8] sm:$0xff] }
 0x1e7   :  { %v1134_v24 = vld [vmem:[%s11699_s1 + $0x21b0] sm:$0xff] }
 0x1e8   :  { %4880 = vmatpush1.bf16.msra.mxu0 %v4879_v16  ;;  %v5683_v16 = vpack.c.bf16 %v1062_v8, %v1058_v7  ;;  %v1096_v7 = vld [vmem:[%s11699_s1 + $0x2080] sm:$0xff]  ;;  %v1098_v8 = vld [vmem:[%s11699_s1 + $0x2090] sm:$0xff] }
 0x1e9   :  { %5664 = vmatpush1.bf16.msra.mxu1 %v5663_v17  ;;  %4882 = vmatprep.subr.bf16.mxu0 %v4881_v18  ;;  %v4901_v17 = vpack.c.bf16 %v1069_v46, %v1065_v9  ;;  %v1064_v18 = vld [vmem:[%s11699_s1 + $0x1f80] sm:$0xff]  ;;  %v1105_v46 = vld [vmem:[%s11699_s1 + $0x20c8] sm:$0xff] }
 0x1ea   :  { %5666 = vmatprep.subr.bf16.mxu1 %v5665_v51  ;;  %v1070_v51 = vld [vmem:[%s11699_s1 + $0x1fb0] sm:$0xff]  ;;  %v4903_v29 = vpack.c.bf16 %v1068_v19, %v1064_v18  ;;  %v4921_v18 = vpack.c.bf16 %v1109_v10, %v1105_v46  ;;  %v1104_v19 = vld [vmem:[%s11699_s1 + $0x20c0] sm:$0xff]  ;;  %v1145_v46 = vld [vmem:[%s11699_s1 + $0x2208] sm:$0xff] }
 0x1eb   :  { %v1149_v10 = vld [vmem:[%s11699_s1 + $0x2228] sm:$0xff] }
 0x1ec   :  { %4884 = vmatpush1.bf16.msra.mxu0 %v4883_v30  ;;  %v5687_v30 = vpack.c.bf16 %v1070_v51, %v1066_v20  ;;  %v1108_v20 = vld [vmem:[%s11699_s1 + $0x20e0] sm:$0xff] }
 0x1ed   :  { %5668 = vmatpush1.bf16.msra.mxu1 %v5667_v31  ;;  %4886 = vmatprep.subr.bf16.mxu0 %v4885_v32  ;;  %v4905_v31 = vpack.c.bf16 %v1077_v23, %v1073_v22  ;;  %v1072_v32 = vld [vmem:[%s11699_s1 + $0x1fc0] sm:$0xff]  ;;  %v1110_v22 = vld [vmem:[%s11699_s1 + $0x20f0] sm:$0xff]  ;;  %v1113_v23 = vld [vmem:[%s11699_s1 + $0x2108] sm:$0xff] }
 0x1ee   :  { %5670 = vmatprep.subr.bf16.mxu1 %v5669_v35  ;;  %v1078_v35 = vld [vmem:[%s11699_s1 + $0x1ff0] sm:$0xff] }
 0x1f0   :  { %4888 = vmatpush1.bf16.msra.mxu0 %v4887_v42  ;;  %v4907_v42 = vpack.c.bf16 %v1076_v33, %v1072_v32  ;;  %v4925_v32 = vpack.c.bf16 %v1117_v27, %v1113_v23  ;;  %v1112_v33 = vld [vmem:[%s11699_s1 + $0x2100] sm:$0xff]  ;;  %v1153_v23 = vld [vmem:[%s11699_s1 + $0x2248] sm:$0xff] }
 0x1f1   :  { %5672 = vmatpush1.bf16.msra.mxu1 %v5671_v43  ;;  %4890 = vmatprep.subr.bf16.mxu0 %v4889_v44  ;;  %v5691_v43 = vpack.c.bf16 %v1078_v35, %v1074_v34  ;;  %v4909_v44 = vpack.c.bf16 %v1085_v63, %v1081_v36  ;;  %v1116_v34 = vld [vmem:[%s11699_s1 + $0x2120] sm:$0xff]  ;;  %v1118_v36 = vld [vmem:[%s11699_s1 + $0x2130] sm:$0xff]  ;;  %v1121_v63 = vld [vmem:[%s11699_s1 + $0x2148] sm:$0xff] }
 0x1f2   :  { %5674 = vmatprep.subr.bf16.mxu1 %v5673_v48  ;;  %v5693_v48 = vpack.c.bf16 %v1087_v38, %v1083_v37  ;;  %v1125_v37 = vld [vmem:[%s11699_s1 + $0x2168] sm:$0xff]  ;;  %v1123_v38 = vld [vmem:[%s11699_s1 + $0x2158] sm:$0xff] }
 0x1f3   :  { %v1157_v27 = vld [vmem:[%s11699_s1 + $0x2268] sm:$0xff] }
 0x1f4   :  { %4892 = vmatpush1.bf16.msra.mxu0 %v4891_v54  ;;  %v1095_v54 = vld [vmem:[%s11699_s1 + $0x2078] sm:$0xff] }
 0x1f5   :  { %5676 = vmatpush1.bf16.msra.mxu1 %v5675_v55  ;;  %4894 = vmatprep.subr.bf16.mxu0 %v4893_v56  ;;  %v4911_v55 = vpack.c.bf16 %v1084_v40, %v1080_v45  ;;  %v5695_v56 = vpack.c.bf16 %v1086_v13, %v1082_v47  ;;  %v5697_v60 = vpack.c.bf16 %v1095_v54, %v1091_v53  ;;  %v1120_v40 = vld [vmem:[%s11699_s1 + $0x2140] sm:$0xff]  ;;  %v1133_v53 = vld [vmem:[%s11699_s1 + $0x21a8] sm:$0xff]  ;;  %v1131_v54 = vld [vmem:[%s11699_s1 + $0x2198] sm:$0xff] }
 0x1f6   :  { %5678 = vmatprep.subr.bf16.mxu1 %v5677_v25  ;;  %v1090_v25 = vld [vmem:[%s11699_s1 + $0x2050] sm:$0xff]  ;;  %v4929_v45 = vpack.c.bf16 %v1125_v37, %v1121_v63  ;;  %v1124_v47 = vld [vmem:[%s11699_s1 + $0x2160] sm:$0xff]  ;;  %v1161_v63 = vld [vmem:[%s11699_s1 + $0x2288] sm:$0xff] }
 0x1f7   :  { %v5699_v5 = vpack.c.bf16 %v1094_v61, %v1090_v25  ;;  %v1132_v25 = vld [vmem:[%s11699_s1 + $0x21a0] sm:$0xff]  ;;  %v1165_v37 = vld [vmem:[%s11699_s1 + $0x22a8] sm:$0xff] }
 0x1f8   :  { %4896 = vmatpush1.bf16.msra.mxu0 %v4895_v2  ;;  %v1099_v2 = vld [vmem:[%s11699_s1 + $0x2098] sm:$0xff] }
 0x1f9   :  { %5680 = vmatpush1.bf16.msra.mxu1 %v5679_v3  ;;  %4898 = vmatprep.subr.bf16.mxu0 %v4897_v4  ;;  %v1103_v3 = vld [vmem:[%s11699_s1 + $0x20b8] sm:$0xff]  ;;  %v4915_v4 = vpack.c.bf16 %v1092_v59, %v1088_v58  ;;  %v4933_v58 = vpack.c.bf16 %v1133_v53, %v1129_v49  ;;  %v1128_v59 = vld [vmem:[%s11699_s1 + $0x2180] sm:$0xff]  ;;  %v1169_v49 = vld [vmem:[%s11699_s1 + $0x22c8] sm:$0xff] }
 0x1fa   :  { %5682 = vmatprep.subr.bf16.mxu1 %v5681_v52  ;;  %v1100_v52 = vld [vmem:[%s11699_s1 + $0x20a0] sm:$0xff]  ;;  %v5701_v9 = vpack.c.bf16 %v1103_v3, %v1099_v2  ;;  %v1139_v2 = vld [vmem:[%s11699_s1 + $0x21d8] sm:$0xff]  ;;  %v1173_v53 = vld [vmem:[%s11699_s1 + $0x22e8] sm:$0xff] }
 0x1fb   :  { %v1143_v3 = vld [vmem:[%s11699_s1 + $0x21f8] sm:$0xff] }
 0x1fc   :  { %4900 = vmatpush1.bf16.msra.mxu0 %v4899_v15  ;;  %v1111_v15 = vld [vmem:[%s11699_s1 + $0x20f8] sm:$0xff] }
 0x1fd   :  { %5684 = vmatpush1.bf16.msra.mxu1 %v5683_v16  ;;  %4902 = vmatprep.subr.bf16.mxu0 %v4901_v17  ;;  %v4919_v16 = vpack.c.bf16 %v1100_v52, %v1096_v7  ;;  %v5705_v51 = vpack.c.bf16 %v1111_v15, %v1107_v11  ;;  %v1136_v7 = vld [vmem:[%s11699_s1 + $0x21c0] sm:$0xff]  ;;  %v1147_v11 = vld [vmem:[%s11699_s1 + $0x2218] sm:$0xff] }
 0x1fe   :  { %5686 = vmatprep.subr.bf16.mxu1 %v5685_v21  ;;  %v1106_v21 = vld [vmem:[%s11699_s1 + $0x20d0] sm:$0xff]  ;;  %v1140_v52 = vld [vmem:[%s11699_s1 + $0x21e0] sm:$0xff]  ;;  %v1151_v15 = vld [vmem:[%s11699_s1 + $0x2238] sm:$0xff] }
 0x200   :  { %4904 = vmatpush1.bf16.msra.mxu0 %v4903_v29  ;;  %v1119_v29 = vld [vmem:[%s11699_s1 + $0x2138] sm:$0xff] }
 0x201   :  { %5688 = vmatpush1.bf16.msra.mxu1 %v5687_v30  ;;  %4906 = vmatprep.subr.bf16.mxu0 %v4905_v31  ;;  %v4923_v30 = vpack.c.bf16 %v1108_v20, %v1104_v19  ;;  %v5707_v31 = vpack.c.bf16 %v1110_v22, %v1106_v21  ;;  %v5709_v35 = vpack.c.bf16 %v1119_v29, %v1115_v28  ;;  %v1144_v19 = vld [vmem:[%s11699_s1 + $0x2200] sm:$0xff]  ;;  %v1146_v21 = vld [vmem:[%s11699_s1 + $0x2210] sm:$0xff]  ;;  %v1155_v28 = vld [vmem:[%s11699_s1 + $0x2258] sm:$0xff] }
 0x202   :  { %5690 = vmatprep.subr.bf16.mxu1 %v5689_v14  ;;  %v1114_v14 = vld [vmem:[%s11699_s1 + $0x2110] sm:$0xff]  ;;  %v1148_v20 = vld [vmem:[%s11699_s1 + $0x2220] sm:$0xff]  ;;  %v1159_v29 = vld [vmem:[%s11699_s1 + $0x2278] sm:$0xff] }
 0x203   :  { %v1150_v22 = vld [vmem:[%s11699_s1 + $0x2230] sm:$0xff] }
 0x204   :  { %4908 = vmatpush1.bf16.msra.mxu0 %v4907_v42  ;;  %v1127_v42 = vld [vmem:[%s11699_s1 + $0x2178] sm:$0xff] }
 0x205   :  { %5692 = vmatpush1.bf16.msra.mxu1 %v5691_v43  ;;  %4910 = vmatprep.subr.bf16.mxu0 %v4909_v44  ;;  %v4927_v43 = vpack.c.bf16 %v1116_v34, %v1112_v33  ;;  %v5711_v44 = vpack.c.bf16 %v1118_v36, %v1114_v14  ;;  %v5713_v13 = vpack.c.bf16 %v1127_v42, %v1123_v38  ;;  %v1152_v33 = vld [vmem:[%s11699_s1 + $0x2240] sm:$0xff]  ;;  %v1154_v14 = vld [vmem:[%s11699_s1 + $0x2250] sm:$0xff]  ;;  %v1163_v38 = vld [vmem:[%s11699_s1 + $0x2298] sm:$0xff] }
 0x206   :  { %5694 = vmatprep.subr.bf16.mxu1 %v5693_v48  ;;  %v1122_v48 = vld [vmem:[%s11699_s1 + $0x2150] sm:$0xff]  ;;  %v1156_v34 = vld [vmem:[%s11699_s1 + $0x2260] sm:$0xff]  ;;  %v1167_v42 = vld [vmem:[%s11699_s1 + $0x22b8] sm:$0xff] }
 0x207   :  { %2351 = vmatmul.mubr.f32.vlgmr.msra.gmra.mrb[0].mxu0 %v9114_v39  ;;  %v1158_v36 = vld [vmem:[%s11699_s1 + $0x2270] sm:$0xff] }
 0x208   :  { %4912 = vmatpush1.bf16.msra.mxu0 %v4911_v55  ;;  %3274 = vmatmul.mubr.f32.vlgmr.msra.gmra.mrb[0].mxu1 %v9114_v39  ;;  %v1102_v39 = vld [vmem:[%s11699_s1 + $0x20b0] sm:$0xff]  ;;  %v1135_v55 = vld [vmem:[%s11699_s1 + $0x21b8] sm:$0xff] }
 0x209   :  { %5696 = vmatpush1.bf16.msra.mxu1 %v5695_v56  ;;  %4914 = vmatprep.subr.bf16.mxu0 %v4913_v57  ;;  %v5703_v17 = vpack.c.bf16 %v1102_v39, %v1098_v8  ;;  %v4931_v56 = vpack.c.bf16 %v1124_v47, %v1120_v40  ;;  %v5715_v57 = vpack.c.bf16 %v1126_v26, %v1122_v48  ;;  %v1138_v8 = vld [vmem:[%s11699_s1 + $0x21d0] sm:$0xff]  ;;  %v1160_v40 = vld [vmem:[%s11699_s1 + $0x2280] sm:$0xff] }
 0x20a   :  { %5698 = vmatprep.subr.bf16.mxu1 %v5697_v60  ;;  %2421 = vmatprep.mubr.f32.mxu0 %v1736_v1  ;;  %v1130_v60 = vld [vmem:[%s11699_s1 + $0x2190] sm:$0xff]  ;;  %v5717_v61 = vpack.c.bf16 %v1135_v55, %v1131_v54  ;;  %v1164_v47 = vld [vmem:[%s11699_s1 + $0x22a0] sm:$0xff]  ;;  %v1171_v54 = vld [vmem:[%s11699_s1 + $0x22d8] sm:$0xff] }
 0x20b   :  { %3344 = vmatprep.mubr.f32.mxu1 %v1736_v1  ;;  %v1141_v1 = vld [vmem:[%s11699_s1 + $0x21e8] sm:$0xff]  ;;  %v1142_v39 = vld [vmem:[%s11699_s1 + $0x21f0] sm:$0xff]  ;;  %v1175_v55 = vld [vmem:[%s11699_s1 + $0x22f8] sm:$0xff] }
 0x20c   :  { %4916 = vmatpush1.bf16.msra.mxu0 %v4915_v4  ;;  %v4935_v4 = vpack.c.bf16 %v1132_v25, %v1128_v59  ;;  %v1162_v48 = vld [vmem:[%s11699_s1 + $0x2290] sm:$0xff]  ;;  %v1168_v59 = vld [vmem:[%s11699_s1 + $0x22c0] sm:$0xff] }
 0x20d   :  { %5700 = vmatpush1.bf16.msra.mxu1 %v5699_v5  ;;  %4918 = vmatprep.subr.bf16.mxu0 %v4917_v6  ;;  %v5719_v5 = vpack.c.bf16 %v1134_v24, %v1130_v60  ;;  %v4937_v6 = vpack.c.bf16 %v1141_v1, %v1137_v0  ;;  %v1166_v26 = vld [vmem:[%s11699_s1 + $0x22b0] sm:$0xff]  ;;  %v1172_v25 = vld [vmem:[%s11699_s1 + $0x22e0] sm:$0xff]  ;;  %v1177_v0 = vld [vmem:[%s11699_s1 + $0x2308] sm:$0xff] }
 0x20e   :  { %5702 = vmatprep.subr.bf16.mxu1 %v5701_v9  ;;  %v5721_v9 = vpack.c.bf16 %v1143_v3, %v1139_v2  ;;  %v1170_v60 = vld [vmem:[%s11699_s1 + $0x22d0] sm:$0xff]  ;;  %v1181_v1 = vld [vmem:[%s11699_s1 + $0x2328] sm:$0xff]  ;;  %v1179_v2 = vld [vmem:[%s11699_s1 + $0x2318] sm:$0xff] }
 0x20f   :  { %v1174_v24 = vld [vmem:[%s11699_s1 + $0x22f0] sm:$0xff]  ;;  %v1183_v3 = vld [vmem:[%s11699_s1 + $0x2338] sm:$0xff] }
 0x210   :  { %4920 = vmatpush1.bf16.msra.mxu0 %v4919_v16  ;;  %v4939_v16 = vpack.c.bf16 %v1140_v52, %v1136_v7  ;;  %v1176_v7 = vld [vmem:[%s11699_s1 + $0x2300] sm:$0xff] }
 0x211   :  { %5704 = vmatpush1.bf16.msra.mxu1 %v5703_v17  ;;  %4922 = vmatprep.subr.bf16.mxu0 %v4921_v18  ;;  %v5723_v17 = vpack.c.bf16 %v1142_v39, %v1138_v8  ;;  %v4941_v18 = vpack.c.bf16 %v1149_v10, %v1145_v46  ;;  %v1180_v52 = vld [vmem:[%s11699_s1 + $0x2320] sm:$0xff]  ;;  %v1178_v8 = vld [vmem:[%s11699_s1 + $0x2310] sm:$0xff]  ;;  %v1185_v46 = vld [vmem:[%s11699_s1 + $0x2348] sm:$0xff] }
 0x212   :  { %5706 = vmatprep.subr.bf16.mxu1 %v5705_v51  ;;  %v5725_v51 = vpack.c.bf16 %v1151_v15, %v1147_v11  ;;  %v1182_v39 = vld [vmem:[%s11699_s1 + $0x2330] sm:$0xff]  ;;  %v1189_v10 = vld [vmem:[%s11699_s1 + $0x2368] sm:$0xff]  ;;  %v1187_v11 = vld [vmem:[%s11699_s1 + $0x2358] sm:$0xff] }
 0x213   :  { %v1191_v15 = vld [vmem:[%s11699_s1 + $0x2378] sm:$0xff] }
 0x214   :  { %4924 = vmatpush1.bf16.msra.mxu0 %v4923_v30  ;;  %v4943_v30 = vpack.c.bf16 %v1148_v20, %v1144_v19  ;;  %v1184_v19 = vld [vmem:[%s11699_s1 + $0x2340] sm:$0xff] }
 0x215   :  { %5708 = vmatpush1.bf16.msra.mxu1 %v5707_v31  ;;  %4926 = vmatprep.subr.bf16.mxu0 %v4925_v32  ;;  %v5727_v31 = vpack.c.bf16 %v1150_v22, %v1146_v21  ;;  %v4945_v32 = vpack.c.bf16 %v1157_v27, %v1153_v23  ;;  %v1188_v20 = vld [vmem:[%s11699_s1 + $0x2360] sm:$0xff]  ;;  %v1186_v21 = vld [vmem:[%s11699_s1 + $0x2350] sm:$0xff]  ;;  %v1193_v23 = vld [vmem:[%s11699_s1 + $0x2388] sm:$0xff] }
 0x216   :  { %5710 = vmatprep.subr.bf16.mxu1 %v5709_v35  ;;  %v5729_v35 = vpack.c.bf16 %v1159_v29, %v1155_v28  ;;  %v1190_v22 = vld [vmem:[%s11699_s1 + $0x2370] sm:$0xff]  ;;  %v1197_v27 = vld [vmem:[%s11699_s1 + $0x23a8] sm:$0xff]  ;;  %v1195_v28 = vld [vmem:[%s11699_s1 + $0x2398] sm:$0xff] }
 0x217   :  { %v1199_v29 = vld [vmem:[%s11699_s1 + $0x23b8] sm:$0xff] }
 0x218   :  { %4928 = vmatpush1.bf16.msra.mxu0 %v4927_v43  ;;  %v4947_v43 = vpack.c.bf16 %v1156_v34, %v1152_v33  ;;  %v1192_v33 = vld [vmem:[%s11699_s1 + $0x2380] sm:$0xff] }
 0x219   :  { %5712 = vmatpush1.bf16.msra.mxu1 %v5711_v44  ;;  %4930 = vmatprep.subr.bf16.mxu0 %v4929_v45  ;;  %v5731_v44 = vpack.c.bf16 %v1158_v36, %v1154_v14  ;;  %v4949_v45 = vpack.c.bf16 %v1165_v37, %v1161_v63  ;;  %v1196_v34 = vld [vmem:[%s11699_s1 + $0x23a0] sm:$0xff]  ;;  %v1194_v14 = vld [vmem:[%s11699_s1 + $0x2390] sm:$0xff]  ;;  %v1201_v63 = vld [vmem:[%s11699_s1 + $0x23c8] sm:$0xff] }
 0x21a   :  { %5714 = vmatprep.subr.bf16.mxu1 %v5713_v13  ;;  %v5733_v13 = vpack.c.bf16 %v1167_v42, %v1163_v38  ;;  %v1198_v36 = vld [vmem:[%s11699_s1 + $0x23b0] sm:$0xff]  ;;  %v1205_v37 = vld [vmem:[%s11699_s1 + $0x23e8] sm:$0xff]  ;;  %v1203_v38 = vld [vmem:[%s11699_s1 + $0x23d8] sm:$0xff] }
 0x21b   :  { %v1207_v42 = vld [vmem:[%s11699_s1 + $0x23f8] sm:$0xff] }
 0x21c   :  { %4932 = vmatpush1.bf16.msra.mxu0 %v4931_v56  ;;  %v4951_v56 = vpack.c.bf16 %v1164_v47, %v1160_v40  ;;  %v1200_v40 = vld [vmem:[%s11699_s1 + $0x23c0] sm:$0xff] }
 0x21d   :  { %5716 = vmatpush1.bf16.msra.mxu1 %v5715_v57  ;;  %4934 = vmatprep.subr.bf16.mxu0 %v4933_v58  ;;  %v5735_v57 = vpack.c.bf16 %v1166_v26, %v1162_v48  ;;  %v4953_v58 = vpack.c.bf16 %v1173_v53, %v1169_v49  ;;  %v1204_v47 = vld [vmem:[%s11699_s1 + $0x23e0] sm:$0xff]  ;;  %v1202_v48 = vld [vmem:[%s11699_s1 + $0x23d0] sm:$0xff]  ;;  %v1209_v49 = vld [vmem:[%s11699_s1 + $0x2408] sm:$0xff] }
 0x21e   :  { %5718 = vmatprep.subr.bf16.mxu1 %v5717_v61  ;;  %v5737_v61 = vpack.c.bf16 %v1175_v55, %v1171_v54  ;;  %v1206_v26 = vld [vmem:[%s11699_s1 + $0x23f0] sm:$0xff]  ;;  %v1213_v53 = vld [vmem:[%s11699_s1 + $0x2428] sm:$0xff]  ;;  %v1721_v54 = vcombine.high %v9489_v41, %v9489_v41  ;;  %v1211_v55 = vld [vmem:[%s11699_s1 + $0x2418] sm:$0xff] }
 0x21f   :  { %v1212_v41 = vld [vmem:[%s11699_s1 + $0x2420] sm:$0xff] }
 0x220   :  { %4936 = vmatpush1.bf16.msra.mxu0 %v4935_v4  ;;  %v4955_v4 = vpack.c.bf16 %v1172_v25, %v1168_v59  ;;  %v4973_v59 = vpack.c.bf16 %v1213_v53, %v1209_v49  ;;  %v1208_v25 = vld [vmem:[%s11699_s1 + $0x2400] sm:$0xff]  ;;  %v1246_v49 = vld [vmem:[%s11699_s1 + $0x2530] sm:$0xff]  ;;  %v1249_v53 = vld [vmem:[%s11699_s1 + $0x2548] sm:$0xff] }
 0x221   :  { %5720 = vmatpush1.bf16.msra.mxu1 %v5719_v5  ;;  %4938 = vmatprep.subr.bf16.mxu0 %v4937_v6  ;;  %v5739_v5 = vpack.c.bf16 %v1174_v24, %v1170_v60  ;;  %v4957_v6 = vpack.c.bf16 %v1181_v1, %v1177_v0  ;;  %v1210_v60 = vld [vmem:[%s11699_s1 + $0x2410] sm:$0xff]  ;;  %v1217_v0 = vld [vmem:[%s11699_s1 + $0x2448] sm:$0xff] }
 0x222   :  { %5722 = vmatprep.subr.bf16.mxu1 %v5721_v9  ;;  %v5741_v9 = vpack.c.bf16 %v1183_v3, %v1179_v2  ;;  %v1214_v24 = vld [vmem:[%s11699_s1 + $0x2430] sm:$0xff]  ;;  %v1221_v1 = vld [vmem:[%s11699_s1 + $0x2468] sm:$0xff]  ;;  %v9904_v2 = vrot.slane %v1721_v54, %v6590_v12  ;;  %v1219_v3 = vld [vmem:[%s11699_s1 + $0x2458] sm:$0xff] }
 0x223   :  { %v1253_v54 = vld [vmem:[%s11699_s1 + $0x2568] sm:$0xff] }
 0x224   :  { %4940 = vmatpush1.bf16.msra.mxu0 %v4939_v16  ;;  %v4959_v16 = vpack.c.bf16 %v1180_v52, %v1176_v7  ;;  %v4977_v7 = vpack.c.bf16 %v1221_v1, %v1217_v0  ;;  %v1216_v52 = vld [vmem:[%s11699_s1 + $0x2440] sm:$0xff]  ;;  %v1257_v0 = vld [vmem:[%s11699_s1 + $0x2588] sm:$0xff] }
 0x225   :  { %5724 = vmatpush1.bf16.msra.mxu1 %v5723_v17  ;;  %4942 = vmatprep.subr.bf16.mxu0 %v4941_v18  ;;  %v5743_v17 = vpack.c.bf16 %v1182_v39, %v1178_v8  ;;  %v4961_v18 = vpack.c.bf16 %v1189_v10, %v1185_v46  ;;  %v1220_v8 = vld [vmem:[%s11699_s1 + $0x2460] sm:$0xff]  ;;  %v1222_v46 = vld [vmem:[%s11699_s1 + $0x2470] sm:$0xff]  ;;  %v1225_v10 = vld [vmem:[%s11699_s1 + $0x2488] sm:$0xff] }
 0x226   :  { %5726 = vmatprep.subr.bf16.mxu1 %v5725_v51  ;;  %v5745_v51 = vpack.c.bf16 %v1191_v15, %v1187_v11  ;;  %v1229_v11 = vld [vmem:[%s11699_s1 + $0x24a8] sm:$0xff]  ;;  %v1737_v15 = vcombine.high %v9904_v2, %v9904_v2 }
 0x227   :  { %v1261_v1 = vld [vmem:[%s11699_s1 + $0x25a8] sm:$0xff] }
 0x228   :  { %4944 = vmatpush1.bf16.msra.mxu0 %v4943_v30  ;;  %v4963_v30 = vpack.c.bf16 %v1188_v20, %v1184_v19  ;;  %v4981_v20 = vpack.c.bf16 %v1229_v11, %v1225_v10  ;;  %v1265_v10 = vld [vmem:[%s11699_s1 + $0x25c8] sm:$0xff] }
 0x229   :  { %5728 = vmatpush1.bf16.msra.mxu1 %v5727_v31  ;;  %4946 = vmatprep.subr.bf16.mxu0 %v4945_v32  ;;  %v5747_v31 = vpack.c.bf16 %v1190_v22, %v1186_v21  ;;  %v4965_v32 = vpack.c.bf16 %v1197_v27, %v1193_v23  ;;  %v1224_v21 = vld [vmem:[%s11699_s1 + $0x2480] sm:$0xff]  ;;  %v1226_v22 = vld [vmem:[%s11699_s1 + $0x2490] sm:$0xff]  ;;  %v1233_v27 = vld [vmem:[%s11699_s1 + $0x24c8] sm:$0xff] }
 0x22a   :  { %5730 = vmatprep.subr.bf16.mxu1 %v5729_v35  ;;  %v5749_v35 = vpack.c.bf16 %v1199_v29, %v1195_v28  ;;  %v1237_v28 = vld [vmem:[%s11699_s1 + $0x24e8] sm:$0xff]  ;;  %v1235_v29 = vld [vmem:[%s11699_s1 + $0x24d8] sm:$0xff] }
 0x22b   :  { %v1269_v11 = vld [vmem:[%s11699_s1 + $0x25e8] sm:$0xff] }
 0x22c   :  { %4948 = vmatpush1.bf16.msra.mxu0 %v4947_v43  ;;  %v4967_v43 = vpack.c.bf16 %v1196_v34, %v1192_v33  ;;  %v4985_v33 = vpack.c.bf16 %v1237_v28, %v1233_v27  ;;  %v1232_v34 = vld [vmem:[%s11699_s1 + $0x24c0] sm:$0xff]  ;;  %v1277_v27 = vld [vmem:[%s11699_s1 + $0x2628] sm:$0xff]  ;;  %v1275_v28 = vld [vmem:[%s11699_s1 + $0x2618] sm:$0xff] }
 0x22d   :  { %5732 = vmatpush1.bf16.msra.mxu1 %v5731_v44  ;;  %4950 = vmatprep.subr.bf16.mxu0 %v4949_v45  ;;  %v5751_v44 = vpack.c.bf16 %v1198_v36, %v1194_v14  ;;  %v4969_v45 = vpack.c.bf16 %v1205_v37, %v1201_v63  ;;  %v1236_v14 = vld [vmem:[%s11699_s1 + $0x24e0] sm:$0xff]  ;;  %v1238_v63 = vld [vmem:[%s11699_s1 + $0x24f0] sm:$0xff]  ;;  %v1241_v37 = vld [vmem:[%s11699_s1 + $0x2508] sm:$0xff] }
 0x22e   :  { %5734 = vmatprep.subr.bf16.mxu1 %v5733_v13  ;;  %v5753_v13 = vpack.c.bf16 %v1207_v42, %v1203_v38  ;;  %v1245_v38 = vld [vmem:[%s11699_s1 + $0x2528] sm:$0xff]  ;;  %v1243_v42 = vld [vmem:[%s11699_s1 + $0x2518] sm:$0xff] }
 0x230   :  { %4952 = vmatpush1.bf16.msra.mxu0 %v4951_v56  ;;  %v1215_v56 = vld [vmem:[%s11699_s1 + $0x2438] sm:$0xff] }
 0x231   :  { %5736 = vmatpush1.bf16.msra.mxu1 %v5735_v57  ;;  %4954 = vmatprep.subr.bf16.mxu0 %v4953_v58  ;;  %v4971_v57 = vpack.c.bf16 %v1204_v47, %v1200_v40  ;;  %v5755_v58 = vpack.c.bf16 %v1206_v26, %v1202_v48  ;;  %v4989_v40 = vpack.c.bf16 %v1245_v38, %v1241_v37  ;;  %v1240_v47 = vld [vmem:[%s11699_s1 + $0x2500] sm:$0xff]  ;;  %v1285_v37 = vld [vmem:[%s11699_s1 + $0x2668] sm:$0xff]  ;;  %v1283_v38 = vld [vmem:[%s11699_s1 + $0x2658] sm:$0xff] }
 0x232   :  { %5738 = vmatprep.subr.bf16.mxu1 %v5737_v61  ;;  %v5757_v61 = vpack.c.bf16 %v1215_v56, %v1211_v55  ;;  %v1244_v48 = vld [vmem:[%s11699_s1 + $0x2520] sm:$0xff]  ;;  %v1251_v55 = vld [vmem:[%s11699_s1 + $0x2558] sm:$0xff] }
 0x233   :  { %v1255_v56 = vld [vmem:[%s11699_s1 + $0x2578] sm:$0xff] }
 0x234   :  { %4956 = vmatpush1.bf16.msra.mxu0 %v4955_v4  ;;  %v1223_v4 = vld [vmem:[%s11699_s1 + $0x2478] sm:$0xff] }
 0x235   :  { %5740 = vmatpush1.bf16.msra.mxu1 %v5739_v5  ;;  %4958 = vmatprep.subr.bf16.mxu0 %v4957_v6  ;;  %v4975_v5 = vpack.c.bf16 %v1212_v41, %v1208_v25  ;;  %v5759_v6 = vpack.c.bf16 %v1214_v24, %v1210_v60  ;;  %v5761_v39 = vpack.c.bf16 %v1223_v4, %v1219_v3  ;;  %v1248_v25 = vld [vmem:[%s11699_s1 + $0x2540] sm:$0xff]  ;;  %v1250_v60 = vld [vmem:[%s11699_s1 + $0x2550] sm:$0xff]  ;;  %v1259_v3 = vld [vmem:[%s11699_s1 + $0x2598] sm:$0xff] }
 0x236   :  { %5742 = vmatprep.subr.bf16.mxu1 %v5741_v9  ;;  %v1218_v9 = vld [vmem:[%s11699_s1 + $0x2450] sm:$0xff]  ;;  %v1252_v41 = vld [vmem:[%s11699_s1 + $0x2560] sm:$0xff]  ;;  %v1263_v4 = vld [vmem:[%s11699_s1 + $0x25b8] sm:$0xff] }
 0x237   :  { %v5763_v19 = vpack.c.bf16 %v1222_v46, %v1218_v9  ;;  %v1254_v24 = vld [vmem:[%s11699_s1 + $0x2570] sm:$0xff] }
 0x238   :  { %4960 = vmatpush1.bf16.msra.mxu0 %v4959_v16  ;;  %v1227_v16 = vld [vmem:[%s11699_s1 + $0x2498] sm:$0xff]  ;;  %v1258_v9 = vld [vmem:[%s11699_s1 + $0x2590] sm:$0xff] }
 0x239   :  { %5744 = vmatpush1.bf16.msra.mxu1 %v5743_v17  ;;  %4962 = vmatprep.subr.bf16.mxu0 %v4961_v18  ;;  %v1231_v17 = vld [vmem:[%s11699_s1 + $0x24b8] sm:$0xff]  ;;  %v4979_v18 = vpack.c.bf16 %v1220_v8, %v1216_v52  ;;  %v1256_v52 = vld [vmem:[%s11699_s1 + $0x2580] sm:$0xff]  ;;  %v1262_v46 = vld [vmem:[%s11699_s1 + $0x25b0] sm:$0xff] }
 0x23a   :  { %5746 = vmatprep.subr.bf16.mxu1 %v5745_v51  ;;  %v1228_v51 = vld [vmem:[%s11699_s1 + $0x24a0] sm:$0xff]  ;;  %v5765_v23 = vpack.c.bf16 %v1231_v17, %v1227_v16  ;;  %v1271_v16 = vld [vmem:[%s11699_s1 + $0x25f8] sm:$0xff] }
 0x23b   :  { %v1260_v8 = vld [vmem:[%s11699_s1 + $0x25a0] sm:$0xff] }
 0x23c   :  { %4964 = vmatpush1.bf16.msra.mxu0 %v4963_v30  ;;  %v1239_v30 = vld [vmem:[%s11699_s1 + $0x24f8] sm:$0xff]  ;;  %v4999_v17 = vpack.c.bf16 %v1260_v8, %v1256_v52  ;;  %v1300_v52 = vld [vmem:[%s11699_s1 + $0x26e0] sm:$0xff]  ;;  %v1298_v8 = vld [vmem:[%s11699_s1 + $0x26d0] sm:$0xff] }
 0x23d   :  { %5748 = vmatpush1.bf16.msra.mxu1 %v5747_v31  ;;  %4966 = vmatprep.subr.bf16.mxu0 %v4965_v32  ;;  %v4983_v31 = vpack.c.bf16 %v1228_v51, %v1224_v21  ;;  %v5769_v36 = vpack.c.bf16 %v1239_v30, %v1235_v29  ;;  %v1268_v21 = vld [vmem:[%s11699_s1 + $0x25e0] sm:$0xff]  ;;  %v1266_v51 = vld [vmem:[%s11699_s1 + $0x25d0] sm:$0xff]  ;;  %v1279_v29 = vld [vmem:[%s11699_s1 + $0x2638] sm:$0xff] }
 0x23e   :  { %5750 = vmatprep.subr.bf16.mxu1 %v5749_v35  ;;  %v1234_v35 = vld [vmem:[%s11699_s1 + $0x24d0] sm:$0xff] }
 0x240   :  { %4968 = vmatpush1.bf16.msra.mxu0 %v4967_v43  ;;  %v1247_v43 = vld [vmem:[%s11699_s1 + $0x2538] sm:$0xff] }
 0x241   :  { %5752 = vmatpush1.bf16.msra.mxu1 %v5751_v44  ;;  %4970 = vmatprep.subr.bf16.mxu0 %v4969_v45  ;;  %v4987_v44 = vpack.c.bf16 %v1236_v14, %v1232_v34  ;;  %v5771_v45 = vpack.c.bf16 %v1238_v63, %v1234_v35  ;;  %v5773_v26 = vpack.c.bf16 %v1247_v43, %v1243_v42  ;;  %v1276_v34 = vld [vmem:[%s11699_s1 + $0x2620] sm:$0xff]  ;;  %v1274_v14 = vld [vmem:[%s11699_s1 + $0x2610] sm:$0xff]  ;;  %v1281_v63 = vld [vmem:[%s11699_s1 + $0x2648] sm:$0xff] }
 0x242   :  { %5754 = vmatprep.subr.bf16.mxu1 %v5753_v13  ;;  %v1242_v13 = vld [vmem:[%s11699_s1 + $0x2510] sm:$0xff]  ;;  %v5789_v35 = vpack.c.bf16 %v1279_v29, %v1275_v28  ;;  %v1287_v42 = vld [vmem:[%s11699_s1 + $0x2678] sm:$0xff] }
 0x243   :  { %v1319_v28 = vld [vmem:[%s11699_s1 + $0x2778] sm:$0xff] }
 0x244   :  { %4972 = vmatpush1.bf16.msra.mxu0 %v4971_v57  ;;  %v4991_v57 = vpack.c.bf16 %v1244_v48, %v1240_v47  ;;  %v1284_v47 = vld [vmem:[%s11699_s1 + $0x2660] sm:$0xff]  ;;  %v1282_v48 = vld [vmem:[%s11699_s1 + $0x2650] sm:$0xff] }
 0x245   :  { %5756 = vmatpush1.bf16.msra.mxu1 %v5755_v58  ;;  %4974 = vmatprep.subr.bf16.mxu0 %v4973_v59  ;;  %v5775_v58 = vpack.c.bf16 %v1246_v49, %v1242_v13  ;;  %v4993_v59 = vpack.c.bf16 %v1253_v54, %v1249_v53  ;;  %v5793_v13 = vpack.c.bf16 %v1287_v42, %v1283_v38  ;;  %v1289_v49 = vld [vmem:[%s11699_s1 + $0x2688] sm:$0xff]  ;;  %v1291_v54 = vld [vmem:[%s11699_s1 + $0x2698] sm:$0xff] }
 0x246   :  { %5758 = vmatprep.subr.bf16.mxu1 %v5757_v61  ;;  %v5777_v61 = vpack.c.bf16 %v1255_v56, %v1251_v55  ;;  %v1293_v53 = vld [vmem:[%s11699_s1 + $0x26a8] sm:$0xff]  ;;  %v1295_v55 = vld [vmem:[%s11699_s1 + $0x26b8] sm:$0xff] }
 0x247   :  { %2422 = vmatmul.mubr.f32.vlgmr.msra.gmra.mrb[0].mxu0 %v9511_v50  ;;  %v1327_v38 = vld [vmem:[%s11699_s1 + $0x27b8] sm:$0xff] }
 0x248   :  { %4976 = vmatpush1.bf16.msra.mxu0 %v4975_v5  ;;  %3345 = vmatmul.mubr.f32.vlgmr.msra.gmra.mrb[0].mxu1 %v9511_v50  ;;  %v1230_v50 = vld [vmem:[%s11699_s1 + $0x24b0] sm:$0xff]  ;;  %v4995_v5 = vpack.c.bf16 %v1252_v41, %v1248_v25  ;;  %v1292_v25 = vld [vmem:[%s11699_s1 + $0x26a0] sm:$0xff] }
 0x249   :  { %5760 = vmatpush1.bf16.msra.mxu1 %v5759_v6  ;;  %4978 = vmatprep.subr.bf16.mxu0 %v4977_v7  ;;  %v5767_v32 = vpack.c.bf16 %v1230_v50, %v1226_v22  ;;  %v5779_v6 = vpack.c.bf16 %v1254_v24, %v1250_v60  ;;  %v4997_v7 = vpack.c.bf16 %v1261_v1, %v1257_v0  ;;  %v1273_v50 = vld [vmem:[%s11699_s1 + $0x2608] sm:$0xff]  ;;  %v1290_v41 = vld [vmem:[%s11699_s1 + $0x2690] sm:$0xff]  ;;  %v1299_v1 = vld [vmem:[%s11699_s1 + $0x26d8] sm:$0xff] }
 0x24a   :  { %5762 = vmatprep.subr.bf16.mxu1 %v5761_v39  ;;  %2492 = vmatprep.mubr.f32.mxu0 %v1737_v15  ;;  %v5781_v39 = vpack.c.bf16 %v1263_v4, %v1259_v3  ;;  %v5797_v60 = vpack.c.bf16 %v1295_v55, %v1291_v54  ;;  %v1297_v24 = vld [vmem:[%s11699_s1 + $0x26c8] sm:$0xff]  ;;  %v1303_v3 = vld [vmem:[%s11699_s1 + $0x26f8] sm:$0xff] }
 0x24b   :  { %3415 = vmatprep.mubr.f32.mxu1 %v1737_v15  ;;  %v1267_v15 = vld [vmem:[%s11699_s1 + $0x25d8] sm:$0xff]  ;;  %v1301_v0 = vld [vmem:[%s11699_s1 + $0x26e8] sm:$0xff] }
 0x24c   :  { %4980 = vmatpush1.bf16.msra.mxu0 %v4979_v18  ;;  %v5783_v18 = vpack.c.bf16 %v1262_v46, %v1258_v9  ;;  %v5785_v22 = vpack.c.bf16 %v1271_v16, %v1267_v15  ;;  %v5801_v9 = vpack.c.bf16 %v1303_v3, %v1299_v1  ;;  %v1305_v46 = vld [vmem:[%s11699_s1 + $0x2708] sm:$0xff]  ;;  %v1311_v15 = vld [vmem:[%s11699_s1 + $0x2738] sm:$0xff] }
 0x24d   :  { %5764 = vmatpush1.bf16.msra.mxu1 %v5763_v19  ;;  %4982 = vmatprep.subr.bf16.mxu0 %v4981_v20  ;;  %v5001_v19 = vpack.c.bf16 %v1269_v11, %v1265_v10  ;;  %v1264_v20 = vld [vmem:[%s11699_s1 + $0x25c0] sm:$0xff]  ;;  %v1309_v10 = vld [vmem:[%s11699_s1 + $0x2728] sm:$0xff]  ;;  %v1307_v11 = vld [vmem:[%s11699_s1 + $0x2718] sm:$0xff] }
 0x24e   :  { %5766 = vmatprep.subr.bf16.mxu1 %v5765_v23  ;;  %v1270_v23 = vld [vmem:[%s11699_s1 + $0x25f0] sm:$0xff]  ;;  %v5003_v30 = vpack.c.bf16 %v1268_v21, %v1264_v20  ;;  %v1308_v20 = vld [vmem:[%s11699_s1 + $0x2720] sm:$0xff]  ;;  %v1335_v54 = vld [vmem:[%s11699_s1 + $0x27f8] sm:$0xff] }
 0x24f   :  { %v1306_v21 = vld [vmem:[%s11699_s1 + $0x2710] sm:$0xff]  ;;  %v1343_v1 = vld [vmem:[%s11699_s1 + $0x2838] sm:$0xff]  ;;  %v10279_v3 = vld [vmem:[%s11698_s0 + $0x28] sm:$0xff] }
 0x250   :  { %4984 = vmatpush1.bf16.msra.mxu0 %v4983_v31  ;;  %v5787_v31 = vpack.c.bf16 %v1270_v23, %v1266_v51  ;;  %v5805_v51 = vpack.c.bf16 %v1311_v15, %v1307_v11  ;;  %v1313_v23 = vld [vmem:[%s11699_s1 + $0x2748] sm:$0xff]  ;;  %v10301_v11 = vrot.slane %v10279_v3, %v6590_v12  ;;  %v1347_v15 = vld [vmem:[%s11699_s1 + $0x2858] sm:$0xff] }
 0x251   :  { %5768 = vmatpush1.bf16.msra.mxu1 %v5767_v32  ;;  %4986 = vmatprep.subr.bf16.mxu0 %v4985_v33  ;;  %v5005_v32 = vpack.c.bf16 %v1277_v27, %v1273_v50  ;;  %v1272_v33 = vld [vmem:[%s11699_s1 + $0x2600] sm:$0xff]  ;;  %v1317_v50 = vld [vmem:[%s11699_s1 + $0x2768] sm:$0xff]  ;;  %v1315_v27 = vld [vmem:[%s11699_s1 + $0x2758] sm:$0xff] }
 0x252   :  { %5770 = vmatprep.subr.bf16.mxu1 %v5769_v36  ;;  %v1278_v36 = vld [vmem:[%s11699_s1 + $0x2630] sm:$0xff]  ;;  %v5007_v43 = vpack.c.bf16 %v1276_v34, %v1272_v33  ;;  %v1316_v33 = vld [vmem:[%s11699_s1 + $0x2760] sm:$0xff] }
 0x253   :  { %v1314_v34 = vld [vmem:[%s11699_s1 + $0x2750] sm:$0xff] }
 0x254   :  { %4988 = vmatpush1.bf16.msra.mxu0 %v4987_v44  ;;  %v5791_v44 = vpack.c.bf16 %v1278_v36, %v1274_v14  ;;  %v5809_v14 = vpack.c.bf16 %v1319_v28, %v1315_v27  ;;  %v1321_v36 = vld [vmem:[%s11699_s1 + $0x2788] sm:$0xff]  ;;  %v1753_v28 = vcombine.high %v10301_v11, %v10301_v11 }
 0x255   :  { %5772 = vmatpush1.bf16.msra.mxu1 %v5771_v45  ;;  %4990 = vmatprep.subr.bf16.mxu0 %v4989_v40  ;;  %v5009_v45 = vpack.c.bf16 %v1285_v37, %v1281_v63  ;;  %v1280_v40 = vld [vmem:[%s11699_s1 + $0x2640] sm:$0xff]  ;;  %v1325_v63 = vld [vmem:[%s11699_s1 + $0x27a8] sm:$0xff]  ;;  %v1323_v37 = vld [vmem:[%s11699_s1 + $0x2798] sm:$0xff] }
 0x256   :  { %5774 = vmatprep.subr.bf16.mxu1 %v5773_v26  ;;  %v1286_v26 = vld [vmem:[%s11699_s1 + $0x2670] sm:$0xff]  ;;  %v5011_v56 = vpack.c.bf16 %v1284_v47, %v1280_v40  ;;  %v1324_v40 = vld [vmem:[%s11699_s1 + $0x27a0] sm:$0xff]  ;;  %v1357_v27 = vld [vmem:[%s11699_s1 + $0x28a8] sm:$0xff] }
 0x257   :  { %v1322_v47 = vld [vmem:[%s11699_s1 + $0x2790] sm:$0xff] }
 0x258   :  { %4992 = vmatpush1.bf16.msra.mxu0 %v4991_v57  ;;  %v5795_v57 = vpack.c.bf16 %v1286_v26, %v1282_v48  ;;  %v5813_v48 = vpack.c.bf16 %v1327_v38, %v1323_v37  ;;  %v1329_v26 = vld [vmem:[%s11699_s1 + $0x27c8] sm:$0xff]  ;;  %v1363_v38 = vld [vmem:[%s11699_s1 + $0x28d8] sm:$0xff] }
 0x259   :  { %5776 = vmatpush1.bf16.msra.mxu1 %v5775_v58  ;;  %4994 = vmatprep.subr.bf16.mxu0 %v4993_v59  ;;  %v5013_v58 = vpack.c.bf16 %v1293_v53, %v1289_v49  ;;  %v1288_v59 = vld [vmem:[%s11699_s1 + $0x2680] sm:$0xff]  ;;  %v1333_v49 = vld [vmem:[%s11699_s1 + $0x27e8] sm:$0xff]  ;;  %v1331_v53 = vld [vmem:[%s11699_s1 + $0x27d8] sm:$0xff] }
 0x25a   :  { %5778 = vmatprep.subr.bf16.mxu1 %v5777_v61  ;;  %v1294_v61 = vld [vmem:[%s11699_s1 + $0x26b0] sm:$0xff]  ;;  %v5015_v4 = vpack.c.bf16 %v1292_v25, %v1288_v59  ;;  %v1332_v59 = vld [vmem:[%s11699_s1 + $0x27e0] sm:$0xff]  ;;  %v1365_v37 = vld [vmem:[%s11699_s1 + $0x28e8] sm:$0xff] }
 0x25b   :  { %v1330_v25 = vld [vmem:[%s11699_s1 + $0x27d0] sm:$0xff] }
 0x25c   :  { %4996 = vmatpush1.bf16.msra.mxu0 %v4995_v5  ;;  %v5799_v5 = vpack.c.bf16 %v1294_v61, %v1290_v41  ;;  %v5817_v41 = vpack.c.bf16 %v1335_v54, %v1331_v53  ;;  %v1337_v61 = vld [vmem:[%s11699_s1 + $0x2808] sm:$0xff]  ;;  %v1371_v54 = vld [vmem:[%s11699_s1 + $0x2918] sm:$0xff] }
 0x25d   :  { %5780 = vmatpush1.bf16.msra.mxu1 %v5779_v6  ;;  %4998 = vmatprep.subr.bf16.mxu0 %v4997_v7  ;;  %v5017_v6 = vpack.c.bf16 %v1301_v0, %v1297_v24  ;;  %v1296_v7 = vld [vmem:[%s11699_s1 + $0x26c0] sm:$0xff]  ;;  %v1341_v24 = vld [vmem:[%s11699_s1 + $0x2828] sm:$0xff]  ;;  %v1339_v0 = vld [vmem:[%s11699_s1 + $0x2818] sm:$0xff] }
 0x25e   :  { %5782 = vmatprep.subr.bf16.mxu1 %v5781_v39  ;;  %v1302_v39 = vld [vmem:[%s11699_s1 + $0x26f0] sm:$0xff]  ;;  %v5019_v16 = vpack.c.bf16 %v1300_v52, %v1296_v7  ;;  %v1336_v7 = vld [vmem:[%s11699_s1 + $0x2800] sm:$0xff]  ;;  %v1373_v53 = vld [vmem:[%s11699_s1 + $0x2928] sm:$0xff] }
 0x25f   :  { %v1340_v52 = vld [vmem:[%s11699_s1 + $0x2820] sm:$0xff] }
 0x260   :  { %5000 = vmatpush1.bf16.msra.mxu0 %v4999_v17  ;;  %v5803_v17 = vpack.c.bf16 %v1302_v39, %v1298_v8  ;;  %v1338_v8 = vld [vmem:[%s11699_s1 + $0x2810] sm:$0xff] }
 0x261   :  { %5784 = vmatpush1.bf16.msra.mxu1 %v5783_v18  ;;  %5002 = vmatprep.subr.bf16.mxu0 %v5001_v19  ;;  %v5021_v18 = vpack.c.bf16 %v1309_v10, %v1305_v46  ;;  %v1304_v19 = vld [vmem:[%s11699_s1 + $0x2700] sm:$0xff]  ;;  %v1342_v39 = vld [vmem:[%s11699_s1 + $0x2830] sm:$0xff]  ;;  %v1345_v46 = vld [vmem:[%s11699_s1 + $0x2848] sm:$0xff] }
 0x262   :  { %5786 = vmatprep.subr.bf16.mxu1 %v5785_v22  ;;  %v1310_v22 = vld [vmem:[%s11699_s1 + $0x2730] sm:$0xff]  ;;  %v5023_v29 = vpack.c.bf16 %v1308_v20, %v1304_v19  ;;  %v1349_v10 = vld [vmem:[%s11699_s1 + $0x2868] sm:$0xff]  ;;  %v1344_v20 = vld [vmem:[%s11699_s1 + $0x2840] sm:$0xff] }
 0x263   :  { %v5041_v19 = vpack.c.bf16 %v1349_v10, %v1345_v46  ;;  %v1382_v46 = vld [vmem:[%s11699_s1 + $0x2970] sm:$0xff]  ;;  %v1385_v10 = vld [vmem:[%s11699_s1 + $0x2988] sm:$0xff] }
 0x264   :  { %5004 = vmatpush1.bf16.msra.mxu0 %v5003_v30  ;;  %v5807_v30 = vpack.c.bf16 %v1310_v22, %v1306_v21  ;;  %v1348_v21 = vld [vmem:[%s11699_s1 + $0x2860] sm:$0xff] }
 0x265   :  { %5788 = vmatpush1.bf16.msra.mxu1 %v5787_v31  ;;  %5006 = vmatprep.subr.bf16.mxu0 %v5005_v32  ;;  %v5025_v31 = vpack.c.bf16 %v1317_v50, %v1313_v23  ;;  %v1312_v32 = vld [vmem:[%s11699_s1 + $0x2740] sm:$0xff]  ;;  %v1350_v23 = vld [vmem:[%s11699_s1 + $0x2870] sm:$0xff]  ;;  %v1353_v50 = vld [vmem:[%s11699_s1 + $0x2888] sm:$0xff] }
 0x266   :  { %5790 = vmatprep.subr.bf16.mxu1 %v5789_v35  ;;  %v1318_v35 = vld [vmem:[%s11699_s1 + $0x2770] sm:$0xff]  ;;  %v5027_v42 = vpack.c.bf16 %v1316_v33, %v1312_v32  ;;  %v5045_v33 = vpack.c.bf16 %v1357_v27, %v1353_v50  ;;  %v1393_v27 = vld [vmem:[%s11699_s1 + $0x29c8] sm:$0xff] }
 0x267   :  { %v1390_v50 = vld [vmem:[%s11699_s1 + $0x29b0] sm:$0xff] }
 0x268   :  { %5008 = vmatpush1.bf16.msra.mxu0 %v5007_v43  ;;  %v5811_v43 = vpack.c.bf16 %v1318_v35, %v1314_v34  ;;  %v1352_v34 = vld [vmem:[%s11699_s1 + $0x2880] sm:$0xff]  ;;  %v1354_v35 = vld [vmem:[%s11699_s1 + $0x2890] sm:$0xff] }
 0x269   :  { %5792 = vmatpush1.bf16.msra.mxu1 %v5791_v44  ;;  %5010 = vmatprep.subr.bf16.mxu0 %v5009_v45  ;;  %v5029_v44 = vpack.c.bf16 %v1325_v63, %v1321_v36  ;;  %v1320_v45 = vld [vmem:[%s11699_s1 + $0x2780] sm:$0xff]  ;;  %v1361_v63 = vld [vmem:[%s11699_s1 + $0x28c8] sm:$0xff] }
 0x26a   :  { %5794 = vmatprep.subr.bf16.mxu1 %v5793_v13  ;;  %v1326_v13 = vld [vmem:[%s11699_s1 + $0x27b0] sm:$0xff]  ;;  %v5031_v55 = vpack.c.bf16 %v1324_v40, %v1320_v45  ;;  %v5049_v45 = vpack.c.bf16 %v1365_v37, %v1361_v63  ;;  %v1360_v40 = vld [vmem:[%s11699_s1 + $0x28c0] sm:$0xff]  ;;  %v1401_v63 = vld [vmem:[%s11699_s1 + $0x2a08] sm:$0xff] }
 0x26b   :  { %v1405_v37 = vld [vmem:[%s11699_s1 + $0x2a28] sm:$0xff] }
 0x26c   :  { %5012 = vmatpush1.bf16.msra.mxu0 %v5011_v56  ;;  %v5815_v56 = vpack.c.bf16 %v1326_v13, %v1322_v47  ;;  %v1364_v47 = vld [vmem:[%s11699_s1 + $0x28e0] sm:$0xff] }
 0x26d   :  { %5796 = vmatpush1.bf16.msra.mxu1 %v5795_v57  ;;  %5014 = vmatprep.subr.bf16.mxu0 %v5013_v58  ;;  %v5033_v57 = vpack.c.bf16 %v1333_v49, %v1329_v26  ;;  %v1328_v58 = vld [vmem:[%s11699_s1 + $0x27c0] sm:$0xff]  ;;  %v1366_v26 = vld [vmem:[%s11699_s1 + $0x28f0] sm:$0xff]  ;;  %v1369_v49 = vld [vmem:[%s11699_s1 + $0x2908] sm:$0xff] }
 0x26e   :  { %5798 = vmatprep.subr.bf16.mxu1 %v5797_v60  ;;  %v1334_v60 = vld [vmem:[%s11699_s1 + $0x27f0] sm:$0xff] }
 0x270   :  { %5016 = vmatpush1.bf16.msra.mxu0 %v5015_v4  ;;  %v5035_v4 = vpack.c.bf16 %v1332_v59, %v1328_v58  ;;  %v5053_v58 = vpack.c.bf16 %v1373_v53, %v1369_v49  ;;  %v1368_v59 = vld [vmem:[%s11699_s1 + $0x2900] sm:$0xff]  ;;  %v1409_v49 = vld [vmem:[%s11699_s1 + $0x2a48] sm:$0xff] }
 0x271   :  { %5800 = vmatpush1.bf16.msra.mxu1 %v5799_v5  ;;  %5018 = vmatprep.subr.bf16.mxu0 %v5017_v6  ;;  %v5819_v5 = vpack.c.bf16 %v1334_v60, %v1330_v25  ;;  %v5037_v6 = vpack.c.bf16 %v1341_v24, %v1337_v61  ;;  %v1372_v25 = vld [vmem:[%s11699_s1 + $0x2920] sm:$0xff]  ;;  %v1374_v61 = vld [vmem:[%s11699_s1 + $0x2930] sm:$0xff]  ;;  %v1377_v24 = vld [vmem:[%s11699_s1 + $0x2948] sm:$0xff] }
 0x272   :  { %5802 = vmatprep.subr.bf16.mxu1 %v5801_v9  ;;  %v5821_v9 = vpack.c.bf16 %v1343_v1, %v1339_v0  ;;  %v1381_v0 = vld [vmem:[%s11699_s1 + $0x2968] sm:$0xff]  ;;  %v1379_v1 = vld [vmem:[%s11699_s1 + $0x2958] sm:$0xff] }
 0x273   :  { %v1413_v53 = vld [vmem:[%s11699_s1 + $0x2a68] sm:$0xff] }
 0x274   :  { %5020 = vmatpush1.bf16.msra.mxu0 %v5019_v16  ;;  %v1351_v16 = vld [vmem:[%s11699_s1 + $0x2878] sm:$0xff] }
 0x275   :  { %5804 = vmatpush1.bf16.msra.mxu1 %v5803_v17  ;;  %5022 = vmatprep.subr.bf16.mxu0 %v5021_v18  ;;  %v5039_v17 = vpack.c.bf16 %v1340_v52, %v1336_v7  ;;  %v5823_v18 = vpack.c.bf16 %v1342_v39, %v1338_v8  ;;  %v5825_v22 = vpack.c.bf16 %v1351_v16, %v1347_v15  ;;  %v1376_v52 = vld [vmem:[%s11699_s1 + $0x2940] sm:$0xff]  ;;  %v1389_v15 = vld [vmem:[%s11699_s1 + $0x29a8] sm:$0xff]  ;;  %v1387_v16 = vld [vmem:[%s11699_s1 + $0x2998] sm:$0xff] }
 0x276   :  { %5806 = vmatprep.subr.bf16.mxu1 %v5805_v51  ;;  %v1346_v51 = vld [vmem:[%s11699_s1 + $0x2850] sm:$0xff]  ;;  %v5057_v7 = vpack.c.bf16 %v1381_v0, %v1377_v24  ;;  %v1380_v8 = vld [vmem:[%s11699_s1 + $0x2960] sm:$0xff]  ;;  %v1417_v24 = vld [vmem:[%s11699_s1 + $0x2a88] sm:$0xff] }
 0x277   :  { %v5827_v32 = vpack.c.bf16 %v1350_v23, %v1346_v51  ;;  %v1388_v51 = vld [vmem:[%s11699_s1 + $0x29a0] sm:$0xff]  ;;  %v1421_v0 = vld [vmem:[%s11699_s1 + $0x2aa8] sm:$0xff] }
 0x278   :  { %5024 = vmatpush1.bf16.msra.mxu0 %v5023_v29  ;;  %v1355_v29 = vld [vmem:[%s11699_s1 + $0x2898] sm:$0xff] }
 0x279   :  { %5808 = vmatpush1.bf16.msra.mxu1 %v5807_v30  ;;  %5026 = vmatprep.subr.bf16.mxu0 %v5025_v31  ;;  %v1359_v30 = vld [vmem:[%s11699_s1 + $0x28b8] sm:$0xff]  ;;  %v5043_v31 = vpack.c.bf16 %v1348_v21, %v1344_v20  ;;  %v5061_v20 = vpack.c.bf16 %v1389_v15, %v1385_v10  ;;  %v1384_v21 = vld [vmem:[%s11699_s1 + $0x2980] sm:$0xff]  ;;  %v1425_v10 = vld [vmem:[%s11699_s1 + $0x2ac8] sm:$0xff] }
 0x27a   :  { %5810 = vmatprep.subr.bf16.mxu1 %v5809_v14  ;;  %v1356_v14 = vld [vmem:[%s11699_s1 + $0x28a0] sm:$0xff]  ;;  %v5829_v36 = vpack.c.bf16 %v1359_v30, %v1355_v29  ;;  %v1395_v29 = vld [vmem:[%s11699_s1 + $0x29d8] sm:$0xff]  ;;  %v1429_v15 = vld [vmem:[%s11699_s1 + $0x2ae8] sm:$0xff] }
 0x27b   :  { %v1399_v30 = vld [vmem:[%s11699_s1 + $0x29f8] sm:$0xff] }
 0x27c   :  { %5028 = vmatpush1.bf16.msra.mxu0 %v5027_v42  ;;  %v1367_v42 = vld [vmem:[%s11699_s1 + $0x28f8] sm:$0xff] }
 0x27d   :  { %5812 = vmatpush1.bf16.msra.mxu1 %v5811_v43  ;;  %5030 = vmatprep.subr.bf16.mxu0 %v5029_v44  ;;  %v5047_v43 = vpack.c.bf16 %v1356_v14, %v1352_v34  ;;  %v5833_v13 = vpack.c.bf16 %v1367_v42, %v1363_v38  ;;  %v1392_v34 = vld [vmem:[%s11699_s1 + $0x29c0] sm:$0xff]  ;;  %v1403_v38 = vld [vmem:[%s11699_s1 + $0x2a18] sm:$0xff] }
 0x27e   :  { %5814 = vmatprep.subr.bf16.mxu1 %v5813_v48  ;;  %v1362_v48 = vld [vmem:[%s11699_s1 + $0x28d0] sm:$0xff]  ;;  %v1396_v14 = vld [vmem:[%s11699_s1 + $0x29e0] sm:$0xff]  ;;  %v1407_v42 = vld [vmem:[%s11699_s1 + $0x2a38] sm:$0xff] }
 0x280   :  { %5032 = vmatpush1.bf16.msra.mxu0 %v5031_v55  ;;  %v1375_v55 = vld [vmem:[%s11699_s1 + $0x2938] sm:$0xff] }
 0x281   :  { %5816 = vmatpush1.bf16.msra.mxu1 %v5815_v56  ;;  %5034 = vmatprep.subr.bf16.mxu0 %v5033_v57  ;;  %v5051_v56 = vpack.c.bf16 %v1364_v47, %v1360_v40  ;;  %v5835_v57 = vpack.c.bf16 %v1366_v26, %v1362_v48  ;;  %v5837_v60 = vpack.c.bf16 %v1375_v55, %v1371_v54  ;;  %v1400_v40 = vld [vmem:[%s11699_s1 + $0x2a00] sm:$0xff]  ;;  %v1402_v48 = vld [vmem:[%s11699_s1 + $0x2a10] sm:$0xff]  ;;  %v1411_v54 = vld [vmem:[%s11699_s1 + $0x2a58] sm:$0xff] }
 0x282   :  { %5818 = vmatprep.subr.bf16.mxu1 %v5817_v41  ;;  %v1370_v41 = vld [vmem:[%s11699_s1 + $0x2910] sm:$0xff]  ;;  %v1404_v47 = vld [vmem:[%s11699_s1 + $0x2a20] sm:$0xff]  ;;  %v1415_v55 = vld [vmem:[%s11699_s1 + $0x2a78] sm:$0xff] }
 0x283   :  { %v1406_v26 = vld [vmem:[%s11699_s1 + $0x2a30] sm:$0xff] }
 0x284   :  { %5036 = vmatpush1.bf16.msra.mxu0 %v5035_v4  ;;  %v1383_v4 = vld [vmem:[%s11699_s1 + $0x2978] sm:$0xff] }
 0x285   :  { %5820 = vmatpush1.bf16.msra.mxu1 %v5819_v5  ;;  %5038 = vmatprep.subr.bf16.mxu0 %v5037_v6  ;;  %v5055_v5 = vpack.c.bf16 %v1372_v25, %v1368_v59  ;;  %v5839_v6 = vpack.c.bf16 %v1374_v61, %v1370_v41  ;;  %v5841_v39 = vpack.c.bf16 %v1383_v4, %v1379_v1  ;;  %v1408_v59 = vld [vmem:[%s11699_s1 + $0x2a40] sm:$0xff]  ;;  %v1410_v41 = vld [vmem:[%s11699_s1 + $0x2a50] sm:$0xff]  ;;  %v1419_v1 = vld [vmem:[%s11699_s1 + $0x2a98] sm:$0xff] }
 0x286   :  { %5822 = vmatprep.subr.bf16.mxu1 %v5821_v9  ;;  %v1378_v9 = vld [vmem:[%s11699_s1 + $0x2950] sm:$0xff]  ;;  %v1412_v25 = vld [vmem:[%s11699_s1 + $0x2a60] sm:$0xff]  ;;  %v1423_v4 = vld [vmem:[%s11699_s1 + $0x2ab8] sm:$0xff] }
 0x287   :  { %2493 = vmatmul.mubr.f32.vlgmr.msra.gmra.mrb[0].mxu0 %v9904_v2  ;;  %v1414_v61 = vld [vmem:[%s11699_s1 + $0x2a70] sm:$0xff] }
 0x288   :  { %5040 = vmatpush1.bf16.msra.mxu0 %v5039_v17  ;;  %3416 = vmatmul.mubr.f32.vlgmr.msra.gmra.mrb[0].mxu1 %v9904_v2  ;;  %v1358_v2 = vld [vmem:[%s11699_s1 + $0x28b0] sm:$0xff]  ;;  %v1391_v17 = vld [vmem:[%s11699_s1 + $0x29b8] sm:$0xff] }
 0x289   :  { %5824 = vmatpush1.bf16.msra.mxu1 %v5823_v18  ;;  %5042 = vmatprep.subr.bf16.mxu0 %v5041_v19  ;;  %v5831_v44 = vpack.c.bf16 %v1358_v2, %v1354_v35  ;;  %v5059_v18 = vpack.c.bf16 %v1380_v8, %v1376_v52  ;;  %v5843_v19 = vpack.c.bf16 %v1382_v46, %v1378_v9  ;;  %v1394_v35 = vld [vmem:[%s11699_s1 + $0x29d0] sm:$0xff]  ;;  %v1416_v52 = vld [vmem:[%s11699_s1 + $0x2a80] sm:$0xff] }
 0x28a   :  { %5826 = vmatprep.subr.bf16.mxu1 %v5825_v22  ;;  %2563 = vmatprep.mubr.f32.mxu0 %v1753_v28  ;;  %v1386_v22 = vld [vmem:[%s11699_s1 + $0x2990] sm:$0xff]  ;;  %v5845_v23 = vpack.c.bf16 %v1391_v17, %v1387_v16  ;;  %v1420_v8 = vld [vmem:[%s11699_s1 + $0x2aa0] sm:$0xff]  ;;  %v1427_v16 = vld [vmem:[%s11699_s1 + $0x2ad8] sm:$0xff] }
 0x28b   :  { %3486 = vmatprep.mubr.f32.mxu1 %v1753_v28  ;;  %v1397_v28 = vld [vmem:[%s11699_s1 + $0x29e8] sm:$0xff]  ;;  %v1398_v2 = vld [vmem:[%s11699_s1 + $0x29f0] sm:$0xff]  ;;  %v1431_v17 = vld [vmem:[%s11699_s1 + $0x2af8] sm:$0xff] }
 0x28c   :  { %5044 = vmatpush1.bf16.msra.mxu0 %v5043_v31  ;;  %v5063_v31 = vpack.c.bf16 %v1388_v51, %v1384_v21  ;;  %v1418_v9 = vld [vmem:[%s11699_s1 + $0x2a90] sm:$0xff]  ;;  %v1424_v21 = vld [vmem:[%s11699_s1 + $0x2ac0] sm:$0xff] }
 0x28d   :  { %5828 = vmatpush1.bf16.msra.mxu1 %v5827_v32  ;;  %5046 = vmatprep.subr.bf16.mxu0 %v5045_v33  ;;  %v5847_v32 = vpack.c.bf16 %v1390_v50, %v1386_v22  ;;  %v5065_v33 = vpack.c.bf16 %v1397_v28, %v1393_v27  ;;  %v1422_v46 = vld [vmem:[%s11699_s1 + $0x2ab0] sm:$0xff]  ;;  %v1428_v51 = vld [vmem:[%s11699_s1 + $0x2ae0] sm:$0xff]  ;;  %v1433_v27 = vld [vmem:[%s11699_s1 + $0x2b08] sm:$0xff] }
 0x28e   :  { %5830 = vmatprep.subr.bf16.mxu1 %v5829_v36  ;;  %v5849_v36 = vpack.c.bf16 %v1399_v30, %v1395_v29  ;;  %v1426_v22 = vld [vmem:[%s11699_s1 + $0x2ad0] sm:$0xff]  ;;  %v1437_v28 = vld [vmem:[%s11699_s1 + $0x2b28] sm:$0xff]  ;;  %v1435_v29 = vld [vmem:[%s11699_s1 + $0x2b18] sm:$0xff] }
 0x28f   :  { %v1430_v50 = vld [vmem:[%s11699_s1 + $0x2af0] sm:$0xff]  ;;  %v1439_v30 = vld [vmem:[%s11699_s1 + $0x2b38] sm:$0xff] }
 0x290   :  { %5048 = vmatpush1.bf16.msra.mxu0 %v5047_v43  ;;  %v5067_v43 = vpack.c.bf16 %v1396_v14, %v1392_v34  ;;  %v1432_v34 = vld [vmem:[%s11699_s1 + $0x2b00] sm:$0xff] }
 0x291   :  { %5832 = vmatpush1.bf16.msra.mxu1 %v5831_v44  ;;  %5050 = vmatprep.subr.bf16.mxu0 %v5049_v45  ;;  %v5851_v44 = vpack.c.bf16 %v1398_v2, %v1394_v35  ;;  %v5069_v45 = vpack.c.bf16 %v1405_v37, %v1401_v63  ;;  %v1436_v14 = vld [vmem:[%s11699_s1 + $0x2b20] sm:$0xff]  ;;  %v1434_v35 = vld [vmem:[%s11699_s1 + $0x2b10] sm:$0xff]  ;;  %v1441_v63 = vld [vmem:[%s11699_s1 + $0x2b48] sm:$0xff] }
 0x292   :  { %5834 = vmatprep.subr.bf16.mxu1 %v5833_v13  ;;  %v5853_v13 = vpack.c.bf16 %v1407_v42, %v1403_v38  ;;  %v1438_v2 = vld [vmem:[%s11699_s1 + $0x2b30] sm:$0xff]  ;;  %v1445_v37 = vld [vmem:[%s11699_s1 + $0x2b68] sm:$0xff]  ;;  %v1443_v38 = vld [vmem:[%s11699_s1 + $0x2b58] sm:$0xff] }
 0x293   :  { %v1447_v42 = vld [vmem:[%s11699_s1 + $0x2b78] sm:$0xff] }
 0x294   :  { %5052 = vmatpush1.bf16.msra.mxu0 %v5051_v56  ;;  %v5071_v56 = vpack.c.bf16 %v1404_v47, %v1400_v40  ;;  %v1440_v40 = vld [vmem:[%s11699_s1 + $0x2b40] sm:$0xff] }
 0x295   :  { %5836 = vmatpush1.bf16.msra.mxu1 %v5835_v57  ;;  %5054 = vmatprep.subr.bf16.mxu0 %v5053_v58  ;;  %v5855_v57 = vpack.c.bf16 %v1406_v26, %v1402_v48  ;;  %v5073_v58 = vpack.c.bf16 %v1413_v53, %v1409_v49  ;;  %v1444_v47 = vld [vmem:[%s11699_s1 + $0x2b60] sm:$0xff]  ;;  %v1442_v48 = vld [vmem:[%s11699_s1 + $0x2b50] sm:$0xff]  ;;  %v1449_v49 = vld [vmem:[%s11699_s1 + $0x2b88] sm:$0xff] }
 0x296   :  { %5838 = vmatprep.subr.bf16.mxu1 %v5837_v60  ;;  %v5857_v60 = vpack.c.bf16 %v1415_v55, %v1411_v54  ;;  %v1446_v26 = vld [vmem:[%s11699_s1 + $0x2b70] sm:$0xff]  ;;  %v1453_v53 = vld [vmem:[%s11699_s1 + $0x2ba8] sm:$0xff]  ;;  %v1451_v54 = vld [vmem:[%s11699_s1 + $0x2b98] sm:$0xff] }
 0x297   :  { %v1455_v55 = vld [vmem:[%s11699_s1 + $0x2bb8] sm:$0xff] }
 0x298   :  { %5056 = vmatpush1.bf16.msra.mxu0 %v5055_v5  ;;  %v5075_v5 = vpack.c.bf16 %v1412_v25, %v1408_v59  ;;  %v1448_v59 = vld [vmem:[%s11699_s1 + $0x2b80] sm:$0xff] }
 0x299   :  { %5840 = vmatpush1.bf16.msra.mxu1 %v5839_v6  ;;  %5058 = vmatprep.subr.bf16.mxu0 %v5057_v7  ;;  %v5859_v6 = vpack.c.bf16 %v1414_v61, %v1410_v41  ;;  %v5077_v7 = vpack.c.bf16 %v1421_v0, %v1417_v24  ;;  %v1452_v25 = vld [vmem:[%s11699_s1 + $0x2ba0] sm:$0xff]  ;;  %v1450_v41 = vld [vmem:[%s11699_s1 + $0x2b90] sm:$0xff]  ;;  %v1457_v24 = vld [vmem:[%s11699_s1 + $0x2bc8] sm:$0xff] }
 0x29a   :  { %5842 = vmatprep.subr.bf16.mxu1 %v5841_v39  ;;  %v5861_v39 = vpack.c.bf16 %v1423_v4, %v1419_v1  ;;  %v1454_v61 = vld [vmem:[%s11699_s1 + $0x2bb0] sm:$0xff]  ;;  %v1461_v0 = vld [vmem:[%s11699_s1 + $0x2be8] sm:$0xff]  ;;  %v1459_v1 = vld [vmem:[%s11699_s1 + $0x2bd8] sm:$0xff] }
 0x29b   :  { %v1463_v4 = vld [vmem:[%s11699_s1 + $0x2bf8] sm:$0xff] }
 0x29c   :  { %5060 = vmatpush1.bf16.msra.mxu0 %v5059_v18  ;;  %v5079_v18 = vpack.c.bf16 %v1420_v8, %v1416_v52  ;;  %v1456_v52 = vld [vmem:[%s11699_s1 + $0x2bc0] sm:$0xff] }
 0x29d   :  { %5844 = vmatpush1.bf16.msra.mxu1 %v5843_v19  ;;  %5062 = vmatprep.subr.bf16.mxu0 %v5061_v20  ;;  %v5863_v19 = vpack.c.bf16 %v1422_v46, %v1418_v9  ;;  %v5081_v20 = vpack.c.bf16 %v1429_v15, %v1425_v10  ;;  %v1460_v8 = vld [vmem:[%s11699_s1 + $0x2be0] sm:$0xff]  ;;  %v1458_v9 = vld [vmem:[%s11699_s1 + $0x2bd0] sm:$0xff]  ;;  %v1465_v10 = vld [vmem:[%s11699_s1 + $0x2c08] sm:$0xff] }
 0x29e   :  { %5846 = vmatprep.subr.bf16.mxu1 %v5845_v23  ;;  %v5865_v23 = vpack.c.bf16 %v1431_v17, %v1427_v16  ;;  %v1462_v46 = vld [vmem:[%s11699_s1 + $0x2bf0] sm:$0xff]  ;;  %v1469_v15 = vld [vmem:[%s11699_s1 + $0x2c28] sm:$0xff]  ;;  %v1738_v16 = vcombine.high %v10279_v3, %v10279_v3  ;;  %v1467_v17 = vld [vmem:[%s11699_s1 + $0x2c18] sm:$0xff] }
 0x29f   :  { %v1468_v3 = vld [vmem:[%s11699_s1 + $0x2c20] sm:$0xff] }
 0x2a0   :  { %5064 = vmatpush1.bf16.msra.mxu0 %v5063_v31  ;;  %v5083_v31 = vpack.c.bf16 %v1428_v51, %v1424_v21  ;;  %v5101_v21 = vpack.c.bf16 %v1469_v15, %v1465_v10  ;;  %v1464_v51 = vld [vmem:[%s11699_s1 + $0x2c00] sm:$0xff]  ;;  %v1505_v10 = vld [vmem:[%s11699_s1 + $0x2d48] sm:$0xff] }
 0x2a1   :  { %5848 = vmatpush1.bf16.msra.mxu1 %v5847_v32  ;;  %5066 = vmatprep.subr.bf16.mxu0 %v5065_v33  ;;  %v5867_v32 = vpack.c.bf16 %v1430_v50, %v1426_v22  ;;  %v5085_v33 = vpack.c.bf16 %v1437_v28, %v1433_v27  ;;  %v1466_v22 = vld [vmem:[%s11699_s1 + $0x2c10] sm:$0xff]  ;;  %v1473_v27 = vld [vmem:[%s11699_s1 + $0x2c48] sm:$0xff] }
 0x2a2   :  { %5850 = vmatprep.subr.bf16.mxu1 %v5849_v36  ;;  %v5869_v36 = vpack.c.bf16 %v1439_v30, %v1435_v29  ;;  %v1470_v50 = vld [vmem:[%s11699_s1 + $0x2c30] sm:$0xff]  ;;  %v1477_v28 = vld [vmem:[%s11699_s1 + $0x2c68] sm:$0xff]  ;;  %v10694_v29 = vrot.slane %v1738_v16, %v6590_v12  ;;  %v1475_v30 = vld [vmem:[%s11699_s1 + $0x2c58] sm:$0xff] }
 0x2a3   :  { %v1476_v12 = vld [vmem:[%s11699_s1 + $0x2c60] sm:$0xff]  ;;  %v1509_v15 = vld [vmem:[%s11699_s1 + $0x2d68] sm:$0xff]  ;;  %v1507_v16 = vld [vmem:[%s11699_s1 + $0x2d58] sm:$0xff] }
 0x2a4   :  { %5068 = vmatpush1.bf16.msra.mxu0 %v5067_v43  ;;  %v5087_v43 = vpack.c.bf16 %v1436_v14, %v1432_v34  ;;  %v5105_v34 = vpack.c.bf16 %v1477_v28, %v1473_v27  ;;  %v1472_v14 = vld [vmem:[%s11699_s1 + $0x2c40] sm:$0xff]  ;;  %v1517_v27 = vld [vmem:[%s11699_s1 + $0x2da8] sm:$0xff]  ;;  %v1515_v28 = vld [vmem:[%s11699_s1 + $0x2d98] sm:$0xff] }
 0x2a5   :  { %5852 = vmatpush1.bf16.msra.mxu1 %v5851_v44  ;;  %5070 = vmatprep.subr.bf16.mxu0 %v5069_v45  ;;  %v5871_v44 = vpack.c.bf16 %v1438_v2, %v1434_v35  ;;  %v5089_v45 = vpack.c.bf16 %v1445_v37, %v1441_v63  ;;  %v1474_v35 = vld [vmem:[%s11699_s1 + $0x2c50] sm:$0xff]  ;;  %v1481_v63 = vld [vmem:[%s11699_s1 + $0x2c88] sm:$0xff] }
 0x2a6   :  { %5854 = vmatprep.subr.bf16.mxu1 %v5853_v13  ;;  %v5873_v13 = vpack.c.bf16 %v1447_v42, %v1443_v38  ;;  %v1478_v2 = vld [vmem:[%s11699_s1 + $0x2c70] sm:$0xff]  ;;  %v1485_v37 = vld [vmem:[%s11699_s1 + $0x2ca8] sm:$0xff]  ;;  %v1754_v38 = vcombine.high %v10694_v29, %v10694_v29  ;;  %v1483_v42 = vld [vmem:[%s11699_s1 + $0x2c98] sm:$0xff] }
 0x2a8   :  { %5072 = vmatpush1.bf16.msra.mxu0 %v5071_v56  ;;  %v5091_v56 = vpack.c.bf16 %v1444_v47, %v1440_v40  ;;  %v5109_v40 = vpack.c.bf16 %v1485_v37, %v1481_v63  ;;  %v1480_v47 = vld [vmem:[%s11699_s1 + $0x2c80] sm:$0xff]  ;;  %v1525_v63 = vld [vmem:[%s11699_s1 + $0x2de8] sm:$0xff]  ;;  %v1523_v37 = vld [vmem:[%s11699_s1 + $0x2dd8] sm:$0xff] }
 0x2a9   :  { %5856 = vmatpush1.bf16.msra.mxu1 %v5855_v57  ;;  %5074 = vmatprep.subr.bf16.mxu0 %v5073_v58  ;;  %v5875_v57 = vpack.c.bf16 %v1446_v26, %v1442_v48  ;;  %v5093_v58 = vpack.c.bf16 %v1453_v53, %v1449_v49  ;;  %v1484_v48 = vld [vmem:[%s11699_s1 + $0x2ca0] sm:$0xff]  ;;  %v1489_v49 = vld [vmem:[%s11699_s1 + $0x2cc8] sm:$0xff] }
 0x2aa   :  { %5858 = vmatprep.subr.bf16.mxu1 %v5857_v60  ;;  %v5877_v60 = vpack.c.bf16 %v1455_v55, %v1451_v54  ;;  %v1493_v53 = vld [vmem:[%s11699_s1 + $0x2ce8] sm:$0xff]  ;;  %v1491_v54 = vld [vmem:[%s11699_s1 + $0x2cd8] sm:$0xff] }
 0x2ab   :  { %v1495_v55 = vld [vmem:[%s11699_s1 + $0x2cf8] sm:$0xff] }
 0x2ac   :  { %5076 = vmatpush1.bf16.msra.mxu0 %v5075_v5  ;;  %v5095_v5 = vpack.c.bf16 %v1452_v25, %v1448_v59  ;;  %v1488_v59 = vld [vmem:[%s11699_s1 + $0x2cc0] sm:$0xff] }
 0x2ad   :  { %5860 = vmatpush1.bf16.msra.mxu1 %v5859_v6  ;;  %5078 = vmatprep.subr.bf16.mxu0 %v5077_v7  ;;  %v5879_v6 = vpack.c.bf16 %v1454_v61, %v1450_v41  ;;  %v5097_v7 = vpack.c.bf16 %v1461_v0, %v1457_v24  ;;  %v1492_v25 = vld [vmem:[%s11699_s1 + $0x2ce0] sm:$0xff]  ;;  %v1490_v41 = vld [vmem:[%s11699_s1 + $0x2cd0] sm:$0xff]  ;;  %v1497_v24 = vld [vmem:[%s11699_s1 + $0x2d08] sm:$0xff] }
 0x2ae   :  { %5862 = vmatprep.subr.bf16.mxu1 %v5861_v39  ;;  %v5881_v39 = vpack.c.bf16 %v1463_v4, %v1459_v1  ;;  %v1494_v61 = vld [vmem:[%s11699_s1 + $0x2cf0] sm:$0xff]  ;;  %v1501_v0 = vld [vmem:[%s11699_s1 + $0x2d28] sm:$0xff]  ;;  %v1499_v1 = vld [vmem:[%s11699_s1 + $0x2d18] sm:$0xff] }
 0x2af   :  { %v1503_v4 = vld [vmem:[%s11699_s1 + $0x2d38] sm:$0xff] }
 0x2b0   :  { %5080 = vmatpush1.bf16.msra.mxu0 %v5079_v18  ;;  %v1471_v18 = vld [vmem:[%s11699_s1 + $0x2c38] sm:$0xff] }
 0x2b1   :  { %5864 = vmatpush1.bf16.msra.mxu1 %v5863_v19  ;;  %5082 = vmatprep.subr.bf16.mxu0 %v5081_v20  ;;  %v5099_v19 = vpack.c.bf16 %v1460_v8, %v1456_v52  ;;  %v5883_v20 = vpack.c.bf16 %v1462_v46, %v1458_v9  ;;  %v1496_v52 = vld [vmem:[%s11699_s1 + $0x2d00] sm:$0xff]  ;;  %v1498_v9 = vld [vmem:[%s11699_s1 + $0x2d10] sm:$0xff] }
 0x2b2   :  { %5866 = vmatprep.subr.bf16.mxu1 %v5865_v23  ;;  %v5885_v23 = vpack.c.bf16 %v1471_v18, %v1467_v17  ;;  %v1500_v8 = vld [vmem:[%s11699_s1 + $0x2d20] sm:$0xff]  ;;  %v1502_v46 = vld [vmem:[%s11699_s1 + $0x2d30] sm:$0xff]  ;;  %v1511_v17 = vld [vmem:[%s11699_s1 + $0x2d78] sm:$0xff] }
 0x2b3   :  { %v5119_v18 = vpack.c.bf16 %v1500_v8, %v1496_v52  ;;  %v1538_v52 = vld [vmem:[%s11699_s1 + $0x2e50] sm:$0xff] }
 0x2b4   :  { %5084 = vmatpush1.bf16.msra.mxu0 %v5083_v31  ;;  %v1479_v31 = vld [vmem:[%s11699_s1 + $0x2c78] sm:$0xff] }
 0x2b5   :  { %5868 = vmatpush1.bf16.msra.mxu1 %v5867_v32  ;;  %5086 = vmatprep.subr.bf16.mxu0 %v5085_v33  ;;  %v5103_v32 = vpack.c.bf16 %v1468_v3, %v1464_v51  ;;  %v5887_v33 = vpack.c.bf16 %v1470_v50, %v1466_v22  ;;  %v1508_v51 = vld [vmem:[%s11699_s1 + $0x2d60] sm:$0xff]  ;;  %v1506_v3 = vld [vmem:[%s11699_s1 + $0x2d50] sm:$0xff]  ;;  %v5905_v22 = vpack.c.bf16 %v1511_v17, %v1507_v16  ;;  %v1513_v50 = vld [vmem:[%s11699_s1 + $0x2d88] sm:$0xff] }
 0x2b6   :  { %5870 = vmatprep.subr.bf16.mxu1 %v5869_v36  ;;  %v5889_v36 = vpack.c.bf16 %v1479_v31, %v1475_v30  ;;  %v1519_v30 = vld [vmem:[%s11699_s1 + $0x2db8] sm:$0xff] }
 0x2b8   :  { %5088 = vmatpush1.bf16.msra.mxu0 %v5087_v43  ;;  %v1487_v43 = vld [vmem:[%s11699_s1 + $0x2cb8] sm:$0xff] }
 0x2b9   :  { %5872 = vmatpush1.bf16.msra.mxu1 %v5871_v44  ;;  %5090 = vmatprep.subr.bf16.mxu0 %v5089_v45  ;;  %v5107_v44 = vpack.c.bf16 %v1476_v12, %v1472_v14  ;;  %v5891_v45 = vpack.c.bf16 %v1478_v2, %v1474_v35  ;;  %v5893_v26 = vpack.c.bf16 %v1487_v43, %v1483_v42  ;;  %v1516_v14 = vld [vmem:[%s11699_s1 + $0x2da0] sm:$0xff]  ;;  %v1514_v12 = vld [vmem:[%s11699_s1 + $0x2d90] sm:$0xff]  ;;  %v1521_v2 = vld [vmem:[%s11699_s1 + $0x2dc8] sm:$0xff] }
 0x2ba   :  { %5874 = vmatprep.subr.bf16.mxu1 %v5873_v13  ;;  %v1482_v13 = vld [vmem:[%s11699_s1 + $0x2c90] sm:$0xff]  ;;  %v5909_v35 = vpack.c.bf16 %v1519_v30, %v1515_v28 }
 0x2bc   :  { %5092 = vmatpush1.bf16.msra.mxu0 %v5091_v56  ;;  %v5111_v56 = vpack.c.bf16 %v1484_v48, %v1480_v47  ;;  %v1522_v47 = vld [vmem:[%s11699_s1 + $0x2dd0] sm:$0xff] }
 0x2bd   :  { %5876 = vmatpush1.bf16.msra.mxu1 %v5875_v57  ;;  %5094 = vmatprep.subr.bf16.mxu0 %v5093_v58  ;;  %v5113_v58 = vpack.c.bf16 %v1493_v53, %v1489_v49  ;;  %v1531_v49 = vld [vmem:[%s11699_s1 + $0x2e18] sm:$0xff] }
 0x2be   :  { %5878 = vmatprep.subr.bf16.mxu1 %v5877_v60  ;;  %v5897_v60 = vpack.c.bf16 %v1495_v55, %v1491_v54  ;;  %v1535_v53 = vld [vmem:[%s11699_s1 + $0x2e38] sm:$0xff] }
 0x2c0   :  { %5096 = vmatpush1.bf16.msra.mxu0 %v5095_v5  ;;  %v5115_v5 = vpack.c.bf16 %v1492_v25, %v1488_v59  ;;  %v1530_v59 = vld [vmem:[%s11699_s1 + $0x2e10] sm:$0xff]  ;;  %v5917_v25 = vpack.c.bf16 %v1535_v53, %v1531_v49 }
 0x2c1   :  { %5880 = vmatpush1.bf16.msra.mxu1 %v5879_v6  ;;  %5098 = vmatprep.subr.bf16.mxu0 %v5097_v7  ;;  %v5899_v6 = vpack.c.bf16 %v1494_v61, %v1490_v41  ;;  %v5117_v7 = vpack.c.bf16 %v1501_v0, %v1497_v24  ;;  %v1534_v41 = vld [vmem:[%s11699_s1 + $0x2e30] sm:$0xff]  ;;  %v1541_v61 = vld [vmem:[%s11699_s1 + $0x2e68] sm:$0xff]  ;;  %v1539_v24 = vld [vmem:[%s11699_s1 + $0x2e58] sm:$0xff] }
 0x2c2   :  { %5882 = vmatprep.subr.bf16.mxu1 %v5881_v39  ;;  %v5901_v39 = vpack.c.bf16 %v1503_v4, %v1499_v1  ;;  %v1543_v0 = vld [vmem:[%s11699_s1 + $0x2e78] sm:$0xff]  ;;  %v5919_v4 = vpack.c.bf16 %v1534_v41, %v1530_v59  ;;  %v1574_v59 = vld [vmem:[%s11699_s1 + $0x2f70] sm:$0xff]  ;;  %v1581_v41 = vld [vmem:[%s11699_s1 + $0x2fa8] sm:$0xff] }
 0x2c3   :  { %v5921_v8 = vpack.c.bf16 %v1543_v0, %v1539_v24 }
 0x2c4   :  { %5100 = vmatpush1.bf16.msra.mxu0 %v5099_v19  ;;  %v5903_v19 = vpack.c.bf16 %v1502_v46, %v1498_v9  ;;  %v1542_v9 = vld [vmem:[%s11699_s1 + $0x2e70] sm:$0xff]  ;;  %v1549_v46 = vld [vmem:[%s11699_s1 + $0x2ea8] sm:$0xff] }
 0x2c5   :  { %5884 = vmatpush1.bf16.msra.mxu1 %v5883_v20  ;;  %5102 = vmatprep.subr.bf16.mxu0 %v5101_v21  ;;  %v5121_v20 = vpack.c.bf16 %v1509_v15, %v1505_v10  ;;  %v1504_v21 = vld [vmem:[%s11699_s1 + $0x2d40] sm:$0xff]  ;;  %v1547_v10 = vld [vmem:[%s11699_s1 + $0x2e98] sm:$0xff]  ;;  %v5923_v17 = vpack.c.bf16 %v1542_v9, %v1538_v52  ;;  %v1582_v52 = vld [vmem:[%s11699_s1 + $0x2fb0] sm:$0xff] }
 0x2c6   :  { %5886 = vmatprep.subr.bf16.mxu1 %v5885_v23  ;;  %v1510_v23 = vld [vmem:[%s11699_s1 + $0x2d70] sm:$0xff]  ;;  %v5123_v31 = vpack.c.bf16 %v1508_v51, %v1504_v21  ;;  %v1551_v15 = vld [vmem:[%s11699_s1 + $0x2eb8] sm:$0xff]  ;;  %v1589_v9 = vld [vmem:[%s11699_s1 + $0x2fe8] sm:$0xff] }
 0x2c7   :  { %2564 = vmatmul.mubr.f32.vlgmr.msra.gmra.mrb[0].mxu0 %v10301_v11  ;;  %v1546_v21 = vld [vmem:[%s11699_s1 + $0x2e90] sm:$0xff]  ;;  %v5925_v51 = vpack.c.bf16 %v1551_v15, %v1547_v10 }
 0x2c8   :  { %5104 = vmatpush1.bf16.msra.mxu0 %v5103_v32  ;;  %3487 = vmatmul.mubr.f32.vlgmr.msra.gmra.mrb[0].mxu1 %v10301_v11  ;;  %v1486_v11 = vld [vmem:[%s11699_s1 + $0x2cb0] sm:$0xff]  ;;  %v5907_v32 = vpack.c.bf16 %v1510_v23, %v1506_v3  ;;  %v1557_v23 = vld [vmem:[%s11699_s1 + $0x2ee8] sm:$0xff] }
 0x2c9   :  { %5888 = vmatpush1.bf16.msra.mxu1 %v5887_v33  ;;  %5106 = vmatprep.subr.bf16.mxu0 %v5105_v34  ;;  %v5895_v57 = vpack.c.bf16 %v1486_v11, %v1482_v13  ;;  %v5125_v33 = vpack.c.bf16 %v1517_v27, %v1513_v50  ;;  %v1512_v34 = vld [vmem:[%s11699_s1 + $0x2d80] sm:$0xff]  ;;  %v1526_v13 = vld [vmem:[%s11699_s1 + $0x2df0] sm:$0xff]  ;;  %v1533_v11 = vld [vmem:[%s11699_s1 + $0x2e28] sm:$0xff] }
 0x2ca   :  { %5890 = vmatprep.subr.bf16.mxu1 %v5889_v36  ;;  %2634 = vmatprep.mubr.f32.mxu0 %v1754_v38  ;;  %v1518_v36 = vld [vmem:[%s11699_s1 + $0x2db0] sm:$0xff]  ;;  %v5127_v42 = vpack.c.bf16 %v1516_v14, %v1512_v34  ;;  %v5915_v55 = vpack.c.bf16 %v1526_v13, %v1522_v47  ;;  %v1555_v50 = vld [vmem:[%s11699_s1 + $0x2ed8] sm:$0xff]  ;;  %v1573_v13 = vld [vmem:[%s11699_s1 + $0x2f68] sm:$0xff] }
 0x2cb   :  { %3557 = vmatprep.mubr.f32.mxu1 %v1754_v38  ;;  %v1527_v38 = vld [vmem:[%s11699_s1 + $0x2df8] sm:$0xff]  ;;  %v5911_v43 = vpack.c.bf16 %v1518_v36, %v1514_v12  ;;  %v1550_v3 = vld [vmem:[%s11699_s1 + $0x2eb0] sm:$0xff]  ;;  %v1565_v36 = vld [vmem:[%s11699_s1 + $0x2f28] sm:$0xff] }
 0x2cc   :  { %5108 = vmatpush1.bf16.msra.mxu0 %v5107_v44  ;;  %v5129_v44 = vpack.c.bf16 %v1525_v63, %v1521_v2  ;;  %v5913_v48 = vpack.c.bf16 %v1527_v38, %v1523_v37  ;;  %v1559_v27 = vld [vmem:[%s11699_s1 + $0x2ef8] sm:$0xff]  ;;  %v5927_v30 = vpack.c.bf16 %v1550_v3, %v1546_v21  ;;  %v1554_v34 = vld [vmem:[%s11699_s1 + $0x2ed0] sm:$0xff]  ;;  %v1597_v3 = vld [vmem:[%s11699_s1 + $0x3028] sm:$0xff] }
 0x2cd   :  { %5892 = vmatpush1.bf16.msra.mxu1 %v5891_v45  ;;  %5110 = vmatprep.subr.bf16.mxu0 %v5109_v40  ;;  %v1520_v45 = vld [vmem:[%s11699_s1 + $0x2dc0] sm:$0xff]  ;;  %v5929_v14 = vpack.c.bf16 %v1559_v27, %v1555_v50  ;;  %v1558_v12 = vld [vmem:[%s11699_s1 + $0x2ef0] sm:$0xff]  ;;  %v1563_v2 = vld [vmem:[%s11699_s1 + $0x2f18] sm:$0xff] }
 0x2ce   :  { %5894 = vmatprep.subr.bf16.mxu1 %v5893_v26  ;;  %v1524_v40 = vld [vmem:[%s11699_s1 + $0x2de0] sm:$0xff]  ;;  %v1529_v26 = vld [vmem:[%s11699_s1 + $0x2e08] sm:$0xff]  ;;  %v1567_v63 = vld [vmem:[%s11699_s1 + $0x2f38] sm:$0xff]  ;;  %v5931_v38 = vpack.c.bf16 %v1558_v12, %v1554_v34 }
 0x2cf   :  { %v5131_v54 = vpack.c.bf16 %v1524_v40, %v1520_v45  ;;  %v1562_v45 = vld [vmem:[%s11699_s1 + $0x2f10] sm:$0xff]  ;;  %v5933_v40 = vpack.c.bf16 %v1567_v63, %v1563_v2  ;;  %v1605_v12 = vld [vmem:[%s11699_s1 + $0x3068] sm:$0xff] }
 0x2d0   :  { %5112 = vmatpush1.bf16.msra.mxu0 %v5111_v56  ;;  %v5133_v56 = vpack.c.bf16 %v1533_v11, %v1529_v26  ;;  %v1566_v47 = vld [vmem:[%s11699_s1 + $0x2f30] sm:$0xff]  ;;  %v1571_v26 = vld [vmem:[%s11699_s1 + $0x2f58] sm:$0xff] }
 0x2d1   :  { %5896 = vmatpush1.bf16.msra.mxu1 %v5895_v57  ;;  %5114 = vmatprep.subr.bf16.mxu0 %v5113_v58  ;;  %v1528_v57 = vld [vmem:[%s11699_s1 + $0x2e00] sm:$0xff]  ;;  %v1575_v11 = vld [vmem:[%s11699_s1 + $0x2f78] sm:$0xff]  ;;  %v5935_v53 = vpack.c.bf16 %v1566_v47, %v1562_v45  ;;  %v1590_v21 = vld [vmem:[%s11699_s1 + $0x2ff0] sm:$0xff] }
 0x2d2   :  { %5898 = vmatprep.subr.bf16.mxu1 %v5897_v60  ;;  %v1532_v58 = vld [vmem:[%s11699_s1 + $0x2e20] sm:$0xff]  ;;  %v1537_v60 = vld [vmem:[%s11699_s1 + $0x2e48] sm:$0xff]  ;;  %v1598_v34 = vld [vmem:[%s11699_s1 + $0x3030] sm:$0xff] }
 0x2d3   :  { %v5135_v1 = vpack.c.bf16 %v1532_v58, %v1528_v57  ;;  %v1570_v57 = vld [vmem:[%s11699_s1 + $0x2f50] sm:$0xff]  ;;  %v5937_v58 = vpack.c.bf16 %v1575_v11, %v1571_v26  ;;  %v1613_v47 = vld [vmem:[%s11699_s1 + $0x30a8] sm:$0xff] }
 0x2d4   :  { %5116 = vmatpush1.bf16.msra.mxu0 %v5115_v5  ;;  %v5137_v5 = vpack.c.bf16 %v1541_v61, %v1537_v60  ;;  %v1579_v60 = vld [vmem:[%s11699_s1 + $0x2f98] sm:$0xff]  ;;  %v5939_v0 = vpack.c.bf16 %v1574_v59, %v1570_v57  ;;  %v1606_v45 = vld [vmem:[%s11699_s1 + $0x3070] sm:$0xff]  ;;  %v1617_v57 = vld [vmem:[%s11699_s1 + $0x30c8] sm:$0xff]  ;;  %v6229_v59 = vmov 0.0  }
 0x2d5   :  { %5900 = vmatpush1.bf16.msra.mxu1 %v5899_v6  ;;  %5118 = vmatprep.subr.bf16.mxu0 %v5117_v7  ;;  %v1536_v6 = vld [vmem:[%s11699_s1 + $0x2e40] sm:$0xff]  ;;  %v1583_v61 = vld [vmem:[%s11699_s1 + $0x2fb8] sm:$0xff] }
 0x2d6   :  { %5902 = vmatprep.subr.bf16.mxu1 %v5901_v39  ;;  %v1540_v7 = vld [vmem:[%s11699_s1 + $0x2e60] sm:$0xff]  ;;  %v1545_v39 = vld [vmem:[%s11699_s1 + $0x2e88] sm:$0xff] }
 0x2d7   :  { %v5139_v16 = vpack.c.bf16 %v1540_v7, %v1536_v6  ;;  %v1578_v6 = vld [vmem:[%s11699_s1 + $0x2f90] sm:$0xff]  ;;  %v5941_v7 = vpack.c.bf16 %v1583_v61, %v1579_v60 }
 0x2d8   :  { %5120 = vmatpush1.bf16.msra.mxu0 %v5119_v18  ;;  %v5141_v18 = vpack.c.bf16 %v1549_v46, %v1545_v39  ;;  %v1587_v39 = vld [vmem:[%s11699_s1 + $0x2fd8] sm:$0xff]  ;;  %v5943_v15 = vpack.c.bf16 %v1582_v52, %v1578_v6  ;;  %v1622_v6 = vld [vmem:[%s11699_s1 + $0x30f0] sm:$0xff] }
 0x2d9   :  { %5904 = vmatpush1.bf16.msra.mxu1 %v5903_v19  ;;  %5122 = vmatprep.subr.bf16.mxu0 %v5121_v20  ;;  %v1544_v19 = vld [vmem:[%s11699_s1 + $0x2e80] sm:$0xff]  ;;  %v1591_v46 = vld [vmem:[%s11699_s1 + $0x2ff8] sm:$0xff] }
 0x2da   :  { %5906 = vmatprep.subr.bf16.mxu1 %v5905_v22  ;;  %v1548_v20 = vld [vmem:[%s11699_s1 + $0x2ea0] sm:$0xff]  ;;  %v1553_v22 = vld [vmem:[%s11699_s1 + $0x2ec8] sm:$0xff]  ;;  %v3642_v52 = vld [vmem:[%s11701_s3 + $0x18] sm:$0xff] }
 0x2db   :  { %v5143_v28 = vpack.c.bf16 %v1548_v20, %v1544_v19  ;;  %v1586_v19 = vld [vmem:[%s11699_s1 + $0x2fd0] sm:$0xff]  ;;  %v5945_v20 = vpack.c.bf16 %v1591_v46, %v1587_v39  ;;  %v3639_v46 = vld [vmem:[%s11701_s3] sm:$0xff] }
 0x2dc   :  { %5124 = vmatpush1.bf16.msra.mxu0 %v5123_v31  ;;  %v5145_v31 = vpack.c.bf16 %v1557_v23, %v1553_v22  ;;  %v1595_v22 = vld [vmem:[%s11699_s1 + $0x3018] sm:$0xff]  ;;  %v5947_v27 = vpack.c.bf16 %v1590_v21, %v1586_v19  ;;  %v3645_v21 = vld [vmem:[%s11701_s3 + $0x30] sm:$0xff] }
 0x2dd   :  { %5908 = vmatpush1.bf16.msra.mxu1 %v5907_v32  ;;  %5126 = vmatprep.subr.bf16.mxu0 %v5125_v33  ;;  %v1552_v32 = vld [vmem:[%s11699_s1 + $0x2ec0] sm:$0xff]  ;;  %v1599_v23 = vld [vmem:[%s11699_s1 + $0x3038] sm:$0xff] }
 0x2de   :  { %5910 = vmatprep.subr.bf16.mxu1 %v5909_v35  ;;  %v1556_v33 = vld [vmem:[%s11699_s1 + $0x2ee0] sm:$0xff]  ;;  %v1561_v35 = vld [vmem:[%s11699_s1 + $0x2f08] sm:$0xff] }
 0x2df   :  { %v5147_v37 = vpack.c.bf16 %v1556_v33, %v1552_v32  ;;  %v1594_v32 = vld [vmem:[%s11699_s1 + $0x3010] sm:$0xff]  ;;  %v5949_v33 = vpack.c.bf16 %v1599_v23, %v1595_v22 }
 0x2e0   :  { %5128 = vmatpush1.bf16.msra.mxu0 %v5127_v42  ;;  %v5149_v42 = vpack.c.bf16 %v1565_v36, %v1561_v35  ;;  %v1603_v35 = vld [vmem:[%s11699_s1 + $0x3058] sm:$0xff]  ;;  %v5951_v63 = vpack.c.bf16 %v1598_v34, %v1594_v32  ;;  %v3653_v34 = vld [vmem:[%s11701_s3 + $0x70] sm:$0xff] }
 0x2e1   :  { %5912 = vmatpush1.bf16.msra.mxu1 %v5911_v43  ;;  %5130 = vmatprep.subr.bf16.mxu0 %v5129_v44  ;;  %v1560_v43 = vld [vmem:[%s11699_s1 + $0x2f00] sm:$0xff]  ;;  %v1607_v36 = vld [vmem:[%s11699_s1 + $0x3078] sm:$0xff] }
 0x2e2   :  { %5914 = vmatprep.subr.bf16.mxu1 %v5913_v48  ;;  %v1564_v44 = vld [vmem:[%s11699_s1 + $0x2f20] sm:$0xff]  ;;  %v1569_v48 = vld [vmem:[%s11699_s1 + $0x2f48] sm:$0xff] }
 0x2e3   :  { %v5151_v49 = vpack.c.bf16 %v1564_v44, %v1560_v43  ;;  %v1602_v43 = vld [vmem:[%s11699_s1 + $0x3050] sm:$0xff]  ;;  %v5953_v44 = vpack.c.bf16 %v1607_v36, %v1603_v35 }
 0x2e4   :  { %5132 = vmatpush1.bf16.msra.mxu0 %v5131_v54  ;;  %v5153_v54 = vpack.c.bf16 %v1573_v13, %v1569_v48  ;;  %v1611_v48 = vld [vmem:[%s11699_s1 + $0x3098] sm:$0xff]  ;;  %v5955_v11 = vpack.c.bf16 %v1606_v45, %v1602_v43  ;;  %v3661_v45 = vld [vmem:[%s11701_s3 + $0xb0] sm:$0xff] }
 0x2e5   :  { %5916 = vmatpush1.bf16.msra.mxu1 %v5915_v55  ;;  %5134 = vmatprep.subr.bf16.mxu0 %v5133_v56  ;;  %v1568_v55 = vld [vmem:[%s11699_s1 + $0x2f40] sm:$0xff]  ;;  %v1615_v13 = vld [vmem:[%s11699_s1 + $0x30b8] sm:$0xff] }
 0x2e6   :  { %5918 = vmatprep.subr.bf16.mxu1 %v5917_v25  ;;  %v1572_v56 = vld [vmem:[%s11699_s1 + $0x2f60] sm:$0xff]  ;;  %v1577_v25 = vld [vmem:[%s11699_s1 + $0x2f88] sm:$0xff] }
 0x2e7   :  { %v5155_v24 = vpack.c.bf16 %v1572_v56, %v1568_v55  ;;  %v1610_v55 = vld [vmem:[%s11699_s1 + $0x3090] sm:$0xff]  ;;  %v5957_v56 = vpack.c.bf16 %v1615_v13, %v1611_v48 }
 0x2e8   :  { %5136 = vmatpush1.bf16.msra.mxu0 %v5135_v1  ;;  %v5157_v1 = vpack.c.bf16 %v1581_v41, %v1577_v25  ;;  %v1619_v25 = vld [vmem:[%s11699_s1 + $0x30d8] sm:$0xff] }
 0x2e9   :  { %5920 = vmatpush1.bf16.msra.mxu1 %v5919_v4  ;;  %5138 = vmatprep.subr.bf16.mxu0 %v5137_v5  ;;  %v1576_v4 = vld [vmem:[%s11699_s1 + $0x2f80] sm:$0xff]  ;;  %v1623_v41 = vld [vmem:[%s11699_s1 + $0x30f8] sm:$0xff] }
 0x2ea   :  { %5922 = vmatprep.subr.bf16.mxu1 %v5921_v8  ;;  %v1580_v5 = vld [vmem:[%s11699_s1 + $0x2fa0] sm:$0xff]  ;;  %v1585_v8 = vld [vmem:[%s11699_s1 + $0x2fc8] sm:$0xff] }
 0x2eb   :  { %v5159_v10 = vpack.c.bf16 %v1580_v5, %v1576_v4  ;;  %v1618_v4 = vld [vmem:[%s11699_s1 + $0x30d0] sm:$0xff]  ;;  %v5961_v5 = vpack.c.bf16 %v1623_v41, %v1619_v25 }
 0x2ec   :  { %5140 = vmatpush1.bf16.msra.mxu0 %v5139_v16  ;;  %v5161_v16 = vpack.c.bf16 %v1589_v9, %v1585_v8  ;;  %v5963_v9 = vpack.c.bf16 %v1622_v6, %v1618_v4  ;;  %v3677_v6 = vld [vmem:[%s11701_s3 + $0x130] sm:$0xff] }
 0x2ed   :  { %5924 = vmatpush1.bf16.msra.mxu1 %v5923_v17  ;;  %5142 = vmatprep.subr.bf16.mxu0 %v5141_v18  ;;  %v1584_v17 = vld [vmem:[%s11699_s1 + $0x2fc0] sm:$0xff] }
 0x2ee   :  { %5926 = vmatprep.subr.bf16.mxu1 %v5925_v51  ;;  %v1588_v18 = vld [vmem:[%s11699_s1 + $0x2fe0] sm:$0xff]  ;;  %v1593_v51 = vld [vmem:[%s11699_s1 + $0x3008] sm:$0xff] }
 0x2ef   :  { %v5163_v50 = vpack.c.bf16 %v1588_v18, %v1584_v17  ;;  %v4216_v17 = vld.sshfl [vmem:[%s11698_s0 + $0x30] sm:$0x3 pattern:$0x76325410] }
 0x2f0   :  { %5144 = vmatpush1.bf16.msra.mxu0 %v5143_v28  ;;  %v5165_v28 = vpack.c.bf16 %v1597_v3, %v1593_v51  ;;  %v3648_v51 = vld [vmem:[%s11701_s3 + $0x48] sm:$0xff]  ;;  %v3650_v3 = vld [vmem:[%s11701_s3 + $0x58] sm:$0xff] }
 0x2f1   :  { %5928 = vmatpush1.bf16.msra.mxu1 %v5927_v30  ;;  %5146 = vmatprep.subr.bf16.mxu0 %v5145_v31  ;;  %v1592_v30 = vld [vmem:[%s11699_s1 + $0x3000] sm:$0xff]  ;;  %v5973_v23 = vpack.c.bf16 %v3650_v3, %v3648_v51 }
 0x2f2   :  { %5930 = vmatprep.subr.bf16.mxu1 %v5929_v14  ;;  %v1596_v31 = vld [vmem:[%s11699_s1 + $0x3020] sm:$0xff]  ;;  %v1601_v14 = vld [vmem:[%s11699_s1 + $0x3048] sm:$0xff] }
 0x2f3   :  { %v5167_v2 = vpack.c.bf16 %v1596_v31, %v1592_v30  ;;  %v3654_v30 = vld [vmem:[%s11701_s3 + $0x78] sm:$0xff] }
 0x2f4   :  { %5148 = vmatpush1.bf16.msra.mxu0 %v5147_v37  ;;  %v5169_v37 = vpack.c.bf16 %v1605_v12, %v1601_v14  ;;  %v3656_v14 = vld [vmem:[%s11701_s3 + $0x88] sm:$0xff]  ;;  %v3658_v12 = vld [vmem:[%s11701_s3 + $0x98] sm:$0xff] }
 0x2f5   :  { %5932 = vmatpush1.bf16.msra.mxu1 %v5931_v38  ;;  %5150 = vmatprep.subr.bf16.mxu0 %v5149_v42  ;;  %v1600_v38 = vld [vmem:[%s11699_s1 + $0x3040] sm:$0xff]  ;;  %v5981_v36 = vpack.c.bf16 %v3658_v12, %v3656_v14 }
 0x2f6   :  { %5934 = vmatprep.subr.bf16.mxu1 %v5933_v40  ;;  %v1604_v42 = vld [vmem:[%s11699_s1 + $0x3060] sm:$0xff]  ;;  %v1609_v40 = vld [vmem:[%s11699_s1 + $0x3088] sm:$0xff] }
 0x2f7   :  { %v5171_v26 = vpack.c.bf16 %v1604_v42, %v1600_v38  ;;  %v3662_v38 = vld [vmem:[%s11701_s3 + $0xb8] sm:$0xff] }
 0x2f8   :  { %5152 = vmatpush1.bf16.msra.mxu0 %v5151_v49  ;;  %v5173_v49 = vpack.c.bf16 %v1613_v47, %v1609_v40  ;;  %v3664_v40 = vld [vmem:[%s11701_s3 + $0xc8] sm:$0xff]  ;;  %v3666_v47 = vld [vmem:[%s11701_s3 + $0xd8] sm:$0xff] }
 0x2f9   :  { %5936 = vmatpush1.bf16.msra.mxu1 %v5935_v53  ;;  %5154 = vmatprep.subr.bf16.mxu0 %v5153_v54  ;;  %v1608_v53 = vld [vmem:[%s11699_s1 + $0x3080] sm:$0xff]  ;;  %v5989_v13 = vpack.c.bf16 %v3666_v47, %v3664_v40  ;;  %v3805_v40 = vld [vmem:[%s11703_s5 + $0x88] sm:$0xff] }
 0x2fa   :  { %5938 = vmatprep.subr.bf16.mxu1 %v5937_v58  ;;  %v1612_v54 = vld [vmem:[%s11699_s1 + $0x30a0] sm:$0xff]  ;;  %v1621_v58 = vld [vmem:[%s11699_s1 + $0x30e8] sm:$0xff] }
 0x2fb   :  { %v5175_v60 = vpack.c.bf16 %v1612_v54, %v1608_v53  ;;  %v3670_v53 = vld [vmem:[%s11701_s3 + $0xf8] sm:$0xff]  ;;  %v3788_v47 = vld [vmem:[%s11703_s5] sm:$0xff] }
 0x2fc   :  { %5156 = vmatpush1.bf16.msra.mxu0 %v5155_v24  ;;  %v5177_v24 = vpack.c.bf16 %v1621_v58, %v1617_v57  ;;  %v3672_v57 = vld [vmem:[%s11701_s3 + $0x108] sm:$0xff]  ;;  %v3674_v58 = vld [vmem:[%s11701_s3 + $0x118] sm:$0xff] }
 0x2fd   :  { %5940 = vmatpush1.bf16.msra.mxu1 %v5939_v0  ;;  %5158 = vmatprep.subr.bf16.mxu0 %v5157_v1  ;;  %v1616_v0 = vld [vmem:[%s11699_s1 + $0x30c0] sm:$0xff]  ;;  %v5997_v41 = vpack.c.bf16 %v3674_v58, %v3672_v57 }
 0x2fe   :  { %5942 = vmatprep.subr.bf16.mxu1 %v5941_v7  ;;  %v1620_v1 = vld [vmem:[%s11699_s1 + $0x30e0] sm:$0xff]  ;;  %v3640_v7 = vld [vmem:[%s11701_s3 + $0x8] sm:$0xff] }
 0x2ff   :  { %v5179_v8 = vpack.c.bf16 %v1620_v1, %v1616_v0  ;;  %v5965_v39 = vpack.c.bf16 %v3642_v52, %v3640_v7  ;;  %v3678_v0 = vld [vmem:[%s11701_s3 + $0x138] sm:$0xff]  ;;  %v3680_v7 = vld [vmem:[%s11701_s3 + $0x148] sm:$0xff] }
 0x300   :  { %5160 = vmatpush1.bf16.msra.mxu0 %v5159_v10  ;;  %v3641_v10 = vld [vmem:[%s11701_s3 + $0x10] sm:$0xff]  ;;  %v3682_v52 = vld [vmem:[%s11701_s3 + $0x158] sm:$0xff] }
 0x301   :  { %5944 = vmatpush1.bf16.msra.mxu1 %v5943_v15  ;;  %5162 = vmatprep.subr.bf16.mxu0 %v5161_v16  ;;  %v3644_v15 = vld [vmem:[%s11701_s3 + $0x28] sm:$0xff]  ;;  %v3646_v16 = vld [vmem:[%s11701_s3 + $0x38] sm:$0xff]  ;;  %v5967_v18 = vpack.c.bf16 %v3641_v10, %v3639_v46  ;;  %v3681_v46 = vld [vmem:[%s11701_s3 + $0x150] sm:$0xff] }
 0x302   :  { %5946 = vmatprep.subr.bf16.mxu1 %v5945_v20  ;;  %v5969_v19 = vpack.c.bf16 %v3646_v16, %v3644_v15  ;;  %v3643_v20 = vld [vmem:[%s11701_s3 + $0x20] sm:$0xff]  ;;  %v3684_v10 = vld [vmem:[%s11701_s3 + $0x168] sm:$0xff]  ;;  %v3686_v15 = vld [vmem:[%s11701_s3 + $0x178] sm:$0xff] }
 0x303   :  { %v5971_v22 = vpack.c.bf16 %v3645_v21, %v3643_v20  ;;  %v3688_v20 = vld [vmem:[%s11701_s3 + $0x188] sm:$0xff]  ;;  %v3690_v21 = vld [vmem:[%s11701_s3 + $0x198] sm:$0xff] }
 0x304   :  { %5164 = vmatpush1.bf16.msra.mxu0 %v5163_v50  ;;  %v3647_v50 = vld [vmem:[%s11701_s3 + $0x40] sm:$0xff]  ;;  %v6013_v3 = vpack.c.bf16 %v3690_v21, %v3688_v20 }
 0x305   :  { %5948 = vmatpush1.bf16.msra.mxu1 %v5947_v27  ;;  %5166 = vmatprep.subr.bf16.mxu0 %v5165_v28  ;;  %v3649_v27 = vld [vmem:[%s11701_s3 + $0x50] sm:$0xff]  ;;  %v3652_v28 = vld [vmem:[%s11701_s3 + $0x68] sm:$0xff] }
 0x306   :  { %5950 = vmatprep.subr.bf16.mxu1 %v5949_v33  ;;  %v5975_v31 = vpack.c.bf16 %v3649_v27, %v3647_v50  ;;  %v5977_v32 = vpack.c.bf16 %v3654_v30, %v3652_v28  ;;  %v3651_v33 = vld [vmem:[%s11701_s3 + $0x60] sm:$0xff]  ;;  %v3692_v50 = vld [vmem:[%s11701_s3 + $0x1a8] sm:$0xff]  ;;  %v3694_v27 = vld [vmem:[%s11701_s3 + $0x1b8] sm:$0xff] }
 0x307   :  { %2635 = vmatmul.mubr.f32.vlgmr.msra.gmra.mrb[0].mxu0 %v10694_v29  ;;  %v5979_v35 = vpack.c.bf16 %v3653_v34, %v3651_v33  ;;  %v6017_v30 = vpack.c.bf16 %v3694_v27, %v3692_v50  ;;  %v3696_v33 = vld [vmem:[%s11701_s3 + $0x1c8] sm:$0xff]  ;;  %v3698_v34 = vld [vmem:[%s11701_s3 + $0x1d8] sm:$0xff]  ;;  %v11437_v50 = vld [vmem:[%s11700_s2] sm:$0xf]  ;;  %v1632_v27 = vsub.s32 1, %v6563_v62 }
 0x308   :  { %5168 = vmatpush1.bf16.msra.mxu0 %v5167_v2  ;;  %3558 = vmatmul.mubr.f32.vlgmr.msra.gmra.mrb[0].mxu1 %v10694_v29  ;;  %v1614_v29 = vld [vmem:[%s11699_s1 + $0x30b0] sm:$0xff]  ;;  %v3655_v2 = vld [vmem:[%s11701_s3 + $0x80] sm:$0xff]  ;;  %v6021_v12 = vpack.c.bf16 %v3698_v34, %v3696_v33 }
 0x309   :  { %5952 = vmatpush1.bf16.msra.mxu1 %v5951_v63  ;;  %5170 = vmatprep.subr.bf16.mxu0 %v5169_v37  ;;  %v5959_v61 = vpack.c.bf16 %v1614_v29, %v1610_v55  ;;  %v3657_v63 = vld [vmem:[%s11701_s3 + $0x90] sm:$0xff]  ;;  %v3660_v37 = vld [vmem:[%s11701_s3 + $0xa8] sm:$0xff] }
 0x30a   :  { %5954 = vmatprep.subr.bf16.mxu1 %v5953_v44  ;;  %2705 = vmatprep.mubr.f32.mxu0 %v6229_v59  ;;  %v5983_v42 = vpack.c.bf16 %v3657_v63, %v3655_v2  ;;  %v5985_v43 = vpack.c.bf16 %v3662_v38, %v3660_v37  ;;  %v3659_v44 = vld [vmem:[%s11701_s3 + $0xa0] sm:$0xff]  ;;  %v3669_v29 = vld [vmem:[%s11701_s3 + $0xf0] sm:$0xff]  ;;  %v3700_v63 = vld [vmem:[%s11701_s3 + $0x1e8] sm:$0xff] }
 0x30b   :  { %3628 = vmatprep.mubr.f32.mxu1 %v6229_v59  ;;  %v5987_v48 = vpack.c.bf16 %v3661_v45, %v3659_v44  ;;  %v3702_v37 = vld [vmem:[%s11701_s3 + $0x1f8] sm:$0xff]  ;;  %v3804_v45 = vld [vmem:[%s11703_s5 + $0x80] sm:$0xff] }
 0x30c   :  { %5172 = vmatpush1.bf16.msra.mxu0 %v5171_v26  ;;  %v3663_v26 = vld [vmem:[%s11701_s3 + $0xc0] sm:$0xff]  ;;  %v6025_v38 = vpack.c.bf16 %v3702_v37, %v3700_v63  ;;  %v3819_v63 = vld [vmem:[%s11703_s5 + $0xf8] sm:$0xff] }
 0x30d   :  { %5956 = vmatpush1.bf16.msra.mxu1 %v5955_v11  ;;  %5174 = vmatprep.subr.bf16.mxu0 %v5173_v49  ;;  %v3665_v11 = vld [vmem:[%s11701_s3 + $0xd0] sm:$0xff]  ;;  %v3668_v49 = vld [vmem:[%s11701_s3 + $0xe8] sm:$0xff] }
 0x30e   :  { %5958 = vmatprep.subr.bf16.mxu1 %v5957_v56  ;;  %v5991_v54 = vpack.c.bf16 %v3665_v11, %v3663_v26  ;;  %v5993_v55 = vpack.c.bf16 %v3670_v53, %v3668_v49  ;;  %v3667_v56 = vld [vmem:[%s11701_s3 + $0xe0] sm:$0xff]  ;;  %v3806_v26 = vld [vmem:[%s11703_s5 + $0x90] sm:$0xff]  ;;  %v3807_v11 = vld [vmem:[%s11703_s5 + $0x98] sm:$0xff] }
 0x30f   :  { %v5995_v25 = vpack.c.bf16 %v3669_v29, %v3667_v56  ;;  %v6033_v53 = vpack.c.bf16 %v3807_v11, %v3806_v26  ;;  %v3808_v56 = vld [vmem:[%s11703_s5 + $0xa0] sm:$0xff]  ;;  %v3809_v29 = vld [vmem:[%s11703_s5 + $0xa8] sm:$0xff] }
 0x310   :  { %5176 = vmatpush1.bf16.msra.mxu0 %v5175_v60  ;;  %v3671_v60 = vld [vmem:[%s11701_s3 + $0x100] sm:$0xff]  ;;  %v6037_v58 = vpack.c.bf16 %v3809_v29, %v3808_v56  ;;  %v3898_v56 = vld [vmem:[%s11705_s7 + $0x8] sm:$0xff] }
 0x311   :  { %5960 = vmatpush1.bf16.msra.mxu1 %v5959_v61  ;;  %5178 = vmatprep.subr.bf16.mxu0 %v5177_v24  ;;  %v3673_v61 = vld [vmem:[%s11701_s3 + $0x110] sm:$0xff]  ;;  %v3676_v24 = vld [vmem:[%s11701_s3 + $0x128] sm:$0xff] }
 0x312   :  { %5962 = vmatprep.subr.bf16.mxu1 %v5961_v5  ;;  %v5999_v1 = vpack.c.bf16 %v3673_v61, %v3671_v60  ;;  %v6001_v4 = vpack.c.bf16 %v3678_v0, %v3676_v24  ;;  %v3675_v5 = vld [vmem:[%s11701_s3 + $0x120] sm:$0xff]  ;;  %v3810_v60 = vld [vmem:[%s11703_s5 + $0xb0] sm:$0xff]  ;;  %v3811_v61 = vld [vmem:[%s11703_s5 + $0xb8] sm:$0xff] }
 0x313   :  { %v6041_v0 = vpack.c.bf16 %v3811_v61, %v3810_v60 }
 0x314   :  { %5180 = vmatpush1.bf16.msra.mxu0 %v5179_v8  ;;  %v6003_v8 = vpack.c.bf16 %v3677_v6, %v3675_v5  ;;  %v3812_v5 = vld [vmem:[%s11703_s5 + $0xc0] sm:$0xff]  ;;  %v3813_v6 = vld [vmem:[%s11703_s5 + $0xc8] sm:$0xff] }
 0x315   :  { %5964 = vmatpush1.bf16.msra.mxu1 %v5963_v9  ;;  %5966 = vmatprep.subr.bf16.mxu0 %v5965_v39  ;;  %v6005_v9 = vpack.c.bf16 %v3682_v52, %v3680_v7  ;;  %v3679_v39 = vld [vmem:[%s11701_s3 + $0x140] sm:$0xff]  ;;  %v6045_v52 = vpack.c.bf16 %v3813_v6, %v3812_v5  ;;  %v3918_v6 = vld [vmem:[%s11705_s7 + $0xa8] sm:$0xff] }
 0x316   :  { %v6007_v16 = vpack.c.bf16 %v3681_v46, %v3679_v39  ;;  %v3814_v39 = vld [vmem:[%s11703_s5 + $0xd0] sm:$0xff]  ;;  %v3815_v46 = vld [vmem:[%s11703_s5 + $0xd8] sm:$0xff]  ;;  %v3917_v5 = vld [vmem:[%s11705_s7 + $0xa0] sm:$0xff] }
 0x317   :  { %4217 = vmatmul.mubr.msk.f32.vlgmr.msra.gmra.mrb[0].mxu0 %vm1786_vm0, %v4216_v17 }
 0x318   :  { %4218 = vmatmul.mubr.msk.f32.vlgmr.msra.gmra.mrb[0].mxu1 %vm1786_vm0, %v4216_v17  ;;  %5968 = vmatpush1.bf16.msra.mxu0 %v5967_v18  ;;  %v6009_v17 = vpack.c.bf16 %v3686_v15, %v3684_v10  ;;  %v3683_v18 = vld [vmem:[%s11701_s3 + $0x160] sm:$0xff]  ;;  %v6049_v15 = vpack.c.bf16 %v3815_v46, %v3814_v39  ;;  %v3919_v39 = vld [vmem:[%s11705_s7 + $0xb0] sm:$0xff]  ;;  %v3920_v46 = vld [vmem:[%s11705_s7 + $0xb8] sm:$0xff] }
 0x319   :  { %5970 = vmatprep.subr.bf16.mxu0 %v5969_v19  ;;  %v3685_v19 = vld [vmem:[%s11701_s3 + $0x170] sm:$0xff] }
 0x31a   :  { %v6011_v51 = vpack.c.bf16 %v3685_v19, %v3683_v18  ;;  %v3816_v18 = vld [vmem:[%s11703_s5 + $0xe0] sm:$0xff]  ;;  %v3817_v19 = vld [vmem:[%s11703_s5 + $0xe8] sm:$0xff] }
 0x31b   :  { %v6053_v21 = vpack.c.bf16 %v3817_v19, %v3816_v18  ;;  %v3921_v18 = vld [vmem:[%s11705_s7 + $0xc0] sm:$0xff]  ;;  %v3922_v19 = vld [vmem:[%s11705_s7 + $0xc8] sm:$0xff] }
 0x31c   :  { %5972 = vmatpush1.bf16.msra.mxu0 %v5971_v22  ;;  %v3687_v22 = vld [vmem:[%s11701_s3 + $0x180] sm:$0xff] }
 0x31d   :  { %5974 = vmatprep.subr.bf16.mxu0 %v5973_v23  ;;  %v3689_v23 = vld [vmem:[%s11701_s3 + $0x190] sm:$0xff] }
 0x31e   :  { %v6015_v28 = vpack.c.bf16 %v3689_v23, %v3687_v22  ;;  %v1628_v23 = vsub.s32 0, %v6563_v62 }
 0x320   :  { %5976 = vmatpush1.bf16.msra.mxu0 %v5975_v31  ;;  %v3691_v31 = vld [vmem:[%s11701_s3 + $0x1a0] sm:$0xff] }
 0x321   :  { %5978 = vmatprep.subr.bf16.mxu0 %v5977_v32  ;;  %v3693_v32 = vld [vmem:[%s11701_s3 + $0x1b0] sm:$0xff] }
 0x322   :  { %v6019_v14 = vpack.c.bf16 %v3693_v32, %v3691_v31 }
 0x324   :  { %5980 = vmatpush1.bf16.msra.mxu0 %v5979_v35  ;;  %v3695_v35 = vld [vmem:[%s11701_s3 + $0x1c0] sm:$0xff] }
 0x325   :  { %5982 = vmatprep.subr.bf16.mxu0 %v5981_v36  ;;  %v3697_v36 = vld [vmem:[%s11701_s3 + $0x1d0] sm:$0xff] }
 0x326   :  { %v6023_v2 = vpack.c.bf16 %v3697_v36, %v3695_v35 }
 0x328   :  { %5984 = vmatpush1.bf16.msra.mxu0 %v5983_v42  ;;  %v3699_v42 = vld [vmem:[%s11701_s3 + $0x1e0] sm:$0xff] }
 0x329   :  { %5986 = vmatprep.subr.bf16.mxu0 %v5985_v43  ;;  %v3701_v43 = vld [vmem:[%s11701_s3 + $0x1f0] sm:$0xff] }
 0x32a   :  { %v6027_v44 = vpack.c.bf16 %v3701_v43, %v3699_v42  ;;  %v3803_v42 = vld [vmem:[%s11703_s5 + $0x78] sm:$0xff] }
 0x32c   :  { %5988 = vmatpush1.bf16.msra.mxu0 %v5987_v48  ;;  %v6029_v48 = vpack.c.bf16 %v3805_v40, %v3804_v45  ;;  %v3914_v45 = vld [vmem:[%s11705_s7 + $0x88] sm:$0xff] }
 0x32d   :  { %5990 = vmatprep.subr.bf16.mxu0 %v5989_v13  ;;  %v3789_v13 = vld [vmem:[%s11703_s5 + $0x8] sm:$0xff] }
 0x32e   :  { %v6031_v49 = vpack.c.bf16 %v3789_v13, %v3788_v47  ;;  %6030 = vmatprep.subr.bf16.mxu1 %v6029_v48  ;;  %v1640_v47 = vsub.s32 3, %v6563_v62  ;;  %v3703_v48 = vld [vmem:[%s11702_s4] sm:$0x3] }
 0x32f   :  { %v3708_v13 = vrot.slane %v3703_v48, %v1628_v23  ;;  %v3712_v11 = vrot.slane %v3703_v48, %v1632_v27  ;;  %v4008_v48 = vld [vmem:[%s11707_s9 + $0x8] sm:$0xff] }
 0x330   :  { %5992 = vmatpush1.bf16.msra.mxu0 %v5991_v54  ;;  %v3790_v54 = vld [vmem:[%s11703_s5 + $0x10] sm:$0xff]  ;;  %6032 = vmatpush3.bf16.msra.mxu1 %v6031_v49  ;;  %v1641_v26 = vrot.slane %v11437_v50, %v1640_v47 }
 0x331   :  { %5994 = vmatprep.subr.bf16.mxu0 %v5993_v55  ;;  %v3791_v55 = vld [vmem:[%s11703_s5 + $0x18] sm:$0xff]  ;;  %6034 = vmatprep.subr.bf16.mxu1 %v6033_v53 }
 0x332   :  { %v6035_v57 = vpack.c.bf16 %v3791_v55, %v3790_v54  ;;  %v3897_v55 = vld [vmem:[%s11705_s7] sm:$0xff] }
 0x333   :  { %v6063_v60 = vpack.c.bf16 %v3898_v56, %v3897_v55  ;;  %v4013_v56 = vld [vmem:[%s11707_s9 + $0x30] sm:$0xff] }
 0x334   :  { %5996 = vmatpush1.bf16.msra.mxu0 %v5995_v25  ;;  %v3792_v25 = vld [vmem:[%s11703_s5 + $0x20] sm:$0xff]  ;;  %6036 = vmatpush3.bf16.msra.mxu1 %v6035_v57 }
 0x335   :  { %5998 = vmatprep.subr.bf16.mxu0 %v5997_v41  ;;  %v3793_v41 = vld [vmem:[%s11703_s5 + $0x28] sm:$0xff]  ;;  %6038 = vmatprep.subr.bf16.mxu1 %v6037_v58  ;;  %v3915_v58 = vld [vmem:[%s11705_s7 + $0x90] sm:$0xff] }
 0x336   :  { %v6039_v24 = vpack.c.bf16 %v3793_v41, %v3792_v25  ;;  %v3916_v25 = vld [vmem:[%s11705_s7 + $0x98] sm:$0xff] }
 0x338   :  { %6000 = vmatpush1.bf16.msra.mxu0 %v5999_v1  ;;  %v3794_v1 = vld [vmem:[%s11703_s5 + $0x30] sm:$0xff]  ;;  %6040 = vmatpush3.bf16.msra.mxu1 %v6039_v24  ;;  %v6065_v24 = vpack.c.bf16 %v3916_v25, %v3915_v58  ;;  %v4015_v58 = vld [vmem:[%s11707_s9 + $0x40] sm:$0xff]  ;;  %v4016_v25 = vld [vmem:[%s11707_s9 + $0x48] sm:$0xff] }
 0x339   :  { %6002 = vmatprep.subr.bf16.mxu0 %v6001_v4  ;;  %v3795_v4 = vld [vmem:[%s11703_s5 + $0x38] sm:$0xff]  ;;  %6042 = vmatprep.subr.bf16.mxu1 %v6041_v0  ;;  %v3899_v0 = vld [vmem:[%s11705_s7 + $0x10] sm:$0xff] }
 0x33a   :  { %v6043_v7 = vpack.c.bf16 %v3795_v4, %v3794_v1  ;;  %v3900_v1 = vld [vmem:[%s11705_s7 + $0x18] sm:$0xff] }
 0x33c   :  { %6004 = vmatpush1.bf16.msra.mxu0 %v6003_v8  ;;  %v3796_v8 = vld [vmem:[%s11703_s5 + $0x40] sm:$0xff]  ;;  %6044 = vmatpush3.bf16.msra.mxu1 %v6043_v7  ;;  %v6067_v7 = vpack.c.bf16 %v3900_v1, %v3899_v0  ;;  %v4020_v1 = vld [vmem:[%s11707_s9 + $0x68] sm:$0xff] }
 0x33d   :  { %6006 = vmatprep.subr.bf16.mxu0 %v6005_v9  ;;  %v3797_v9 = vld [vmem:[%s11703_s5 + $0x48] sm:$0xff]  ;;  %6046 = vmatprep.subr.bf16.mxu1 %v6045_v52  ;;  %v6069_v52 = vpack.c.bf16 %v3918_v6, %v3917_v5  ;;  %v4019_v0 = vld [vmem:[%s11707_s9 + $0x60] sm:$0xff]  ;;  %v4021_v5 = vld [vmem:[%s11707_s9 + $0x70] sm:$0xff] }
 0x33e   :  { %v6047_v10 = vpack.c.bf16 %v3797_v9, %v3796_v8  ;;  %v3901_v8 = vld [vmem:[%s11705_s7 + $0x20] sm:$0xff]  ;;  %v3902_v9 = vld [vmem:[%s11705_s7 + $0x28] sm:$0xff]  ;;  %v4022_v6 = vld [vmem:[%s11707_s9 + $0x78] sm:$0xff] }
 0x340   :  { %6008 = vmatpush1.bf16.msra.mxu0 %v6007_v16  ;;  %v3798_v16 = vld [vmem:[%s11703_s5 + $0x50] sm:$0xff]  ;;  %6048 = vmatpush3.bf16.msra.mxu1 %v6047_v10  ;;  %v6071_v10 = vpack.c.bf16 %v3902_v9, %v3901_v8  ;;  %v4102_v8 = vld [vmem:[%s11709_s11 + $0x8] sm:$0xff] }
 0x341   :  { %6010 = vmatprep.subr.bf16.mxu0 %v6009_v17  ;;  %v3799_v17 = vld [vmem:[%s11703_s5 + $0x58] sm:$0xff]  ;;  %6050 = vmatprep.subr.bf16.mxu1 %v6049_v15  ;;  %v6073_v15 = vpack.c.bf16 %v3920_v46, %v3919_v39  ;;  %v4103_v9 = vld [vmem:[%s11709_s11 + $0x10] sm:$0xff] }
 0x342   :  { %v6051_v20 = vpack.c.bf16 %v3799_v17, %v3798_v16  ;;  %v3903_v16 = vld [vmem:[%s11705_s7 + $0x30] sm:$0xff]  ;;  %v3904_v17 = vld [vmem:[%s11705_s7 + $0x38] sm:$0xff] }
 0x343   :  { %v4104_v46 = vld [vmem:[%s11709_s11 + $0x18] sm:$0xff] }
 0x344   :  { %6012 = vmatpush1.bf16.msra.mxu0 %v6011_v51  ;;  %v3800_v51 = vld [vmem:[%s11703_s5 + $0x60] sm:$0xff]  ;;  %6052 = vmatpush3.bf16.msra.mxu1 %v6051_v20  ;;  %v6075_v20 = vpack.c.bf16 %v3904_v17, %v3903_v16  ;;  %v4107_v17 = vld [vmem:[%s11709_s11 + $0x30] sm:$0xff] }
 0x345   :  { %6014 = vmatprep.subr.bf16.mxu0 %v6013_v3  ;;  %v3801_v3 = vld [vmem:[%s11703_s5 + $0x68] sm:$0xff]  ;;  %6054 = vmatprep.subr.bf16.mxu1 %v6053_v21  ;;  %v6077_v21 = vpack.c.bf16 %v3922_v19, %v3921_v18  ;;  %v4108_v18 = vld [vmem:[%s11709_s11 + $0x38] sm:$0xff] }
 0x346   :  { %v6055_v22 = vpack.c.bf16 %v3801_v3, %v3800_v51  ;;  %v3905_v51 = vld [vmem:[%s11705_s7 + $0x40] sm:$0xff]  ;;  %v3906_v3 = vld [vmem:[%s11705_s7 + $0x48] sm:$0xff]  ;;  %v6127_v19 = vpack.c.bf16 %v4108_v18, %v4107_v17 }
 0x348   :  { %6016 = vmatpush1.bf16.msra.mxu0 %v6015_v28  ;;  %6056 = vmatpush3.bf16.msra.mxu1 %v6055_v22  ;;  %v1629_v28 = vrot.slane %v11437_v50, %v1628_v23  ;;  %v3923_v22 = vld [vmem:[%s11705_s7 + $0xd0] sm:$0xff]  ;;  %v3924_v23 = vld [vmem:[%s11705_s7 + $0xd8] sm:$0xff] }
 0x349   :  { %6018 = vmatprep.subr.bf16.mxu0 %v6017_v30  ;;  %v1633_v30 = vrot.slane %v11437_v50, %v1632_v27  ;;  %v6079_v27 = vpack.c.bf16 %v3906_v3, %v3905_v51  ;;  %v4111_v3 = vld [vmem:[%s11709_s11 + $0x50] sm:$0xff] }
 0x34c   :  { %6020 = vmatpush1.bf16.msra.mxu0 %v6019_v14 }
 0x34d   :  { %6022 = vmatprep.subr.bf16.mxu0 %v6021_v12 }
 0x350   :  { %6024 = vmatpush1.bf16.msra.mxu0 %v6023_v2  ;;  %v3818_v2 = vld [vmem:[%s11703_s5 + $0xf0] sm:$0xff] }
 0x351   :  { %6026 = vmatprep.subr.bf16.mxu0 %v6025_v38  ;;  %v6057_v37 = vpack.c.bf16 %v3819_v63, %v3818_v2  ;;  %v3802_v38 = vld [vmem:[%s11703_s5 + $0x70] sm:$0xff]  ;;  %v3910_v2 = vld [vmem:[%s11705_s7 + $0x68] sm:$0xff] }
 0x352   :  { %v6059_v43 = vpack.c.bf16 %v3803_v42, %v3802_v38  ;;  %v3927_v63 = vld [vmem:[%s11705_s7 + $0xf0] sm:$0xff] }
 0x353   :  { %6058 = vmatprep.subr.bf16.mxu1 %v6057_v37  ;;  %v3928_v37 = vld [vmem:[%s11705_s7 + $0xf8] sm:$0xff] }
 0x354   :  { %6028 = vmatpush1.bf16.msra.mxu0 %v6027_v44  ;;  %6060 = vmatpush3.bf16.msra.mxu1 %v6059_v43  ;;  %v3913_v44 = vld [vmem:[%s11705_s7 + $0x80] sm:$0xff]  ;;  %v6089_v42 = vpack.c.bf16 %v3928_v37, %v3927_v63  ;;  %v3911_v43 = vld [vmem:[%s11705_s7 + $0x70] sm:$0xff] }
 0x355   :  { %v6061_v40 = vpack.c.bf16 %v3914_v45, %v3913_v44  ;;  %v3912_v44 = vld [vmem:[%s11705_s7 + $0x78] sm:$0xff] }
 0x356   :  { %v6091_v45 = vpack.c.bf16 %v3912_v44, %v3911_v43  ;;  %v4221_v44 = vld [vmem:[%s11708_s10] ss:$0 sm:$0xff] }
 0x357   :  { %6062 = vmatprep.subr.bf16.mxu1 %v6061_v40 }
 0x3ea   :  { %v2707_v31 = vpop.f32.mrb[0].mxu0 }
 0x3eb   :  { %v6141_v32 = vadd.f32 %v2707_v31, %v1629_v28  ;;  %v11442_v33 = vpop.f32.mrb[0].mxu1  ;;  %v2709_v34 = vpop.f32.mrb[1].mxu0  ;;  %v6081_v28 = vpack.c.bf16 %v3924_v23, %v3923_v22  ;;  %v3908_v31 = vld [vmem:[%s11705_s7 + $0x58] sm:$0xff] }
 0x3ec   :  { %v6142_v14 = vadd.f32 %v2709_v34, %v1633_v30  ;;  %v3632_v12 = vpop.f32.mrb[1].mxu1  ;;  %v3907_v30 = vld [vmem:[%s11705_s7 + $0x50] sm:$0xff]  ;;  %v3926_v34 = vld [vmem:[%s11705_s7 + $0xe8] sm:$0xff]  ;;  %v4112_v22 = vld [vmem:[%s11709_s11 + $0x58] sm:$0xff] }
 0x3ed   :  { %v3635_v36 = vmax.f32 %v6141_v32, 0.0  ;;  %v6144_v29 = vadd.f32 %v3632_v12, %v1641_v26  ;;  %v3925_v32 = vld [vmem:[%s11705_s7 + $0xe0] sm:$0xff]  ;;  %v1636_v12 = vsub.s32 2, %v6563_v62  ;;  %v6230_v26 = vmov 0.0|0.0  }
 0x3ee   :  { %v3636_v35 = vmax.f32 %v6142_v14, 0.0  ;;  %v6083_v14 = vpack.c.bf16 %v3908_v31, %v3907_v30  ;;  %6093 = vmatprep.subr.bf16.mxu0 %v6230_v26  ;;  %v6133_v23 = vpack.c.bf16 %v4112_v22, %v4111_v3 }
 0x3ef   :  { %v3638_v4 = vmax.f32 %v6144_v29, 0.0  ;;  %v1637_v38 = vrot.slane %v11437_v50, %v1636_v12  ;;  %v4007_v50 = vld [vmem:[%s11707_s9] sm:$0xff]  ;;  %v4014_v29 = vld [vmem:[%s11707_s9 + $0x38] sm:$0xff] }
 0x3f0   :  { %3779 = vmatprep.mubr.f32.mxu0 %v3636_v35  ;;  %v6085_v35 = vpack.c.bf16 %v3926_v34, %v3925_v32  ;;  %v4219_v32 = vld [vmem:[%s11704_s6] ss:$0 sm:$0xff] }
 0x3f1   :  { %3780 = vmatmul.mubr.f32.vlgmr.msra.gmra.mrb[2].mxu0 %v3635_v36  ;;  %v3909_v36 = vld [vmem:[%s11705_s7 + $0x60] sm:$0xff]  ;;  %v6143_v40 = vadd.f32 %v11442_v33, %v1637_v38  ;;  %v6094_v33 = vpack.c.bf16 %v4008_v48, %v4007_v50  ;;  %v4115_v38 = vld [vmem:[%s11709_s11 + $0x70] sm:$0xff] }
 0x3f2   :  { %v6087_v62 = vpack.c.bf16 %v3910_v2, %v3909_v36  ;;  %4359 = vmatprep.mubr.msk.f32.mxu0 %vm6231_vm1, %v6229_v59  ;;  %v4220_v36 = vld [vmem:[%s11706_s8] ss:$0 sm:$0xff]  ;;  %s6232_s8 = smov [#allocation3]  }
 0x3f3   :  { %v3637_v47 = vmax.f32 %v6143_v40, 0.0  ;;  %6095 = vmatpush3.bf16.msra.mxu0 %v6094_v33  ;;  %s4204_s30 = sshll.u32 %s6232_s8, 4  ;;  %s4205_s30 = int_to_ptr.vmem [resolvable:$true] %s4204_s30 }
 0x3f4   :  { %6096 = vmatprep.subr.bf16.mxu0 %v6230_v26  ;;  %s6204_s2 = scalar_lea.vmem %s4205_s30, 32  ;;  %p6209_p1 = scmp.lt.s32.totalorder %s4205_s30, %s4205_s30 }
 0x3f5   :  { %p6205_p0 = scmp.ne.s32.totalorder %s4205_s30, %s6204_s2  ;;  %p6210_p2 = scmp.lt.s32.totalorder %s6204_s2, %s6204_s2 }
 0x3f7   :  { %p6211_p3 = por %p6210_p2, %p6209_p1 }
 0x3f9   :  { %p6212_p4 = pnand %p6211_p3, %p6205_p0 }
 0x4c4   :  { %v3781_v49 = vpop.f32.mrb[2].mxu0 }
 0x4c5   :  { %v3782_v53 = vadd.f32 %v3781_v49, %v3708_v13  ;;  %v3783_v54 = vpop.f32.mrb[3].mxu0  ;;  %v4009_v13 = vld [vmem:[%s11707_s9 + $0x10] sm:$0xff] }
 0x4c6   :  { %v3784_v57 = vadd.f32 %v3783_v54, %v3712_v11  ;;  %v4010_v11 = vld [vmem:[%s11707_s9 + $0x18] sm:$0xff]  ;;  %v4012_v54 = vld [vmem:[%s11707_s9 + $0x28] sm:$0xff] }
 0x4c7   :  { %v3786_v61 = vmax.f32 %v3782_v53, 0.0  ;;  %v6097_v49 = vpack.c.bf16 %v4010_v11, %v4009_v13  ;;  %v4011_v53 = vld [vmem:[%s11707_s9 + $0x20] sm:$0xff] }
 0x4c8   :  { %v3787_v41 = vmax.f32 %v3784_v57, 0.0  ;;  %v6100_v55 = vpack.c.bf16 %v4012_v54, %v4011_v53  ;;  %v6103_v57 = vpack.c.bf16 %v4014_v29, %v4013_v56 }
 0x4c9   :  { %6098 = vmatpush3.bf16.msra.mxu0 %v6097_v49 }
 0x4ca   :  { %3891 = vmatprep.mubr.f32.mxu1 %v3787_v41  ;;  %6099 = vmatprep.subr.bf16.mxu0 %v6230_v26  ;;  %v6106_v41 = vpack.c.bf16 %v4016_v25, %v4015_v58 }
 0x4cb   :  { %3892 = vmatmul.mubr.f32.vlgmr.msra.gmra.mrb[2].mxu1 %v3786_v61  ;;  %v4018_v61 = vld [vmem:[%s11707_s9 + $0x58] sm:$0xff] }
 0x4cc   :  { %6064 = vmatpush3.bf16.msra.mxu1 %v6063_v60  ;;  %4000 = vmatprep.mubr.f32.mxu1 %v3638_v4  ;;  %v4017_v60 = vld [vmem:[%s11707_s9 + $0x50] sm:$0xff]  ;;  %v6112_v4 = vpack.c.bf16 %v4020_v1, %v4019_v0 }
 0x4cd   :  { %6066 = vmatprep.subr.bf16.mxu1 %v6065_v24  ;;  %6101 = vmatpush3.bf16.msra.mxu0 %v6100_v55  ;;  %v6109_v24 = vpack.c.bf16 %v4018_v61, %v4017_v60 }
 0x4ce   :  { %6102 = vmatprep.subr.bf16.mxu0 %v6230_v26 }
 0x4d0   :  { %6068 = vmatpush3.bf16.msra.mxu1 %v6067_v7  ;;  %v6115_v7 = vpack.c.bf16 %v4022_v6, %v4021_v5 }
 0x4d1   :  { %6070 = vmatprep.subr.bf16.mxu1 %v6069_v52  ;;  %6104 = vmatpush3.bf16.msra.mxu0 %v6103_v57  ;;  %v4101_v52 = vld [vmem:[%s11709_s11] sm:$0xff] }
 0x4d2   :  { %6105 = vmatprep.subr.bf16.mxu0 %v6230_v26  ;;  %v6118_v39 = vpack.c.bf16 %v4102_v8, %v4101_v52 }
 0x4d4   :  { %6072 = vmatpush3.bf16.msra.mxu1 %v6071_v10  ;;  %v6121_v10 = vpack.c.bf16 %v4104_v46, %v4103_v9 }
 0x4d5   :  { %6074 = vmatprep.subr.bf16.mxu1 %v6073_v15  ;;  %6107 = vmatpush3.bf16.msra.mxu0 %v6106_v41  ;;  %v4106_v15 = vld [vmem:[%s11709_s11 + $0x28] sm:$0xff] }
 0x4d6   :  { %6108 = vmatprep.subr.bf16.mxu0 %v6230_v26 }
 0x4d8   :  { %6076 = vmatpush3.bf16.msra.mxu1 %v6075_v20  ;;  %v4109_v20 = vld [vmem:[%s11709_s11 + $0x40] sm:$0xff] }
 0x4d9   :  { %6078 = vmatprep.subr.bf16.mxu1 %v6077_v21  ;;  %6110 = vmatpush3.bf16.msra.mxu0 %v6109_v24  ;;  %v4110_v21 = vld [vmem:[%s11709_s11 + $0x48] sm:$0xff] }
 0x4da   :  { %6111 = vmatprep.subr.bf16.mxu0 %v6230_v26  ;;  %v6130_v51 = vpack.c.bf16 %v4110_v21, %v4109_v20 }
 0x4dc   :  { %6080 = vmatpush3.bf16.msra.mxu1 %v6079_v27  ;;  %v4113_v27 = vld [vmem:[%s11709_s11 + $0x60] sm:$0xff] }
 0x4dd   :  { %6082 = vmatprep.subr.bf16.mxu1 %v6081_v28  ;;  %6113 = vmatpush3.bf16.msra.mxu0 %v6112_v4  ;;  %v4114_v28 = vld [vmem:[%s11709_s11 + $0x68] sm:$0xff] }
 0x4de   :  { %6114 = vmatprep.subr.bf16.mxu0 %v6230_v26  ;;  %v6136_v30 = vpack.c.bf16 %v4114_v28, %v4113_v27 }
 0x4e0   :  { %6084 = vmatpush3.bf16.msra.mxu1 %v6083_v14 }
 0x4e1   :  { %6086 = vmatprep.subr.bf16.mxu1 %v6085_v35  ;;  %6116 = vmatpush3.bf16.msra.mxu0 %v6115_v7 }
 0x4e4   :  { %6088 = vmatpush3.bf16.msra.mxu1 %v6087_v62 }
 0x4e5   :  { %6090 = vmatprep.subr.bf16.mxu1 %v6089_v42  ;;  %v4116_v42 = vld [vmem:[%s11709_s11 + $0x78] sm:$0xff] }
 0x4e6   :  { %v6139_v43 = vpack.c.bf16 %v4116_v42, %v4115_v38 }
 0x4e8   :  { %6092 = vmatpush3.bf16.msra.mxu1 %v6091_v45 }
 0x4e9   :  { %6117 = vmatprep.subr.bf16.mxu1 %v6230_v26 }
 0x4eb   :  { %4001 = vmatmul.mubr.f32.vlgmr.msra.gmra.mrb[4].mxu1 %v3637_v47 }
 0x4ec   :  { %4394 = vmatprep.mubr.msk.f32.mxu1 %vm6231_vm1, %v6229_v59  ;;  %6119 = vmatpush3.bf16.msra.mxu1 %v6118_v39  ;;  %v4105_v59 = vld [vmem:[%s11709_s11 + $0x20] sm:$0xff] }
 0x4ed   :  { %6120 = vmatprep.subr.bf16.mxu1 %v6230_v26  ;;  %v6124_v16 = vpack.c.bf16 %v4106_v15, %v4105_v59 }
 0x4f0   :  { %6122 = vmatpush3.bf16.msra.mxu1 %v6121_v10 }
 0x4f1   :  { %6123 = vmatprep.subr.bf16.mxu1 %v6230_v26 }
 0x4f4   :  { %6125 = vmatpush3.bf16.msra.mxu1 %v6124_v16 }
 0x4f5   :  { %6126 = vmatprep.subr.bf16.mxu1 %v6230_v26 }
 0x4f8   :  { %6128 = vmatpush3.bf16.msra.mxu1 %v6127_v19 }
 0x4f9   :  { %6129 = vmatprep.subr.bf16.mxu1 %v6230_v26 }
 0x4fc   :  { %6131 = vmatpush3.bf16.msra.mxu1 %v6130_v51 }
 0x4fd   :  { %6132 = vmatprep.subr.bf16.mxu1 %v6230_v26 }
 0x500   :  { %6134 = vmatpush3.bf16.msra.mxu1 %v6133_v23 }
 0x501   :  { %6135 = vmatprep.subr.bf16.mxu1 %v6230_v26 }
 0x504   :  { %6137 = vmatpush3.bf16.msra.mxu1 %v6136_v30 }
 0x505   :  { %6138 = vmatprep.subr.bf16.mxu1 %v6230_v26 }
 0x508   :  { %6140 = vmatpush3.bf16.msra.mxu1 %v6139_v43 }
 0x59e   :  { %v4255_v31 = vpop.f32.mrb[2].mxu1 }
 0x59f   :  { %v4256_v34 = vpop.f32.mrb[3].mxu1 }
 0x5a0   :  { %v4257_v14 = vadd.f32 %v4256_v34, %v4255_v31 }
 0x5a2   :  { %v3894_v12 = vadd.f32 %v4257_v14, %v4219_v32 }
 0x5a4   :  { %4195 = vst.msk [vmem:[#allocation3] sm:$0x3] %vm4194_vm2, %v3894_v12 }
 0x5be   :  { %v4290_v35 = vpop.f32.mrb[4].mxu1 }
 0x5bf   :  { %v4291_v2 = vpop.f32.mrb[5].mxu1 }
 0x5c0   :  { %v4292_v63 = vadd.f32 %v4291_v2, %v4290_v35 }
 0x5c2   :  { %v4003_v37 = vadd.f32 %v4292_v63, %v4220_v36 }
 0x5c4   :  { %v4006_v62 = vmax.f32 %v4003_v37, 0.0 }
 0x5c6   :  { %4360 = vmatmul.mubr.f32.vlgmr.msra.gmra.mrb[4].mxu0 %v4006_v62 }
 0x699   :  { %v4096_v45 = vpop.f32.mrb[4].mxu0 }
 0x69a   :  { %v4097_v40 = vadd.f32 %v4221_v44, %v4096_v45  ;;  %v4361_v47 = vpop.f32.mrb[5].mxu0 }
 0x69c   :  { %v4100_v50 = vmax.f32 %v4097_v40, 0.0 }
 0x69e   :  { %4395 = vmatmul.mubr.f32.vlgmr.msra.gmra.mrb[6].mxu1 %v4100_v50 }
 0x69f   :  { %6215 = shalt.err (!%p6212_p4)
}
 0x6a0   :  { %s6216_s16 = scalar_lea.hbm %s11711_s13, 32 }
 0x6a1   :  { %p6217_p5 = scmp.ne.s32.totalorder %s11711_s13, %s6216_s16  ;;  %p6220_p6 = scmp.lt.u32.totalorder %s6216_s16, %s11711_s13 }
 0x6a3   :  { %p6222_p7 = pnand %p6220_p6, %p6217_p5 }
 0x6a5   :  { %6225 = shalt.err (!%p6222_p7)
}
 0x6a6   :  { %4207 = dma.vmem_to_hbm [thread:$0]  %s4205_s30, 32, %s11711_s13, [#allocation4]   ;;  %v4222_v48 = vld [vmem:[#allocation2] ss:$0 sm:$0xff]  ;;  %vm4196_vm3 = vcmask 1024  }
 0x771   :  { %v4190_v13 = vpop.f32.mrb[6].mxu1 }
 0x772   :  { %v4191_v26 = vadd.f32 %v4222_v48, %v4190_v13  ;;  %v4396_v33 = vpop.f32.mrb[7].mxu1 }
 0x774   :  { %4197 = vst.msk [vmem:[%s11712_s14] sm:$0x3] %vm4196_vm3, %v4191_v26 }
 0x775   :  { %6226 = dma.done.wait [#allocation4], 32  }
 0x776   :  { %6227 = vsyncadd [#allocation4], 4294967264 }
 0x777   :  { %4215 = vsyncpa [#allocation4], 1 }

</bundles_post_ra>
